<compile_context>
chip_gen: v7x
topology: tpu7x:2x2x1
jax: 0.10.0
libtpu: 0.0.40
codegen_flags: <defaults>
</compile_context>

<pallas_src>
import functools

import jax
import jax.numpy as jnp
from jax.experimental import pallas as pl
from jax.experimental.pallas import tpu as pltpu


_CONV_CFG = [  # (kernel, stride, pad)
    (4, 2, 1), (4, 2, 1), (2, 2, 1), (2, 2, 1), (4, 1, 0)
]
_C_OUT = [64, 128, 256, 512, 1]
_BN_EPS = 1e-5


# ----------------------------------------------------------------------------
# Pallas kernel 1: fused conv-matmul + BatchNorm(batch stats) + LeakyReLU(0.2)
# ----------------------------------------------------------------------------
def _conv_bn_lrelu_kernel(a_ref, w_ref, g_ref, b_ref, o_ref, *, inv_m):
    # a_ref: [Mp, K] bf16 (padded rows are zero), w_ref: [K, tn] bf16
    # g_ref/b_ref: [1, tn] f32, o_ref: [Mp, tn] bf16
    y = jnp.dot(a_ref[...], w_ref[...],
                preferred_element_type=jnp.float32)          # MXU, f32 acc

    # Batch stats over the true M rows.  Padded rows are zero, so they add 0
    # to both sums and no row mask is needed.
    s1 = jnp.sum(y, axis=0, keepdims=True)
    s2 = jnp.sum(y * y, axis=0, keepdims=True)
    mean = s1 * inv_m
    var = s2 * inv_m - mean * mean                            # biased variance
    scale = g_ref[...] * jax.lax.rsqrt(var + _BN_EPS)         # gamma/sqrt(v+e)
    shift = b_ref[...] - mean * scale                         # folded affine
    z = y * scale + shift
    o_ref[...] = jnp.where(z >= 0.0, z, 0.2 * z).astype(o_ref.dtype)


def conv_bn_lrelu(patches, w_mat, gamma, beta):
    """patches: [M, K] bf16, w_mat: [K, Cout] bf16, gamma/beta: [1, Cout] f32
    -> [M, Cout] bf16 with training-mode BN + LeakyReLU(0.2) fused in."""
    M, K = patches.shape
    Kw, Cout = w_mat.shape
    assert K == Kw
    Mp = pl.cdiv(M, 16) * 16                 # bf16 sublane packing (16, 128)
    a = patches if Mp == M else jnp.pad(patches, ((0, Mp - M), (0, 0)))

    tn = Cout if Cout <= 256 else 256        # wide lane-dense tiles, few steps
    grid = (Cout // tn,)

    kernel = functools.partial(_conv_bn_lrelu_kernel, inv_m=1.0 / M)
    out = pl.pallas_call(
        kernel,
        out_shape=jax.ShapeDtypeStruct((Mp, Cout), jnp.bfloat16),
        grid=grid,
        in_specs=[
            pl.BlockSpec((Mp, K), lambda j: (0, 0)),   # full-M, full-K block
            pl.BlockSpec((K, tn), lambda j: (0, j)),
            pl.BlockSpec((1, tn), lambda j: (0, j)),
            pl.BlockSpec((1, tn), lambda j: (0, j)),
        ],
        out_specs=pl.BlockSpec((Mp, tn), lambda j: (0, j)),
        compiler_params=pltpu.CompilerParams(
            dimension_semantics=("parallel",)),
    )(a, w_mat, gamma, beta)
    return out if Mp == M else out[:M]


# ----------------------------------------------------------------------------
# Pallas kernel 2: final 1-output conv as a VPU/XLU reduction (no MXU padding)
# ----------------------------------------------------------------------------
def _final_conv_kernel(a_ref, w_ref, o_ref):
    # a_ref: [M, K] bf16, w_ref: [1, K] bf16, o_ref: [M, 1] f32
    a = a_ref[...].astype(jnp.float32)
    w = w_ref[...].astype(jnp.float32)
    o_ref[...] = jnp.sum(a * w, axis=-1, keepdims=True)


def final_conv(patches, w_row):
    """patches: [M, K] bf16, w_row: [1, K] bf16 -> [M, 1] f32."""
    M, K = patches.shape
    return pl.pallas_call(
        _final_conv_kernel,
        out_shape=jax.ShapeDtypeStruct((M, 1), jnp.float32),
        grid=(1,),
        in_specs=[
            pl.BlockSpec((M, K), lambda i: (0, 0)),
            pl.BlockSpec((1, K), lambda i: (0, 0)),
        ],
        out_specs=pl.BlockSpec((M, 1), lambda i: (0, 0)),
    )(patches, w_row)


# ----------------------------------------------------------------------------
# Glue: cheap im2col formulations (single space-to-depth reshape where
# possible; 4 unit-stride quarter slices for the overlapping 4x4/stride-2
# layers).  Weight prep below matches these K orderings exactly.
# ----------------------------------------------------------------------------
def _im2col(x, k, s, p):
    """x: [N,H,W,C] bf16 -> ([M, k*k*C], (N, Ho, Wo))."""
    if p > 0:
        x = jnp.pad(x, ((0, 0), (p, p), (p, p), (0, 0)))
    N, Hp, Wp, C = x.shape
    Ho = (Hp - k) // s + 1
    Wo = (Wp - k) // s + 1

    if k == s:                               # non-overlapping: space-to-depth
        x = x[:, :s * Ho, :s * Wo, :]
        m = (x.reshape(N, Ho, s, Wo, s, C)
              .transpose(0, 1, 3, 2, 4, 5)
              .reshape(N * Ho * Wo, k * k * C))
    elif k == 4 and s == 2:                  # overlapping: s2d + 4 quarters
        # S[n, a, b, (ri, rj, c)] = x[n, 2a+ri, 2b+rj, c]
        S = (x.reshape(N, Hp // 2, 2, Wp // 2, 2, C)
              .transpose(0, 1, 3, 2, 4, 5)
              .reshape(N, Hp // 2, Wp // 2, 4 * C))
        quarters = [S[:, qi:qi + Ho, qj:qj + Wo, :]
                    for qi in (0, 1) for qj in (0, 1)]
        m = jnp.concatenate(quarters, axis=-1).reshape(N * Ho * Wo, 16 * C)
    else:
        raise NotImplementedError((k, s))
    return m, (N, Ho, Wo)


# ----------------------------------------------------------------------------
# Parameters
# ----------------------------------------------------------------------------
def init_params(nChannels, key):
    """PyTorch-layout parameters (OIHW conv weights, per-channel gamma/beta)."""
    c_in = [nChannels, 64, 128, 256, 512]
    params = {}
    for li, (k, _, _) in enumerate(_CONV_CFG):
        key, sub = jax.random.split(key)
        params[f"w{li}"] = 0.05 * jax.random.normal(
            sub, (_C_OUT[li], c_in[li], k, k), jnp.float32)
        if li < 4:
            params[f"gamma{li}"] = jnp.ones((_C_OUT[li],), jnp.float32)
            params[f"beta{li}"] = jnp.zeros((_C_OUT[li],), jnp.float32)
    return params


def prepare_params(params):
    """One-time weight transform: OIHW -> [K, Cout] bf16 matching the im2col
    K ordering above, plus (1, Cout) f32 gamma/beta."""
    kp = {}
    for li, (k, s, _) in enumerate(_CONV_CFG):
        w = params[f"w{li}"]
        Cout, Cin, kh, kw = w.shape
        if k == 4 and s == 2:
            # quarter ordering: K = (qi, qj, ri, rj, c) with i=2qi+ri, j=2qj+rj
            w_mat = (w.reshape(Cout, Cin, 2, 2, 2, 2)
                      .transpose(2, 4, 3, 5, 1, 0)
                      .reshape(16 * Cin, Cout))
        else:
            # plain (i, j, c) ordering
            w_mat = jnp.transpose(w, (2, 3, 1, 0)).reshape(kh * kw * Cin, Cout)

        if li < 4:
            kp[f"w{li}"] = w_mat.astype(jnp.bfloat16)
            kp[f"gamma{li}"] = params[f"gamma{li}"].reshape(1, Cout).astype(
                jnp.float32)
            kp[f"beta{li}"] = params[f"beta{li}"].reshape(1, Cout).astype(
                jnp.float32)
        else:                                   # Cout == 1, row vector
            kp[f"w{li}"] = w_mat.reshape(1, kh * kw * Cin).astype(jnp.bfloat16)
    return kp


# ----------------------------------------------------------------------------
# Discriminator forward
# ----------------------------------------------------------------------------
@jax.jit
def discriminator_forward(x_nchw, kparams):
    # PyTorch NCHW input -> NHWC bf16 once; everything downstream stays bf16.
    x = jnp.transpose(x_nchw, (0, 2, 3, 1)).astype(jnp.bfloat16)
    for li in range(4):
        k, s, p = _CONV_CFG[li]
        patches, (N, Ho, Wo) = _im2col(x, k, s, p)
        y = conv_bn_lrelu(patches, kparams[f"w{li}"],
                          kparams[f"gamma{li}"], kparams[f"beta{li}"])
        x = y.reshape(N, Ho, Wo, _C_OUT[li])

    # Final Conv2d(512, 1, 4, 1, 0) on a 4x4 map: the whole map is one window,
    # so its "im2col" is a plain reshape (K order (h, w, c) matches weights).
    N, Hf, Wf, Cf = x.shape
    assert (Hf, Wf) == (4, 4)
    patches = x.reshape(N, Hf * Wf * Cf)
    y = final_conv(patches, kparams["w4"])      # [N, 1] f32
    return y.reshape(-1, 1)                     # == output.view(-1, 1)


if __name__ == "__main__":
    key = jax.random.PRNGKey(0)
    k_x, k_p = jax.random.split(key)

    nChannels, batch, spatial = 3, 2, 48   # 48 -> 24 -> 12 -> 7 -> 4 -> 1
    x = jax.random.normal(k_x, (batch, nChannels, spatial, spatial),
                          jnp.float32)
    params = init_params(nChannels, k_p)
    kparams = prepare_params(params)       # one-time weight prep

    out = discriminator_forward(x, kparams)
    out = jax.block_until_ready(out)
    assert out.shape == (batch, 1), out.shape
    assert bool(jnp.all(jnp.isfinite(out)))
    print("KERNEL_OK")
</pallas_src>

<mosaic_0001>
module attributes {stable_mosaic.version = 11 : i64} {
  func.func @_conv_bn_lrelu_kernel(%arg0: i32, %arg1: memref<1152x48xbf16, #tpu.memory_space<vmem>>, %arg2: memref<48x64xbf16, #tpu.memory_space<vmem>>, %arg3: memref<1x64xf32, #tpu.memory_space<vmem>>, %arg4: memref<1x64xf32, #tpu.memory_space<vmem>>, %arg5: memref<1152x64xbf16, #tpu.memory_space<vmem>>) attributes {dimension_semantics = [#tpu.dimension_semantics<parallel>], iteration_bounds = array<i64: 1>, scalar_prefetch = 0 : i64, scratch_operands = 0 : i64, tpu.core_type = #tpu.core_type<tc>, window_params = [{pipeline_mode = #tpu.pipeline_mode<synchronous>, transform_indices = @transform_0, window_bounds = array<i64: 1152, 48>}, {transform_indices = @transform_1, window_bounds = array<i64: 48, 64>}, {transform_indices = @transform_2, window_bounds = array<i64: 1, 64>}, {transform_indices = @transform_3, window_bounds = array<i64: 1, 64>}, {transform_indices = @transform_4, window_bounds = array<i64: 1152, 64>}]} {
    %c0 = arith.constant 0 : index
    %c0_0 = arith.constant 0 : index
    %0 = vector.load %arg1[%c0, %c0_0] : memref<1152x48xbf16, #tpu.memory_space<vmem>>, vector<1152x48xbf16>
    %c0_1 = arith.constant 0 : index
    %c0_2 = arith.constant 0 : index
    %1 = vector.load %arg2[%c0_1, %c0_2] : memref<48x64xbf16, #tpu.memory_space<vmem>>, vector<48x64xbf16>
    %cst = arith.constant dense<0.000000e+00> : vector<1152x64xf32>
    %2 = tpu.matmul %0, %1, %cst {dimension_numbers = #tpu.dot_dimension_numbers<[1], [0], [0], [1], [0, 0, 1, 1], [], []>} : vector<1152x48xbf16>, vector<48x64xbf16>, vector<1152x64xf32> -> vector<1152x64xf32>
    %cst_3 = arith.constant dense<0.000000e+00> : vector<64xf32>
    %3 = vector.multi_reduction <add>, %2, %cst_3 [0] : vector<1152x64xf32> to vector<64xf32>
    %4 = vector.shape_cast %3 : vector<64xf32> to vector<1x64xf32>
    %5 = arith.mulf %2, %2 : vector<1152x64xf32>
    %cst_4 = arith.constant dense<0.000000e+00> : vector<64xf32>
    %6 = vector.multi_reduction <add>, %5, %cst_4 [0] : vector<1152x64xf32> to vector<64xf32>
    %7 = vector.shape_cast %6 : vector<64xf32> to vector<1x64xf32>
    %cst_5 = arith.constant 8.68055562E-4 : f32
    %8 = vector.broadcast %cst_5 : f32 to vector<1x64xf32>
    %9 = arith.mulf %4, %8 : vector<1x64xf32>
    %cst_6 = arith.constant 8.68055562E-4 : f32
    %10 = vector.broadcast %cst_6 : f32 to vector<1x64xf32>
    %11 = arith.mulf %7, %10 : vector<1x64xf32>
    %12 = arith.mulf %9, %9 : vector<1x64xf32>
    %13 = arith.subf %11, %12 : vector<1x64xf32>
    %c0_7 = arith.constant 0 : index
    %c0_8 = arith.constant 0 : index
    %14 = vector.load %arg3[%c0_7, %c0_8] : memref<1x64xf32, #tpu.memory_space<vmem>>, vector<1x64xf32>
    %cst_9 = arith.constant 9.99999974E-6 : f32
    %15 = vector.broadcast %cst_9 : f32 to vector<1x64xf32>
    %16 = arith.addf %13, %15 : vector<1x64xf32>
    %17 = math.rsqrt %16 : vector<1x64xf32>
    %18 = arith.mulf %14, %17 : vector<1x64xf32>
    %c0_10 = arith.constant 0 : index
    %c0_11 = arith.constant 0 : index
    %19 = vector.load %arg4[%c0_10, %c0_11] : memref<1x64xf32, #tpu.memory_space<vmem>>, vector<1x64xf32>
    %20 = arith.mulf %9, %18 : vector<1x64xf32>
    %21 = arith.subf %19, %20 : vector<1x64xf32>
    %22 = vector.broadcast %18 : vector<1x64xf32> to vector<1152x64xf32>
    %23 = arith.mulf %2, %22 : vector<1152x64xf32>
    %24 = vector.broadcast %21 : vector<1x64xf32> to vector<1152x64xf32>
    %25 = arith.addf %23, %24 : vector<1152x64xf32>
    %cst_12 = arith.constant 0.000000e+00 : f32
    %26 = vector.broadcast %cst_12 : f32 to vector<1152x64xf32>
    %27 = arith.cmpf oge, %25, %26 : vector<1152x64xf32>
    %cst_13 = arith.constant 2.000000e-01 : f32
    %28 = vector.broadcast %cst_13 : f32 to vector<1152x64xf32>
    %29 = arith.mulf %28, %25 : vector<1152x64xf32>
    %30 = arith.select %27, %25, %29 : vector<1152x64xi1>, vector<1152x64xf32>
    %31 = arith.truncf %30 : vector<1152x64xf32> to vector<1152x64xbf16>
    %c0_14 = arith.constant 0 : index
    %c0_15 = arith.constant 0 : index
    %32 = vector.load %arg5[%c0_14, %c0_15] : memref<1152x64xbf16, #tpu.memory_space<vmem>>, vector<1152x64xbf16>
    tpu.vector_store %arg5[%c0_14, %c0_15], %31 {strides = array<i32>} : memref<1152x64xbf16, #tpu.memory_space<vmem>>, vector<1152x64xbf16>,
    return
  }
  func.func @transform_0(%arg0: i32) -> (i32, i32) {
    %c0_i32 = arith.constant 0 : i32
    %c0_i32_0 = arith.constant 0 : i32
    %c0_i32_1 = arith.constant 0 : i32
    return %c0_i32, %c0_i32_0 : i32, i32
  }
  func.func @transform_1(%arg0: i32) -> (i32, i32) {
    %c0_i32 = arith.constant 0 : i32
    %c0_i32_0 = arith.constant 0 : i32
    return %c0_i32, %arg0 : i32, i32
  }
  func.func @transform_2(%arg0: i32) -> (i32, i32) {
    %c0_i32 = arith.constant 0 : i32
    %c0_i32_0 = arith.constant 0 : i32
    return %c0_i32, %arg0 : i32, i32
  }
  func.func @transform_3(%arg0: i32) -> (i32, i32) {
    %c0_i32 = arith.constant 0 : i32
    %c0_i32_0 = arith.constant 0 : i32
    return %c0_i32, %arg0 : i32, i32
  }
  func.func @transform_4(%arg0: i32) -> (i32, i32) {
    %c0_i32 = arith.constant 0 : i32
    %c0_i32_0 = arith.constant 0 : i32
    return %c0_i32, %arg0 : i32, i32
  }
}

module attributes {stable_mosaic.version = 11 : i64} {
  func.func @_conv_bn_lrelu_kernel(%arg0: i32, %arg1: memref<288x1024xbf16, #tpu.memory_space<vmem>>, %arg2: memref<1024x128xbf16, #tpu.memory_space<vmem>>, %arg3: memref<1x128xf32, #tpu.memory_space<vmem>>, %arg4: memref<1x128xf32, #tpu.memory_space<vmem>>, %arg5: memref<288x128xbf16, #tpu.memory_space<vmem>>) attributes {dimension_semantics = [#tpu.dimension_semantics<parallel>], iteration_bounds = array<i64: 1>, scalar_prefetch = 0 : i64, scratch_operands = 0 : i64, tpu.core_type = #tpu.core_type<tc>, window_params = [{pipeline_mode = #tpu.pipeline_mode<synchronous>, transform_indices = @transform_0, window_bounds = array<i64: 288, 1024>}, {transform_indices = @transform_1, window_bounds = array<i64: 1024, 128>}, {transform_indices = @transform_2, window_bounds = array<i64: 1, 128>}, {transform_indices = @transform_3, window_bounds = array<i64: 1, 128>}, {transform_indices = @transform_4, window_bounds = array<i64: 288, 128>}]} {
    %c0 = arith.constant 0 : index
    %c0_0 = arith.constant 0 : index
    %0 = vector.load %arg1[%c0, %c0_0] : memref<288x1024xbf16, #tpu.memory_space<vmem>>, vector<288x1024xbf16>
    %c0_1 = arith.constant 0 : index
    %c0_2 = arith.constant 0 : index
    %1 = vector.load %arg2[%c0_1, %c0_2] : memref<1024x128xbf16, #tpu.memory_space<vmem>>, vector<1024x128xbf16>
    %cst = arith.constant dense<0.000000e+00> : vector<288x128xf32>
    %2 = tpu.matmul %0, %1, %cst {dimension_numbers = #tpu.dot_dimension_numbers<[1], [0], [0], [1], [0, 0, 1, 1], [], []>} : vector<288x1024xbf16>, vector<1024x128xbf16>, vector<288x128xf32> -> vector<288x128xf32>
    %cst_3 = arith.constant dense<0.000000e+00> : vector<128xf32>
    %3 = vector.multi_reduction <add>, %2, %cst_3 [0] : vector<288x128xf32> to vector<128xf32>
    %4 = vector.shape_cast %3 : vector<128xf32> to vector<1x128xf32>
    %5 = arith.mulf %2, %2 : vector<288x128xf32>
    %cst_4 = arith.constant dense<0.000000e+00> : vector<128xf32>
    %6 = vector.multi_reduction <add>, %5, %cst_4 [0] : vector<288x128xf32> to vector<128xf32>
    %7 = vector.shape_cast %6 : vector<128xf32> to vector<1x128xf32>
    %cst_5 = arith.constant 0.00347222225 : f32
    %8 = vector.broadcast %cst_5 : f32 to vector<1x128xf32>
    %9 = arith.mulf %4, %8 : vector<1x128xf32>
    %cst_6 = arith.constant 0.00347222225 : f32
    %10 = vector.broadcast %cst_6 : f32 to vector<1x128xf32>
    %11 = arith.mulf %7, %10 : vector<1x128xf32>
    %12 = arith.mulf %9, %9 : vector<1x128xf32>
    %13 = arith.subf %11, %12 : vector<1x128xf32>
    %c0_7 = arith.constant 0 : index
    %c0_8 = arith.constant 0 : index
    %14 = vector.load %arg3[%c0_7, %c0_8] : memref<1x128xf32, #tpu.memory_space<vmem>>, vector<1x128xf32>
    %cst_9 = arith.constant 9.99999974E-6 : f32
    %15 = vector.broadcast %cst_9 : f32 to vector<1x128xf32>
    %16 = arith.addf %13, %15 : vector<1x128xf32>
    %17 = math.rsqrt %16 : vector<1x128xf32>
    %18 = arith.mulf %14, %17 : vector<1x128xf32>
    %c0_10 = arith.constant 0 : index
    %c0_11 = arith.constant 0 : index
    %19 = vector.load %arg4[%c0_10, %c0_11] : memref<1x128xf32, #tpu.memory_space<vmem>>, vector<1x128xf32>
    %20 = arith.mulf %9, %18 : vector<1x128xf32>
    %21 = arith.subf %19, %20 : vector<1x128xf32>
    %22 = vector.broadcast %18 : vector<1x128xf32> to vector<288x128xf32>
    %23 = arith.mulf %2, %22 : vector<288x128xf32>
    %24 = vector.broadcast %21 : vector<1x128xf32> to vector<288x128xf32>
    %25 = arith.addf %23, %24 : vector<288x128xf32>
    %cst_12 = arith.constant 0.000000e+00 : f32
    %26 = vector.broadcast %cst_12 : f32 to vector<288x128xf32>
    %27 = arith.cmpf oge, %25, %26 : vector<288x128xf32>
    %cst_13 = arith.constant 2.000000e-01 : f32
    %28 = vector.broadcast %cst_13 : f32 to vector<288x128xf32>
    %29 = arith.mulf %28, %25 : vector<288x128xf32>
    %30 = arith.select %27, %25, %29 : vector<288x128xi1>, vector<288x128xf32>
    %31 = arith.truncf %30 : vector<288x128xf32> to vector<288x128xbf16>
    %c0_14 = arith.constant 0 : index
    %c0_15 = arith.constant 0 : index
    %32 = vector.load %arg5[%c0_14, %c0_15] : memref<288x128xbf16, #tpu.memory_space<vmem>>, vector<288x128xbf16>
    tpu.vector_store %arg5[%c0_14, %c0_15], %31 {strides = array<i32>} : memref<288x128xbf16, #tpu.memory_space<vmem>>, vector<288x128xbf16>,
    return
  }
  func.func @transform_0(%arg0: i32) -> (i32, i32) {
    %c0_i32 = arith.constant 0 : i32
    %c0_i32_0 = arith.constant 0 : i32
    %c0_i32_1 = arith.constant 0 : i32
    return %c0_i32, %c0_i32_0 : i32, i32
  }
  func.func @transform_1(%arg0: i32) -> (i32, i32) {
    %c0_i32 = arith.constant 0 : i32
    %c0_i32_0 = arith.constant 0 : i32
    return %c0_i32, %arg0 : i32, i32
  }
  func.func @transform_2(%arg0: i32) -> (i32, i32) {
    %c0_i32 = arith.constant 0 : i32
    %c0_i32_0 = arith.constant 0 : i32
    return %c0_i32, %arg0 : i32, i32
  }
  func.func @transform_3(%arg0: i32) -> (i32, i32) {
    %c0_i32 = arith.constant 0 : i32
    %c0_i32_0 = arith.constant 0 : i32
    return %c0_i32, %arg0 : i32, i32
  }
  func.func @transform_4(%arg0: i32) -> (i32, i32) {
    %c0_i32 = arith.constant 0 : i32
    %c0_i32_0 = arith.constant 0 : i32
    return %c0_i32, %arg0 : i32, i32
  }
}

module attributes {stable_mosaic.version = 11 : i64} {
  func.func @_conv_bn_lrelu_kernel(%arg0: i32, %arg1: memref<112x512xbf16, #tpu.memory_space<vmem>>, %arg2: memref<512x256xbf16, #tpu.memory_space<vmem>>, %arg3: memref<1x256xf32, #tpu.memory_space<vmem>>, %arg4: memref<1x256xf32, #tpu.memory_space<vmem>>, %arg5: memref<112x256xbf16, #tpu.memory_space<vmem>>) attributes {dimension_semantics = [#tpu.dimension_semantics<parallel>], iteration_bounds = array<i64: 1>, scalar_prefetch = 0 : i64, scratch_operands = 0 : i64, tpu.core_type = #tpu.core_type<tc>, window_params = [{pipeline_mode = #tpu.pipeline_mode<synchronous>, transform_indices = @transform_0, window_bounds = array<i64: 112, 512>}, {transform_indices = @transform_1, window_bounds = array<i64: 512, 256>}, {transform_indices = @transform_2, window_bounds = array<i64: 1, 256>}, {transform_indices = @transform_3, window_bounds = array<i64: 1, 256>}, {transform_indices = @transform_4, window_bounds = array<i64: 112, 256>}]} {
    %c0 = arith.constant 0 : index
    %c0_0 = arith.constant 0 : index
    %0 = vector.load %arg1[%c0, %c0_0] : memref<112x512xbf16, #tpu.memory_space<vmem>>, vector<112x512xbf16>
    %c0_1 = arith.constant 0 : index
    %c0_2 = arith.constant 0 : index
    %1 = vector.load %arg2[%c0_1, %c0_2] : memref<512x256xbf16, #tpu.memory_space<vmem>>, vector<512x256xbf16>
    %cst = arith.constant dense<0.000000e+00> : vector<112x256xf32>
    %2 = tpu.matmul %0, %1, %cst {dimension_numbers = #tpu.dot_dimension_numbers<[1], [0], [0], [1], [0, 0, 1, 1], [], []>} : vector<112x512xbf16>, vector<512x256xbf16>, vector<112x256xf32> -> vector<112x256xf32>
    %cst_3 = arith.constant dense<0.000000e+00> : vector<256xf32>
    %3 = vector.multi_reduction <add>, %2, %cst_3 [0] : vector<112x256xf32> to vector<256xf32>
    %4 = vector.shape_cast %3 : vector<256xf32> to vector<1x256xf32>
    %5 = arith.mulf %2, %2 : vector<112x256xf32>
    %cst_4 = arith.constant dense<0.000000e+00> : vector<256xf32>
    %6 = vector.multi_reduction <add>, %5, %cst_4 [0] : vector<112x256xf32> to vector<256xf32>
    %7 = vector.shape_cast %6 : vector<256xf32> to vector<1x256xf32>
    %cst_5 = arith.constant 0.0102040814 : f32
    %8 = vector.broadcast %cst_5 : f32 to vector<1x256xf32>
    %9 = arith.mulf %4, %8 : vector<1x256xf32>
    %cst_6 = arith.constant 0.0102040814 : f32
    %10 = vector.broadcast %cst_6 : f32 to vector<1x256xf32>
    %11 = arith.mulf %7, %10 : vector<1x256xf32>
    %12 = arith.mulf %9, %9 : vector<1x256xf32>
    %13 = arith.subf %11, %12 : vector<1x256xf32>
    %c0_7 = arith.constant 0 : index
    %c0_8 = arith.constant 0 : index
    %14 = vector.load %arg3[%c0_7, %c0_8] : memref<1x256xf32, #tpu.memory_space<vmem>>, vector<1x256xf32>
    %cst_9 = arith.constant 9.99999974E-6 : f32
    %15 = vector.broadcast %cst_9 : f32 to vector<1x256xf32>
    %16 = arith.addf %13, %15 : vector<1x256xf32>
    %17 = math.rsqrt %16 : vector<1x256xf32>
    %18 = arith.mulf %14, %17 : vector<1x256xf32>
    %c0_10 = arith.constant 0 : index
    %c0_11 = arith.constant 0 : index
    %19 = vector.load %arg4[%c0_10, %c0_11] : memref<1x256xf32, #tpu.memory_space<vmem>>, vector<1x256xf32>
    %20 = arith.mulf %9, %18 : vector<1x256xf32>
    %21 = arith.subf %19, %20 : vector<1x256xf32>
    %22 = vector.broadcast %18 : vector<1x256xf32> to vector<112x256xf32>
    %23 = arith.mulf %2, %22 : vector<112x256xf32>
    %24 = vector.broadcast %21 : vector<1x256xf32> to vector<112x256xf32>
    %25 = arith.addf %23, %24 : vector<112x256xf32>
    %cst_12 = arith.constant 0.000000e+00 : f32
    %26 = vector.broadcast %cst_12 : f32 to vector<112x256xf32>
    %27 = arith.cmpf oge, %25, %26 : vector<112x256xf32>
    %cst_13 = arith.constant 2.000000e-01 : f32
    %28 = vector.broadcast %cst_13 : f32 to vector<112x256xf32>
    %29 = arith.mulf %28, %25 : vector<112x256xf32>
    %30 = arith.select %27, %25, %29 : vector<112x256xi1>, vector<112x256xf32>
    %31 = arith.truncf %30 : vector<112x256xf32> to vector<112x256xbf16>
    %c0_14 = arith.constant 0 : index
    %c0_15 = arith.constant 0 : index
    %32 = vector.load %arg5[%c0_14, %c0_15] : memref<112x256xbf16, #tpu.memory_space<vmem>>, vector<112x256xbf16>
    tpu.vector_store %arg5[%c0_14, %c0_15], %31 {strides = array<i32>} : memref<112x256xbf16, #tpu.memory_space<vmem>>, vector<112x256xbf16>,
    return
  }
  func.func @transform_0(%arg0: i32) -> (i32, i32) {
    %c0_i32 = arith.constant 0 : i32
    %c0_i32_0 = arith.constant 0 : i32
    %c0_i32_1 = arith.constant 0 : i32
    return %c0_i32, %c0_i32_0 : i32, i32
  }
  func.func @transform_1(%arg0: i32) -> (i32, i32) {
    %c0_i32 = arith.constant 0 : i32
    %c0_i32_0 = arith.constant 0 : i32
    return %c0_i32, %arg0 : i32, i32
  }
  func.func @transform_2(%arg0: i32) -> (i32, i32) {
    %c0_i32 = arith.constant 0 : i32
    %c0_i32_0 = arith.constant 0 : i32
    return %c0_i32, %arg0 : i32, i32
  }
  func.func @transform_3(%arg0: i32) -> (i32, i32) {
    %c0_i32 = arith.constant 0 : i32
    %c0_i32_0 = arith.constant 0 : i32
    return %c0_i32, %arg0 : i32, i32
  }
  func.func @transform_4(%arg0: i32) -> (i32, i32) {
    %c0_i32 = arith.constant 0 : i32
    %c0_i32_0 = arith.constant 0 : i32
    return %c0_i32, %arg0 : i32, i32
  }
}

module attributes {stable_mosaic.version = 11 : i64} {
  func.func @_conv_bn_lrelu_kernel(%arg0: i32, %arg1: memref<32x1024xbf16, #tpu.memory_space<vmem>>, %arg2: memref<1024x256xbf16, #tpu.memory_space<vmem>>, %arg3: memref<1x256xf32, #tpu.memory_space<vmem>>, %arg4: memref<1x256xf32, #tpu.memory_space<vmem>>, %arg5: memref<32x256xbf16, #tpu.memory_space<vmem>>) attributes {dimension_semantics = [#tpu.dimension_semantics<parallel>], iteration_bounds = array<i64: 2>, scalar_prefetch = 0 : i64, scratch_operands = 0 : i64, tpu.core_type = #tpu.core_type<tc>, window_params = [{pipeline_mode = #tpu.pipeline_mode<synchronous>, transform_indices = @transform_0, window_bounds = array<i64: 32, 1024>}, {transform_indices = @transform_1, window_bounds = array<i64: 1024, 256>}, {transform_indices = @transform_2, window_bounds = array<i64: 1, 256>}, {transform_indices = @transform_3, window_bounds = array<i64: 1, 256>}, {transform_indices = @transform_4, window_bounds = array<i64: 32, 256>}]} {
    %c0 = arith.constant 0 : index
    %c0_0 = arith.constant 0 : index
    %0 = vector.load %arg1[%c0, %c0_0] : memref<32x1024xbf16, #tpu.memory_space<vmem>>, vector<32x1024xbf16>
    %c0_1 = arith.constant 0 : index
    %c0_2 = arith.constant 0 : index
    %1 = vector.load %arg2[%c0_1, %c0_2] : memref<1024x256xbf16, #tpu.memory_space<vmem>>, vector<1024x256xbf16>
    %cst = arith.constant dense<0.000000e+00> : vector<32x256xf32>
    %2 = tpu.matmul %0, %1, %cst {dimension_numbers = #tpu.dot_dimension_numbers<[1], [0], [0], [1], [0, 0, 1, 1], [], []>} : vector<32x1024xbf16>, vector<1024x256xbf16>, vector<32x256xf32> -> vector<32x256xf32>
    %cst_3 = arith.constant dense<0.000000e+00> : vector<256xf32>
    %3 = vector.multi_reduction <add>, %2, %cst_3 [0] : vector<32x256xf32> to vector<256xf32>
    %4 = vector.shape_cast %3 : vector<256xf32> to vector<1x256xf32>
    %5 = arith.mulf %2, %2 : vector<32x256xf32>
    %cst_4 = arith.constant dense<0.000000e+00> : vector<256xf32>
    %6 = vector.multi_reduction <add>, %5, %cst_4 [0] : vector<32x256xf32> to vector<256xf32>
    %7 = vector.shape_cast %6 : vector<256xf32> to vector<1x256xf32>
    %cst_5 = arith.constant 3.125000e-02 : f32
    %8 = vector.broadcast %cst_5 : f32 to vector<1x256xf32>
    %9 = arith.mulf %4, %8 : vector<1x256xf32>
    %cst_6 = arith.constant 3.125000e-02 : f32
    %10 = vector.broadcast %cst_6 : f32 to vector<1x256xf32>
    %11 = arith.mulf %7, %10 : vector<1x256xf32>
    %12 = arith.mulf %9, %9 : vector<1x256xf32>
    %13 = arith.subf %11, %12 : vector<1x256xf32>
    %c0_7 = arith.constant 0 : index
    %c0_8 = arith.constant 0 : index
    %14 = vector.load %arg3[%c0_7, %c0_8] : memref<1x256xf32, #tpu.memory_space<vmem>>, vector<1x256xf32>
    %cst_9 = arith.constant 9.99999974E-6 : f32
    %15 = vector.broadcast %cst_9 : f32 to vector<1x256xf32>
    %16 = arith.addf %13, %15 : vector<1x256xf32>
    %17 = math.rsqrt %16 : vector<1x256xf32>
    %18 = arith.mulf %14, %17 : vector<1x256xf32>
    %c0_10 = arith.constant 0 : index
    %c0_11 = arith.constant 0 : index
    %19 = vector.load %arg4[%c0_10, %c0_11] : memref<1x256xf32, #tpu.memory_space<vmem>>, vector<1x256xf32>
    %20 = arith.mulf %9, %18 : vector<1x256xf32>
    %21 = arith.subf %19, %20 : vector<1x256xf32>
    %22 = vector.broadcast %18 : vector<1x256xf32> to vector<32x256xf32>
    %23 = arith.mulf %2, %22 : vector<32x256xf32>
    %24 = vector.broadcast %21 : vector<1x256xf32> to vector<32x256xf32>
    %25 = arith.addf %23, %24 : vector<32x256xf32>
    %cst_12 = arith.constant 0.000000e+00 : f32
    %26 = vector.broadcast %cst_12 : f32 to vector<32x256xf32>
    %27 = arith.cmpf oge, %25, %26 : vector<32x256xf32>
    %cst_13 = arith.constant 2.000000e-01 : f32
    %28 = vector.broadcast %cst_13 : f32 to vector<32x256xf32>
    %29 = arith.mulf %28, %25 : vector<32x256xf32>
    %30 = arith.select %27, %25, %29 : vector<32x256xi1>, vector<32x256xf32>
    %31 = arith.truncf %30 : vector<32x256xf32> to vector<32x256xbf16>
    %c0_14 = arith.constant 0 : index
    %c0_15 = arith.constant 0 : index
    %32 = vector.load %arg5[%c0_14, %c0_15] : memref<32x256xbf16, #tpu.memory_space<vmem>>, vector<32x256xbf16>
    tpu.vector_store %arg5[%c0_14, %c0_15], %31 {strides = array<i32>} : memref<32x256xbf16, #tpu.memory_space<vmem>>, vector<32x256xbf16>,
    return
  }
  func.func @transform_0(%arg0: i32) -> (i32, i32) {
    %c0_i32 = arith.constant 0 : i32
    %c0_i32_0 = arith.constant 0 : i32
    %c0_i32_1 = arith.constant 0 : i32
    return %c0_i32, %c0_i32_0 : i32, i32
  }
  func.func @transform_1(%arg0: i32) -> (i32, i32) {
    %c0_i32 = arith.constant 0 : i32
    %c0_i32_0 = arith.constant 0 : i32
    return %c0_i32, %arg0 : i32, i32
  }
  func.func @transform_2(%arg0: i32) -> (i32, i32) {
    %c0_i32 = arith.constant 0 : i32
    %c0_i32_0 = arith.constant 0 : i32
    return %c0_i32, %arg0 : i32, i32
  }
  func.func @transform_3(%arg0: i32) -> (i32, i32) {
    %c0_i32 = arith.constant 0 : i32
    %c0_i32_0 = arith.constant 0 : i32
    return %c0_i32, %arg0 : i32, i32
  }
  func.func @transform_4(%arg0: i32) -> (i32, i32) {
    %c0_i32 = arith.constant 0 : i32
    %c0_i32_0 = arith.constant 0 : i32
    return %c0_i32, %arg0 : i32, i32
  }
}

module attributes {stable_mosaic.version = 11 : i64} {
  func.func @_final_conv_kernel(%arg0: i32, %arg1: memref<2x8192xbf16, #tpu.memory_space<vmem>>, %arg2: memref<1x8192xbf16, #tpu.memory_space<vmem>>, %arg3: memref<2x1xf32, #tpu.memory_space<vmem>>) attributes {dimension_semantics = [#tpu.dimension_semantics<arbitrary>], iteration_bounds = array<i64: 1>, scalar_prefetch = 0 : i64, scratch_operands = 0 : i64, tpu.core_type = #tpu.core_type<tc>, window_params = [{pipeline_mode = #tpu.pipeline_mode<synchronous>, transform_indices = @transform_0, window_bounds = array<i64: 2, 8192>}, {pipeline_mode = #tpu.pipeline_mode<synchronous>, transform_indices = @transform_1, window_bounds = array<i64: 1, 8192>}, {pipeline_mode = #tpu.pipeline_mode<synchronous>, transform_indices = @transform_2, window_bounds = array<i64: 2, 1>}]} {
    %c0 = arith.constant 0 : index
    %c0_0 = arith.constant 0 : index
    %0 = vector.load %arg1[%c0, %c0_0] : memref<2x8192xbf16, #tpu.memory_space<vmem>>, vector<2x8192xbf16>
    %1 = arith.extf %0 : vector<2x8192xbf16> to vector<2x8192xf32>
    %c0_1 = arith.constant 0 : index
    %c0_2 = arith.constant 0 : index
    %2 = vector.load %arg2[%c0_1, %c0_2] : memref<1x8192xbf16, #tpu.memory_space<vmem>>, vector<1x8192xbf16>
    %3 = arith.extf %2 : vector<1x8192xbf16> to vector<1x8192xf32>
    %4 = vector.broadcast %3 : vector<1x8192xf32> to vector<2x8192xf32>
    %5 = arith.mulf %1, %4 : vector<2x8192xf32>
    %cst = arith.constant dense<0.000000e+00> : vector<2xf32>
    %6 = vector.multi_reduction <add>, %5, %cst [1] : vector<2x8192xf32> to vector<2xf32>
    %7 = vector.shape_cast %6 : vector<2xf32> to vector<2x1xf32>
    %c0_3 = arith.constant 0 : index
    %c0_4 = arith.constant 0 : index
    %8 = vector.load %arg3[%c0_3, %c0_4] : memref<2x1xf32, #tpu.memory_space<vmem>>, vector<2x1xf32>
    tpu.vector_store %arg3[%c0_3, %c0_4], %7 {strides = array<i32>} : memref<2x1xf32, #tpu.memory_space<vmem>>, vector<2x1xf32>,
    return
  }
  func.func @transform_0(%arg0: i32) -> (i32, i32) {
    %c0_i32 = arith.constant 0 : i32
    %c0_i32_0 = arith.constant 0 : i32
    %c0_i32_1 = arith.constant 0 : i32
    return %c0_i32, %c0_i32_0 : i32, i32
  }
  func.func @transform_1(%arg0: i32) -> (i32, i32) {
    %c0_i32 = arith.constant 0 : i32
    %c0_i32_0 = arith.constant 0 : i32
    %c0_i32_1 = arith.constant 0 : i32
    return %c0_i32, %c0_i32_0 : i32, i32
  }
  func.func @transform_2(%arg0: i32) -> (i32, i32) {
    %c0_i32 = arith.constant 0 : i32
    %c0_i32_0 = arith.constant 0 : i32
    %c0_i32_1 = arith.constant 0 : i32
    return %c0_i32, %c0_i32_0 : i32, i32
  }
}

</mosaic_0001>

<bundles_post_ra>
// kernel: discriminator_forward.5
= control target key start
LH: loop header
LB: loop body
LE: loop exit
PB: predicated region body
PF: predicated region fallthrough
CT: control target
= control target key end

     0   :  { %vm546_vm0 = vcmask 392192   ;;  %vm1372_vm1 = vcmask 523264   ;;  %s9513_s1 = inlined_call_operand.vmem [shape: bf16[48,64], index: 1, kind: input, shape index: {}]   ;;  %s9514_s0 = inlined_call_operand.vmem [shape: bf16[1152,48], index: 0, kind: input, shape index: {}]   ;;  %s9515_s2 = inlined_call_operand.vmem [shape: f32[1,64], index: 2, kind: input, shape index: {}]   ;;  %s9516_s3 = inlined_call_operand.vmem [shape: f32[1,64], index: 3, kind: input, shape index: {}]   ;;  %s9517_s4 = inlined_call_operand.vmem [shape: bf16[1152,64], index: 4, kind: output, shape index: {}]  }
   0x1   :  { %v4237_v0 = vld [vmem:[%s9513_s1] sm:$0xff]   ;;  %v4238_v1 = vld [vmem:[%s9513_s1 + $0x8] sm:$0xff]   ;;  %v4239_v3 = vld [vmem:[%s9513_s1 + $0x10] sm:$0xff]  }
   0x2   :  { %4081 = vmatprep.subr.bf16.mxu0 %v4237_v0  ;;  %4231 = vmatprep.subr.bf16.mxu1 %v4237_v0  ;;  %v4240_v2 = vld [vmem:[%s9514_s0] sm:$0xff]   ;;  %v4241_v4 = vld [vmem:[%s9514_s0 + $0x8] sm:$0xff]   ;;  %v4242_v5 = vld [vmem:[%s9514_s0 + $0x10] sm:$0xff]  }
   0x3   :  { %4082 = vmatpush3.bf16.msra.mxu0 %v4237_v0  ;;  %4234 = vmatpush3.bf16.msra.mxu1 %v4237_v0  ;;  %v4243_v6 = vld [vmem:[%s9514_s0 + $0x18] sm:$0xff]   ;;  %v4244_v7 = vld [vmem:[%s9514_s0 + $0x20] sm:$0xff]   ;;  %v4245_v8 = vld [vmem:[%s9514_s0 + $0x28] sm:$0xff]  }
   0x4   :  { %4083 = vmatprep.subr.bf16.mxu0 %v4238_v1  ;;  %4232 = vmatprep.subr.bf16.mxu1 %v4238_v1  ;;  %v4246_v9 = vld [vmem:[%s9514_s0 + $0x30] sm:$0xff]   ;;  %v4247_v10 = vld [vmem:[%s9514_s0 + $0x38] sm:$0xff]   ;;  %v4248_v11 = vld [vmem:[%s9514_s0 + $0x40] sm:$0xff]  }
   0x5   :  { %4087 = vmatprep.mubr.msk.bf16.mxu0 %vm546_vm0, %v4240_v2  ;;  %v4276_v12 = vld [vmem:[%s9514_s0 + $0x120] sm:$0xff]   ;;  %v4277_v13 = vld [vmem:[%s9514_s0 + $0x128] sm:$0xff]   ;;  %v4278_v14 = vld [vmem:[%s9514_s0 + $0x130] sm:$0xff]  }
   0x6   :  { %4159 = vmatprep.mubr.msk.bf16.mxu1 %vm546_vm0, %v4276_v12  ;;  %v4249_v15 = vld [vmem:[%s9514_s0 + $0x48] sm:$0xff]   ;;  %v4250_v16 = vld [vmem:[%s9514_s0 + $0x50] sm:$0xff]   ;;  %v4279_v17 = vld [vmem:[%s9514_s0 + $0x138] sm:$0xff]  }
   0x7   :  { %4084 = vmatpush3.bf16.msra.mxu0 %v4238_v1  ;;  %4235 = vmatpush3.bf16.msra.mxu1 %v4238_v1  ;;  %v4280_v18 = vld [vmem:[%s9514_s0 + $0x140] sm:$0xff]   ;;  %v4251_v19 = vld [vmem:[%s9514_s0 + $0x58] sm:$0xff]   ;;  %v4281_v21 = vld [vmem:[%s9514_s0 + $0x148] sm:$0xff]  }
   0x8   :  { %4085 = vmatprep.subr.bf16.mxu0 %v4239_v3  ;;  %4233 = vmatprep.subr.bf16.mxu1 %v4239_v3  ;;  %v4252_v20 = vld [vmem:[%s9514_s0 + $0x60] sm:$0xff]   ;;  %v4282_v22 = vld [vmem:[%s9514_s0 + $0x150] sm:$0xff]   ;;  %v4253_v23 = vld [vmem:[%s9514_s0 + $0x68] sm:$0xff]  }
   0x9   :  { %v4254_v24 = vld [vmem:[%s9514_s0 + $0x70] sm:$0xff]   ;;  %v4283_v25 = vld [vmem:[%s9514_s0 + $0x158] sm:$0xff]   ;;  %v4284_v26 = vld [vmem:[%s9514_s0 + $0x160] sm:$0xff]  }
   0xa   :  { %v4255_v27 = vld [vmem:[%s9514_s0 + $0x78] sm:$0xff]   ;;  %v4256_v28 = vld [vmem:[%s9514_s0 + $0x80] sm:$0xff]   ;;  %v4285_v29 = vld [vmem:[%s9514_s0 + $0x168] sm:$0xff]  }
   0xb   :  { %4086 = vmatpush3.bf16.msra.mxu0 %v4239_v3  ;;  %4236 = vmatpush3.bf16.msra.mxu1 %v4239_v3  ;;  %v4286_v30 = vld [vmem:[%s9514_s0 + $0x170] sm:$0xff]   ;;  %v4257_v31 = vld [vmem:[%s9514_s0 + $0x88] sm:$0xff]   ;;  %v4287_v33 = vld [vmem:[%s9514_s0 + $0x178] sm:$0xff]  }
   0xc   :  { %v4258_v32 = vld [vmem:[%s9514_s0 + $0x90] sm:$0xff]   ;;  %v4288_v34 = vld [vmem:[%s9514_s0 + $0x180] sm:$0xff]   ;;  %v4259_v35 = vld [vmem:[%s9514_s0 + $0x98] sm:$0xff]  }
   0xd   :  { %v4260_v36 = vld [vmem:[%s9514_s0 + $0xa0] sm:$0xff]   ;;  %v4289_v37 = vld [vmem:[%s9514_s0 + $0x188] sm:$0xff]   ;;  %v4290_v38 = vld [vmem:[%s9514_s0 + $0x190] sm:$0xff]  }
   0xe   :  { %4088 = vmatmul.mubr.msk.bf16.vlgmr.msra.gmra.mrb[0].mxu0 %vm546_vm0, %v4241_v4  ;;  %4160 = vmatmul.mubr.msk.bf16.vlgmr.msra.gmra.mrb[0].mxu1 %vm546_vm0, %v4277_v13  ;;  %v4261_v39 = vld [vmem:[%s9514_s0 + $0xa8] sm:$0xff]   ;;  %v4262_v40 = vld [vmem:[%s9514_s0 + $0xb0] sm:$0xff]   ;;  %v4291_v41 = vld [vmem:[%s9514_s0 + $0x198] sm:$0xff]  }
   0xf   :  { %4091 = vmatprep.mubr.msk.bf16.mxu0 %vm546_vm0, %v4242_v5  ;;  %4163 = vmatprep.mubr.msk.bf16.mxu1 %vm546_vm0, %v4278_v14  ;;  %v4292_v42 = vld [vmem:[%s9514_s0 + $0x1a0] sm:$0xff]   ;;  %v4263_v43 = vld [vmem:[%s9514_s0 + $0xb8] sm:$0xff]   ;;  %v4293_v45 = vld [vmem:[%s9514_s0 + $0x1a8] sm:$0xff]  }
  0x10   :  { %v4264_v44 = vld [vmem:[%s9514_s0 + $0xc0] sm:$0xff]   ;;  %v4294_v46 = vld [vmem:[%s9514_s0 + $0x1b0] sm:$0xff]   ;;  %v4265_v47 = vld [vmem:[%s9514_s0 + $0xc8] sm:$0xff]  }
  0x11   :  { %v4266_v48 = vld [vmem:[%s9514_s0 + $0xd0] sm:$0xff]   ;;  %v4295_v49 = vld [vmem:[%s9514_s0 + $0x1b8] sm:$0xff]   ;;  %v4296_v50 = vld [vmem:[%s9514_s0 + $0x1c0] sm:$0xff]  }
  0x12   :  { %v4267_v51 = vld [vmem:[%s9514_s0 + $0xd8] sm:$0xff]   ;;  %v4268_v52 = vld [vmem:[%s9514_s0 + $0xe0] sm:$0xff]   ;;  %v4297_v53 = vld [vmem:[%s9514_s0 + $0x1c8] sm:$0xff]  }
  0x13   :  { %v4298_v54 = vld [vmem:[%s9514_s0 + $0x1d0] sm:$0xff]   ;;  %v4269_v55 = vld [vmem:[%s9514_s0 + $0xe8] sm:$0xff]   ;;  %v4299_v57 = vld [vmem:[%s9514_s0 + $0x1d8] sm:$0xff]  }
  0x14   :  { %v4270_v56 = vld [vmem:[%s9514_s0 + $0xf0] sm:$0xff]   ;;  %v4300_v58 = vld [vmem:[%s9514_s0 + $0x1e0] sm:$0xff]   ;;  %v4271_v59 = vld [vmem:[%s9514_s0 + $0xf8] sm:$0xff]  }
  0x15   :  { %v4272_v60 = vld [vmem:[%s9514_s0 + $0x100] sm:$0xff]   ;;  %v4301_v61 = vld [vmem:[%s9514_s0 + $0x1e8] sm:$0xff]   ;;  %v4302_v62 = vld [vmem:[%s9514_s0 + $0x1f0] sm:$0xff]  }
  0x16   :  { %4092 = vmatmul.mubr.msk.bf16.gmra.mrb[4].mxu0 %vm546_vm0, %v4243_v6  ;;  %4164 = vmatmul.mubr.msk.bf16.gmra.mrb[4].mxu1 %vm546_vm0, %v4279_v17  ;;  %v4273_v63 = vld [vmem:[%s9514_s0 + $0x108] sm:$0xff]   ;;  %v4274_v0 = vld [vmem:[%s9514_s0 + $0x110] sm:$0xff]   ;;  %v4303_v1 = vld [vmem:[%s9514_s0 + $0x1f8] sm:$0xff]  }
  0x17   :  { %4095 = vmatprep.mubr.msk.bf16.mxu0 %vm546_vm0, %v4244_v7  ;;  %4167 = vmatprep.mubr.msk.bf16.mxu1 %vm546_vm0, %v4280_v18  ;;  %v4304_v2 = vld [vmem:[%s9514_s0 + $0x200] sm:$0xff]   ;;  %v4275_v3 = vld [vmem:[%s9514_s0 + $0x118] sm:$0xff]   ;;  %v4305_v4 = vld [vmem:[%s9514_s0 + $0x208] sm:$0xff]  }
  0x18   :  { %v4306_v5 = vld [vmem:[%s9514_s0 + $0x210] sm:$0xff]   ;;  %v4307_v6 = vld [vmem:[%s9514_s0 + $0x218] sm:$0xff]   ;;  %v4308_v7 = vld [vmem:[%s9514_s0 + $0x220] sm:$0xff]  }
  0x1e   :  { %4096 = vmatmul.mubr.msk.bf16.gmra.mrb[8].mxu0 %vm546_vm0, %v4245_v8  ;;  %4168 = vmatmul.mubr.msk.bf16.gmra.mrb[8].mxu1 %vm546_vm0, %v4281_v21  ;;  %v4309_v8 = vld [vmem:[%s9514_s0 + $0x228] sm:$0xff]  }
  0x1f   :  { %4099 = vmatprep.mubr.msk.bf16.mxu0 %vm546_vm0, %v4246_v9  ;;  %4171 = vmatprep.mubr.msk.bf16.mxu1 %vm546_vm0, %v4282_v22  ;;  %v4310_v9 = vld [vmem:[%s9514_s0 + $0x230] sm:$0xff]  }
  0x26   :  { %4100 = vmatmul.mubr.msk.bf16.gmra.mrb[12].mxu0 %vm546_vm0, %v4247_v10  ;;  %4172 = vmatmul.mubr.msk.bf16.gmra.mrb[12].mxu1 %vm546_vm0, %v4283_v25  ;;  %v4311_v10 = vld [vmem:[%s9514_s0 + $0x238] sm:$0xff]  }
  0x27   :  { %4103 = vmatprep.mubr.msk.bf16.mxu0 %vm546_vm0, %v4248_v11  ;;  %4175 = vmatprep.mubr.msk.bf16.mxu1 %vm546_vm0, %v4284_v26 }
  0x2e   :  { %4104 = vmatmul.mubr.msk.bf16.gmra.mrb[16].mxu0 %vm546_vm0, %v4249_v15  ;;  %4176 = vmatmul.mubr.msk.bf16.gmra.mrb[16].mxu1 %vm546_vm0, %v4285_v29 }
  0x2f   :  { %4107 = vmatprep.mubr.msk.bf16.mxu0 %vm546_vm0, %v4250_v16  ;;  %4179 = vmatprep.mubr.msk.bf16.mxu1 %vm546_vm0, %v4286_v30 }
  0x36   :  { %4108 = vmatmul.mubr.msk.bf16.gmra.mrb[20].mxu0 %vm546_vm0, %v4251_v19  ;;  %4180 = vmatmul.mubr.msk.bf16.gmra.mrb[20].mxu1 %vm546_vm0, %v4287_v33 }
  0x37   :  { %4111 = vmatprep.mubr.msk.bf16.mxu0 %vm546_vm0, %v4252_v20  ;;  %4183 = vmatprep.mubr.msk.bf16.mxu1 %vm546_vm0, %v4288_v34 }
  0x3e   :  { %4112 = vmatmul.mubr.msk.bf16.gmra.mrb[24].mxu0 %vm546_vm0, %v4253_v23  ;;  %4184 = vmatmul.mubr.msk.bf16.gmra.mrb[24].mxu1 %vm546_vm0, %v4289_v37 }
  0x3f   :  { %4115 = vmatprep.mubr.msk.bf16.mxu0 %vm546_vm0, %v4254_v24  ;;  %4187 = vmatprep.mubr.msk.bf16.mxu1 %vm546_vm0, %v4290_v38 }
  0x46   :  { %4116 = vmatmul.mubr.msk.bf16.gmra.mrb[28].mxu0 %vm546_vm0, %v4255_v27  ;;  %4188 = vmatmul.mubr.msk.bf16.gmra.mrb[28].mxu1 %vm546_vm0, %v4291_v41 }
  0x47   :  { %4119 = vmatprep.mubr.msk.bf16.mxu0 %vm546_vm0, %v4256_v28  ;;  %4191 = vmatprep.mubr.msk.bf16.mxu1 %vm546_vm0, %v4292_v42 }
  0x4e   :  { %4120 = vmatmul.mubr.msk.bf16.gmra.mrb[32].mxu0 %vm546_vm0, %v4257_v31  ;;  %4192 = vmatmul.mubr.msk.bf16.gmra.mrb[32].mxu1 %vm546_vm0, %v4293_v45 }
  0x4f   :  { %4123 = vmatprep.mubr.msk.bf16.mxu0 %vm546_vm0, %v4258_v32  ;;  %4195 = vmatprep.mubr.msk.bf16.mxu1 %vm546_vm0, %v4294_v46 }
  0x56   :  { %4124 = vmatmul.mubr.msk.bf16.gmra.mrb[36].mxu0 %vm546_vm0, %v4259_v35  ;;  %4196 = vmatmul.mubr.msk.bf16.gmra.mrb[36].mxu1 %vm546_vm0, %v4295_v49 }
  0x57   :  { %4127 = vmatprep.mubr.msk.bf16.mxu0 %vm546_vm0, %v4260_v36  ;;  %4199 = vmatprep.mubr.msk.bf16.mxu1 %vm546_vm0, %v4296_v50 }
  0x5e   :  { %4128 = vmatmul.mubr.msk.bf16.gmra.mrb[40].mxu0 %vm546_vm0, %v4261_v39  ;;  %4200 = vmatmul.mubr.msk.bf16.gmra.mrb[40].mxu1 %vm546_vm0, %v4297_v53 }
  0x5f   :  { %4131 = vmatprep.mubr.msk.bf16.mxu0 %vm546_vm0, %v4262_v40  ;;  %4203 = vmatprep.mubr.msk.bf16.mxu1 %vm546_vm0, %v4298_v54 }
  0x66   :  { %4132 = vmatmul.mubr.msk.bf16.gmra.mrb[44].mxu0 %vm546_vm0, %v4263_v43  ;;  %4204 = vmatmul.mubr.msk.bf16.gmra.mrb[44].mxu1 %vm546_vm0, %v4299_v57 }
  0x67   :  { %4135 = vmatprep.mubr.msk.bf16.mxu0 %vm546_vm0, %v4264_v44  ;;  %4207 = vmatprep.mubr.msk.bf16.mxu1 %vm546_vm0, %v4300_v58 }
  0x6e   :  { %4136 = vmatmul.mubr.msk.bf16.gmra.mrb[48].mxu0 %vm546_vm0, %v4265_v47  ;;  %4208 = vmatmul.mubr.msk.bf16.gmra.mrb[48].mxu1 %vm546_vm0, %v4301_v61 }
  0x6f   :  { %4139 = vmatprep.mubr.msk.bf16.mxu0 %vm546_vm0, %v4266_v48  ;;  %4211 = vmatprep.mubr.msk.bf16.mxu1 %vm546_vm0, %v4302_v62 }
  0x76   :  { %4140 = vmatmul.mubr.msk.bf16.gmra.mrb[52].mxu0 %vm546_vm0, %v4267_v51  ;;  %4212 = vmatmul.mubr.msk.bf16.gmra.mrb[52].mxu1 %vm546_vm0, %v4303_v1 }
  0x77   :  { %4143 = vmatprep.mubr.msk.bf16.mxu0 %vm546_vm0, %v4268_v52  ;;  %4215 = vmatprep.mubr.msk.bf16.mxu1 %vm546_vm0, %v4304_v2 }
  0x7e   :  { %4144 = vmatmul.mubr.msk.bf16.gmra.mrb[56].mxu0 %vm546_vm0, %v4269_v55  ;;  %4216 = vmatmul.mubr.msk.bf16.gmra.mrb[56].mxu1 %vm546_vm0, %v4305_v4 }
  0x7f   :  { %4147 = vmatprep.mubr.msk.bf16.mxu0 %vm546_vm0, %v4270_v56  ;;  %4219 = vmatprep.mubr.msk.bf16.mxu1 %vm546_vm0, %v4306_v5 }
  0x86   :  { %4148 = vmatmul.mubr.msk.bf16.gmra.mrb[60].mxu0 %vm546_vm0, %v4271_v59  ;;  %4220 = vmatmul.mubr.msk.bf16.gmra.mrb[60].mxu1 %vm546_vm0, %v4307_v6 }
  0x87   :  { %4151 = vmatprep.mubr.msk.bf16.mxu0 %vm546_vm0, %v4272_v60  ;;  %4223 = vmatprep.mubr.msk.bf16.mxu1 %vm546_vm0, %v4308_v7 }
  0x8e   :  { %4152 = vmatmul.mubr.msk.bf16.gmra.mrb[64].mxu0 %vm546_vm0, %v4273_v63  ;;  %4224 = vmatmul.mubr.msk.bf16.gmra.mrb[64].mxu1 %vm546_vm0, %v4309_v8 }
  0x8f   :  { %4155 = vmatprep.mubr.msk.bf16.mxu0 %vm546_vm0, %v4274_v0  ;;  %4227 = vmatprep.mubr.msk.bf16.mxu1 %vm546_vm0, %v4310_v9 }
  0x96   :  { %4156 = vmatmul.mubr.msk.bf16.gmra.mrb[68].mxu0 %vm546_vm0, %v4275_v3  ;;  %4228 = vmatmul.mubr.msk.bf16.gmra.mrb[68].mxu1 %vm546_vm0, %v4311_v10 }
  0xe1   :  { %v4636_v11 = vpop.f32.mrb[0].mxu0 }
  0xe2   :  { %9879 = vst [vmem:[#allocation2_spill] sm:$0xff] %v4636_v11  ;;  %v4638_v12 = vpop.f32.mrb[1].mxu0  ;;  %v1668_v16 = vmul.f32 %v4636_v11, %v4636_v11  ;;  %v1376_v21 = vsel %vm1372_vm1, %v4636_v11, 0.0 }
  0xe3   :  { %9880 = vst [vmem:[#allocation3_spill] sm:$0xff] %v4638_v12  ;;  %v1666_v13 = vmul.f32 %v4638_v12, %v4638_v12  ;;  %v4642_v14 = vpop.f32.mrb[2].mxu0  ;;  %v1373_v17 = vsel %vm1372_vm1, %v4638_v12, 0.0 }
  0xe4   :  { %9881 = vst [vmem:[#allocation4_spill] sm:$0xff] %v4642_v14  ;;  %v4644_v15 = vpop.f32.mrb[3].mxu0  ;;  %v1669_v23 = vmul.f32 %v4642_v14, %v4642_v14  ;;  %v1813_v27 = vsel %vm1372_vm1, %v1668_v16, 0.0  ;;  %v1378_v28 = vsel %vm1372_vm1, %v4642_v14, 0.0 }
  0xe5   :  { %9882 = vst [vmem:[#allocation5_spill] sm:$0xff] %v4644_v15  ;;  %v1374_v18 = vsel %vm1372_vm1, %v4644_v15, 0.0  ;;  %v1667_v19 = vmul.f32 %v4644_v15, %v4644_v15  ;;  %v1810_v22 = vsel %vm1372_vm1, %v1666_v13, 0.0 }
  0xe6   :  { %v1375_v20 = vadd.f32 %v1374_v18, %v1373_v17  ;;  %v1815_v33 = vsel %vm1372_vm1, %v1669_v23, 0.0 }
  0xe7   :  { %v1811_v24 = vsel %vm1372_vm1, %v1667_v19, 0.0 }
  0xe8   :  { %v1377_v25 = vadd.f32 %v1376_v21, %v1375_v20  ;;  %v1812_v26 = vadd.f32 %v1811_v24, %v1810_v22 }
  0xe9   :  { %v4663_v29 = vpop.f32.mrb[4].mxu0 }
  0xea   :  { %9883 = vst [vmem:[#allocation6_spill] sm:$0xff] %v4663_v29  ;;  %v1379_v30 = vadd.f32 %v1378_v28, %v1377_v25  ;;  %v1814_v31 = vadd.f32 %v1813_v27, %v1812_v26  ;;  %v4665_v32 = vpop.f32.mrb[5].mxu0  ;;  %v1672_v40 = vmul.f32 %v4663_v29, %v4663_v29  ;;  %v1384_v46 = vsel %vm1372_vm1, %v4663_v29, 0.0 }
  0xeb   :  { %9884 = vst [vmem:[#allocation7_spill] sm:$0xff] %v4665_v32  ;;  %v1380_v34 = vsel %vm1372_vm1, %v4665_v32, 0.0  ;;  %v1670_v35 = vmul.f32 %v4665_v32, %v4665_v32  ;;  %v4672_v36 = vpop.f32.mrb[6].mxu0 }
  0xec   :  { %9885 = vst [vmem:[#allocation8_spill] sm:$0xff] %v4672_v36  ;;  %v1816_v37 = vadd.f32 %v1815_v33, %v1814_v31  ;;  %v1381_v38 = vadd.f32 %v1380_v34, %v1379_v30  ;;  %v4674_v39 = vpop.f32.mrb[7].mxu0  ;;  %v1673_v47 = vmul.f32 %v4672_v36, %v4672_v36  ;;  %v1821_v51 = vsel %vm1372_vm1, %v1672_v40, 0.0  ;;  %v4739_v34 = vpop.f32.mrb[0].mxu1 }
  0xed   :  { %9886 = vst [vmem:[#allocation9_spill] sm:$0xff] %v4674_v39  ;;  %v1817_v41 = vsel %vm1372_vm1, %v1670_v35, 0.0  ;;  %v1382_v42 = vsel %vm1372_vm1, %v4674_v39, 0.0  ;;  %v1671_v43 = vmul.f32 %v4674_v39, %v4674_v39  ;;  %v1386_v52 = vsel %vm1372_vm1, %v4672_v36, 0.0  ;;  %9895 = vst [vmem:[#allocation18_spill] sm:$0xff] %v4739_v34 }
  0xee   :  { %v1818_v44 = vadd.f32 %v1817_v41, %v1816_v37  ;;  %v1383_v45 = vadd.f32 %v1382_v42, %v1381_v38  ;;  %v1823_v57 = vsel %vm1372_vm1, %v1673_v47, 0.0  ;;  %v4741_v38 = vpop.f32.mrb[1].mxu1 }
  0xef   :  { %v1819_v48 = vsel %vm1372_vm1, %v1671_v43, 0.0  ;;  %9896 = vst [vmem:[#allocation19_spill] sm:$0xff] %v4741_v38  ;;  %v4748_v43 = vpop.f32.mrb[2].mxu1 }
  0xf0   :  { %v1385_v49 = vadd.f32 %v1384_v46, %v1383_v45  ;;  %v1820_v50 = vadd.f32 %v1819_v48, %v1818_v44  ;;  %9897 = vst [vmem:[#allocation20_spill] sm:$0xff] %v4748_v43  ;;  %v4750_v46 = vpop.f32.mrb[3].mxu1 }
  0xf1   :  { %v4691_v53 = vpop.f32.mrb[8].mxu0  ;;  %9898 = vst [vmem:[#allocation21_spill] sm:$0xff] %v4750_v46 }
  0xf2   :  { %9887 = vst [vmem:[#allocation10_spill] sm:$0xff] %v4691_v53  ;;  %v1387_v54 = vadd.f32 %v1386_v52, %v1385_v49  ;;  %v1822_v55 = vadd.f32 %v1821_v51, %v1820_v50  ;;  %v4693_v56 = vpop.f32.mrb[9].mxu0  ;;  %v1676_v0 = vmul.f32 %v4691_v53, %v4691_v53  ;;  %v1392_v6 = vsel %vm1372_vm1, %v4691_v53, 0.0 }
  0xf3   :  { %9888 = vst [vmem:[#allocation11_spill] sm:$0xff] %v4693_v56  ;;  %v1388_v58 = vsel %vm1372_vm1, %v4693_v56, 0.0  ;;  %v1674_v59 = vmul.f32 %v4693_v56, %v4693_v56  ;;  %v4700_v60 = vpop.f32.mrb[10].mxu0 }
  0xf4   :  { %9889 = vst [vmem:[#allocation12_spill] sm:$0xff] %v4700_v60  ;;  %v1824_v61 = vadd.f32 %v1823_v57, %v1822_v55  ;;  %v1389_v62 = vadd.f32 %v1388_v58, %v1387_v54  ;;  %v4702_v63 = vpop.f32.mrb[11].mxu0  ;;  %v1677_v7 = vmul.f32 %v4700_v60, %v4700_v60  ;;  %v1829_v13 = vsel %vm1372_vm1, %v1676_v0, 0.0 }
  0xf5   :  { %9890 = vst [vmem:[#allocation13_spill] sm:$0xff] %v4702_v63  ;;  %v1825_v1 = vsel %vm1372_vm1, %v1674_v59, 0.0  ;;  %v1390_v2 = vsel %vm1372_vm1, %v4702_v63, 0.0  ;;  %v1675_v3 = vmul.f32 %v4702_v63, %v4702_v63  ;;  %v1394_v16 = vsel %vm1372_vm1, %v4700_v60, 0.0 }
  0xf6   :  { %v1826_v4 = vadd.f32 %v1825_v1, %v1824_v61  ;;  %v1391_v5 = vadd.f32 %v1390_v2, %v1389_v62  ;;  %v1831_v21 = vsel %vm1372_vm1, %v1677_v7, 0.0 }
  0xf7   :  { %v1827_v8 = vsel %vm1372_vm1, %v1675_v3, 0.0 }
  0xf8   :  { %v1393_v9 = vadd.f32 %v1392_v6, %v1391_v5  ;;  %v1828_v10 = vadd.f32 %v1827_v8, %v1826_v4  ;;  %v4775_v4 = vpop.f32.mrb[4].mxu1 }
  0xf9   :  { %v4719_v17 = vpop.f32.mrb[12].mxu0  ;;  %9903 = vst [vmem:[#allocation26_spill] sm:$0xff] %v4775_v4  ;;  %v4777_v7 = vpop.f32.mrb[5].mxu1 }
  0xfa   :  { %9891 = vst [vmem:[#allocation14_spill] sm:$0xff] %v4719_v17  ;;  %v1395_v18 = vadd.f32 %v1394_v16, %v1393_v9  ;;  %v1830_v19 = vadd.f32 %v1829_v13, %v1828_v10  ;;  %v4721_v20 = vpop.f32.mrb[13].mxu0  ;;  %v1680_v28 = vmul.f32 %v4719_v17, %v4719_v17  ;;  %v1400_v40 = vsel %vm1372_vm1, %v4719_v17, 0.0  ;;  %9904 = vst [vmem:[#allocation27_spill] sm:$0xff] %v4777_v7  ;;  %v4784_v13 = vpop.f32.mrb[6].mxu1 }
  0xfb   :  { %9892 = vst [vmem:[#allocation15_spill] sm:$0xff] %v4721_v20  ;;  %v1396_v22 = vsel %vm1372_vm1, %v4721_v20, 0.0  ;;  %v1678_v23 = vmul.f32 %v4721_v20, %v4721_v20  ;;  %v4728_v24 = vpop.f32.mrb[14].mxu0  ;;  %9905 = vst [vmem:[#allocation28_spill] sm:$0xff] %v4784_v13 }
  0xfc   :  { %9893 = vst [vmem:[#allocation16_spill] sm:$0xff] %v4728_v24  ;;  %v1832_v25 = vadd.f32 %v1831_v21, %v1830_v19  ;;  %v1397_v26 = vadd.f32 %v1396_v22, %v1395_v18  ;;  %v4730_v27 = vpop.f32.mrb[15].mxu0  ;;  %v1681_v41 = vmul.f32 %v4728_v24, %v4728_v24  ;;  %v1837_v47 = vsel %vm1372_vm1, %v1680_v28, 0.0  ;;  %v4786_v19 = vpop.f32.mrb[7].mxu1 }
  0xfd   :  { %9894 = vst [vmem:[#allocation17_spill] sm:$0xff] %v4730_v27  ;;  %v1833_v30 = vsel %vm1372_vm1, %v1678_v23, 0.0  ;;  %v1398_v31 = vsel %vm1372_vm1, %v4730_v27, 0.0  ;;  %v1679_v33 = vmul.f32 %v4730_v27, %v4730_v27  ;;  %v1402_v48 = vsel %vm1372_vm1, %v4728_v24, 0.0  ;;  %9906 = vst [vmem:[#allocation29_spill] sm:$0xff] %v4786_v19 }
  0xfe   :  { %v1834_v35 = vadd.f32 %v1833_v30, %v1832_v25  ;;  %v1399_v37 = vadd.f32 %v1398_v31, %v1397_v26  ;;  %v1839_v54 = vsel %vm1372_vm1, %v1681_v41, 0.0 }
  0xff   :  { %v1835_v42 = vsel %vm1372_vm1, %v1679_v33, 0.0 }
 0x100   :  { %v1401_v44 = vadd.f32 %v1400_v40, %v1399_v37  ;;  %v1836_v45 = vadd.f32 %v1835_v42, %v1834_v35 }
 0x101   :  { %v4755_v49 = vpop.f32.mrb[16].mxu0 }
 0x102   :  { %9899 = vst [vmem:[#allocation22_spill] sm:$0xff] %v4755_v49  ;;  %v1838_v50 = vadd.f32 %v1837_v47, %v1836_v45  ;;  %v4757_v51 = vpop.f32.mrb[17].mxu0  ;;  %v1403_v52 = vadd.f32 %v1402_v48, %v1401_v44  ;;  %v1684_v0 = vmul.f32 %v4755_v49, %v4755_v49  ;;  %v1408_v8 = vsel %vm1372_vm1, %v4755_v49, 0.0  ;;  %v4811_v48 = vpop.f32.mrb[8].mxu1 }
 0x103   :  { %9900 = vst [vmem:[#allocation23_spill] sm:$0xff] %v4757_v51  ;;  %v1404_v55 = vsel %vm1372_vm1, %v4757_v51, 0.0  ;;  %v1682_v57 = vmul.f32 %v4757_v51, %v4757_v51  ;;  %v4764_v58 = vpop.f32.mrb[18].mxu0  ;;  %9911 = vst [vmem:[#allocation34_spill] sm:$0xff] %v4811_v48 }
 0x104   :  { %9901 = vst [vmem:[#allocation24_spill] sm:$0xff] %v4764_v58  ;;  %v1405_v59 = vadd.f32 %v1404_v55, %v1403_v52  ;;  %v1840_v61 = vadd.f32 %v1839_v54, %v1838_v50  ;;  %v4766_v62 = vpop.f32.mrb[19].mxu0  ;;  %v1685_v9 = vmul.f32 %v4764_v58, %v4764_v58  ;;  %v1845_v21 = vsel %vm1372_vm1, %v1684_v0, 0.0  ;;  %v4813_v54 = vpop.f32.mrb[9].mxu1 }
 0x105   :  { %9902 = vst [vmem:[#allocation25_spill] sm:$0xff] %v4766_v62  ;;  %v1841_v1 = vsel %vm1372_vm1, %v1682_v57, 0.0  ;;  %v1406_v2 = vsel %vm1372_vm1, %v4766_v62, 0.0  ;;  %v1683_v3 = vmul.f32 %v4766_v62, %v4766_v62  ;;  %v1410_v22 = vsel %vm1372_vm1, %v4764_v58, 0.0  ;;  %9912 = vst [vmem:[#allocation35_spill] sm:$0xff] %v4813_v54 }
 0x106   :  { %v1842_v5 = vadd.f32 %v1841_v1, %v1840_v61  ;;  %v1407_v6 = vadd.f32 %v1406_v2, %v1405_v59  ;;  %v1847_v30 = vsel %vm1372_vm1, %v1685_v9, 0.0  ;;  %v4820_v61 = vpop.f32.mrb[10].mxu1 }
 0x107   :  { %v1843_v10 = vsel %vm1372_vm1, %v1683_v3, 0.0  ;;  %9913 = vst [vmem:[#allocation36_spill] sm:$0xff] %v4820_v61  ;;  %v4822_v2 = vpop.f32.mrb[11].mxu1 }
 0x108   :  { %v1409_v16 = vadd.f32 %v1408_v8, %v1407_v6  ;;  %v1844_v18 = vadd.f32 %v1843_v10, %v1842_v5  ;;  %9914 = vst [vmem:[#allocation37_spill] sm:$0xff] %v4822_v2 }
 0x109   :  { %v4791_v23 = vpop.f32.mrb[20].mxu0 }
 0x10a   :  { %9907 = vst [vmem:[#allocation30_spill] sm:$0xff] %v4791_v23  ;;  %v1846_v25 = vadd.f32 %v1845_v21, %v1844_v18  ;;  %v4793_v26 = vpop.f32.mrb[21].mxu0  ;;  %v1411_v28 = vadd.f32 %v1410_v22, %v1409_v16  ;;  %v1688_v42 = vmul.f32 %v4791_v23, %v4791_v23  ;;  %v1416_v55 = vsel %vm1372_vm1, %v4791_v23, 0.0 }
 0x10b   :  { %9908 = vst [vmem:[#allocation31_spill] sm:$0xff] %v4793_v26  ;;  %v1412_v31 = vsel %vm1372_vm1, %v4793_v26, 0.0  ;;  %v1686_v33 = vmul.f32 %v4793_v26, %v4793_v26  ;;  %v4800_v35 = vpop.f32.mrb[22].mxu0 }
 0x10c   :  { %9909 = vst [vmem:[#allocation32_spill] sm:$0xff] %v4800_v35  ;;  %v1413_v37 = vadd.f32 %v1412_v31, %v1411_v28  ;;  %v1848_v40 = vadd.f32 %v1847_v30, %v1846_v25  ;;  %v4802_v41 = vpop.f32.mrb[23].mxu0  ;;  %v1689_v57 = vmul.f32 %v4800_v35, %v4800_v35  ;;  %v1853_v3 = vsel %vm1372_vm1, %v1688_v42, 0.0  ;;  %v4847_v42 = vpop.f32.mrb[12].mxu1 }
 0x10d   :  { %9910 = vst [vmem:[#allocation33_spill] sm:$0xff] %v4802_v41  ;;  %v1849_v44 = vsel %vm1372_vm1, %v1686_v33, 0.0  ;;  %v1414_v45 = vsel %vm1372_vm1, %v4802_v41, 0.0  ;;  %v1687_v47 = vmul.f32 %v4802_v41, %v4802_v41  ;;  %v1418_v5 = vsel %vm1372_vm1, %v4800_v35, 0.0 }
 0x10e   :  { %v1850_v50 = vadd.f32 %v1849_v44, %v1848_v40  ;;  %v1415_v52 = vadd.f32 %v1414_v45, %v1413_v37  ;;  %v1855_v16 = vsel %vm1372_vm1, %v1689_v57, 0.0 }
 0x10f   :  { %v1851_v59 = vsel %vm1372_vm1, %v1687_v47, 0.0  ;;  %v4849_v47 = vpop.f32.mrb[13].mxu1 }
 0x110   :  { %v1417_v0 = vadd.f32 %v1416_v55, %v1415_v52  ;;  %v1852_v1 = vadd.f32 %v1851_v59, %v1850_v50  ;;  %v4856_v57 = vpop.f32.mrb[14].mxu1 }
 0x111   :  { %v4827_v6 = vpop.f32.mrb[24].mxu0 }
 0x112   :  { %9915 = vst [vmem:[#allocation38_spill] sm:$0xff] %v4827_v6  ;;  %v1854_v8 = vadd.f32 %v1853_v3, %v1852_v1  ;;  %v4829_v9 = vpop.f32.mrb[25].mxu0  ;;  %v1419_v10 = vadd.f32 %v1418_v5, %v1417_v0  ;;  %v1692_v31 = vmul.f32 %v4827_v6, %v4827_v6  ;;  %v1424_v50 = vsel %vm1372_vm1, %v4827_v6, 0.0  ;;  %v4858_v1 = vpop.f32.mrb[15].mxu1 }
 0x113   :  { %9916 = vst [vmem:[#allocation39_spill] sm:$0xff] %v4829_v9  ;;  %v1420_v18 = vsel %vm1372_vm1, %v4829_v9, 0.0  ;;  %v1690_v21 = vmul.f32 %v4829_v9, %v4829_v9  ;;  %v4836_v22 = vpop.f32.mrb[26].mxu0 }
 0x114   :  { %9917 = vst [vmem:[#allocation40_spill] sm:$0xff] %v4836_v22  ;;  %v1421_v25 = vadd.f32 %v1420_v18, %v1419_v10  ;;  %v1856_v28 = vadd.f32 %v1855_v16, %v1854_v8  ;;  %v4838_v30 = vpop.f32.mrb[27].mxu0  ;;  %v1693_v52 = vmul.f32 %v4836_v22, %v4836_v22  ;;  %v1861_v3 = vsel %vm1372_vm1, %v1692_v31, 0.0 }
 0x115   :  { %9918 = vst [vmem:[#allocation41_spill] sm:$0xff] %v4838_v30  ;;  %v1857_v33 = vsel %vm1372_vm1, %v1690_v21, 0.0  ;;  %v1422_v37 = vsel %vm1372_vm1, %v4838_v30, 0.0  ;;  %v1691_v40 = vmul.f32 %v4838_v30, %v4838_v30  ;;  %v1426_v5 = vsel %vm1372_vm1, %v4836_v22, 0.0 }
 0x116   :  { %v1858_v44 = vadd.f32 %v1857_v33, %v1856_v28  ;;  %v1423_v45 = vadd.f32 %v1422_v37, %v1421_v25  ;;  %v1863_v21 = vsel %vm1372_vm1, %v1693_v52, 0.0 }
 0x117   :  { %v1859_v55 = vsel %vm1372_vm1, %v1691_v40, 0.0 }
 0x118   :  { %v1425_v59 = vadd.f32 %v1424_v50, %v1423_v45  ;;  %v1860_v0 = vadd.f32 %v1859_v55, %v1858_v44  ;;  %v4883_v55 = vpop.f32.mrb[16].mxu1 }
 0x119   :  { %v4863_v8 = vpop.f32.mrb[28].mxu0 }
 0x11a   :  { %9919 = vst [vmem:[#allocation42_spill] sm:$0xff] %v4863_v8  ;;  %v1862_v10 = vadd.f32 %v1861_v3, %v1860_v0  ;;  %v4865_v16 = vpop.f32.mrb[29].mxu0  ;;  %v1427_v18 = vadd.f32 %v1426_v5, %v1425_v59  ;;  %v1696_v44 = vmul.f32 %v4863_v8, %v4863_v8  ;;  %v4885_v3 = vpop.f32.mrb[17].mxu1  ;;  %v1432_v5 = vsel %vm1372_vm1, %v4863_v8, 0.0 }
 0x11b   :  { %9920 = vst [vmem:[#allocation43_spill] sm:$0xff] %v4865_v16  ;;  %v1428_v25 = vsel %vm1372_vm1, %v4865_v16, 0.0  ;;  %v1694_v28 = vmul.f32 %v4865_v16, %v4865_v16  ;;  %v4872_v33 = vpop.f32.mrb[30].mxu0 }
 0x11c   :  { %9921 = vst [vmem:[#allocation44_spill] sm:$0xff] %v4872_v33  ;;  %v1429_v31 = vadd.f32 %v1428_v25, %v1427_v18  ;;  %v1864_v37 = vadd.f32 %v1863_v21, %v1862_v10  ;;  %v4874_v40 = vpop.f32.mrb[31].mxu0  ;;  %v1697_v10 = vmul.f32 %v4872_v33, %v4872_v33  ;;  %v4892_v21 = vpop.f32.mrb[18].mxu1 }
 0x11d   :  { %9922 = vst [vmem:[#allocation45_spill] sm:$0xff] %v4874_v40  ;;  %v1865_v45 = vsel %vm1372_vm1, %v1694_v28, 0.0  ;;  %v1430_v50 = vsel %vm1372_vm1, %v4874_v40, 0.0  ;;  %v1695_v52 = vmul.f32 %v4874_v40, %v4874_v40  ;;  %v4894_v16 = vpop.f32.mrb[19].mxu1  ;;  %v1869_v40 = vsel %vm1372_vm1, %v1696_v44, 0.0 }
 0x11e   :  { %v1866_v59 = vadd.f32 %v1865_v45, %v1864_v37  ;;  %v1431_v0 = vadd.f32 %v1430_v50, %v1429_v31  ;;  %v1434_v31 = vsel %vm1372_vm1, %v4872_v33, 0.0  ;;  %v1871_v22 = vsel %vm1372_vm1, %v1697_v10, 0.0 }
 0x11f   :  { %v1867_v18 = vsel %vm1372_vm1, %v1695_v52, 0.0 }
 0x120   :  { %v1433_v25 = vadd.f32 %v1432_v5, %v1431_v0  ;;  %v1868_v28 = vadd.f32 %v1867_v18, %v1866_v59 }
 0x121   :  { %v4899_v37 = vpop.f32.mrb[32].mxu0 }
 0x122   :  { %9923 = vst [vmem:[#allocation46_spill] sm:$0xff] %v4899_v37  ;;  %v1870_v45 = vadd.f32 %v1869_v40, %v1868_v28  ;;  %v4901_v50 = vpop.f32.mrb[33].mxu0  ;;  %v1435_v8 = vadd.f32 %v1434_v31, %v1433_v25  ;;  %v1700_v40 = vmul.f32 %v4899_v37, %v4899_v37  ;;  %v4919_v31 = vpop.f32.mrb[20].mxu1 }
 0x123   :  { %9924 = vst [vmem:[#allocation47_spill] sm:$0xff] %v4901_v50  ;;  %v1436_v52 = vsel %vm1372_vm1, %v4901_v50, 0.0  ;;  %v1698_v59 = vmul.f32 %v4901_v50, %v4901_v50  ;;  %v4908_v0 = vpop.f32.mrb[34].mxu0  ;;  %v4921_v6 = vpop.f32.mrb[21].mxu1 }
 0x124   :  { %9925 = vst [vmem:[#allocation48_spill] sm:$0xff] %v4908_v0  ;;  %v1437_v44 = vadd.f32 %v1436_v52, %v1435_v8  ;;  %v1872_v5 = vadd.f32 %v1871_v22, %v1870_v45  ;;  %v4910_v18 = vpop.f32.mrb[35].mxu0  ;;  %v1440_v22 = vsel %vm1372_vm1, %v4899_v37, 0.0  ;;  %v1701_v8 = vmul.f32 %v4908_v0, %v4908_v0  ;;  %v4928_v52 = vpop.f32.mrb[22].mxu1 }
 0x125   :  { %9926 = vst [vmem:[#allocation49_spill] sm:$0xff] %v4910_v18  ;;  %v1873_v28 = vsel %vm1372_vm1, %v1698_v59, 0.0  ;;  %v1438_v10 = vsel %vm1372_vm1, %v4910_v18, 0.0  ;;  %v1699_v25 = vmul.f32 %v4910_v18, %v4910_v18  ;;  %v4930_v9 = vpop.f32.mrb[23].mxu1  ;;  %v1877_v18 = vsel %vm1372_vm1, %v1700_v40, 0.0 }
 0x126   :  { %v1874_v50 = vadd.f32 %v1873_v28, %v1872_v5  ;;  %v1439_v33 = vadd.f32 %v1438_v10, %v1437_v44  ;;  %v1442_v44 = vsel %vm1372_vm1, %v4908_v0, 0.0  ;;  %v1879_v35 = vsel %vm1372_vm1, %v1701_v8, 0.0 }
 0x127   :  { %v1875_v45 = vsel %vm1372_vm1, %v1699_v25, 0.0 }
 0x128   :  { %v1441_v59 = vadd.f32 %v1440_v22, %v1439_v33  ;;  %v1876_v30 = vadd.f32 %v1875_v45, %v1874_v50 }
 0x129   :  { %v4935_v5 = vpop.f32.mrb[36].mxu0 }
 0x12a   :  { %9927 = vst [vmem:[#allocation50_spill] sm:$0xff] %v4935_v5  ;;  %v1878_v28 = vadd.f32 %v1877_v18, %v1876_v30  ;;  %v4937_v10 = vpop.f32.mrb[37].mxu0  ;;  %v1443_v37 = vadd.f32 %v1442_v44, %v1441_v59  ;;  %v1704_v30 = vmul.f32 %v4935_v5, %v4935_v5  ;;  %v4955_v44 = vpop.f32.mrb[24].mxu1 }
 0x12b   :  { %9928 = vst [vmem:[#allocation51_spill] sm:$0xff] %v4937_v10  ;;  %v1444_v25 = vsel %vm1372_vm1, %v4937_v10, 0.0  ;;  %v1702_v33 = vmul.f32 %v4937_v10, %v4937_v10  ;;  %v4944_v50 = vpop.f32.mrb[38].mxu0  ;;  %v4957_v23 = vpop.f32.mrb[25].mxu1 }
 0x12c   :  { %9929 = vst [vmem:[#allocation52_spill] sm:$0xff] %v4944_v50  ;;  %v1445_v40 = vadd.f32 %v1444_v25, %v1443_v37  ;;  %v1880_v22 = vadd.f32 %v1879_v35, %v1878_v28  ;;  %v4946_v45 = vpop.f32.mrb[39].mxu0  ;;  %v1448_v35 = vsel %vm1372_vm1, %v4935_v5, 0.0  ;;  %v1705_v37 = vmul.f32 %v4944_v50, %v4944_v50  ;;  %v4964_v25 = vpop.f32.mrb[26].mxu1 }
 0x12d   :  { %9930 = vst [vmem:[#allocation53_spill] sm:$0xff] %v4946_v45  ;;  %v1881_v18 = vsel %vm1372_vm1, %v1702_v33, 0.0  ;;  %v1446_v8 = vsel %vm1372_vm1, %v4946_v45, 0.0  ;;  %v1703_v59 = vmul.f32 %v4946_v45, %v4946_v45  ;;  %v4966_v26 = vpop.f32.mrb[27].mxu1  ;;  %v1885_v45 = vsel %vm1372_vm1, %v1704_v30, 0.0 }
 0x12e   :  { %v1882_v10 = vadd.f32 %v1881_v18, %v1880_v22  ;;  %v1447_v0 = vadd.f32 %v1446_v8, %v1445_v40  ;;  %v1450_v40 = vsel %vm1372_vm1, %v4944_v50, 0.0  ;;  %v1887_v58 = vsel %vm1372_vm1, %v1705_v37, 0.0 }
 0x12f   :  { %v1883_v28 = vsel %vm1372_vm1, %v1703_v59, 0.0 }
 0x130   :  { %v1449_v33 = vadd.f32 %v1448_v35, %v1447_v0  ;;  %v1884_v41 = vadd.f32 %v1883_v28, %v1882_v10 }
 0x131   :  { %v4971_v22 = vpop.f32.mrb[40].mxu0 }
 0x132   :  { %9931 = vst [vmem:[#allocation54_spill] sm:$0xff] %v4971_v22  ;;  %v1886_v18 = vadd.f32 %v1885_v45, %v1884_v41  ;;  %v4973_v8 = vpop.f32.mrb[41].mxu0  ;;  %v1451_v5 = vadd.f32 %v1450_v40, %v1449_v33  ;;  %v1708_v41 = vmul.f32 %v4971_v22, %v4971_v22  ;;  %v4991_v40 = vpop.f32.mrb[28].mxu1 }
 0x133   :  { %9932 = vst [vmem:[#allocation55_spill] sm:$0xff] %v4973_v8  ;;  %v1452_v59 = vsel %vm1372_vm1, %v4973_v8, 0.0  ;;  %v1706_v0 = vmul.f32 %v4973_v8, %v4973_v8  ;;  %v4980_v10 = vpop.f32.mrb[42].mxu0  ;;  %v4993_v49 = vpop.f32.mrb[29].mxu1 }
 0x134   :  { %9933 = vst [vmem:[#allocation56_spill] sm:$0xff] %v4980_v10  ;;  %v1453_v30 = vadd.f32 %v1452_v59, %v1451_v5  ;;  %v1888_v35 = vadd.f32 %v1887_v58, %v1886_v18  ;;  %v4982_v28 = vpop.f32.mrb[43].mxu0  ;;  %v1456_v58 = vsel %vm1372_vm1, %v4971_v22, 0.0  ;;  %v1709_v5 = vmul.f32 %v4980_v10, %v4980_v10  ;;  %v5000_v59 = vpop.f32.mrb[30].mxu1 }
 0x135   :  { %9934 = vst [vmem:[#allocation57_spill] sm:$0xff] %v4982_v28  ;;  %v1889_v45 = vsel %vm1372_vm1, %v1706_v0, 0.0  ;;  %v1454_v37 = vsel %vm1372_vm1, %v4982_v28, 0.0  ;;  %v1707_v33 = vmul.f32 %v4982_v28, %v4982_v28  ;;  %v5002_v51 = vpop.f32.mrb[31].mxu1  ;;  %v1893_v28 = vsel %vm1372_vm1, %v1708_v41, 0.0 }
 0x136   :  { %v1890_v8 = vadd.f32 %v1889_v45, %v1888_v35  ;;  %v1455_v50 = vadd.f32 %v1454_v37, %v1453_v30  ;;  %v1458_v30 = vsel %vm1372_vm1, %v4980_v10, 0.0  ;;  %v1895_v24 = vsel %vm1372_vm1, %v1709_v5, 0.0 }
 0x137   :  { %v1891_v18 = vsel %vm1372_vm1, %v1707_v33, 0.0 }
 0x138   :  { %v1457_v0 = vadd.f32 %v1456_v58, %v1455_v50  ;;  %v1892_v62 = vadd.f32 %v1891_v18, %v1890_v8 }
 0x139   :  { %v5007_v35 = vpop.f32.mrb[44].mxu0 }
 0x13a   :  { %9935 = vst [vmem:[#allocation58_spill] sm:$0xff] %v5007_v35  ;;  %v1894_v45 = vadd.f32 %v1893_v28, %v1892_v62  ;;  %v5009_v37 = vpop.f32.mrb[45].mxu0  ;;  %v1459_v22 = vadd.f32 %v1458_v30, %v1457_v0  ;;  %v1712_v62 = vmul.f32 %v5007_v35, %v5007_v35  ;;  %v5027_v30 = vpop.f32.mrb[32].mxu1 }
 0x13b   :  { %9936 = vst [vmem:[#allocation59_spill] sm:$0xff] %v5009_v37  ;;  %v1460_v33 = vsel %vm1372_vm1, %v5009_v37, 0.0  ;;  %v1710_v50 = vmul.f32 %v5009_v37, %v5009_v37  ;;  %v5016_v8 = vpop.f32.mrb[46].mxu0  ;;  %v5029_v17 = vpop.f32.mrb[33].mxu1 }
 0x13c   :  { %9937 = vst [vmem:[#allocation60_spill] sm:$0xff] %v5016_v8  ;;  %v1461_v41 = vadd.f32 %v1460_v33, %v1459_v22  ;;  %v1896_v58 = vadd.f32 %v1895_v24, %v1894_v45  ;;  %v5018_v18 = vpop.f32.mrb[47].mxu0  ;;  %v1464_v24 = vsel %vm1372_vm1, %v5007_v35, 0.0  ;;  %v1713_v22 = vmul.f32 %v5016_v8, %v5016_v8  ;;  %v5036_v33 = vpop.f32.mrb[34].mxu1 }
 0x13d   :  { %9938 = vst [vmem:[#allocation61_spill] sm:$0xff] %v5018_v18  ;;  %v1897_v28 = vsel %vm1372_vm1, %v1710_v50, 0.0  ;;  %v1462_v5 = vsel %vm1372_vm1, %v5018_v18, 0.0  ;;  %v1711_v0 = vmul.f32 %v5018_v18, %v5018_v18  ;;  %v5038_v20 = vpop.f32.mrb[35].mxu1  ;;  %v1901_v18 = vsel %vm1372_vm1, %v1712_v62, 0.0 }
 0x13e   :  { %v1898_v37 = vadd.f32 %v1897_v28, %v1896_v58  ;;  %v1463_v10 = vadd.f32 %v1462_v5, %v1461_v41  ;;  %v1466_v41 = vsel %vm1372_vm1, %v5016_v8, 0.0  ;;  %v1903_v60 = vsel %vm1372_vm1, %v1713_v22, 0.0 }
 0x13f   :  { %v1899_v45 = vsel %vm1372_vm1, %v1711_v0, 0.0 }
 0x140   :  { %v1465_v50 = vadd.f32 %v1464_v24, %v1463_v10  ;;  %v1900_v27 = vadd.f32 %v1899_v45, %v1898_v37 }
 0x141   :  { %v5043_v58 = vpop.f32.mrb[48].mxu0 }
 0x142   :  { %9939 = vst [vmem:[#allocation62_spill] sm:$0xff] %v5043_v58  ;;  %v1902_v28 = vadd.f32 %v1901_v18, %v1900_v27  ;;  %v5045_v5 = vpop.f32.mrb[49].mxu0  ;;  %v1467_v35 = vadd.f32 %v1466_v41, %v1465_v50  ;;  %v1716_v27 = vmul.f32 %v5043_v58, %v5043_v58  ;;  %v5063_v41 = vpop.f32.mrb[36].mxu1 }
 0x143   :  { %9940 = vst [vmem:[#allocation63_spill] sm:$0xff] %v5045_v5  ;;  %v1468_v0 = vsel %vm1372_vm1, %v5045_v5, 0.0  ;;  %v1714_v10 = vmul.f32 %v5045_v5, %v5045_v5  ;;  %v5052_v37 = vpop.f32.mrb[50].mxu0  ;;  %v5065_v53 = vpop.f32.mrb[37].mxu1 }
 0x144   :  { %9941 = vst [vmem:[#allocation64_spill] sm:$0xff] %v5052_v37  ;;  %v1469_v62 = vadd.f32 %v1468_v0, %v1467_v35  ;;  %v1904_v24 = vadd.f32 %v1903_v60, %v1902_v28  ;;  %v5054_v45 = vpop.f32.mrb[51].mxu0  ;;  %v1472_v60 = vsel %vm1372_vm1, %v5043_v58, 0.0  ;;  %v1717_v35 = vmul.f32 %v5052_v37, %v5052_v37  ;;  %v5072_v0 = vpop.f32.mrb[38].mxu1 }
 0x145   :  { %9942 = vst [vmem:[#allocation65_spill] sm:$0xff] %v5054_v45  ;;  %v1905_v18 = vsel %vm1372_vm1, %v1714_v10, 0.0  ;;  %v1470_v22 = vsel %vm1372_vm1, %v5054_v45, 0.0  ;;  %v1715_v50 = vmul.f32 %v5054_v45, %v5054_v45  ;;  %v5074_v56 = vpop.f32.mrb[39].mxu1  ;;  %v1909_v45 = vsel %vm1372_vm1, %v1716_v27, 0.0 }
 0x146   :  { %v1906_v5 = vadd.f32 %v1905_v18, %v1904_v24  ;;  %v1471_v8 = vadd.f32 %v1470_v22, %v1469_v62  ;;  %v1474_v62 = vsel %vm1372_vm1, %v5052_v37, 0.0  ;;  %v1911_v36 = vsel %vm1372_vm1, %v1717_v35, 0.0 }
 0x147   :  { %v1907_v28 = vsel %vm1372_vm1, %v1715_v50, 0.0 }
 0x148   :  { %v1473_v10 = vadd.f32 %v1472_v60, %v1471_v8  ;;  %v1908_v63 = vadd.f32 %v1907_v28, %v1906_v5 }
 0x149   :  { %v5079_v24 = vpop.f32.mrb[52].mxu0 }
 0x14a   :  { %9943 = vst [vmem:[#allocation66_spill] sm:$0xff] %v5079_v24  ;;  %v1910_v18 = vadd.f32 %v1909_v45, %v1908_v63  ;;  %v5081_v22 = vpop.f32.mrb[53].mxu0  ;;  %v1475_v58 = vadd.f32 %v1474_v62, %v1473_v10  ;;  %v1720_v63 = vmul.f32 %v5079_v24, %v5079_v24  ;;  %v5099_v62 = vpop.f32.mrb[40].mxu1 }
 0x14b   :  { %9944 = vst [vmem:[#allocation67_spill] sm:$0xff] %v5081_v22  ;;  %v1476_v50 = vsel %vm1372_vm1, %v5081_v22, 0.0  ;;  %v1718_v8 = vmul.f32 %v5081_v22, %v5081_v22  ;;  %v5088_v5 = vpop.f32.mrb[54].mxu0  ;;  %9947 = vst [vmem:[#allocation70_spill] sm:$0xff] %v5099_v62  ;;  %v5101_v29 = vpop.f32.mrb[41].mxu1 }
 0x14c   :  { %9945 = vst [vmem:[#allocation68_spill] sm:$0xff] %v5088_v5  ;;  %v1477_v27 = vadd.f32 %v1476_v50, %v1475_v58  ;;  %v1912_v60 = vadd.f32 %v1911_v36, %v1910_v18  ;;  %v5090_v28 = vpop.f32.mrb[55].mxu0  ;;  %v1480_v36 = vsel %vm1372_vm1, %v5079_v24, 0.0  ;;  %v1721_v58 = vmul.f32 %v5088_v5, %v5088_v5  ;;  %v5108_v50 = vpop.f32.mrb[42].mxu1 }
 0x14d   :  { %9946 = vst [vmem:[#allocation69_spill] sm:$0xff] %v5090_v28  ;;  %v1913_v45 = vsel %vm1372_vm1, %v1718_v8, 0.0  ;;  %v1478_v35 = vsel %vm1372_vm1, %v5090_v28, 0.0  ;;  %v1719_v10 = vmul.f32 %v5090_v28, %v5090_v28  ;;  %9948 = vst [vmem:[#allocation71_spill] sm:$0xff] %v5108_v50  ;;  %v5110_v32 = vpop.f32.mrb[43].mxu1  ;;  %v1917_v28 = vsel %vm1372_vm1, %v1720_v63, 0.0 }
 0x14e   :  { %v1914_v22 = vadd.f32 %v1913_v45, %v1912_v60  ;;  %v1479_v37 = vadd.f32 %v1478_v35, %v1477_v27  ;;  %9949 = vst [vmem:[#allocation72_spill] sm:$0xff] %v5110_v32  ;;  %v1482_v27 = vsel %vm1372_vm1, %v5088_v5, 0.0  ;;  %v1919_v14 = vsel %vm1372_vm1, %v1721_v58, 0.0 }
 0x14f   :  { %v1915_v18 = vsel %vm1372_vm1, %v1719_v10, 0.0 }
 0x150   :  { %v1481_v8 = vadd.f32 %v1480_v36, %v1479_v37  ;;  %v1916_v39 = vadd.f32 %v1915_v18, %v1914_v22 }
 0x151   :  { %v5115_v60 = vpop.f32.mrb[56].mxu0 }
 0x152   :  { %9950 = vst [vmem:[#allocation73_spill] sm:$0xff] %v5115_v60  ;;  %v1918_v45 = vadd.f32 %v1917_v28, %v1916_v39  ;;  %v5117_v35 = vpop.f32.mrb[57].mxu0  ;;  %v1483_v24 = vadd.f32 %v1482_v27, %v1481_v8  ;;  %v1724_v39 = vmul.f32 %v5115_v60, %v5115_v60  ;;  %v5135_v27 = vpop.f32.mrb[44].mxu1 }
 0x153   :  { %9951 = vst [vmem:[#allocation74_spill] sm:$0xff] %v5117_v35  ;;  %v1484_v10 = vsel %vm1372_vm1, %v5117_v35, 0.0  ;;  %v1722_v37 = vmul.f32 %v5117_v35, %v5117_v35  ;;  %v5124_v22 = vpop.f32.mrb[58].mxu0  ;;  %9954 = vst [vmem:[#allocation77_spill] sm:$0xff] %v5135_v27  ;;  %v5137_v11 = vpop.f32.mrb[45].mxu1 }
 0x154   :  { %9952 = vst [vmem:[#allocation75_spill] sm:$0xff] %v5124_v22  ;;  %v1485_v63 = vadd.f32 %v1484_v10, %v1483_v24  ;;  %v1920_v36 = vadd.f32 %v1919_v14, %v1918_v45  ;;  %v5126_v18 = vpop.f32.mrb[59].mxu0  ;;  %9955 = vst [vmem:[#allocation78_spill] sm:$0xff] %v5137_v11  ;;  %v1488_v14 = vsel %vm1372_vm1, %v5115_v60, 0.0  ;;  %v1725_v24 = vmul.f32 %v5124_v22, %v5124_v22  ;;  %v5144_v10 = vpop.f32.mrb[46].mxu1 }
 0x155   :  { %9953 = vst [vmem:[#allocation76_spill] sm:$0xff] %v5126_v18  ;;  %v1921_v28 = vsel %vm1372_vm1, %v1722_v37, 0.0  ;;  %v1486_v58 = vsel %vm1372_vm1, %v5126_v18, 0.0  ;;  %v1723_v8 = vmul.f32 %v5126_v18, %v5126_v18  ;;  %9956 = vst [vmem:[#allocation79_spill] sm:$0xff] %v5144_v10  ;;  %v5146_v12 = vpop.f32.mrb[47].mxu1  ;;  %v1925_v18 = vsel %vm1372_vm1, %v1724_v39, 0.0 }
 0x156   :  { %v1922_v35 = vadd.f32 %v1921_v28, %v1920_v36  ;;  %v1487_v5 = vadd.f32 %v1486_v58, %v1485_v63  ;;  %9957 = vst [vmem:[#allocation80_spill] sm:$0xff] %v5146_v12  ;;  %v1490_v63 = vsel %vm1372_vm1, %v5124_v22, 0.0  ;;  %v1927_v27 = vsel %vm1372_vm1, %v1725_v24, 0.0 }
 0x157   :  { %v1923_v45 = vsel %vm1372_vm1, %v1723_v8, 0.0 }
 0x158   :  { %v1489_v37 = vadd.f32 %v1488_v14, %v1487_v5  ;;  %v1924_v15 = vadd.f32 %v1923_v45, %v1922_v35 }
 0x159   :  { %v5151_v36 = vpop.f32.mrb[60].mxu0 }
 0x15a   :  { %9958 = vst [vmem:[#allocation81_spill] sm:$0xff] %v5151_v36  ;;  %v1926_v28 = vadd.f32 %v1925_v18, %v1924_v15  ;;  %v5153_v58 = vpop.f32.mrb[61].mxu0  ;;  %v1491_v60 = vadd.f32 %v1490_v63, %v1489_v37  ;;  %v1728_v15 = vmul.f32 %v5151_v36, %v5151_v36  ;;  %v5171_v63 = vpop.f32.mrb[48].mxu1 }
 0x15b   :  { %9959 = vst [vmem:[#allocation82_spill] sm:$0xff] %v5153_v58  ;;  %v1492_v8 = vsel %vm1372_vm1, %v5153_v58, 0.0  ;;  %v1726_v5 = vmul.f32 %v5153_v58, %v5153_v58  ;;  %v5160_v35 = vpop.f32.mrb[62].mxu0  ;;  %9962 = vst [vmem:[#allocation85_spill] sm:$0xff] %v5171_v63  ;;  %v5173_v10 = vpop.f32.mrb[49].mxu1 }
 0x15c   :  { %9960 = vst [vmem:[#allocation83_spill] sm:$0xff] %v5160_v35  ;;  %v1493_v39 = vadd.f32 %v1492_v8, %v1491_v60  ;;  %v1928_v14 = vadd.f32 %v1927_v27, %v1926_v28  ;;  %v5162_v45 = vpop.f32.mrb[63].mxu0  ;;  %9963 = vst [vmem:[#allocation86_spill] sm:$0xff] %v5173_v10  ;;  %v1496_v60 = vsel %vm1372_vm1, %v5151_v36, 0.0  ;;  %v1729_v27 = vmul.f32 %v5160_v35, %v5160_v35  ;;  %v5180_v8 = vpop.f32.mrb[50].mxu1 }
 0x15d   :  { %9961 = vst [vmem:[#allocation84_spill] sm:$0xff] %v5162_v45  ;;  %v1929_v18 = vsel %vm1372_vm1, %v1726_v5, 0.0  ;;  %v1494_v24 = vsel %vm1372_vm1, %v5162_v45, 0.0  ;;  %v1727_v37 = vmul.f32 %v5162_v45, %v5162_v45  ;;  %9964 = vst [vmem:[#allocation87_spill] sm:$0xff] %v5180_v8  ;;  %v5182_v11 = vpop.f32.mrb[51].mxu1  ;;  %v1933_v45 = vsel %vm1372_vm1, %v1728_v15, 0.0 }
 0x15e   :  { %v1930_v58 = vadd.f32 %v1929_v18, %v1928_v14  ;;  %v1495_v22 = vadd.f32 %v1494_v24, %v1493_v39  ;;  %9965 = vst [vmem:[#allocation88_spill] sm:$0xff] %v5182_v11  ;;  %v1498_v39 = vsel %vm1372_vm1, %v5160_v35, 0.0  ;;  %v1935_v63 = vsel %vm1372_vm1, %v1729_v27, 0.0 }
 0x15f   :  { %v1931_v28 = vsel %vm1372_vm1, %v1727_v37, 0.0 }
 0x160   :  { %v1497_v5 = vadd.f32 %v1496_v60, %v1495_v22  ;;  %v1932_v12 = vadd.f32 %v1931_v28, %v1930_v58 }
 0x161   :  { %v5187_v14 = vpop.f32.mrb[64].mxu0 }
 0x162   :  { %9966 = vst [vmem:[#allocation89_spill] sm:$0xff] %v5187_v14  ;;  %v1934_v18 = vadd.f32 %v1933_v45, %v1932_v12  ;;  %v5189_v24 = vpop.f32.mrb[65].mxu0  ;;  %v1499_v36 = vadd.f32 %v1498_v39, %v1497_v5  ;;  %v1732_v12 = vmul.f32 %v5187_v14, %v5187_v14  ;;  %v5207_v39 = vpop.f32.mrb[52].mxu1 }
 0x163   :  { %9967 = vst [vmem:[#allocation90_spill] sm:$0xff] %v5189_v24  ;;  %v1500_v37 = vsel %vm1372_vm1, %v5189_v24, 0.0  ;;  %v1730_v22 = vmul.f32 %v5189_v24, %v5189_v24  ;;  %v5196_v58 = vpop.f32.mrb[66].mxu0  ;;  %9970 = vst [vmem:[#allocation93_spill] sm:$0xff] %v5207_v39  ;;  %v5209_v8 = vpop.f32.mrb[53].mxu1 }
 0x164   :  { %9968 = vst [vmem:[#allocation91_spill] sm:$0xff] %v5196_v58  ;;  %v1501_v15 = vadd.f32 %v1500_v37, %v1499_v36  ;;  %v1936_v60 = vadd.f32 %v1935_v63, %v1934_v18  ;;  %v5198_v28 = vpop.f32.mrb[67].mxu0  ;;  %v1504_v36 = vsel %vm1372_vm1, %v5187_v14, 0.0  ;;  %v1733_v63 = vmul.f32 %v5196_v58, %v5196_v58  ;;  %v5216_v37 = vpop.f32.mrb[54].mxu1 }
 0x165   :  { %9969 = vst [vmem:[#allocation92_spill] sm:$0xff] %v5198_v28  ;;  %v1937_v45 = vsel %vm1372_vm1, %v1730_v22, 0.0  ;;  %v1502_v27 = vsel %vm1372_vm1, %v5198_v28, 0.0  ;;  %v1731_v5 = vmul.f32 %v5198_v28, %v5198_v28  ;;  %9971 = vst [vmem:[#allocation94_spill] sm:$0xff] %v5216_v37  ;;  %v5218_v10 = vpop.f32.mrb[55].mxu1  ;;  %v1941_v28 = vsel %vm1372_vm1, %v1732_v12, 0.0 }
 0x166   :  { %v1938_v24 = vadd.f32 %v1937_v45, %v1936_v60  ;;  %v1503_v35 = vadd.f32 %v1502_v27, %v1501_v15  ;;  %9972 = vst [vmem:[#allocation95_spill] sm:$0xff] %v5218_v10  ;;  %v1506_v15 = vsel %vm1372_vm1, %v5196_v58, 0.0  ;;  %v1943_v39 = vsel %vm1372_vm1, %v1733_v63, 0.0 }
 0x167   :  { %v1939_v18 = vsel %vm1372_vm1, %v1731_v5, 0.0 }
 0x168   :  { %v1505_v22 = vadd.f32 %v1504_v36, %v1503_v35  ;;  %v1940_v11 = vadd.f32 %v1939_v18, %v1938_v24 }
 0x169   :  { %v5223_v60 = vpop.f32.mrb[68].mxu0 }
 0x16a   :  { %9973 = vst [vmem:[#allocation96_spill] sm:$0xff] %v5223_v60  ;;  %v1942_v45 = vadd.f32 %v1941_v28, %v1940_v11  ;;  %v5225_v27 = vpop.f32.mrb[69].mxu0  ;;  %v1507_v14 = vadd.f32 %v1506_v15, %v1505_v22  ;;  %v1736_v11 = vmul.f32 %v5223_v60, %v5223_v60  ;;  %v5243_v15 = vpop.f32.mrb[56].mxu1 }
 0x16b   :  { %9974 = vst [vmem:[#allocation97_spill] sm:$0xff] %v5225_v27  ;;  %v1508_v5 = vsel %vm1372_vm1, %v5225_v27, 0.0  ;;  %v1734_v35 = vmul.f32 %v5225_v27, %v5225_v27  ;;  %v5232_v24 = vpop.f32.mrb[70].mxu0  ;;  %9977 = vst [vmem:[#allocation100_spill] sm:$0xff] %v5243_v15  ;;  %v5245_v37 = vpop.f32.mrb[57].mxu1 }
 0x16c   :  { %9975 = vst [vmem:[#allocation98_spill] sm:$0xff] %v5232_v24  ;;  %v1509_v12 = vadd.f32 %v1508_v5, %v1507_v14  ;;  %v1944_v36 = vadd.f32 %v1943_v39, %v1942_v45  ;;  %v5234_v18 = vpop.f32.mrb[71].mxu0  ;;  %9978 = vst [vmem:[#allocation101_spill] sm:$0xff] %v5245_v37  ;;  %v1512_v14 = vsel %vm1372_vm1, %v5223_v60, 0.0  ;;  %v1737_v39 = vmul.f32 %v5232_v24, %v5232_v24 }
 0x16d   :  { %9976 = vst [vmem:[#allocation99_spill] sm:$0xff] %v5234_v18  ;;  %v1945_v28 = vsel %vm1372_vm1, %v1734_v35, 0.0  ;;  %v1510_v63 = vsel %vm1372_vm1, %v5234_v18, 0.0  ;;  %v1735_v22 = vmul.f32 %v5234_v18, %v5234_v18  ;;  %v1738_v5 = vmul.f32 %v4741_v38, %v4741_v38  ;;  %v5254_v35 = vpop.f32.mrb[58].mxu1 }
 0x16e   :  { %v1946_v27 = vadd.f32 %v1945_v28, %v1944_v36  ;;  %v1511_v58 = vadd.f32 %v1510_v63, %v1509_v12  ;;  %v5256_v15 = vpop.f32.mrb[59].mxu1  ;;  %v1949_v12 = vsel %vm1372_vm1, %v1736_v11, 0.0  ;;  %v1514_v36 = vsel %vm1372_vm1, %v5232_v24, 0.0 }
 0x16f   :  { %v1947_v45 = vsel %vm1372_vm1, %v1735_v22, 0.0  ;;  %v1516_v28 = vsel %vm1372_vm1, %v4741_v38, 0.0  ;;  %v1951_v22 = vsel %vm1372_vm1, %v1737_v39, 0.0  ;;  %v1953_v37 = vsel %vm1372_vm1, %v1738_v5, 0.0  ;;  %v5271_v24 = vpop.f32.mrb[60].mxu1 }
 0x170   :  { %v1513_v18 = vadd.f32 %v1512_v14, %v1511_v58  ;;  %v1948_v10 = vadd.f32 %v1947_v45, %v1946_v27  ;;  %v1739_v58 = vmul.f32 %v4750_v46, %v4750_v46  ;;  %v1740_v11 = vmul.f32 %v4739_v34, %v4739_v34 }
 0x171   :  { %v1518_v45 = vsel %vm1372_vm1, %v4750_v46, 0.0  ;;  %v1520_v39 = vsel %vm1372_vm1, %v4739_v34, 0.0  ;;  %v1741_v5 = vmul.f32 %v4748_v43, %v4748_v43 }
 0x172   :  { %v1515_v63 = vadd.f32 %v1514_v36, %v1513_v18  ;;  %v1950_v60 = vadd.f32 %v1949_v12, %v1948_v10  ;;  %v5273_v10 = vpop.f32.mrb[61].mxu1  ;;  %v1742_v12 = vmul.f32 %v4777_v7, %v4777_v7 }
 0x173   :  { %v5282_v36 = vpop.f32.mrb[62].mxu1 }
 0x174   :  { %v1952_v27 = vadd.f32 %v1951_v22, %v1950_v60  ;;  %v1517_v14 = vadd.f32 %v1516_v28, %v1515_v63  ;;  %v1955_v60 = vsel %vm1372_vm1, %v1739_v58, 0.0  ;;  %v5284_v22 = vpop.f32.mrb[63].mxu1  ;;  %v1959_v58 = vsel %vm1372_vm1, %v1741_v5, 0.0 }
 0x175   :  { %v1961_v46 = vsel %vm1372_vm1, %v1742_v12, 0.0  ;;  %v1528_v5 = vsel %vm1372_vm1, %v4775_v4, 0.0  ;;  %v1745_v12 = vmul.f32 %v4784_v13, %v4784_v13 }
 0x176   :  { %v1954_v38 = vadd.f32 %v1953_v37, %v1952_v27  ;;  %v1519_v18 = vadd.f32 %v1518_v45, %v1517_v14  ;;  %v1957_v37 = vsel %vm1372_vm1, %v1740_v11, 0.0  ;;  %v1522_v27 = vsel %vm1372_vm1, %v4748_v43, 0.0  ;;  %v5299_v43 = vpop.f32.mrb[64].mxu1 }
 0x177   :  { %v1524_v14 = vsel %vm1372_vm1, %v4777_v7, 0.0  ;;  %v1744_v11 = vmul.f32 %v4775_v4, %v4775_v4  ;;  %9979 = vst [vmem:[#allocation102_spill] sm:$0xff] %v5299_v43 }
 0x178   :  { %v1521_v28 = vadd.f32 %v1520_v39, %v1519_v18  ;;  %v1956_v63 = vadd.f32 %v1955_v60, %v1954_v38  ;;  %v1743_v18 = vmul.f32 %v4786_v19, %v4786_v19  ;;  %v1526_v60 = vsel %vm1372_vm1, %v4786_v19, 0.0 }
 0x17a   :  { %v1523_v45 = vadd.f32 %v1522_v27, %v1521_v28  ;;  %v1958_v34 = vadd.f32 %v1957_v37, %v1956_v63  ;;  %v5301_v63 = vpop.f32.mrb[65].mxu1  ;;  %v1746_v37 = vmul.f32 %v4813_v54, %v4813_v54 }
 0x17b   :  { %v5310_v27 = vpop.f32.mrb[66].mxu1 }
 0x17c   :  { %v1960_v38 = vadd.f32 %v1959_v58, %v1958_v34  ;;  %v1525_v39 = vadd.f32 %v1524_v14, %v1523_v45  ;;  %v1963_v34 = vsel %vm1372_vm1, %v1743_v18, 0.0  ;;  %9980 = vst [vmem:[#allocation103_spill] sm:$0xff] %v5310_v27  ;;  %v5312_v58 = vpop.f32.mrb[67].mxu1  ;;  %v1967_v18 = vsel %vm1372_vm1, %v1745_v12, 0.0 }
 0x17d   :  { %9981 = vst [vmem:[#allocation104_spill] sm:$0xff] %v5312_v58  ;;  %v1969_v19 = vsel %vm1372_vm1, %v1746_v37, 0.0  ;;  %v1536_v12 = vsel %vm1372_vm1, %v4811_v48, 0.0  ;;  %v1749_v37 = vmul.f32 %v4820_v61, %v4820_v61 }
 0x17e   :  { %v1962_v7 = vadd.f32 %v1961_v46, %v1960_v38  ;;  %v1527_v28 = vadd.f32 %v1526_v60, %v1525_v39  ;;  %v1965_v46 = vsel %vm1372_vm1, %v1744_v11, 0.0  ;;  %v1530_v38 = vsel %vm1372_vm1, %v4784_v13, 0.0  ;;  %v5327_v13 = vpop.f32.mrb[68].mxu1 }
 0x17f   :  { %v1532_v39 = vsel %vm1372_vm1, %v4813_v54, 0.0  ;;  %v1748_v11 = vmul.f32 %v4811_v48, %v4811_v48  ;;  %9982 = vst [vmem:[#allocation105_spill] sm:$0xff] %v5327_v13 }
 0x180   :  { %v1529_v14 = vadd.f32 %v1528_v5, %v1527_v28  ;;  %v1964_v45 = vadd.f32 %v1963_v34, %v1962_v7  ;;  %v1747_v28 = vmul.f32 %v4822_v2, %v4822_v2  ;;  %v1534_v34 = vsel %vm1372_vm1, %v4822_v2, 0.0 }
 0x182   :  { %v1531_v60 = vadd.f32 %v1530_v38, %v1529_v14  ;;  %v1966_v4 = vadd.f32 %v1965_v46, %v1964_v45  ;;  %v5329_v45 = vpop.f32.mrb[69].mxu1  ;;  %v1750_v46 = vmul.f32 %v4849_v47, %v4849_v47 }
 0x183   :  { %9983 = vst [vmem:[#allocation106_spill] sm:$0xff] %v5329_v45  ;;  %v5338_v38 = vpop.f32.mrb[70].mxu1 }
 0x184   :  { %v1968_v7 = vadd.f32 %v1967_v18, %v1966_v4  ;;  %v1533_v5 = vadd.f32 %v1532_v39, %v1531_v60  ;;  %v1971_v4 = vsel %vm1372_vm1, %v1747_v28, 0.0  ;;  %9984 = vst [vmem:[#allocation107_spill] sm:$0xff] %v5338_v38  ;;  %v5340_v18 = vpop.f32.mrb[71].mxu1  ;;  %v1975_v28 = vsel %vm1372_vm1, %v1749_v37, 0.0 }
 0x185   :  { %9985 = vst [vmem:[#allocation108_spill] sm:$0xff] %v5340_v18  ;;  %v1977_v2 = vsel %vm1372_vm1, %v1750_v46, 0.0  ;;  %v1753_v37 = vmul.f32 %v4856_v57, %v4856_v57 }
 0x186   :  { %v1970_v54 = vadd.f32 %v1969_v19, %v1968_v7  ;;  %v1535_v14 = vadd.f32 %v1534_v34, %v1533_v5  ;;  %v1973_v19 = vsel %vm1372_vm1, %v1748_v11, 0.0  ;;  %v1538_v7 = vsel %vm1372_vm1, %v4820_v61, 0.0 }
 0x187   :  { %v1540_v5 = vsel %vm1372_vm1, %v4849_v47, 0.0  ;;  %v1752_v11 = vmul.f32 %v4847_v42, %v4847_v42 }
 0x188   :  { %v1537_v39 = vadd.f32 %v1536_v12, %v1535_v14  ;;  %v1972_v60 = vadd.f32 %v1971_v4, %v1970_v54  ;;  %v1751_v14 = vmul.f32 %v4858_v1, %v4858_v1  ;;  %v1542_v4 = vsel %vm1372_vm1, %v4858_v1, 0.0 }
 0x18a   :  { %v1974_v34 = vadd.f32 %v1973_v19, %v1972_v60  ;;  %v1539_v48 = vadd.f32 %v1538_v7, %v1537_v39  ;;  %v1544_v39 = vsel %vm1372_vm1, %v4847_v42, 0.0  ;;  %v1979_v46 = vsel %vm1372_vm1, %v1751_v14, 0.0 }
 0x18b   :  { %v1981_v7 = vsel %vm1372_vm1, %v1752_v11, 0.0  ;;  %v1755_v14 = vmul.f32 %v4894_v16, %v4894_v16  ;;  %v1550_v11 = vsel %vm1372_vm1, %v4894_v16, 0.0 }
 0x18c   :  { %v1541_v54 = vadd.f32 %v1540_v5, %v1539_v48  ;;  %v1976_v12 = vadd.f32 %v1975_v28, %v1974_v34  ;;  %v1754_v48 = vmul.f32 %v4885_v3, %v4885_v3  ;;  %v1546_v5 = vsel %vm1372_vm1, %v4856_v57, 0.0 }
 0x18e   :  { %v1978_v61 = vadd.f32 %v1977_v2, %v1976_v12  ;;  %v1543_v38 = vadd.f32 %v1542_v4, %v1541_v54  ;;  %v1548_v2 = vsel %vm1372_vm1, %v4885_v3, 0.0  ;;  %v1983_v54 = vsel %vm1372_vm1, %v1753_v37, 0.0 }
 0x18f   :  { %v1985_v12 = vsel %vm1372_vm1, %v1754_v48, 0.0  ;;  %v1757_v37 = vmul.f32 %v4892_v21, %v4892_v21  ;;  %v1987_v48 = vsel %vm1372_vm1, %v1755_v14, 0.0  ;;  %v1759_v14 = vmul.f32 %v4930_v9, %v4930_v9 }
 0x190   :  { %v1545_v60 = vadd.f32 %v1544_v39, %v1543_v38  ;;  %v1980_v19 = vadd.f32 %v1979_v46, %v1978_v61  ;;  %v1756_v61 = vmul.f32 %v4883_v55, %v4883_v55 }
 0x192   :  { %v1982_v34 = vadd.f32 %v1981_v7, %v1980_v19  ;;  %v1547_v28 = vadd.f32 %v1546_v5, %v1545_v60  ;;  %v1552_v60 = vsel %vm1372_vm1, %v4883_v55, 0.0  ;;  %v1758_v19 = vmul.f32 %v4921_v6, %v4921_v6 }
 0x194   :  { %v1549_v4 = vadd.f32 %v1548_v2, %v1547_v28  ;;  %v1984_v38 = vadd.f32 %v1983_v54, %v1982_v34  ;;  %v1989_v2 = vsel %vm1372_vm1, %v1756_v61, 0.0  ;;  %v1554_v34 = vsel %vm1372_vm1, %v4892_v21, 0.0 }
 0x195   :  { %v1556_v28 = vsel %vm1372_vm1, %v4921_v6, 0.0  ;;  %v1760_v61 = vmul.f32 %v4919_v31, %v4919_v31 }
 0x196   :  { %v1986_v39 = vadd.f32 %v1985_v12, %v1984_v38  ;;  %v1551_v46 = vadd.f32 %v1550_v11, %v1549_v4  ;;  %v1991_v4 = vsel %vm1372_vm1, %v1757_v37, 0.0  ;;  %v1993_v38 = vsel %vm1372_vm1, %v1758_v19, 0.0 }
 0x197   :  { %v1761_v37 = vmul.f32 %v4928_v52, %v4928_v52  ;;  %v1995_v19 = vsel %vm1372_vm1, %v1759_v14, 0.0  ;;  %v1763_v14 = vmul.f32 %v4966_v26, %v4966_v26 }
 0x198   :  { %v1553_v7 = vadd.f32 %v1552_v60, %v1551_v46  ;;  %v1988_v5 = vadd.f32 %v1987_v48, %v1986_v39  ;;  %v1558_v39 = vsel %vm1372_vm1, %v4930_v9, 0.0 }
 0x19a   :  { %v1990_v54 = vadd.f32 %v1989_v2, %v1988_v5  ;;  %v1555_v12 = vadd.f32 %v1554_v34, %v1553_v7  ;;  %v1560_v7 = vsel %vm1372_vm1, %v4919_v31, 0.0  ;;  %v1762_v5 = vmul.f32 %v4957_v23, %v4957_v23 }
 0x19c   :  { %v1557_v11 = vadd.f32 %v1556_v28, %v1555_v12  ;;  %v1992_v46 = vadd.f32 %v1991_v4, %v1990_v54  ;;  %v1997_v28 = vsel %vm1372_vm1, %v1760_v61, 0.0  ;;  %v1562_v54 = vsel %vm1372_vm1, %v4928_v52, 0.0 }
 0x19d   :  { %v1564_v12 = vsel %vm1372_vm1, %v4957_v23, 0.0  ;;  %v1764_v61 = vmul.f32 %v4955_v44, %v4955_v44 }
 0x19e   :  { %v1994_v60 = vadd.f32 %v1993_v38, %v1992_v46  ;;  %v1559_v48 = vadd.f32 %v1558_v39, %v1557_v11  ;;  %v1999_v11 = vsel %vm1372_vm1, %v1761_v37, 0.0  ;;  %v2001_v46 = vsel %vm1372_vm1, %v1762_v5, 0.0 }
 0x19f   :  { %v1765_v37 = vmul.f32 %v4964_v25, %v4964_v25  ;;  %v2003_v5 = vsel %vm1372_vm1, %v1763_v14, 0.0  ;;  %v1767_v14 = vmul.f32 %v5002_v51, %v5002_v51 }
 0x1a0   :  { %v1561_v2 = vadd.f32 %v1560_v7, %v1559_v48  ;;  %v1996_v34 = vadd.f32 %v1995_v19, %v1994_v60  ;;  %v1566_v60 = vsel %vm1372_vm1, %v4966_v26, 0.0 }
 0x1a2   :  { %v1998_v4 = vadd.f32 %v1997_v28, %v1996_v34  ;;  %v1563_v38 = vadd.f32 %v1562_v54, %v1561_v2  ;;  %v1568_v2 = vsel %vm1372_vm1, %v4955_v44, 0.0  ;;  %v1766_v34 = vmul.f32 %v4993_v49, %v4993_v49 }
 0x1a4   :  { %v1565_v39 = vadd.f32 %v1564_v12, %v1563_v38  ;;  %v2000_v48 = vadd.f32 %v1999_v11, %v1998_v4  ;;  %v2005_v12 = vsel %vm1372_vm1, %v1764_v61, 0.0  ;;  %v1570_v4 = vsel %vm1372_vm1, %v4964_v25, 0.0 }
 0x1a5   :  { %v1572_v38 = vsel %vm1372_vm1, %v4993_v49, 0.0  ;;  %v1768_v61 = vmul.f32 %v4991_v40, %v4991_v40 }
 0x1a6   :  { %v2002_v7 = vadd.f32 %v2001_v46, %v2000_v48  ;;  %v1567_v19 = vadd.f32 %v1566_v60, %v1565_v39  ;;  %v2007_v39 = vsel %vm1372_vm1, %v1765_v37, 0.0  ;;  %v2009_v48 = vsel %vm1372_vm1, %v1766_v34, 0.0 }
 0x1a7   :  { %v1769_v37 = vmul.f32 %v5000_v59, %v5000_v59  ;;  %v2011_v34 = vsel %vm1372_vm1, %v1767_v14, 0.0  ;;  %v1771_v14 = vmul.f32 %v5038_v20, %v5038_v20 }
 0x1a8   :  { %v1569_v28 = vadd.f32 %v1568_v2, %v1567_v19  ;;  %v2004_v54 = vadd.f32 %v2003_v5, %v2002_v7  ;;  %v1574_v7 = vsel %vm1372_vm1, %v5002_v51, 0.0 }
 0x1aa   :  { %v2006_v11 = vadd.f32 %v2005_v12, %v2004_v54  ;;  %v1571_v46 = vadd.f32 %v1570_v4, %v1569_v28  ;;  %v1576_v28 = vsel %vm1372_vm1, %v4991_v40, 0.0  ;;  %v1770_v54 = vmul.f32 %v5029_v17, %v5029_v17 }
 0x1ac   :  { %v1573_v60 = vadd.f32 %v1572_v38, %v1571_v46  ;;  %v2008_v19 = vadd.f32 %v2007_v39, %v2006_v11  ;;  %v2013_v38 = vsel %vm1372_vm1, %v1768_v61, 0.0  ;;  %v1578_v11 = vsel %vm1372_vm1, %v5000_v59, 0.0 }
 0x1ad   :  { %v1580_v46 = vsel %vm1372_vm1, %v5029_v17, 0.0  ;;  %v1772_v61 = vmul.f32 %v5027_v30, %v5027_v30 }
 0x1ae   :  { %v2010_v2 = vadd.f32 %v2009_v48, %v2008_v19  ;;  %v1575_v5 = vadd.f32 %v1574_v7, %v1573_v60  ;;  %v2015_v60 = vsel %vm1372_vm1, %v1769_v37, 0.0  ;;  %v2017_v19 = vsel %vm1372_vm1, %v1770_v54, 0.0 }
 0x1af   :  { %v1773_v37 = vmul.f32 %v5036_v33, %v5036_v33  ;;  %v2019_v54 = vsel %vm1372_vm1, %v1771_v14, 0.0  ;;  %v1775_v14 = vmul.f32 %v5074_v56, %v5074_v56 }
 0x1b0   :  { %v1577_v12 = vadd.f32 %v1576_v28, %v1575_v5  ;;  %v2012_v4 = vadd.f32 %v2011_v34, %v2010_v2  ;;  %v1582_v2 = vsel %vm1372_vm1, %v5038_v20, 0.0 }
 0x1b2   :  { %v2014_v39 = vadd.f32 %v2013_v38, %v2012_v4  ;;  %v1579_v48 = vadd.f32 %v1578_v11, %v1577_v12  ;;  %v1584_v12 = vsel %vm1372_vm1, %v5027_v30, 0.0  ;;  %v1774_v4 = vmul.f32 %v5065_v53, %v5065_v53 }
 0x1b4   :  { %v1581_v7 = vadd.f32 %v1580_v46, %v1579_v48  ;;  %v2016_v5 = vadd.f32 %v2015_v60, %v2014_v39  ;;  %v2021_v46 = vsel %vm1372_vm1, %v1772_v61, 0.0  ;;  %v1586_v39 = vsel %vm1372_vm1, %v5036_v33, 0.0 }
 0x1b5   :  { %v1588_v48 = vsel %vm1372_vm1, %v5065_v53, 0.0  ;;  %v1776_v61 = vmul.f32 %v5063_v41, %v5063_v41 }
 0x1b6   :  { %v2018_v28 = vadd.f32 %v2017_v19, %v2016_v5  ;;  %v1583_v34 = vadd.f32 %v1582_v2, %v1581_v7  ;;  %v2023_v7 = vsel %vm1372_vm1, %v1773_v37, 0.0  ;;  %v2025_v5 = vsel %vm1372_vm1, %v1774_v4, 0.0 }
 0x1b7   :  { %v1777_v37 = vmul.f32 %v5072_v0, %v5072_v0  ;;  %v2027_v4 = vsel %vm1372_vm1, %v1775_v14, 0.0  ;;  %v1779_v14 = vmul.f32 %v5110_v32, %v5110_v32 }
 0x1b8   :  { %v1585_v38 = vadd.f32 %v1584_v12, %v1583_v34  ;;  %v2020_v11 = vadd.f32 %v2019_v54, %v2018_v28  ;;  %v1590_v28 = vsel %vm1372_vm1, %v5074_v56, 0.0 }
 0x1ba   :  { %v2022_v60 = vadd.f32 %v2021_v46, %v2020_v11  ;;  %v1587_v19 = vadd.f32 %v1586_v39, %v1585_v38  ;;  %v1592_v38 = vsel %vm1372_vm1, %v5063_v41, 0.0  ;;  %v1778_v11 = vmul.f32 %v5101_v29, %v5101_v29 }
 0x1bc   :  { %v1589_v2 = vadd.f32 %v1588_v48, %v1587_v19  ;;  %v2024_v34 = vadd.f32 %v2023_v7, %v2022_v60  ;;  %v2029_v48 = vsel %vm1372_vm1, %v1776_v61, 0.0  ;;  %v1594_v60 = vsel %vm1372_vm1, %v5072_v0, 0.0 }
 0x1bd   :  { %v1596_v19 = vsel %vm1372_vm1, %v5101_v29, 0.0  ;;  %v1780_v61 = vmul.f32 %v5099_v62, %v5099_v62 }
 0x1be   :  { %v2026_v12 = vadd.f32 %v2025_v5, %v2024_v34  ;;  %v1591_v54 = vadd.f32 %v1590_v28, %v1589_v2  ;;  %v2031_v2 = vsel %vm1372_vm1, %v1777_v37, 0.0  ;;  %v2033_v34 = vsel %vm1372_vm1, %v1778_v11, 0.0 }
 0x1bf   :  { %v1781_v37 = vmul.f32 %v5108_v50, %v5108_v50  ;;  %v2035_v11 = vsel %vm1372_vm1, %v1779_v14, 0.0  ;;  %v9987_v14 = vld [vmem:[#allocation80_spill] sm:$0xff] }
 0x1c0   :  { %v1593_v46 = vadd.f32 %v1592_v38, %v1591_v54  ;;  %v2028_v39 = vadd.f32 %v2027_v4, %v2026_v12  ;;  %v1598_v12 = vsel %vm1372_vm1, %v5110_v32, 0.0 }
 0x1c2   :  { %v2030_v7 = vadd.f32 %v2029_v48, %v2028_v39  ;;  %v1595_v5 = vadd.f32 %v1594_v60, %v1593_v46  ;;  %v1600_v46 = vsel %vm1372_vm1, %v5099_v62, 0.0  ;;  %v9986_v39 = vld [vmem:[#allocation78_spill] sm:$0xff]  ;;  %v1783_v62 = vmul.f32 %v9987_v14, %v9987_v14 }
 0x1c3   :  { %v1782_v48 = vmul.f32 %v9986_v39, %v9986_v39 }
 0x1c4   :  { %v1597_v28 = vadd.f32 %v1596_v19, %v1595_v5  ;;  %v2032_v54 = vadd.f32 %v2031_v2, %v2030_v7  ;;  %v2037_v7 = vsel %vm1372_vm1, %v1780_v61, 0.0  ;;  %v1602_v5 = vsel %vm1372_vm1, %v5108_v50, 0.0 }
 0x1c5   :  { %v1604_v2 = vsel %vm1372_vm1, %v9986_v39, 0.0 }
 0x1c6   :  { %v2034_v38 = vadd.f32 %v2033_v34, %v2032_v54  ;;  %v1599_v4 = vadd.f32 %v1598_v12, %v1597_v28  ;;  %v2039_v54 = vsel %vm1372_vm1, %v1781_v37, 0.0  ;;  %v2041_v12 = vsel %vm1372_vm1, %v1782_v48, 0.0 }
 0x1c7   :  { %v2043_v48 = vsel %vm1372_vm1, %v1783_v62, 0.0  ;;  %v9991_v62 = vld [vmem:[#allocation88_spill] sm:$0xff] }
 0x1c8   :  { %v1601_v60 = vadd.f32 %v1600_v46, %v1599_v4  ;;  %v2036_v19 = vadd.f32 %v2035_v11, %v2034_v38  ;;  %v9988_v38 = vld [vmem:[#allocation77_spill] sm:$0xff]  ;;  %v1606_v46 = vsel %vm1372_vm1, %v9987_v14, 0.0  ;;  %v1787_v14 = vmul.f32 %v9991_v62, %v9991_v62 }
 0x1c9   :  { %v1784_v61 = vmul.f32 %v9988_v38, %v9988_v38 }
 0x1ca   :  { %v2038_v34 = vadd.f32 %v2037_v7, %v2036_v19  ;;  %v1603_v28 = vadd.f32 %v1602_v5, %v1601_v60  ;;  %v1608_v60 = vsel %vm1372_vm1, %v9988_v38, 0.0  ;;  %v9989_v19 = vld [vmem:[#allocation79_spill] sm:$0xff]  ;;  %v9990_v7 = vld [vmem:[#allocation86_spill] sm:$0xff] }
 0x1cb   :  { %v1785_v37 = vmul.f32 %v9989_v19, %v9989_v19  ;;  %v1786_v5 = vmul.f32 %v9990_v7, %v9990_v7 }
 0x1cc   :  { %v1605_v32 = vadd.f32 %v1604_v2, %v1603_v28  ;;  %v2040_v4 = vadd.f32 %v2039_v54, %v2038_v34  ;;  %v2045_v28 = vsel %vm1372_vm1, %v1784_v61, 0.0  ;;  %v1610_v54 = vsel %vm1372_vm1, %v9989_v19, 0.0 }
 0x1cd   :  { %v2049_v38 = vsel %vm1372_vm1, %v1786_v5, 0.0  ;;  %v2051_v5 = vsel %vm1372_vm1, %v1787_v14, 0.0  ;;  %v9994_v14 = vld [vmem:[#allocation95_spill] sm:$0xff] }
 0x1ce   :  { %v2042_v11 = vadd.f32 %v2041_v12, %v2040_v4  ;;  %v1607_v50 = vadd.f32 %v1606_v46, %v1605_v32  ;;  %v1612_v32 = vsel %vm1372_vm1, %v9990_v7, 0.0  ;;  %v2047_v46 = vsel %vm1372_vm1, %v1785_v37, 0.0 }
 0x1d0   :  { %v1609_v2 = vadd.f32 %v1608_v60, %v1607_v50  ;;  %v2044_v34 = vadd.f32 %v2043_v48, %v2042_v11  ;;  %v9992_v11 = vld [vmem:[#allocation85_spill] sm:$0xff]  ;;  %v1614_v60 = vsel %vm1372_vm1, %v9991_v62, 0.0 }
 0x1d1   :  { %v1788_v61 = vmul.f32 %v9992_v11, %v9992_v11 }
 0x1d2   :  { %v2046_v12 = vadd.f32 %v2045_v28, %v2044_v34  ;;  %v1611_v4 = vadd.f32 %v1610_v54, %v1609_v2  ;;  %v1616_v2 = vsel %vm1372_vm1, %v9992_v11, 0.0  ;;  %v9993_v34 = vld [vmem:[#allocation87_spill] sm:$0xff]  ;;  %v1790_v28 = vmul.f32 %v5209_v8, %v5209_v8 }
 0x1d3   :  { %v1789_v37 = vmul.f32 %v9993_v34, %v9993_v34  ;;  %v1791_v11 = vmul.f32 %v9994_v14, %v9994_v14 }
 0x1d4   :  { %v1613_v39 = vadd.f32 %v1612_v32, %v1611_v4  ;;  %v2048_v50 = vadd.f32 %v2047_v46, %v2046_v12  ;;  %v2053_v12 = vsel %vm1372_vm1, %v1788_v61, 0.0  ;;  %v1618_v4 = vsel %vm1372_vm1, %v9993_v34, 0.0 }
 0x1d6   :  { %v2050_v48 = vadd.f32 %v2049_v38, %v2048_v50  ;;  %v1615_v19 = vadd.f32 %v1614_v60, %v1613_v39  ;;  %v1620_v39 = vsel %vm1372_vm1, %v5209_v8, 0.0  ;;  %v2055_v50 = vsel %vm1372_vm1, %v1789_v37, 0.0 }
 0x1d7   :  { %v2057_v60 = vsel %vm1372_vm1, %v1790_v28, 0.0  ;;  %v2059_v28 = vsel %vm1372_vm1, %v1791_v11, 0.0  ;;  %v1795_v11 = vmul.f32 %v5256_v15, %v5256_v15 }
 0x1d8   :  { %v1617_v54 = vadd.f32 %v1616_v2, %v1615_v19  ;;  %v2052_v32 = vadd.f32 %v2051_v5, %v2050_v48  ;;  %v9995_v48 = vld [vmem:[#allocation93_spill] sm:$0xff]  ;;  %v1622_v2 = vsel %vm1372_vm1, %v9994_v14, 0.0 }
 0x1d9   :  { %v1792_v61 = vmul.f32 %v9995_v48, %v9995_v48 }
 0x1da   :  { %v2054_v38 = vadd.f32 %v2053_v12, %v2052_v32  ;;  %v1619_v46 = vadd.f32 %v1618_v4, %v1617_v54  ;;  %v1624_v54 = vsel %vm1372_vm1, %v9995_v48, 0.0  ;;  %v9996_v32 = vld [vmem:[#allocation94_spill] sm:$0xff]  ;;  %v9997_v12 = vld [vmem:[#allocation101_spill] sm:$0xff] }
 0x1db   :  { %v1793_v37 = vmul.f32 %v9996_v32, %v9996_v32  ;;  %v1794_v4 = vmul.f32 %v9997_v12, %v9997_v12 }
 0x1dc   :  { %v1621_v62 = vadd.f32 %v1620_v39, %v1619_v46  ;;  %v2056_v19 = vadd.f32 %v2055_v50, %v2054_v38  ;;  %v2061_v46 = vsel %vm1372_vm1, %v1792_v61, 0.0  ;;  %v1626_v50 = vsel %vm1372_vm1, %v9996_v32, 0.0 }
 0x1dd   :  { %v2065_v48 = vsel %vm1372_vm1, %v1794_v4, 0.0  ;;  %v2067_v4 = vsel %vm1372_vm1, %v1795_v11, 0.0  ;;  %v1799_v11 = vmul.f32 %v5284_v22, %v5284_v22 }
 0x1de   :  { %v2058_v5 = vadd.f32 %v2057_v60, %v2056_v19  ;;  %v1623_v34 = vadd.f32 %v1622_v2, %v1621_v62  ;;  %v1628_v62 = vsel %vm1372_vm1, %v9997_v12, 0.0  ;;  %v2063_v2 = vsel %vm1372_vm1, %v1793_v37, 0.0 }
 0x1df   :  { %v1797_v37 = vmul.f32 %v5254_v35, %v5254_v35 }
 0x1e0   :  { %v1625_v39 = vadd.f32 %v1624_v54, %v1623_v34  ;;  %v2060_v38 = vadd.f32 %v2059_v28, %v2058_v5  ;;  %v9998_v5 = vld [vmem:[#allocation100_spill] sm:$0xff]  ;;  %v1630_v54 = vsel %vm1372_vm1, %v5256_v15, 0.0 }
 0x1e1   :  { %v1796_v61 = vmul.f32 %v9998_v5, %v9998_v5 }
 0x1e2   :  { %v2062_v60 = vadd.f32 %v2061_v46, %v2060_v38  ;;  %v1627_v19 = vadd.f32 %v1626_v50, %v1625_v39  ;;  %v1632_v39 = vsel %vm1372_vm1, %v9998_v5, 0.0  ;;  %v1798_v38 = vmul.f32 %v5273_v10, %v5273_v10 }
 0x1e4   :  { %v1629_v14 = vadd.f32 %v1628_v62, %v1627_v19  ;;  %v2064_v34 = vadd.f32 %v2063_v2, %v2062_v60  ;;  %v2069_v62 = vsel %vm1372_vm1, %v1796_v61, 0.0  ;;  %v1634_v60 = vsel %vm1372_vm1, %v5254_v35, 0.0 }
 0x1e5   :  { %v2071_v2 = vsel %vm1372_vm1, %v1797_v37, 0.0  ;;  %v1800_v61 = vmul.f32 %v5271_v24, %v5271_v24  ;;  %v1801_v37 = vmul.f32 %v5282_v36, %v5282_v36 }
 0x1e6   :  { %v2066_v28 = vadd.f32 %v2065_v48, %v2064_v34  ;;  %v1631_v32 = vadd.f32 %v1630_v54, %v1629_v14  ;;  %v1636_v14 = vsel %vm1372_vm1, %v5273_v10, 0.0  ;;  %v2073_v34 = vsel %vm1372_vm1, %v1798_v38, 0.0 }
 0x1e7   :  { %v2075_v38 = vsel %vm1372_vm1, %v1799_v11, 0.0  ;;  %v1803_v11 = vmul.f32 %v5312_v58, %v5312_v58 }
 0x1e8   :  { %v1633_v46 = vadd.f32 %v1632_v39, %v1631_v32  ;;  %v2068_v50 = vadd.f32 %v2067_v4, %v2066_v28  ;;  %v1638_v28 = vsel %vm1372_vm1, %v5284_v22, 0.0 }
 0x1ea   :  { %v2070_v48 = vadd.f32 %v2069_v62, %v2068_v50  ;;  %v1635_v19 = vadd.f32 %v1634_v60, %v1633_v46  ;;  %v1640_v46 = vsel %vm1372_vm1, %v5271_v24, 0.0  ;;  %v1802_v50 = vmul.f32 %v5301_v63, %v5301_v63 }
 0x1ec   :  { %v1637_v54 = vadd.f32 %v1636_v14, %v1635_v19  ;;  %v2072_v32 = vadd.f32 %v2071_v2, %v2070_v48  ;;  %v2077_v14 = vsel %vm1372_vm1, %v1800_v61, 0.0  ;;  %v1642_v48 = vsel %vm1372_vm1, %v5282_v36, 0.0 }
 0x1ed   :  { %v1644_v19 = vsel %vm1372_vm1, %v5301_v63, 0.0  ;;  %v1804_v61 = vmul.f32 %v5299_v43, %v5299_v43 }
 0x1ee   :  { %v2074_v39 = vadd.f32 %v2073_v34, %v2072_v32  ;;  %v1639_v4 = vadd.f32 %v1638_v28, %v1637_v54  ;;  %v2079_v54 = vsel %vm1372_vm1, %v1801_v37, 0.0  ;;  %v2081_v32 = vsel %vm1372_vm1, %v1802_v50, 0.0 }
 0x1ef   :  { %v1805_v37 = vmul.f32 %v5310_v27, %v5310_v27  ;;  %v2083_v50 = vsel %vm1372_vm1, %v1803_v11, 0.0  ;;  %v1807_v11 = vmul.f32 %v5340_v18, %v5340_v18 }
 0x1f0   :  { %v1641_v62 = vadd.f32 %v1640_v46, %v1639_v4  ;;  %v2076_v60 = vadd.f32 %v2075_v38, %v2074_v39  ;;  %v1646_v39 = vsel %vm1372_vm1, %v5312_v58, 0.0 }
 0x1f2   :  { %v2078_v2 = vadd.f32 %v2077_v14, %v2076_v60  ;;  %v1643_v34 = vadd.f32 %v1642_v48, %v1641_v62  ;;  %v1648_v62 = vsel %vm1372_vm1, %v5299_v43, 0.0  ;;  %v1806_v60 = vmul.f32 %v5329_v45, %v5329_v45 }
 0x1f4   :  { %v1645_v28 = vadd.f32 %v1644_v19, %v1643_v34  ;;  %v2080_v4 = vadd.f32 %v2079_v54, %v2078_v2  ;;  %v2085_v19 = vsel %vm1372_vm1, %v1804_v61, 0.0  ;;  %v1650_v2 = vsel %vm1372_vm1, %v5310_v27, 0.0 }
 0x1f5   :  { %v1652_v34 = vsel %vm1372_vm1, %v5329_v45, 0.0  ;;  %v1808_v61 = vmul.f32 %v5327_v13, %v5327_v13 }
 0x1f6   :  { %v2082_v46 = vadd.f32 %v2081_v32, %v2080_v4  ;;  %v1647_v38 = vadd.f32 %v1646_v39, %v1645_v28  ;;  %v2087_v28 = vsel %vm1372_vm1, %v1805_v37, 0.0  ;;  %v2089_v4 = vsel %vm1372_vm1, %v1806_v60, 0.0 }
 0x1f7   :  { %v2091_v60 = vsel %vm1372_vm1, %v1807_v11, 0.0 }
 0x1f8   :  { %v1649_v14 = vadd.f32 %v1648_v62, %v1647_v38  ;;  %v2084_v48 = vadd.f32 %v2083_v50, %v2082_v46  ;;  %v1654_v46 = vsel %vm1372_vm1, %v5340_v18, 0.0 }
 0x1fa   :  { %v2086_v54 = vadd.f32 %v2085_v19, %v2084_v48  ;;  %v1651_v32 = vadd.f32 %v1650_v2, %v1649_v14  ;;  %v1656_v14 = vsel %vm1372_vm1, %v5327_v13, 0.0  ;;  %v9999_v48 = vld [vmem:[#allocation107_spill] sm:$0xff] }
 0x1fb   :  { %v1809_v37 = vmul.f32 %v9999_v48, %v9999_v48 }
 0x1fc   :  { %v1653_v39 = vadd.f32 %v1652_v34, %v1651_v32  ;;  %v2088_v38 = vadd.f32 %v2087_v28, %v2086_v54  ;;  %v2093_v34 = vsel %vm1372_vm1, %v1808_v61, 0.0  ;;  %v1658_v54 = vsel %vm1372_vm1, %v9999_v48, 0.0 }
 0x1fe   :  { %v2090_v62 = vadd.f32 %v2089_v4, %v2088_v38  ;;  %v1655_v50 = vadd.f32 %v1654_v46, %v1653_v39  ;;  %v2095_v4 = vsel %vm1372_vm1, %v1809_v37, 0.0  ;;  %v2115_v37 = vlaneseq }
 0x200   :  { %v1657_v19 = vadd.f32 %v1656_v14, %v1655_v50  ;;  %v2092_v2 = vadd.f32 %v2091_v60, %v2090_v62 }
 0x202   :  { %v1659_v32 = vadd.f32 %v1658_v54, %v1657_v19  ;;  %v2094_v28 = vadd.f32 %v2093_v34, %v2092_v2  ;;  %v5644_v34 = vshrl.u32 %v2115_v37, 7  ;;  %v10007_v37 = vld [vmem:[#allocation8_spill] sm:$0xff] }
 0x204   :  { %v1660_v39 = vrot.slane %v1659_v32, 4  ;;  %v2096_v38 = vadd.f32 %v2095_v4, %v2094_v28  ;;  %v10001_v4 = vld [vmem:[#allocation5_spill] sm:$0xff] }
 0x206   :  { %v1661_v46 = vadd.f32 %v1660_v39, %v1659_v32  ;;  %v2097_v13 = vrot.slane %v2096_v38, 4  ;;  %v10000_v32 = vld [vmem:[#allocation3_spill] sm:$0xff] }
 0x208   :  { %v1662_v18 = vrot.slane %v1661_v46, 2  ;;  %v2098_v45 = vadd.f32 %v2097_v13, %v2096_v38  ;;  %v2107_v13 = vld [vmem:[%s9515_s2] sm:$0x1] }
 0x209   :  { %v10002_v38 = vld [vmem:[#allocation2_spill] sm:$0xff] }
 0x20a   :  { %v1663_v27 = vadd.f32 %v1662_v18, %v1661_v46  ;;  %v2099_v43 = vrot.slane %v2098_v45, 2  ;;  %v9636_v18 = vsub.s32 0, %v5644_v34 }
 0x20c   :  { %v1664_v11 = vrot.slane %v1663_v27, 1  ;;  %v2100_v50 = vadd.f32 %v2099_v43, %v2098_v45 }
 0x20e   :  { %v1665_v62 = vadd.f32 %v1664_v11, %v1663_v27  ;;  %v2101_v14 = vrot.slane %v2100_v50, 1  ;;  %v5653_v27 = vld [vmem:[%s9516_s3] sm:$0x1]  ;;  %v10003_v11 = vld [vmem:[#allocation4_spill] sm:$0xff] }
 0x210   :  { %v2102_v61 = vadd.f32 %v2101_v14, %v2100_v50  ;;  %v2103_v60 = vmul.f32 0.00086805556, %v1665_v62  ;;  %v10004_v62 = vld [vmem:[#allocation7_spill] sm:$0xff] }
 0x212   :  { %v2104_v58 = vmul.f32 0.00086805556, %v2102_v61  ;;  %v2105_v48 = vmul.f32 %v2103_v60, %v2103_v60  ;;  %v10005_v61 = vld [vmem:[#allocation9_spill] sm:$0xff] }
 0x214   :  { %v2106_v19 = vsub.f32 %v2104_v58, %v2105_v48  ;;  %v10017_v48 = vld [vmem:[#allocation17_spill] sm:$0xff] }
 0x216   :  { %v2108_v2 = vadd.f32 1e-05, %v2106_v19  ;;  %v10006_v19 = vld [vmem:[#allocation6_spill] sm:$0xff] }
 0x218   :  { %4312 = vrsqrt.f32 %v2108_v2 }
 0x222   :  { %v4313_v54 = vpop.eup %4312 }
 0x223   :  { %v2110_v43 = vmul.f32 %v4313_v54, %v2107_v13  ;;  %v10008_v54 = vld [vmem:[#allocation11_spill] sm:$0xff] }
 0x225   :  { %v5655_v45 = vmul.f32 %v2110_v43, %v2103_v60  ;;  %v5659_v58 = vrot.slane %v2110_v43, %v9636_v18  ;;  %v10019_v18 = vld [vmem:[#allocation14_spill] sm:$0xff] }
 0x227   :  { %v5665_v28 = vmul.f32 %v5659_v58, %v10000_v32  ;;  %v5669_v39 = vmul.f32 %v5659_v58, %v10001_v4  ;;  %v5673_v46 = vmul.f32 %v10002_v38, %v5659_v58  ;;  %v5677_v50 = vmul.f32 %v10003_v11, %v5659_v58  ;;  %v10009_v32 = vld [vmem:[#allocation13_spill] sm:$0xff]  ;;  %v10011_v38 = vld [vmem:[#allocation10_spill] sm:$0xff] }
 0x228   :  { %v5681_v14 = vmul.f32 %v5659_v58, %v10004_v62  ;;  %v5685_v60 = vmul.f32 %v5659_v58, %v10005_v61  ;;  %v5689_v2 = vmul.f32 %v10006_v19, %v5659_v58  ;;  %v5693_v13 = vmul.f32 %v10007_v37, %v5659_v58  ;;  %v10013_v62 = vld [vmem:[#allocation12_spill] sm:$0xff]  ;;  %v10015_v19 = vld [vmem:[#allocation15_spill] sm:$0xff] }
 0x229   :  { %v5697_v43 = vmul.f32 %v5659_v58, %v10008_v54  ;;  %v5701_v4 = vmul.f32 %v5659_v58, %v10009_v32  ;;  %v5705_v11 = vmul.f32 %v10011_v38, %v5659_v58  ;;  %v5709_v61 = vmul.f32 %v10013_v62, %v5659_v58 }
 0x22a   :  { %v5713_v37 = vmul.f32 %v5659_v58, %v10015_v19  ;;  %v5717_v54 = vmul.f32 %v5659_v58, %v10017_v48  ;;  %v5721_v32 = vmul.f32 %v10019_v18, %v5659_v58 }
 0x22b   :  { %10010 = vst [vmem:[#allocation86_spill] sm:$0xff] %v5701_v4  ;;  %10012 = vst [vmem:[#allocation101_spill] sm:$0xff] %v5705_v11  ;;  %v10021_v4 = vld [vmem:[#allocation16_spill] sm:$0xff]  ;;  %v10023_v11 = vld [vmem:[#allocation23_spill] sm:$0xff] }
 0x22c   :  { %10014 = vst [vmem:[#allocation100_spill] sm:$0xff] %v5709_v61  ;;  %10016 = vst [vmem:[#allocation3_spill] sm:$0xff] %v5713_v37  ;;  %v5725_v38 = vmul.f32 %v10021_v4, %v5659_v58  ;;  %v5729_v62 = vmul.f32 %v5659_v58, %v10023_v11  ;;  %v10025_v61 = vld [vmem:[#allocation25_spill] sm:$0xff]  ;;  %v10027_v37 = vld [vmem:[#allocation22_spill] sm:$0xff] }
 0x22d   :  { %10018 = vst [vmem:[#allocation5_spill] sm:$0xff] %v5717_v54  ;;  %10020 = vst [vmem:[#allocation2_spill] sm:$0xff] %v5721_v32  ;;  %v5733_v19 = vmul.f32 %v5659_v58, %v10025_v61  ;;  %v5737_v48 = vmul.f32 %v10027_v37, %v5659_v58  ;;  %v10029_v54 = vld [vmem:[#allocation24_spill] sm:$0xff]  ;;  %v10031_v32 = vld [vmem:[#allocation31_spill] sm:$0xff] }
 0x22e   :  { %10022 = vst [vmem:[#allocation4_spill] sm:$0xff] %v5725_v38  ;;  %10024 = vst [vmem:[#allocation7_spill] sm:$0xff] %v5729_v62  ;;  %v5741_v18 = vmul.f32 %v10029_v54, %v5659_v58  ;;  %v5745_v4 = vmul.f32 %v5659_v58, %v10031_v32  ;;  %v10033_v38 = vld [vmem:[#allocation33_spill] sm:$0xff]  ;;  %v10035_v62 = vld [vmem:[#allocation30_spill] sm:$0xff] }
 0x22f   :  { %10026 = vst [vmem:[#allocation9_spill] sm:$0xff] %v5733_v19  ;;  %10028 = vst [vmem:[#allocation6_spill] sm:$0xff] %v5737_v48  ;;  %v5749_v11 = vmul.f32 %v5659_v58, %v10033_v38  ;;  %v5753_v61 = vmul.f32 %v10035_v62, %v5659_v58  ;;  %v10037_v19 = vld [vmem:[#allocation32_spill] sm:$0xff]  ;;  %v10039_v48 = vld [vmem:[#allocation39_spill] sm:$0xff] }
 0x230   :  { %10030 = vst [vmem:[#allocation8_spill] sm:$0xff] %v5741_v18  ;;  %10032 = vst [vmem:[#allocation11_spill] sm:$0xff] %v5745_v4  ;;  %v5757_v37 = vmul.f32 %v10037_v19, %v5659_v58  ;;  %v5761_v54 = vmul.f32 %v5659_v58, %v10039_v48  ;;  %v10041_v18 = vld [vmem:[#allocation41_spill] sm:$0xff]  ;;  %v10043_v4 = vld [vmem:[#allocation38_spill] sm:$0xff] }
 0x231   :  { %10034 = vst [vmem:[#allocation13_spill] sm:$0xff] %v5749_v11  ;;  %10036 = vst [vmem:[#allocation10_spill] sm:$0xff] %v5753_v61  ;;  %v5765_v32 = vmul.f32 %v5659_v58, %v10041_v18  ;;  %v5769_v38 = vmul.f32 %v10043_v4, %v5659_v58  ;;  %v10045_v11 = vld [vmem:[#allocation40_spill] sm:$0xff]  ;;  %v10047_v61 = vld [vmem:[#allocation43_spill] sm:$0xff] }
 0x232   :  { %10038 = vst [vmem:[#allocation12_spill] sm:$0xff] %v5757_v37  ;;  %10040 = vst [vmem:[#allocation15_spill] sm:$0xff] %v5761_v54  ;;  %v5773_v62 = vmul.f32 %v10045_v11, %v5659_v58  ;;  %v5777_v19 = vmul.f32 %v5659_v58, %v10047_v61  ;;  %v10049_v37 = vld [vmem:[#allocation45_spill] sm:$0xff]  ;;  %v10051_v54 = vld [vmem:[#allocation42_spill] sm:$0xff] }
 0x233   :  { %10042 = vst [vmem:[#allocation17_spill] sm:$0xff] %v5765_v32  ;;  %10044 = vst [vmem:[#allocation14_spill] sm:$0xff] %v5769_v38  ;;  %v5781_v48 = vmul.f32 %v5659_v58, %v10049_v37  ;;  %v5785_v18 = vmul.f32 %v10051_v54, %v5659_v58  ;;  %v10053_v32 = vld [vmem:[#allocation44_spill] sm:$0xff]  ;;  %v10055_v38 = vld [vmem:[#allocation47_spill] sm:$0xff] }
 0x234   :  { %10046 = vst [vmem:[#allocation16_spill] sm:$0xff] %v5773_v62  ;;  %10048 = vst [vmem:[#allocation23_spill] sm:$0xff] %v5777_v19  ;;  %v5789_v4 = vmul.f32 %v10053_v32, %v5659_v58  ;;  %v5793_v11 = vmul.f32 %v5659_v58, %v10055_v38  ;;  %v10057_v62 = vld [vmem:[#allocation49_spill] sm:$0xff]  ;;  %v10059_v19 = vld [vmem:[#allocation46_spill] sm:$0xff] }
 0x235   :  { %10050 = vst [vmem:[#allocation25_spill] sm:$0xff] %v5781_v48  ;;  %10052 = vst [vmem:[#allocation22_spill] sm:$0xff] %v5785_v18  ;;  %v5797_v61 = vmul.f32 %v5659_v58, %v10057_v62  ;;  %v5801_v37 = vmul.f32 %v10059_v19, %v5659_v58  ;;  %v10061_v48 = vld [vmem:[#allocation48_spill] sm:$0xff]  ;;  %v10063_v18 = vld [vmem:[#allocation51_spill] sm:$0xff] }
 0x236   :  { %10054 = vst [vmem:[#allocation24_spill] sm:$0xff] %v5789_v4  ;;  %10056 = vst [vmem:[#allocation31_spill] sm:$0xff] %v5793_v11  ;;  %v5805_v54 = vmul.f32 %v10061_v48, %v5659_v58  ;;  %v5809_v32 = vmul.f32 %v5659_v58, %v10063_v18  ;;  %v10065_v4 = vld [vmem:[#allocation53_spill] sm:$0xff]  ;;  %v10067_v11 = vld [vmem:[#allocation50_spill] sm:$0xff] }
 0x237   :  { %10058 = vst [vmem:[#allocation33_spill] sm:$0xff] %v5797_v61  ;;  %10060 = vst [vmem:[#allocation30_spill] sm:$0xff] %v5801_v37  ;;  %v5813_v38 = vmul.f32 %v5659_v58, %v10065_v4  ;;  %v5817_v62 = vmul.f32 %v10067_v11, %v5659_v58  ;;  %v10069_v61 = vld [vmem:[#allocation52_spill] sm:$0xff]  ;;  %v10071_v37 = vld [vmem:[#allocation55_spill] sm:$0xff] }
 0x238   :  { %10062 = vst [vmem:[#allocation32_spill] sm:$0xff] %v5805_v54  ;;  %10064 = vst [vmem:[#allocation39_spill] sm:$0xff] %v5809_v32  ;;  %v5821_v19 = vmul.f32 %v10069_v61, %v5659_v58  ;;  %v5825_v48 = vmul.f32 %v5659_v58, %v10071_v37  ;;  %v10073_v54 = vld [vmem:[#allocation57_spill] sm:$0xff]  ;;  %v10075_v32 = vld [vmem:[#allocation54_spill] sm:$0xff] }
 0x239   :  { %10066 = vst [vmem:[#allocation41_spill] sm:$0xff] %v5813_v38  ;;  %10068 = vst [vmem:[#allocation38_spill] sm:$0xff] %v5817_v62  ;;  %v5829_v18 = vmul.f32 %v5659_v58, %v10073_v54  ;;  %v5833_v4 = vmul.f32 %v10075_v32, %v5659_v58  ;;  %v10077_v38 = vld [vmem:[#allocation56_spill] sm:$0xff]  ;;  %v10079_v62 = vld [vmem:[#allocation59_spill] sm:$0xff] }
 0x23a   :  { %10070 = vst [vmem:[#allocation40_spill] sm:$0xff] %v5821_v19  ;;  %10072 = vst [vmem:[#allocation43_spill] sm:$0xff] %v5825_v48  ;;  %v5837_v11 = vmul.f32 %v10077_v38, %v5659_v58  ;;  %v5841_v61 = vmul.f32 %v5659_v58, %v10079_v62  ;;  %v10081_v19 = vld [vmem:[#allocation61_spill] sm:$0xff]  ;;  %v10083_v48 = vld [vmem:[#allocation58_spill] sm:$0xff] }
 0x23b   :  { %10074 = vst [vmem:[#allocation45_spill] sm:$0xff] %v5829_v18  ;;  %10076 = vst [vmem:[#allocation42_spill] sm:$0xff] %v5833_v4  ;;  %v5845_v37 = vmul.f32 %v5659_v58, %v10081_v19  ;;  %v5849_v54 = vmul.f32 %v10083_v48, %v5659_v58  ;;  %v10085_v18 = vld [vmem:[#allocation60_spill] sm:$0xff]  ;;  %v10087_v4 = vld [vmem:[#allocation63_spill] sm:$0xff] }
 0x23c   :  { %10078 = vst [vmem:[#allocation44_spill] sm:$0xff] %v5837_v11  ;;  %10080 = vst [vmem:[#allocation47_spill] sm:$0xff] %v5841_v61  ;;  %v5853_v32 = vmul.f32 %v10085_v18, %v5659_v58  ;;  %v5857_v38 = vmul.f32 %v5659_v58, %v10087_v4  ;;  %v10089_v11 = vld [vmem:[#allocation65_spill] sm:$0xff]  ;;  %v10091_v61 = vld [vmem:[#allocation62_spill] sm:$0xff] }
 0x23d   :  { %10082 = vst [vmem:[#allocation49_spill] sm:$0xff] %v5845_v37  ;;  %10084 = vst [vmem:[#allocation46_spill] sm:$0xff] %v5849_v54  ;;  %v5861_v62 = vmul.f32 %v5659_v58, %v10089_v11  ;;  %v5865_v19 = vmul.f32 %v10091_v61, %v5659_v58  ;;  %v10093_v37 = vld [vmem:[#allocation64_spill] sm:$0xff]  ;;  %v10095_v54 = vld [vmem:[#allocation67_spill] sm:$0xff] }
 0x23e   :  { %10086 = vst [vmem:[#allocation48_spill] sm:$0xff] %v5853_v32  ;;  %10088 = vst [vmem:[#allocation51_spill] sm:$0xff] %v5857_v38  ;;  %v5869_v48 = vmul.f32 %v10093_v37, %v5659_v58  ;;  %v5873_v18 = vmul.f32 %v5659_v58, %v10095_v54  ;;  %v10097_v32 = vld [vmem:[#allocation69_spill] sm:$0xff]  ;;  %v10099_v38 = vld [vmem:[#allocation66_spill] sm:$0xff] }
 0x23f   :  { %10090 = vst [vmem:[#allocation53_spill] sm:$0xff] %v5861_v62  ;;  %10092 = vst [vmem:[#allocation50_spill] sm:$0xff] %v5865_v19  ;;  %v5877_v4 = vmul.f32 %v5659_v58, %v10097_v32  ;;  %v5881_v11 = vmul.f32 %v10099_v38, %v5659_v58  ;;  %v10101_v62 = vld [vmem:[#allocation68_spill] sm:$0xff]  ;;  %v10103_v19 = vld [vmem:[#allocation74_spill] sm:$0xff] }
 0x240   :  { %10094 = vst [vmem:[#allocation52_spill] sm:$0xff] %v5869_v48  ;;  %10096 = vst [vmem:[#allocation55_spill] sm:$0xff] %v5873_v18  ;;  %v5885_v61 = vmul.f32 %v10101_v62, %v5659_v58  ;;  %v5889_v37 = vmul.f32 %v5659_v58, %v10103_v19  ;;  %v10105_v48 = vld [vmem:[#allocation76_spill] sm:$0xff]  ;;  %v10107_v18 = vld [vmem:[#allocation73_spill] sm:$0xff] }
 0x241   :  { %10098 = vst [vmem:[#allocation57_spill] sm:$0xff] %v5877_v4  ;;  %10100 = vst [vmem:[#allocation54_spill] sm:$0xff] %v5881_v11  ;;  %v5893_v54 = vmul.f32 %v5659_v58, %v10105_v48  ;;  %v5897_v32 = vmul.f32 %v10107_v18, %v5659_v58  ;;  %v10109_v4 = vld [vmem:[#allocation75_spill] sm:$0xff]  ;;  %v10111_v11 = vld [vmem:[#allocation82_spill] sm:$0xff] }
 0x242   :  { %10102 = vst [vmem:[#allocation56_spill] sm:$0xff] %v5885_v61  ;;  %10104 = vst [vmem:[#allocation59_spill] sm:$0xff] %v5889_v37  ;;  %v5901_v38 = vmul.f32 %v10109_v4, %v5659_v58  ;;  %v5905_v62 = vmul.f32 %v5659_v58, %v10111_v11  ;;  %v10113_v61 = vld [vmem:[#allocation84_spill] sm:$0xff]  ;;  %v10115_v37 = vld [vmem:[#allocation81_spill] sm:$0xff] }
 0x243   :  { %10106 = vst [vmem:[#allocation61_spill] sm:$0xff] %v5893_v54  ;;  %10108 = vst [vmem:[#allocation58_spill] sm:$0xff] %v5897_v32  ;;  %v5909_v19 = vmul.f32 %v5659_v58, %v10113_v61  ;;  %v5913_v48 = vmul.f32 %v10115_v37, %v5659_v58  ;;  %v10117_v54 = vld [vmem:[#allocation83_spill] sm:$0xff]  ;;  %v10119_v32 = vld [vmem:[#allocation90_spill] sm:$0xff] }
 0x244   :  { %10110 = vst [vmem:[#allocation60_spill] sm:$0xff] %v5901_v38  ;;  %10112 = vst [vmem:[#allocation63_spill] sm:$0xff] %v5905_v62  ;;  %v5917_v18 = vmul.f32 %v10117_v54, %v5659_v58  ;;  %v5921_v4 = vmul.f32 %v5659_v58, %v10119_v32  ;;  %v10121_v38 = vld [vmem:[#allocation92_spill] sm:$0xff]  ;;  %v10123_v62 = vld [vmem:[#allocation89_spill] sm:$0xff] }
 0x245   :  { %10114 = vst [vmem:[#allocation65_spill] sm:$0xff] %v5909_v19  ;;  %10116 = vst [vmem:[#allocation62_spill] sm:$0xff] %v5913_v48  ;;  %v5925_v11 = vmul.f32 %v5659_v58, %v10121_v38  ;;  %v5929_v61 = vmul.f32 %v10123_v62, %v5659_v58  ;;  %v10125_v19 = vld [vmem:[#allocation91_spill] sm:$0xff]  ;;  %v10127_v48 = vld [vmem:[#allocation97_spill] sm:$0xff] }
 0x246   :  { %10118 = vst [vmem:[#allocation64_spill] sm:$0xff] %v5917_v18  ;;  %10120 = vst [vmem:[#allocation67_spill] sm:$0xff] %v5921_v4  ;;  %v5933_v37 = vmul.f32 %v10125_v19, %v5659_v58  ;;  %v5937_v54 = vmul.f32 %v5659_v58, %v10127_v48  ;;  %v10129_v18 = vld [vmem:[#allocation99_spill] sm:$0xff]  ;;  %v10131_v4 = vld [vmem:[#allocation96_spill] sm:$0xff] }
 0x247   :  { %10122 = vst [vmem:[#allocation69_spill] sm:$0xff] %v5925_v11  ;;  %10124 = vst [vmem:[#allocation66_spill] sm:$0xff] %v5929_v61  ;;  %v5941_v32 = vmul.f32 %v5659_v58, %v10129_v18  ;;  %v5945_v38 = vmul.f32 %v10131_v4, %v5659_v58  ;;  %v10133_v11 = vld [vmem:[#allocation98_spill] sm:$0xff]  ;;  %v10135_v61 = vld [vmem:[#allocation19_spill] sm:$0xff] }
 0x248   :  { %10126 = vst [vmem:[#allocation68_spill] sm:$0xff] %v5933_v37  ;;  %10128 = vst [vmem:[#allocation74_spill] sm:$0xff] %v5937_v54  ;;  %v5949_v62 = vmul.f32 %v10133_v11, %v5659_v58  ;;  %v5953_v19 = vmul.f32 %v5659_v58, %v10135_v61  ;;  %v10137_v37 = vld [vmem:[#allocation21_spill] sm:$0xff]  ;;  %v10139_v54 = vld [vmem:[#allocation18_spill] sm:$0xff] }
 0x249   :  { %10130 = vst [vmem:[#allocation76_spill] sm:$0xff] %v5941_v32  ;;  %10132 = vst [vmem:[#allocation73_spill] sm:$0xff] %v5945_v38  ;;  %v5957_v48 = vmul.f32 %v5659_v58, %v10137_v37  ;;  %v5961_v18 = vmul.f32 %v10139_v54, %v5659_v58  ;;  %v10141_v32 = vld [vmem:[#allocation20_spill] sm:$0xff]  ;;  %v10143_v38 = vld [vmem:[#allocation27_spill] sm:$0xff] }
 0x24a   :  { %10134 = vst [vmem:[#allocation75_spill] sm:$0xff] %v5949_v62  ;;  %10136 = vst [vmem:[#allocation82_spill] sm:$0xff] %v5953_v19  ;;  %v5965_v4 = vmul.f32 %v10141_v32, %v5659_v58  ;;  %v5969_v11 = vmul.f32 %v5659_v58, %v10143_v38  ;;  %v10145_v62 = vld [vmem:[#allocation29_spill] sm:$0xff]  ;;  %v10147_v19 = vld [vmem:[#allocation26_spill] sm:$0xff] }
 0x24b   :  { %10138 = vst [vmem:[#allocation84_spill] sm:$0xff] %v5957_v48  ;;  %10140 = vst [vmem:[#allocation81_spill] sm:$0xff] %v5961_v18  ;;  %v5973_v61 = vmul.f32 %v5659_v58, %v10145_v62  ;;  %v5977_v37 = vmul.f32 %v10147_v19, %v5659_v58  ;;  %v10148_v48 = vld [vmem:[#allocation28_spill] sm:$0xff]  ;;  %v10149_v18 = vld [vmem:[#allocation35_spill] sm:$0xff] }
 0x24c   :  { %10142 = vst [vmem:[#allocation83_spill] sm:$0xff] %v5965_v4  ;;  %10144 = vst [vmem:[#allocation90_spill] sm:$0xff] %v5969_v11  ;;  %v5981_v54 = vmul.f32 %v10148_v48, %v5659_v58  ;;  %v5985_v32 = vmul.f32 %v5659_v58, %v10149_v18  ;;  %v10150_v4 = vld [vmem:[#allocation37_spill] sm:$0xff]  ;;  %v10151_v11 = vld [vmem:[#allocation34_spill] sm:$0xff]  ;;  %v6001_v48 = vmul.f32 %v5659_v58, %v4849_v47 }
 0x24d   :  { %10146 = vst [vmem:[#allocation92_spill] sm:$0xff] %v5973_v61  ;;  %v5989_v38 = vmul.f32 %v5659_v58, %v10150_v4  ;;  %v5993_v62 = vmul.f32 %v10151_v11, %v5659_v58  ;;  %v10152_v61 = vld [vmem:[#allocation36_spill] sm:$0xff]  ;;  %v6005_v18 = vmul.f32 %v5659_v58, %v4858_v1  ;;  %v6009_v4 = vmul.f32 %v4847_v42, %v5659_v58 }
 0x24e   :  { %v5997_v19 = vmul.f32 %v10152_v61, %v5659_v58  ;;  %v6013_v11 = vmul.f32 %v4856_v57, %v5659_v58  ;;  %v6017_v61 = vmul.f32 %v5659_v58, %v4885_v3  ;;  %v6021_v47 = vmul.f32 %v5659_v58, %v4894_v16 }
 0x24f   :  { %v6025_v1 = vmul.f32 %v4883_v55, %v5659_v58  ;;  %v6029_v42 = vmul.f32 %v4892_v21, %v5659_v58  ;;  %v6033_v57 = vmul.f32 %v5659_v58, %v4921_v6  ;;  %v6037_v3 = vmul.f32 %v5659_v58, %v4930_v9 }
 0x250   :  { %v6041_v16 = vmul.f32 %v4919_v31, %v5659_v58  ;;  %v6045_v55 = vmul.f32 %v4928_v52, %v5659_v58  ;;  %v6049_v21 = vmul.f32 %v5659_v58, %v4957_v23  ;;  %v6053_v6 = vmul.f32 %v5659_v58, %v4966_v26 }
 0x251   :  { %v6057_v9 = vmul.f32 %v4955_v44, %v5659_v58  ;;  %v6061_v31 = vmul.f32 %v4964_v25, %v5659_v58  ;;  %v6065_v52 = vmul.f32 %v5659_v58, %v4993_v49  ;;  %v6069_v23 = vmul.f32 %v5659_v58, %v5002_v51 }
 0x252   :  { %v6073_v26 = vmul.f32 %v4991_v40, %v5659_v58  ;;  %v6077_v44 = vmul.f32 %v5000_v59, %v5659_v58  ;;  %v6081_v25 = vmul.f32 %v5659_v58, %v5029_v17  ;;  %v6085_v49 = vmul.f32 %v5659_v58, %v5038_v20 }
 0x253   :  { %v6089_v51 = vmul.f32 %v5027_v30, %v5659_v58  ;;  %v6093_v40 = vmul.f32 %v5036_v33, %v5659_v58  ;;  %v6097_v59 = vmul.f32 %v5659_v58, %v5065_v53  ;;  %v6101_v17 = vmul.f32 %v5659_v58, %v5074_v56 }
 0x254   :  { %v6105_v20 = vmul.f32 %v5063_v41, %v5659_v58  ;;  %v6109_v30 = vmul.f32 %v5072_v0, %v5659_v58  ;;  %v6113_v33 = vmul.f32 %v5659_v58, %v5101_v29 }
 0x255   :  { %10153 = vst [vmem:[#allocation89_spill] sm:$0xff] %v6093_v40  ;;  %10154 = vst [vmem:[#allocation91_spill] sm:$0xff] %v6097_v59  ;;  %v10159_v40 = vld [vmem:[#allocation72_spill] sm:$0xff]  ;;  %v10161_v59 = vld [vmem:[#allocation70_spill] sm:$0xff] }
 0x256   :  { %10155 = vst [vmem:[#allocation97_spill] sm:$0xff] %v6101_v17  ;;  %10156 = vst [vmem:[#allocation99_spill] sm:$0xff] %v6105_v20  ;;  %v6117_v53 = vmul.f32 %v5659_v58, %v10159_v40  ;;  %v6121_v56 = vmul.f32 %v10161_v59, %v5659_v58  ;;  %v10162_v17 = vld [vmem:[#allocation71_spill] sm:$0xff]  ;;  %v10164_v20 = vld [vmem:[#allocation78_spill] sm:$0xff] }
 0x257   :  { %10157 = vst [vmem:[#allocation96_spill] sm:$0xff] %v6109_v30  ;;  %10158 = vst [vmem:[#allocation98_spill] sm:$0xff] %v6113_v33  ;;  %v6125_v41 = vmul.f32 %v10162_v17, %v5659_v58  ;;  %v6129_v0 = vmul.f32 %v5659_v58, %v10164_v20  ;;  %v10166_v30 = vld [vmem:[#allocation80_spill] sm:$0xff]  ;;  %v10168_v33 = vld [vmem:[#allocation77_spill] sm:$0xff]  ;;  %v6145_v17 = vmul.f32 %v5659_v58, %v9990_v7 }
 0x258   :  { %10160 = vst [vmem:[#allocation19_spill] sm:$0xff] %v6117_v53  ;;  %v6133_v29 = vmul.f32 %v5659_v58, %v10166_v30  ;;  %v6137_v40 = vmul.f32 %v10168_v33, %v5659_v58  ;;  %v10169_v53 = vld [vmem:[#allocation79_spill] sm:$0xff] }
 0x259   :  { %10163 = vst [vmem:[#allocation21_spill] sm:$0xff] %v6125_v41  ;;  %10165 = vst [vmem:[#allocation18_spill] sm:$0xff] %v6129_v0  ;;  %v6141_v59 = vmul.f32 %v10169_v53, %v5659_v58  ;;  %v10172_v41 = vld [vmem:[#allocation88_spill] sm:$0xff]  ;;  %v10174_v0 = vld [vmem:[#allocation85_spill] sm:$0xff]  ;;  %v6161_v53 = vmul.f32 %v5659_v58, %v5209_v8  ;;  %v6181_v8 = vmul.f32 %v5659_v58, %v5256_v15 }
 0x25a   :  { %10167 = vst [vmem:[#allocation20_spill] sm:$0xff] %v6133_v29  ;;  %10171 = vst [vmem:[#allocation29_spill] sm:$0xff] %v6145_v17  ;;  %v6149_v20 = vmul.f32 %v5659_v58, %v10172_v41  ;;  %v6153_v30 = vmul.f32 %v10174_v0, %v5659_v58  ;;  %v10175_v29 = vld [vmem:[#allocation87_spill] sm:$0xff]  ;;  %v10177_v17 = vld [vmem:[#allocation93_spill] sm:$0xff]  ;;  %v6201_v15 = vmul.f32 %v5271_v24, %v5659_v58 }
 0x25b   :  { %10170 = vst [vmem:[#allocation27_spill] sm:$0xff] %v6141_v59  ;;  %v6157_v33 = vmul.f32 %v10175_v29, %v5659_v58  ;;  %v10176_v59 = vld [vmem:[#allocation95_spill] sm:$0xff]  ;;  %v6169_v41 = vmul.f32 %v10177_v17, %v5659_v58  ;;  %v6177_v29 = vmul.f32 %v5659_v58, %v9997_v12  ;;  %v6189_v17 = vmul.f32 %v5254_v35, %v5659_v58 }
 0x25c   :  { %10173 = vst [vmem:[#allocation26_spill] sm:$0xff] %v6149_v20  ;;  %v6165_v7 = vmul.f32 %v5659_v58, %v10176_v59  ;;  %v10178_v20 = vld [vmem:[#allocation94_spill] sm:$0xff]  ;;  %v6185_v59 = vmul.f32 %v9998_v5, %v5659_v58  ;;  %v6197_v12 = vmul.f32 %v5659_v58, %v5284_v22  ;;  %10182 = vst [vmem:[#allocation34_spill] sm:$0xff] %v6201_v15 }
 0x25d   :  { %v6173_v0 = vmul.f32 %v10178_v20, %v5659_v58  ;;  %10179 = vst [vmem:[#allocation28_spill] sm:$0xff] %v6189_v17  ;;  %v6193_v20 = vmul.f32 %v5659_v58, %v5273_v10  ;;  %v6205_v5 = vmul.f32 %v5282_v36, %v5659_v58  ;;  %v6209_v35 = vmul.f32 %v5659_v58, %v5301_v63  ;;  %v10185_v17 = vld [vmem:[#allocation104_spill] sm:$0xff]  ;;  %v10191_v15 = vld [vmem:[#allocation106_spill] sm:$0xff] }
 0x25e   :  { %10181 = vst [vmem:[#allocation37_spill] sm:$0xff] %v6197_v12  ;;  %v6213_v10 = vmul.f32 %v5659_v58, %v10185_v17  ;;  %v10189_v12 = vld [vmem:[#allocation103_spill] sm:$0xff]  ;;  %v6225_v36 = vmul.f32 %v5659_v58, %v10191_v15 }
 0x25f   :  { %10180 = vst [vmem:[#allocation35_spill] sm:$0xff] %v6193_v20  ;;  %10183 = vst [vmem:[#allocation36_spill] sm:$0xff] %v6205_v5  ;;  %v10187_v20 = vld [vmem:[#allocation102_spill] sm:$0xff]  ;;  %v6221_v24 = vmul.f32 %v10189_v12, %v5659_v58  ;;  %v10192_v5 = vld [vmem:[#allocation108_spill] sm:$0xff]  ;;  %v10196_v12 = vsub.f32 %v5653_v27, %v5655_v45 }
 0x260   :  { %10184 = vst [vmem:[#allocation72_spill] sm:$0xff] %v6209_v35  ;;  %10186 = vst [vmem:[#allocation70_spill] sm:$0xff] %v6213_v10  ;;  %v6217_v22 = vmul.f32 %v10187_v20, %v5659_v58  ;;  %v6229_v63 = vmul.f32 %v5659_v58, %v10192_v5  ;;  %v10193_v35 = vld [vmem:[#allocation105_spill] sm:$0xff]  ;;  %v10194_v10 = vld [vmem:[#allocation107_spill] sm:$0xff] }
 0x261   :  { %10190 = vst [vmem:[#allocation78_spill] sm:$0xff] %v6221_v24  ;;  %v6233_v17 = vmul.f32 %v10193_v35, %v5659_v58  ;;  %v6237_v20 = vmul.f32 %v10194_v10, %v5659_v58  ;;  %v10202_v10 = vld [vmem:[#allocation100_spill] sm:$0xff] }
 0x262   :  { %10188 = vst [vmem:[#allocation71_spill] sm:$0xff] %v6217_v22  ;;  %v10195_v22 = vsub.s32 0, %v5644_v34 }
 0x264   :  { %v6244_v24 = vrot.slane %v10196_v12, %v10195_v22  ;;  %v10204_v22 = vld [vmem:[#allocation3_spill] sm:$0xff]  ;;  %v10206_v12 = vld [vmem:[#allocation5_spill] sm:$0xff] }
 0x266   :  { %v6248_v15 = vadd.f32 %v6244_v24, %v5665_v28  ;;  %v6252_v5 = vadd.f32 %v6244_v24, %v5669_v39  ;;  %v6256_v35 = vadd.f32 %v6244_v24, %v5673_v46  ;;  %v6260_v34 = vadd.f32 %v6244_v24, %v5677_v50  ;;  %v10198_v46 = vld [vmem:[#allocation86_spill] sm:$0xff] }
 0x267   :  { %v6264_v27 = vadd.f32 %v6244_v24, %v5681_v14  ;;  %v6268_v45 = vadd.f32 %v6244_v24, %v5685_v60  ;;  %v6272_v58 = vadd.f32 %v6244_v24, %v5689_v2  ;;  %v6276_v28 = vadd.f32 %v6244_v24, %v5693_v13  ;;  %v10200_v14 = vld [vmem:[#allocation101_spill] sm:$0xff] }
 0x268   :  { %v6280_v39 = vadd.f32 %v6244_v24, %v5697_v43  ;;  %v6284_v50 = vadd.f32 %v6244_v24, %v10198_v46  ;;  %v6288_v60 = vadd.f32 %v6244_v24, %v10200_v14  ;;  %v6292_v2 = vadd.f32 %v6244_v24, %v10202_v10 }
 0x269   :  { %v6296_v13 = vadd.f32 %v6244_v24, %v10204_v22  ;;  %v6300_v43 = vadd.f32 %v6244_v24, %v10206_v12  ;;  %vm2414_vm2 = vcmp.ge.f32.partialorder %v6248_v15, 0.0  ;;  %vm2415_vm3 = vcmp.ge.f32.partialorder %v6252_v5, 0.0 }
 0x26a   :  { %10197 = vst [vmem:[#allocation80_spill] sm:$0xff] %v6280_v39  ;;  %10199 = vst [vmem:[#allocation77_spill] sm:$0xff] %v6284_v50  ;;  %v10208_v39 = vld [vmem:[#allocation2_spill] sm:$0xff]  ;;  %v10210_v50 = vld [vmem:[#allocation4_spill] sm:$0xff]  ;;  %vm2416_vm4 = vcmp.ge.f32.partialorder %v6256_v35, 0.0  ;;  %vm2417_vm5 = vcmp.ge.f32.partialorder %v6260_v34, 0.0 }
 0x26b   :  { %10201 = vst [vmem:[#allocation79_spill] sm:$0xff] %v6288_v60  ;;  %10203 = vst [vmem:[#allocation88_spill] sm:$0xff] %v6292_v2  ;;  %v6304_v46 = vadd.f32 %v6244_v24, %v10208_v39  ;;  %v6308_v14 = vadd.f32 %v6244_v24, %v10210_v50  ;;  %v10212_v60 = vld [vmem:[#allocation7_spill] sm:$0xff]  ;;  %v10214_v2 = vld [vmem:[#allocation9_spill] sm:$0xff]  ;;  %vm2418_vm6 = vcmp.ge.f32.partialorder %v6264_v27, 0.0  ;;  %vm2419_vm7 = vcmp.ge.f32.partialorder %v6268_v45, 0.0 }
 0x26c   :  { %10205 = vst [vmem:[#allocation85_spill] sm:$0xff] %v6296_v13  ;;  %10207 = vst [vmem:[#allocation87_spill] sm:$0xff] %v6300_v43  ;;  %v6312_v10 = vadd.f32 %v6244_v24, %v10212_v60  ;;  %v6316_v22 = vadd.f32 %v6244_v24, %v10214_v2  ;;  %v10216_v13 = vld [vmem:[#allocation6_spill] sm:$0xff]  ;;  %v10218_v43 = vld [vmem:[#allocation8_spill] sm:$0xff]  ;;  %vm2420_vm8 = vcmp.ge.f32.partialorder %v6272_v58, 0.0  ;;  %vm2421_vm9 = vcmp.ge.f32.partialorder %v6276_v28, 0.0 }
 0x26d   :  { %10209 = vst [vmem:[#allocation95_spill] sm:$0xff] %v6304_v46  ;;  %10211 = vst [vmem:[#allocation93_spill] sm:$0xff] %v6308_v14  ;;  %v6320_v12 = vadd.f32 %v6244_v24, %v10216_v13  ;;  %v6324_v39 = vadd.f32 %v6244_v24, %v10218_v43  ;;  %v10220_v46 = vld [vmem:[#allocation11_spill] sm:$0xff]  ;;  %v10222_v14 = vld [vmem:[#allocation13_spill] sm:$0xff] }
 0x26e   :  { %10213 = vst [vmem:[#allocation94_spill] sm:$0xff] %v6312_v10  ;;  %10215 = vst [vmem:[#allocation104_spill] sm:$0xff] %v6316_v22  ;;  %v6328_v50 = vadd.f32 %v6244_v24, %v10220_v46  ;;  %v6332_v60 = vadd.f32 %v6244_v24, %v10222_v14  ;;  %v10224_v10 = vld [vmem:[#allocation10_spill] sm:$0xff]  ;;  %v10226_v22 = vld [vmem:[#allocation12_spill] sm:$0xff] }
 0x26f   :  { %10217 = vst [vmem:[#allocation102_spill] sm:$0xff] %v6320_v12  ;;  %10219 = vst [vmem:[#allocation103_spill] sm:$0xff] %v6324_v39  ;;  %v6336_v2 = vadd.f32 %v6244_v24, %v10224_v10  ;;  %v6340_v13 = vadd.f32 %v6244_v24, %v10226_v22  ;;  %v10228_v12 = vld [vmem:[#allocation15_spill] sm:$0xff]  ;;  %v10230_v39 = vld [vmem:[#allocation17_spill] sm:$0xff] }
 0x270   :  { %10221 = vst [vmem:[#allocation106_spill] sm:$0xff] %v6328_v50  ;;  %10223 = vst [vmem:[#allocation108_spill] sm:$0xff] %v6332_v60  ;;  %v6344_v43 = vadd.f32 %v6244_v24, %v10228_v12  ;;  %v6348_v46 = vadd.f32 %v6244_v24, %v10230_v39  ;;  %v10232_v50 = vld [vmem:[#allocation14_spill] sm:$0xff]  ;;  %v10234_v60 = vld [vmem:[#allocation16_spill] sm:$0xff] }
 0x271   :  { %10225 = vst [vmem:[#allocation105_spill] sm:$0xff] %v6336_v2  ;;  %10227 = vst [vmem:[#allocation107_spill] sm:$0xff] %v6340_v13  ;;  %v6352_v14 = vadd.f32 %v6244_v24, %v10232_v50  ;;  %v6356_v10 = vadd.f32 %v6244_v24, %v10234_v60  ;;  %v10236_v2 = vld [vmem:[#allocation23_spill] sm:$0xff]  ;;  %v10238_v13 = vld [vmem:[#allocation25_spill] sm:$0xff] }
 0x272   :  { %10229 = vst [vmem:[#allocation86_spill] sm:$0xff] %v6344_v43  ;;  %10231 = vst [vmem:[#allocation101_spill] sm:$0xff] %v6348_v46  ;;  %v6360_v22 = vadd.f32 %v6244_v24, %v10236_v2  ;;  %v6364_v12 = vadd.f32 %v6244_v24, %v10238_v13  ;;  %v10240_v43 = vld [vmem:[#allocation22_spill] sm:$0xff]  ;;  %v10242_v46 = vld [vmem:[#allocation24_spill] sm:$0xff] }
 0x273   :  { %10233 = vst [vmem:[#allocation100_spill] sm:$0xff] %v6352_v14  ;;  %10235 = vst [vmem:[#allocation3_spill] sm:$0xff] %v6356_v10  ;;  %v6368_v39 = vadd.f32 %v6244_v24, %v10240_v43  ;;  %v6372_v50 = vadd.f32 %v6244_v24, %v10242_v46  ;;  %v10244_v14 = vld [vmem:[#allocation31_spill] sm:$0xff]  ;;  %v10246_v10 = vld [vmem:[#allocation33_spill] sm:$0xff] }
 0x274   :  { %10237 = vst [vmem:[#allocation5_spill] sm:$0xff] %v6360_v22  ;;  %10239 = vst [vmem:[#allocation2_spill] sm:$0xff] %v6364_v12  ;;  %v6376_v60 = vadd.f32 %v6244_v24, %v10244_v14  ;;  %v6380_v2 = vadd.f32 %v6244_v24, %v10246_v10  ;;  %v10248_v22 = vld [vmem:[#allocation30_spill] sm:$0xff]  ;;  %v10250_v12 = vld [vmem:[#allocation32_spill] sm:$0xff] }
 0x275   :  { %10241 = vst [vmem:[#allocation4_spill] sm:$0xff] %v6368_v39  ;;  %10243 = vst [vmem:[#allocation7_spill] sm:$0xff] %v6372_v50  ;;  %v6384_v13 = vadd.f32 %v6244_v24, %v10248_v22  ;;  %v6388_v43 = vadd.f32 %v6244_v24, %v10250_v12  ;;  %v10252_v39 = vld [vmem:[#allocation39_spill] sm:$0xff]  ;;  %v10254_v50 = vld [vmem:[#allocation41_spill] sm:$0xff] }
 0x276   :  { %10245 = vst [vmem:[#allocation9_spill] sm:$0xff] %v6376_v60  ;;  %10247 = vst [vmem:[#allocation6_spill] sm:$0xff] %v6380_v2  ;;  %v6392_v46 = vadd.f32 %v6244_v24, %v10252_v39  ;;  %v6396_v14 = vadd.f32 %v6244_v24, %v10254_v50  ;;  %v10256_v60 = vld [vmem:[#allocation38_spill] sm:$0xff]  ;;  %v10258_v2 = vld [vmem:[#allocation40_spill] sm:$0xff] }
 0x277   :  { %10249 = vst [vmem:[#allocation8_spill] sm:$0xff] %v6384_v13  ;;  %10251 = vst [vmem:[#allocation11_spill] sm:$0xff] %v6388_v43  ;;  %v6400_v10 = vadd.f32 %v6244_v24, %v10256_v60  ;;  %v6404_v22 = vadd.f32 %v6244_v24, %v10258_v2  ;;  %v10260_v13 = vld [vmem:[#allocation43_spill] sm:$0xff]  ;;  %v10262_v43 = vld [vmem:[#allocation45_spill] sm:$0xff] }
 0x278   :  { %10253 = vst [vmem:[#allocation13_spill] sm:$0xff] %v6392_v46  ;;  %10255 = vst [vmem:[#allocation10_spill] sm:$0xff] %v6396_v14  ;;  %v6408_v12 = vadd.f32 %v6244_v24, %v10260_v13  ;;  %v6412_v39 = vadd.f32 %v6244_v24, %v10262_v43  ;;  %v10264_v46 = vld [vmem:[#allocation42_spill] sm:$0xff]  ;;  %v10266_v14 = vld [vmem:[#allocation44_spill] sm:$0xff] }
 0x279   :  { %10257 = vst [vmem:[#allocation12_spill] sm:$0xff] %v6400_v10  ;;  %10259 = vst [vmem:[#allocation15_spill] sm:$0xff] %v6404_v22  ;;  %v6416_v50 = vadd.f32 %v6244_v24, %v10264_v46  ;;  %v6420_v60 = vadd.f32 %v6244_v24, %v10266_v14  ;;  %v10268_v10 = vld [vmem:[#allocation47_spill] sm:$0xff]  ;;  %v10270_v22 = vld [vmem:[#allocation49_spill] sm:$0xff] }
 0x27a   :  { %10261 = vst [vmem:[#allocation17_spill] sm:$0xff] %v6408_v12  ;;  %10263 = vst [vmem:[#allocation14_spill] sm:$0xff] %v6412_v39  ;;  %v6424_v2 = vadd.f32 %v6244_v24, %v10268_v10  ;;  %v6428_v13 = vadd.f32 %v6244_v24, %v10270_v22  ;;  %v10272_v12 = vld [vmem:[#allocation46_spill] sm:$0xff]  ;;  %v10274_v39 = vld [vmem:[#allocation48_spill] sm:$0xff] }
 0x27b   :  { %10265 = vst [vmem:[#allocation16_spill] sm:$0xff] %v6416_v50  ;;  %10267 = vst [vmem:[#allocation23_spill] sm:$0xff] %v6420_v60  ;;  %v6432_v43 = vadd.f32 %v6244_v24, %v10272_v12  ;;  %v6436_v46 = vadd.f32 %v6244_v24, %v10274_v39  ;;  %v10276_v50 = vld [vmem:[#allocation51_spill] sm:$0xff]  ;;  %v10278_v60 = vld [vmem:[#allocation53_spill] sm:$0xff] }
 0x27c   :  { %10269 = vst [vmem:[#allocation25_spill] sm:$0xff] %v6424_v2  ;;  %10271 = vst [vmem:[#allocation22_spill] sm:$0xff] %v6428_v13  ;;  %v6440_v14 = vadd.f32 %v6244_v24, %v10276_v50  ;;  %v6444_v10 = vadd.f32 %v6244_v24, %v10278_v60  ;;  %v10280_v2 = vld [vmem:[#allocation50_spill] sm:$0xff]  ;;  %v10282_v13 = vld [vmem:[#allocation52_spill] sm:$0xff] }
 0x27d   :  { %10273 = vst [vmem:[#allocation24_spill] sm:$0xff] %v6432_v43  ;;  %10275 = vst [vmem:[#allocation31_spill] sm:$0xff] %v6436_v46  ;;  %v6448_v22 = vadd.f32 %v6244_v24, %v10280_v2  ;;  %v6452_v12 = vadd.f32 %v6244_v24, %v10282_v13  ;;  %v10284_v43 = vld [vmem:[#allocation55_spill] sm:$0xff]  ;;  %v10286_v46 = vld [vmem:[#allocation57_spill] sm:$0xff] }
 0x27e   :  { %10277 = vst [vmem:[#allocation33_spill] sm:$0xff] %v6440_v14  ;;  %10279 = vst [vmem:[#allocation30_spill] sm:$0xff] %v6444_v10  ;;  %v6456_v39 = vadd.f32 %v6244_v24, %v10284_v43  ;;  %v6460_v50 = vadd.f32 %v6244_v24, %v10286_v46  ;;  %v10288_v14 = vld [vmem:[#allocation54_spill] sm:$0xff]  ;;  %v10290_v10 = vld [vmem:[#allocation56_spill] sm:$0xff] }
 0x27f   :  { %10281 = vst [vmem:[#allocation32_spill] sm:$0xff] %v6448_v22  ;;  %10283 = vst [vmem:[#allocation39_spill] sm:$0xff] %v6452_v12  ;;  %v6464_v60 = vadd.f32 %v6244_v24, %v10288_v14  ;;  %v6468_v2 = vadd.f32 %v6244_v24, %v10290_v10  ;;  %v10292_v22 = vld [vmem:[#allocation59_spill] sm:$0xff]  ;;  %v10294_v12 = vld [vmem:[#allocation61_spill] sm:$0xff] }
 0x280   :  { %10285 = vst [vmem:[#allocation41_spill] sm:$0xff] %v6456_v39  ;;  %10287 = vst [vmem:[#allocation38_spill] sm:$0xff] %v6460_v50  ;;  %v6472_v13 = vadd.f32 %v6244_v24, %v10292_v22  ;;  %v6476_v43 = vadd.f32 %v6244_v24, %v10294_v12  ;;  %v10296_v39 = vld [vmem:[#allocation58_spill] sm:$0xff]  ;;  %v10298_v50 = vld [vmem:[#allocation60_spill] sm:$0xff] }
 0x281   :  { %10289 = vst [vmem:[#allocation40_spill] sm:$0xff] %v6464_v60  ;;  %10291 = vst [vmem:[#allocation43_spill] sm:$0xff] %v6468_v2  ;;  %v6480_v46 = vadd.f32 %v6244_v24, %v10296_v39  ;;  %v6484_v14 = vadd.f32 %v6244_v24, %v10298_v50  ;;  %v10300_v60 = vld [vmem:[#allocation63_spill] sm:$0xff]  ;;  %v10302_v2 = vld [vmem:[#allocation65_spill] sm:$0xff] }
 0x282   :  { %10293 = vst [vmem:[#allocation45_spill] sm:$0xff] %v6472_v13  ;;  %10295 = vst [vmem:[#allocation42_spill] sm:$0xff] %v6476_v43  ;;  %v6488_v10 = vadd.f32 %v6244_v24, %v10300_v60  ;;  %v6492_v22 = vadd.f32 %v6244_v24, %v10302_v2  ;;  %v10304_v13 = vld [vmem:[#allocation62_spill] sm:$0xff]  ;;  %v10306_v43 = vld [vmem:[#allocation64_spill] sm:$0xff] }
 0x283   :  { %10297 = vst [vmem:[#allocation44_spill] sm:$0xff] %v6480_v46  ;;  %10299 = vst [vmem:[#allocation47_spill] sm:$0xff] %v6484_v14  ;;  %v6496_v12 = vadd.f32 %v6244_v24, %v10304_v13  ;;  %v6500_v39 = vadd.f32 %v6244_v24, %v10306_v43  ;;  %v10308_v46 = vld [vmem:[#allocation67_spill] sm:$0xff]  ;;  %v10310_v14 = vld [vmem:[#allocation69_spill] sm:$0xff] }
 0x284   :  { %10301 = vst [vmem:[#allocation49_spill] sm:$0xff] %v6488_v10  ;;  %10303 = vst [vmem:[#allocation46_spill] sm:$0xff] %v6492_v22  ;;  %v6504_v50 = vadd.f32 %v6244_v24, %v10308_v46  ;;  %v6508_v60 = vadd.f32 %v6244_v24, %v10310_v14  ;;  %v10312_v10 = vld [vmem:[#allocation66_spill] sm:$0xff]  ;;  %v10314_v22 = vld [vmem:[#allocation68_spill] sm:$0xff] }
 0x285   :  { %10305 = vst [vmem:[#allocation48_spill] sm:$0xff] %v6496_v12  ;;  %10307 = vst [vmem:[#allocation51_spill] sm:$0xff] %v6500_v39  ;;  %v6512_v2 = vadd.f32 %v6244_v24, %v10312_v10  ;;  %v6516_v13 = vadd.f32 %v6244_v24, %v10314_v22  ;;  %v10316_v12 = vld [vmem:[#allocation74_spill] sm:$0xff]  ;;  %v10318_v39 = vld [vmem:[#allocation76_spill] sm:$0xff] }
 0x286   :  { %10309 = vst [vmem:[#allocation53_spill] sm:$0xff] %v6504_v50  ;;  %10311 = vst [vmem:[#allocation50_spill] sm:$0xff] %v6508_v60  ;;  %v6520_v43 = vadd.f32 %v6244_v24, %v10316_v12  ;;  %v6524_v46 = vadd.f32 %v6244_v24, %v10318_v39  ;;  %v10320_v50 = vld [vmem:[#allocation73_spill] sm:$0xff]  ;;  %v10322_v60 = vld [vmem:[#allocation75_spill] sm:$0xff] }
 0x287   :  { %10313 = vst [vmem:[#allocation52_spill] sm:$0xff] %v6512_v2  ;;  %10315 = vst [vmem:[#allocation55_spill] sm:$0xff] %v6516_v13  ;;  %v6528_v14 = vadd.f32 %v6244_v24, %v10320_v50  ;;  %v6532_v10 = vadd.f32 %v6244_v24, %v10322_v60  ;;  %v10324_v2 = vld [vmem:[#allocation82_spill] sm:$0xff]  ;;  %v10325_v13 = vld [vmem:[#allocation84_spill] sm:$0xff] }
 0x288   :  { %10317 = vst [vmem:[#allocation57_spill] sm:$0xff] %v6520_v43  ;;  %10319 = vst [vmem:[#allocation54_spill] sm:$0xff] %v6524_v46  ;;  %v6536_v22 = vadd.f32 %v6244_v24, %v10324_v2  ;;  %v6540_v12 = vadd.f32 %v6244_v24, %v10325_v13  ;;  %v10326_v43 = vld [vmem:[#allocation81_spill] sm:$0xff]  ;;  %v10327_v46 = vld [vmem:[#allocation83_spill] sm:$0xff]  ;;  %v6560_v13 = vadd.f32 %v6244_v24, %v5977_v37 }
 0x289   :  { %10321 = vst [vmem:[#allocation56_spill] sm:$0xff] %v6528_v14  ;;  %10323 = vst [vmem:[#allocation59_spill] sm:$0xff] %v6532_v10  ;;  %v6544_v39 = vadd.f32 %v6244_v24, %v10326_v43  ;;  %v6548_v50 = vadd.f32 %v6244_v24, %v10327_v46  ;;  %v10328_v14 = vld [vmem:[#allocation90_spill] sm:$0xff]  ;;  %v10329_v10 = vld [vmem:[#allocation92_spill] sm:$0xff]  ;;  %v6564_v43 = vadd.f32 %v6244_v24, %v5981_v54 }
 0x28a   :  { %v6552_v60 = vadd.f32 %v6244_v24, %v10328_v14  ;;  %v6556_v2 = vadd.f32 %v6244_v24, %v10329_v10  ;;  %v6568_v46 = vadd.f32 %v6244_v24, %v5985_v32  ;;  %v6572_v14 = vadd.f32 %v6244_v24, %v5989_v38 }
 0x28b   :  { %v6576_v10 = vadd.f32 %v6244_v24, %v5993_v62  ;;  %v6580_v37 = vadd.f32 %v6244_v24, %v5997_v19  ;;  %v6584_v54 = vadd.f32 %v6244_v24, %v6001_v48  ;;  %v6588_v32 = vadd.f32 %v6244_v24, %v6005_v18 }
 0x28c   :  { %v6592_v38 = vadd.f32 %v6244_v24, %v6009_v4  ;;  %v6596_v62 = vadd.f32 %v6244_v24, %v6013_v11  ;;  %v6600_v19 = vadd.f32 %v6244_v24, %v6017_v61  ;;  %v6604_v48 = vadd.f32 %v6244_v24, %v6021_v47 }
 0x28d   :  { %10330 = vst [vmem:[#allocation61_spill] sm:$0xff] %v6580_v37  ;;  %10331 = vst [vmem:[#allocation58_spill] sm:$0xff] %v6584_v54  ;;  %v6608_v18 = vadd.f32 %v6244_v24, %v6025_v1  ;;  %v6612_v4 = vadd.f32 %v6244_v24, %v6029_v42  ;;  %v6616_v11 = vadd.f32 %v6244_v24, %v6033_v57 }
 0x28e   :  { %10332 = vst [vmem:[#allocation60_spill] sm:$0xff] %v6588_v32  ;;  %10333 = vst [vmem:[#allocation63_spill] sm:$0xff] %v6592_v38  ;;  %v6620_v61 = vadd.f32 %v6244_v24, %v6037_v3  ;;  %v6624_v47 = vadd.f32 %v6244_v24, %v6041_v16  ;;  %v6628_v1 = vadd.f32 %v6244_v24, %v6045_v55 }
 0x28f   :  { %10334 = vst [vmem:[#allocation65_spill] sm:$0xff] %v6596_v62  ;;  %10335 = vst [vmem:[#allocation62_spill] sm:$0xff] %v6600_v19  ;;  %v6632_v42 = vadd.f32 %v6244_v24, %v6049_v21  ;;  %v6636_v57 = vadd.f32 %v6244_v24, %v6053_v6  ;;  %v6640_v3 = vadd.f32 %v6244_v24, %v6057_v9  ;;  %v10445_v19 = vld [vmem:[#allocation2_spill] sm:$0xff] }
 0x290   :  { %10336 = vst [vmem:[#allocation64_spill] sm:$0xff] %v6604_v48  ;;  %10337 = vst [vmem:[#allocation67_spill] sm:$0xff] %v6608_v18  ;;  %v6644_v16 = vadd.f32 %v6244_v24, %v6061_v31  ;;  %v6648_v55 = vadd.f32 %v6244_v24, %v6065_v52  ;;  %v6652_v21 = vadd.f32 %v6244_v24, %v6069_v23  ;;  %v6934_v62 = vmul.f32 0.2, %v10445_v19 }
 0x291   :  { %10338 = vst [vmem:[#allocation69_spill] sm:$0xff] %v6612_v4  ;;  %10339 = vst [vmem:[#allocation66_spill] sm:$0xff] %v6616_v11  ;;  %v6656_v6 = vadd.f32 %v6244_v24, %v6073_v26  ;;  %v6660_v9 = vadd.f32 %v6244_v24, %v6077_v44  ;;  %v6664_v31 = vadd.f32 %v6244_v24, %v6081_v25  ;;  %v10438_v11 = vld [vmem:[#allocation100_spill] sm:$0xff] }
 0x292   :  { %10340 = vst [vmem:[#allocation68_spill] sm:$0xff] %v6620_v61  ;;  %10341 = vst [vmem:[#allocation74_spill] sm:$0xff] %v6624_v47  ;;  %v6668_v52 = vadd.f32 %v6244_v24, %v6085_v49  ;;  %v6672_v23 = vadd.f32 %v6244_v24, %v6089_v51  ;;  %v6919_v4 = vmul.f32 0.2, %v10438_v11 }
 0x293   :  { %10342 = vst [vmem:[#allocation76_spill] sm:$0xff] %v6628_v1  ;;  %10343 = vst [vmem:[#allocation73_spill] sm:$0xff] %v6632_v42  ;;  %v10433_v42 = vld [vmem:[#allocation107_spill] sm:$0xff] }
 0x294   :  { %10344 = vst [vmem:[#allocation75_spill] sm:$0xff] %v6636_v57  ;;  %10345 = vst [vmem:[#allocation82_spill] sm:$0xff] %v6640_v3  ;;  %v6904_v1 = vmul.f32 0.2, %v10433_v42 }
 0x295   :  { %10346 = vst [vmem:[#allocation84_spill] sm:$0xff] %v6644_v16  ;;  %10347 = vst [vmem:[#allocation81_spill] sm:$0xff] %v6648_v55  ;;  %v10429_v55 = vld [vmem:[#allocation106_spill] sm:$0xff] }
 0x296   :  { %10348 = vst [vmem:[#allocation83_spill] sm:$0xff] %v6652_v21  ;;  %10349 = vst [vmem:[#allocation90_spill] sm:$0xff] %v6656_v6  ;;  %v10354_v21 = vld [vmem:[#allocation89_spill] sm:$0xff]  ;;  %v10356_v6 = vld [vmem:[#allocation91_spill] sm:$0xff]  ;;  %v6889_v16 = vmul.f32 0.2, %v10429_v55 }
 0x297   :  { %10350 = vst [vmem:[#allocation92_spill] sm:$0xff] %v6660_v9  ;;  %10351 = vst [vmem:[#allocation109_spill] sm:$0xff] %v6664_v31  ;;  %v6676_v26 = vadd.f32 %v6244_v24, %v10354_v21  ;;  %v6680_v44 = vadd.f32 %v6244_v24, %v10356_v6  ;;  %v10358_v9 = vld [vmem:[#allocation97_spill] sm:$0xff]  ;;  %v10360_v31 = vld [vmem:[#allocation99_spill] sm:$0xff] }
 0x298   :  { %10352 = vst [vmem:[#allocation110_spill] sm:$0xff] %v6668_v52  ;;  %10353 = vst [vmem:[#allocation111_spill] sm:$0xff] %v6672_v23  ;;  %v6684_v25 = vadd.f32 %v6244_v24, %v10358_v9  ;;  %v6688_v49 = vadd.f32 %v6244_v24, %v10360_v31  ;;  %v10362_v52 = vld [vmem:[#allocation96_spill] sm:$0xff]  ;;  %v10364_v23 = vld [vmem:[#allocation98_spill] sm:$0xff]  ;;  %v6704_v9 = vadd.f32 %v6244_v24, %v6121_v56 }
 0x299   :  { %10355 = vst [vmem:[#allocation89_spill] sm:$0xff] %v6676_v26  ;;  %10357 = vst [vmem:[#allocation91_spill] sm:$0xff] %v6680_v44  ;;  %v6692_v51 = vadd.f32 %v6244_v24, %v10362_v52  ;;  %v6696_v21 = vadd.f32 %v6244_v24, %v10364_v23  ;;  %v10366_v26 = vld [vmem:[#allocation19_spill] sm:$0xff] }
 0x29a   :  { %10359 = vst [vmem:[#allocation97_spill] sm:$0xff] %v6684_v25  ;;  %10361 = vst [vmem:[#allocation99_spill] sm:$0xff] %v6688_v49  ;;  %v6700_v6 = vadd.f32 %v6244_v24, %v10366_v26  ;;  %v10369_v25 = vld [vmem:[#allocation21_spill] sm:$0xff]  ;;  %v10371_v49 = vld [vmem:[#allocation18_spill] sm:$0xff]  ;;  %v6720_v26 = vadd.f32 %v6244_v24, %v6137_v40  ;;  %v6740_v40 = vadd.f32 %v6244_v24, %v6157_v33 }
 0x29b   :  { %10363 = vst [vmem:[#allocation96_spill] sm:$0xff] %v6692_v51  ;;  %10365 = vst [vmem:[#allocation98_spill] sm:$0xff] %v6696_v21  ;;  %v6708_v31 = vadd.f32 %v6244_v24, %v10369_v25  ;;  %v6712_v52 = vadd.f32 %v6244_v24, %v10371_v49  ;;  %v10373_v51 = vld [vmem:[#allocation20_spill] sm:$0xff]  ;;  %v6760_v33 = vadd.f32 %v6244_v24, %v6177_v29 }
 0x29c   :  { %10367 = vst [vmem:[#allocation19_spill] sm:$0xff] %v6700_v6  ;;  %10368 = vst [vmem:[#allocation112_spill] sm:$0xff] %v6704_v9  ;;  %v6716_v23 = vadd.f32 %v6244_v24, %v10373_v51  ;;  %v10376_v6 = vld [vmem:[#allocation27_spill] sm:$0xff]  ;;  %v10378_v9 = vld [vmem:[#allocation29_spill] sm:$0xff]  ;;  %v6736_v51 = vadd.f32 %v6244_v24, %v6153_v30  ;;  %v6756_v30 = vadd.f32 %v6244_v24, %v6173_v0 }
 0x29d   :  { %10370 = vst [vmem:[#allocation21_spill] sm:$0xff] %v6708_v31  ;;  %10372 = vst [vmem:[#allocation18_spill] sm:$0xff] %v6712_v52  ;;  %v6724_v56 = vadd.f32 %v6244_v24, %v10376_v6  ;;  %v6728_v25 = vadd.f32 %v6244_v24, %v10378_v9  ;;  %v10380_v31 = vld [vmem:[#allocation26_spill] sm:$0xff]  ;;  %v6744_v6 = vadd.f32 %v6244_v24, %v6161_v53 }
 0x29e   :  { %10374 = vst [vmem:[#allocation20_spill] sm:$0xff] %v6716_v23  ;;  %10375 = vst [vmem:[#allocation113_spill] sm:$0xff] %v6720_v26  ;;  %v6732_v49 = vadd.f32 %v6244_v24, %v10380_v31  ;;  %v6748_v9 = vadd.f32 %v6244_v24, %v6165_v7  ;;  %v6752_v31 = vadd.f32 %v6244_v24, %v6169_v41  ;;  %v10423_v26 = vld [vmem:[#allocation93_spill] sm:$0xff] }
 0x29f   :  { %10377 = vst [vmem:[#allocation27_spill] sm:$0xff] %v6724_v56  ;;  %10379 = vst [vmem:[#allocation29_spill] sm:$0xff] %v6728_v25  ;;  %v6764_v53 = vadd.f32 %v6244_v24, %v6181_v8  ;;  %v6768_v7 = vadd.f32 %v6244_v24, %v6185_v59  ;;  %v6868_v23 = vmul.f32 0.2, %v10423_v26  ;;  %vm2429_vm1 = vcmp.ge.f32.partialorder %v10423_v26, 0.0 }
 0x2a0   :  { %10381 = vst [vmem:[#allocation26_spill] sm:$0xff] %v6732_v49  ;;  %10382 = vst [vmem:[#allocation114_spill] sm:$0xff] %v6736_v51  ;;  %v10420_v49 = vld [vmem:[#allocation87_spill] sm:$0xff] }
 0x2a1   :  { %10383 = vst [vmem:[#allocation115_spill] sm:$0xff] %v6740_v40  ;;  %10384 = vst [vmem:[#allocation116_spill] sm:$0xff] %v6744_v6  ;;  %vm2427_vm15 = vcmp.ge.f32.partialorder %v10420_v49, 0.0 }
 0x2a2   :  { %10385 = vst [vmem:[#allocation117_spill] sm:$0xff] %v6748_v9  ;;  %10386 = vst [vmem:[#allocation118_spill] sm:$0xff] %v6752_v31  ;;  %v10391_v9 = vld [vmem:[#allocation28_spill] sm:$0xff]  ;;  %v10393_v31 = vld [vmem:[#allocation35_spill] sm:$0xff] }
 0x2a3   :  { %10387 = vst [vmem:[#allocation119_spill] sm:$0xff] %v6756_v30  ;;  %10388 = vst [vmem:[#allocation120_spill] sm:$0xff] %v6760_v33  ;;  %v6772_v41 = vadd.f32 %v6244_v24, %v10391_v9  ;;  %v6776_v0 = vadd.f32 %v6244_v24, %v10393_v31  ;;  %v10395_v30 = vld [vmem:[#allocation37_spill] sm:$0xff]  ;;  %v10397_v33 = vld [vmem:[#allocation34_spill] sm:$0xff] }
 0x2a4   :  { %10389 = vst [vmem:[#allocation121_spill] sm:$0xff] %v6764_v53  ;;  %10390 = vst [vmem:[#allocation122_spill] sm:$0xff] %v6768_v7  ;;  %v6780_v29 = vadd.f32 %v6244_v24, %v10395_v30  ;;  %v6784_v8 = vadd.f32 %v6244_v24, %v10397_v33  ;;  %v10399_v53 = vld [vmem:[#allocation36_spill] sm:$0xff] }
 0x2a5   :  { %10392 = vst [vmem:[#allocation28_spill] sm:$0xff] %v6772_v41  ;;  %10394 = vst [vmem:[#allocation35_spill] sm:$0xff] %v6776_v0  ;;  %v6788_v59 = vadd.f32 %v6244_v24, %v10399_v53  ;;  %v10401_v7 = vld [vmem:[#allocation72_spill] sm:$0xff]  ;;  %v10403_v41 = vld [vmem:[#allocation70_spill] sm:$0xff]  ;;  %v6808_v53 = vadd.f32 %v6244_v24, %v6225_v36 }
 0x2a6   :  { %10396 = vst [vmem:[#allocation37_spill] sm:$0xff] %v6780_v29  ;;  %10398 = vst [vmem:[#allocation34_spill] sm:$0xff] %v6784_v8  ;;  %v6792_v9 = vadd.f32 %v6244_v24, %v10401_v7  ;;  %v6796_v31 = vadd.f32 %v6244_v24, %v10403_v41  ;;  %v10405_v0 = vld [vmem:[#allocation71_spill] sm:$0xff]  ;;  %v10407_v29 = vld [vmem:[#allocation78_spill] sm:$0xff]  ;;  %v6812_v7 = vadd.f32 %v6244_v24, %v6229_v63  ;;  %v2558_v63 = vmul.f32 0.2, %v6248_v15 }
 0x2a7   :  { %10400 = vst [vmem:[#allocation36_spill] sm:$0xff] %v6788_v59  ;;  %v6800_v30 = vadd.f32 %v6244_v24, %v10405_v0  ;;  %v6804_v33 = vadd.f32 %v6244_v24, %v10407_v29  ;;  %10409 = vst [vmem:[#allocation123_spill] sm:$0xff] %v6808_v53  ;;  %v6816_v41 = vadd.f32 %v6244_v24, %v6233_v17  ;;  %v10413_v36 = vld [vmem:[#allocation80_spill] sm:$0xff]  ;;  %v2559_v17 = vmul.f32 0.2, %v6252_v5  ;;  %v10415_v29 = vld [vmem:[#allocation79_spill] sm:$0xff] }
 0x2a8   :  { %10402 = vst [vmem:[#allocation72_spill] sm:$0xff] %v6792_v9  ;;  %10404 = vst [vmem:[#allocation70_spill] sm:$0xff] %v6796_v31  ;;  %v6820_v0 = vadd.f32 %v6244_v24, %v6237_v20  ;;  %vm2422_vm10 = vcmp.ge.f32.partialorder %v10413_v36, 0.0  ;;  %v10414_v24 = vld [vmem:[#allocation77_spill] sm:$0xff]  ;;  %v2560_v20 = vmul.f32 0.2, %v6256_v35  ;;  %v6846_v9 = vsel %vm2414_vm2, %v6248_v15, %v2558_v63 }
 0x2a9   :  { %10406 = vst [vmem:[#allocation71_spill] sm:$0xff] %v6800_v30  ;;  %10408 = vst [vmem:[#allocation78_spill] sm:$0xff] %v6804_v33  ;;  %vm2423_vm11 = vcmp.ge.f32.partialorder %v10414_v24, 0.0  ;;  %vm2424_vm12 = vcmp.ge.f32.partialorder %v10415_v29, 0.0  ;;  %v10416_v53 = vld [vmem:[#allocation88_spill] sm:$0xff]  ;;  %v10418_v59 = vld [vmem:[#allocation85_spill] sm:$0xff]  ;;  %v6855_v51 = vsel %vm2415_vm3, %v6252_v5, %v2559_v17 }
 0x2aa   :  { %10410 = vst [vmem:[#allocation124_spill] sm:$0xff] %v6812_v7  ;;  %10411 = vst [vmem:[#allocation125_spill] sm:$0xff] %v6816_v41  ;;  %v2562_v41 = vmul.f32 0.2, %v6264_v27  ;;  %v2563_v7 = vmul.f32 0.2, %v6268_v45  ;;  %v6864_v56 = vsel %vm2416_vm4, %v6256_v35, %v2560_v20 }
 0x2ab   :  { %10412 = vst [vmem:[#allocation126_spill] sm:$0xff] %v6820_v0  ;;  %v2561_v0 = vmul.f32 0.2, %v6260_v34  ;;  %vm2425_vm13 = vcmp.ge.f32.partialorder %v10416_v53, 0.0  ;;  %v2564_v33 = vmul.f32 0.2, %v6272_v58 }
 0x2ac   :  { %v2565_v30 = vmul.f32 0.2, %v6276_v28  ;;  %v2566_v31 = vmul.f32 0.2, %v10413_v36  ;;  %10417 = vst [vmem:[#allocation80_spill] sm:$0xff] %v6846_v9  ;;  %vm2426_vm14 = vcmp.ge.f32.partialorder %v10418_v59, 0.0  ;;  %v6894_v3 = vsel %vm2418_vm6, %v6264_v27, %v2562_v41 }
 0x2ad   :  { %v2567_v8 = vmul.f32 0.2, %v10414_v24  ;;  %v2568_v6 = vmul.f32 0.2, %v10415_v29  ;;  %v2569_v40 = vmul.f32 0.2, %v10416_v53  ;;  %v6879_v21 = vsel %vm2417_vm5, %v6260_v34, %v2561_v0 }
 0x2ae   :  { %10419 = vst [vmem:[#allocation77_spill] sm:$0xff] %v6855_v51  ;;  %v2570_v25 = vmul.f32 0.2, %v10418_v59  ;;  %v2571_v15 = vmul.f32 0.2, %v10420_v49  ;;  %v10421_v63 = vld [vmem:[#allocation95_spill] sm:$0xff]  ;;  %v6909_v47 = vsel %vm2419_vm7, %v6268_v45, %v2563_v7  ;;  %v6924_v18 = vsel %vm2420_vm8, %v6272_v58, %v2564_v33 }
 0x2af   :  { %v2572_v9 = vmul.f32 0.2, %v10421_v63  ;;  %10422 = vst [vmem:[#allocation79_spill] sm:$0xff] %v6864_v56  ;;  %vm2428_vm0 = vcmp.ge.f32.partialorder %v10421_v63, 0.0  ;;  %v10424_v5 = vld [vmem:[#allocation94_spill] sm:$0xff]  ;;  %v10425_v51 = vld [vmem:[#allocation104_spill] sm:$0xff] }
 0x2b0   :  { %v6871_v17 = vmul.f32 0.2, %v10424_v5  ;;  %v6874_v52 = vmul.f32 0.2, %v10425_v51  ;;  %10426 = vst [vmem:[#allocation88_spill] sm:$0xff] %v6879_v21  ;;  %v10427_v35 = vld [vmem:[#allocation102_spill] sm:$0xff] }
 0x2b1   :  { %v6883_v20 = vmul.f32 0.2, %v10427_v35  ;;  %v10428_v56 = vld [vmem:[#allocation103_spill] sm:$0xff]  ;;  %10430 = vst [vmem:[#allocation85_spill] sm:$0xff] %v6894_v3  ;;  %vm2430_vm2 = vcmp.ge.f32.partialorder %v10424_v5, 0.0  ;;  %v10431_v34 = vld [vmem:[#allocation108_spill] sm:$0xff] }
 0x2b2   :  { %v6886_v44 = vmul.f32 0.2, %v10428_v56  ;;  %v6898_v0 = vmul.f32 0.2, %v10431_v34  ;;  %v10432_v21 = vld [vmem:[#allocation105_spill] sm:$0xff]  ;;  %10434 = vst [vmem:[#allocation87_spill] sm:$0xff] %v6909_v47 }
 0x2b3   :  { %v6901_v57 = vmul.f32 0.2, %v10432_v21  ;;  %vm2431_vm3 = vcmp.ge.f32.partialorder %v10425_v51, 0.0  ;;  %v10435_v27 = vld [vmem:[#allocation86_spill] sm:$0xff]  ;;  %v10436_v3 = vld [vmem:[#allocation101_spill] sm:$0xff]  ;;  %10439 = vst [vmem:[#allocation93_spill] sm:$0xff] %v6919_v4  ;;  %v6939_v4 = vsel %vm2421_vm9, %v6276_v28, %v2565_v30 }
 0x2b4   :  { %v6913_v41 = vmul.f32 0.2, %v10435_v27  ;;  %v6916_v61 = vmul.f32 0.2, %v10436_v3  ;;  %10440 = vst [vmem:[#allocation94_spill] sm:$0xff] %v6924_v18  ;;  %vm2432_vm4 = vcmp.ge.f32.partialorder %v10427_v35, 0.0 }
 0x2b5   :  { %v10441_v45 = vld [vmem:[#allocation3_spill] sm:$0xff]  ;;  %v10443_v47 = vld [vmem:[#allocation5_spill] sm:$0xff]  ;;  %10446 = vst [vmem:[#allocation103_spill] sm:$0xff] %v6934_v62  ;;  %10447 = vst [vmem:[#allocation106_spill] sm:$0xff] %v6939_v4  ;;  %vm2433_vm5 = vcmp.ge.f32.partialorder %v10428_v56, 0.0  ;;  %v6954_v62 = vsel %vm2422_vm10, %v10413_v36, %v2566_v31  ;;  %vm2434_vm6 = vcmp.ge.f32.partialorder %v10429_v55, 0.0 }
 0x2b6   :  { %10437 = vst [vmem:[#allocation95_spill] sm:$0xff] %v6916_v61  ;;  %v6928_v7 = vmul.f32 0.2, %v10441_v45  ;;  %v6931_v48 = vmul.f32 0.2, %v10443_v47  ;;  %v10448_v58 = vld [vmem:[#allocation4_spill] sm:$0xff] }
 0x2b7   :  { %v6943_v33 = vmul.f32 0.2, %v10448_v58  ;;  %v10450_v18 = vld [vmem:[#allocation7_spill] sm:$0xff]  ;;  %10454 = vst [vmem:[#allocation86_spill] sm:$0xff] %v6954_v62  ;;  %v10455_v28 = vld [vmem:[#allocation6_spill] sm:$0xff]  ;;  %v10457_v4 = vld [vmem:[#allocation8_spill] sm:$0xff] }
 0x2b8   :  { %10442 = vst [vmem:[#allocation104_spill] sm:$0xff] %v6928_v7  ;;  %10444 = vst [vmem:[#allocation102_spill] sm:$0xff] %v6931_v48  ;;  %v6946_v38 = vmul.f32 0.2, %v10450_v18  ;;  %v10452_v7 = vld [vmem:[#allocation9_spill] sm:$0xff]  ;;  %vm2435_vm7 = vcmp.ge.f32.partialorder %v10431_v34, 0.0 }
 0x2b9   :  { %10449 = vst [vmem:[#allocation108_spill] sm:$0xff] %v6943_v33  ;;  %v6949_v32 = vmul.f32 0.2, %v10452_v7  ;;  %v6958_v30 = vmul.f32 0.2, %v10455_v28  ;;  %v10459_v33 = vld [vmem:[#allocation11_spill] sm:$0xff] }
 0x2ba   :  { %10451 = vst [vmem:[#allocation105_spill] sm:$0xff] %v6946_v38  ;;  %v6961_v48 = vmul.f32 0.2, %v10457_v4  ;;  %v6964_v54 = vmul.f32 0.2, %v10459_v33  ;;  %v10462_v31 = vld [vmem:[#allocation13_spill] sm:$0xff] }
 0x2bb   :  { %10453 = vst [vmem:[#allocation107_spill] sm:$0xff] %v6949_v32  ;;  %10456 = vst [vmem:[#allocation101_spill] sm:$0xff] %v6958_v30  ;;  %v6969_v32 = vsel %vm2423_vm11, %v10414_v24, %v2567_v8  ;;  %v6973_v36 = vmul.f32 0.2, %v10462_v31  ;;  %v10464_v62 = vld [vmem:[#allocation10_spill] sm:$0xff]  ;;  %v10466_v30 = vld [vmem:[#allocation12_spill] sm:$0xff] }
 0x2bc   :  { %10458 = vst [vmem:[#allocation100_spill] sm:$0xff] %v6961_v48  ;;  %10460 = vst [vmem:[#allocation3_spill] sm:$0xff] %v6964_v54  ;;  %v6976_v38 = vmul.f32 0.2, %v10464_v62  ;;  %v6979_v61 = vmul.f32 0.2, %v10466_v30  ;;  %v6984_v54 = vsel %vm2424_vm12, %v10415_v29, %v2568_v6 }
 0x2bd   :  { %10461 = vst [vmem:[#allocation5_spill] sm:$0xff] %v6969_v32  ;;  %10463 = vst [vmem:[#allocation2_spill] sm:$0xff] %v6973_v36  ;;  %vm2436_vm8 = vcmp.ge.f32.partialorder %v10432_v21, 0.0  ;;  %v10469_v8 = vld [vmem:[#allocation15_spill] sm:$0xff]  ;;  %v10471_v32 = vld [vmem:[#allocation17_spill] sm:$0xff]  ;;  %vm2437_vm9 = vcmp.ge.f32.partialorder %v10433_v42, 0.0 }
 0x2be   :  { %10465 = vst [vmem:[#allocation4_spill] sm:$0xff] %v6976_v38  ;;  %10467 = vst [vmem:[#allocation7_spill] sm:$0xff] %v6979_v61  ;;  %v6988_v24 = vmul.f32 0.2, %v10469_v8  ;;  %v6991_v48 = vmul.f32 0.2, %v10471_v32  ;;  %v6999_v61 = vsel %vm2425_vm13, %v10416_v53, %v2569_v40 }
 0x2bf   :  { %10468 = vst [vmem:[#allocation9_spill] sm:$0xff] %v6984_v54  ;;  %v10473_v36 = vld [vmem:[#allocation14_spill] sm:$0xff]  ;;  %10475 = vst [vmem:[#allocation13_spill] sm:$0xff] %v6999_v61  ;;  %v10476_v6 = vld [vmem:[#allocation16_spill] sm:$0xff]  ;;  %vm2438_vm10 = vcmp.ge.f32.partialorder %v10435_v27, 0.0  ;;  %vm2439_vm11 = vcmp.ge.f32.partialorder %v10436_v3, 0.0 }
 0x2c0   :  { %10470 = vst [vmem:[#allocation6_spill] sm:$0xff] %v6988_v24  ;;  %10472 = vst [vmem:[#allocation8_spill] sm:$0xff] %v6991_v48  ;;  %v6994_v37 = vmul.f32 0.2, %v10473_v36  ;;  %v7003_v29 = vmul.f32 0.2, %v10476_v6 }
 0x2c1   :  { %v10478_v54 = vld [vmem:[#allocation23_spill] sm:$0xff]  ;;  %v10480_v24 = vld [vmem:[#allocation25_spill] sm:$0xff]  ;;  %v10483_v40 = vld [vmem:[#allocation22_spill] sm:$0xff]  ;;  %vm2440_vm12 = vcmp.ge.f32.partialorder %v10438_v11, 0.0  ;;  %vm2441_vm13 = vcmp.ge.f32.partialorder %v10441_v45, 0.0 }
 0x2c2   :  { %10474 = vst [vmem:[#allocation11_spill] sm:$0xff] %v6994_v37  ;;  %10477 = vst [vmem:[#allocation10_spill] sm:$0xff] %v7003_v29  ;;  %v7006_v38 = vmul.f32 0.2, %v10478_v54  ;;  %v7009_v8 = vmul.f32 0.2, %v10480_v24  ;;  %v7014_v37 = vsel %vm2426_vm14, %v10418_v59, %v2570_v25 }
 0x2c3   :  { %10482 = vst [vmem:[#allocation14_spill] sm:$0xff] %v7014_v37  ;;  %v7018_v53 = vmul.f32 0.2, %v10483_v40  ;;  %v10485_v61 = vld [vmem:[#allocation24_spill] sm:$0xff]  ;;  %v10487_v29 = vld [vmem:[#allocation31_spill] sm:$0xff]  ;;  %v10490_v25 = vld [vmem:[#allocation33_spill] sm:$0xff] }
 0x2c4   :  { %10479 = vst [vmem:[#allocation12_spill] sm:$0xff] %v7006_v38  ;;  %10481 = vst [vmem:[#allocation17_spill] sm:$0xff] %v7009_v8  ;;  %v7021_v48 = vmul.f32 0.2, %v10485_v61  ;;  %v7024_v6 = vmul.f32 0.2, %v10487_v29  ;;  %v7029_v8 = vsel %vm2427_vm15, %v10420_v49, %v2571_v15 }
 0x2c5   :  { %10484 = vst [vmem:[#allocation23_spill] sm:$0xff] %v7018_v53  ;;  %10489 = vst [vmem:[#allocation31_spill] sm:$0xff] %v7029_v8  ;;  %v7033_v59 = vmul.f32 0.2, %v10490_v25  ;;  %v10492_v37 = vld [vmem:[#allocation30_spill] sm:$0xff]  ;;  %v10494_v53 = vld [vmem:[#allocation32_spill] sm:$0xff] }
 0x2c6   :  { %10486 = vst [vmem:[#allocation25_spill] sm:$0xff] %v7021_v48  ;;  %10488 = vst [vmem:[#allocation24_spill] sm:$0xff] %v7024_v6  ;;  %v7036_v38 = vmul.f32 0.2, %v10492_v37  ;;  %v7039_v40 = vmul.f32 0.2, %v10494_v53  ;;  %v7044_v6 = vsel %vm2428_vm0, %v10421_v63, %v2572_v9 }
 0x2c7   :  { %10491 = vst [vmem:[#allocation127_spill] sm:$0xff] %v7033_v59  ;;  %10496 = vst [vmem:[#allocation128_spill] sm:$0xff] %v7044_v6  ;;  %v10497_v49 = vld [vmem:[#allocation39_spill] sm:$0xff]  ;;  %v10499_v8 = vld [vmem:[#allocation41_spill] sm:$0xff]  ;;  %vm2442_vm14 = vcmp.ge.f32.partialorder %v10443_v47, 0.0  ;;  %vm2443_vm15 = vcmp.ge.f32.partialorder %v10445_v19, 0.0 }
 0x2c8   :  { %10493 = vst [vmem:[#allocation30_spill] sm:$0xff] %v7036_v38  ;;  %10495 = vst [vmem:[#allocation32_spill] sm:$0xff] %v7039_v40  ;;  %v7048_v15 = vmul.f32 0.2, %v10497_v49  ;;  %v7051_v48 = vmul.f32 0.2, %v10499_v8  ;;  %v7060_v40 = vsel %vm2429_vm1, %v10423_v26, %v6868_v23 }
 0x2c9   :  { %v10501_v59 = vld [vmem:[#allocation38_spill] sm:$0xff]  ;;  %10503 = vst [vmem:[#allocation130_spill] sm:$0xff] %v7060_v40  ;;  %v10504_v9 = vld [vmem:[#allocation40_spill] sm:$0xff]  ;;  %v10506_v6 = vld [vmem:[#allocation43_spill] sm:$0xff]  ;;  %vm2444_vm0 = vcmp.ge.f32.partialorder %v10448_v58, 0.0  ;;  %vm2445_vm1 = vcmp.ge.f32.partialorder %v10450_v18, 0.0 }
 0x2ca   :  { %10498 = vst [vmem:[#allocation39_spill] sm:$0xff] %v7048_v15  ;;  %10500 = vst [vmem:[#allocation129_spill] sm:$0xff] %v7051_v48  ;;  %v7054_v25 = vmul.f32 0.2, %v10501_v59  ;;  %v7064_v63 = vmul.f32 0.2, %v10504_v9 }
 0x2cb   :  { %v7067_v38 = vmul.f32 0.2, %v10506_v6  ;;  %v10508_v15 = vld [vmem:[#allocation45_spill] sm:$0xff]  ;;  %v10511_v23 = vld [vmem:[#allocation42_spill] sm:$0xff]  ;;  %v10513_v40 = vld [vmem:[#allocation44_spill] sm:$0xff] }
 0x2cc   :  { %10502 = vst [vmem:[#allocation38_spill] sm:$0xff] %v7054_v25  ;;  %10505 = vst [vmem:[#allocation40_spill] sm:$0xff] %v7064_v63  ;;  %v7070_v8 = vmul.f32 0.2, %v10508_v15  ;;  %v7076_v25 = vsel %vm2430_vm2, %v10424_v5, %v6871_v17  ;;  %v7080_v26 = vmul.f32 0.2, %v10511_v23 }
 0x2cd   :  { %10507 = vst [vmem:[#allocation131_spill] sm:$0xff] %v7067_v38  ;;  %10510 = vst [vmem:[#allocation132_spill] sm:$0xff] %v7076_v25  ;;  %v7083_v48 = vmul.f32 0.2, %v10513_v40  ;;  %v10515_v63 = vld [vmem:[#allocation47_spill] sm:$0xff]  ;;  %v10518_v5 = vld [vmem:[#allocation49_spill] sm:$0xff] }
 0x2ce   :  { %10509 = vst [vmem:[#allocation45_spill] sm:$0xff] %v7070_v8  ;;  %10512 = vst [vmem:[#allocation42_spill] sm:$0xff] %v7080_v26  ;;  %v7086_v6 = vmul.f32 0.2, %v10515_v63  ;;  %v7092_v8 = vsel %vm2431_vm3, %v10425_v51, %v6874_v52  ;;  %v7096_v17 = vmul.f32 0.2, %v10518_v5 }
 0x2cf   :  { %10514 = vst [vmem:[#allocation133_spill] sm:$0xff] %v7083_v48  ;;  %10517 = vst [vmem:[#allocation134_spill] sm:$0xff] %v7092_v8  ;;  %v10520_v25 = vld [vmem:[#allocation46_spill] sm:$0xff]  ;;  %v10522_v26 = vld [vmem:[#allocation48_spill] sm:$0xff]  ;;  %vm2446_vm2 = vcmp.ge.f32.partialorder %v10452_v7, 0.0  ;;  %vm2447_vm3 = vcmp.ge.f32.partialorder %v10455_v28, 0.0 }
 0x2d0   :  { %10516 = vst [vmem:[#allocation47_spill] sm:$0xff] %v7086_v6  ;;  %10519 = vst [vmem:[#allocation49_spill] sm:$0xff] %v7096_v17  ;;  %v7099_v38 = vmul.f32 0.2, %v10520_v25  ;;  %v7102_v40 = vmul.f32 0.2, %v10522_v26  ;;  %v7108_v6 = vsel %vm2432_vm4, %v10427_v35, %v6883_v20 }
 0x2d1   :  { %10524 = vst [vmem:[#allocation136_spill] sm:$0xff] %v7108_v6  ;;  %v10525_v52 = vld [vmem:[#allocation51_spill] sm:$0xff]  ;;  %v10527_v8 = vld [vmem:[#allocation53_spill] sm:$0xff]  ;;  %v10529_v17 = vld [vmem:[#allocation50_spill] sm:$0xff]  ;;  %vm2448_vm4 = vcmp.ge.f32.partialorder %v10457_v4, 0.0 }
 0x2d2   :  { %10521 = vst [vmem:[#allocation135_spill] sm:$0xff] %v7099_v38  ;;  %10523 = vst [vmem:[#allocation48_spill] sm:$0xff] %v7102_v40  ;;  %v7112_v51 = vmul.f32 0.2, %v10525_v52  ;;  %v7115_v48 = vmul.f32 0.2, %v10527_v8  ;;  %v7124_v40 = vsel %vm2433_vm5, %v10428_v56, %v6886_v44 }
 0x2d3   :  { %v7118_v25 = vmul.f32 0.2, %v10529_v17  ;;  %10531 = vst [vmem:[#allocation138_spill] sm:$0xff] %v7124_v40  ;;  %v10532_v35 = vld [vmem:[#allocation52_spill] sm:$0xff]  ;;  %v10534_v6 = vld [vmem:[#allocation55_spill] sm:$0xff]  ;;  %v10539_v44 = vld [vmem:[#allocation54_spill] sm:$0xff] }
 0x2d4   :  { %10526 = vst [vmem:[#allocation51_spill] sm:$0xff] %v7112_v51  ;;  %10528 = vst [vmem:[#allocation137_spill] sm:$0xff] %v7115_v48  ;;  %v7128_v20 = vmul.f32 0.2, %v10532_v35  ;;  %v7131_v38 = vmul.f32 0.2, %v10534_v6 }
 0x2d5   :  { %10530 = vst [vmem:[#allocation50_spill] sm:$0xff] %v7118_v25  ;;  %v10536_v51 = vld [vmem:[#allocation57_spill] sm:$0xff]  ;;  %v7140_v25 = vsel %vm2434_vm6, %v10429_v55, %v6889_v16  ;;  %v7144_v56 = vmul.f32 0.2, %v10539_v44  ;;  %v10541_v40 = vld [vmem:[#allocation56_spill] sm:$0xff]  ;;  %vm2449_vm5 = vcmp.ge.f32.partialorder %v10459_v33, 0.0 }
 0x2d6   :  { %10533 = vst [vmem:[#allocation52_spill] sm:$0xff] %v7128_v20  ;;  %10535 = vst [vmem:[#allocation139_spill] sm:$0xff] %v7131_v38  ;;  %v7134_v8 = vmul.f32 0.2, %v10536_v51  ;;  %v7147_v48 = vmul.f32 0.2, %v10541_v40 }
 0x2d7   :  { %10538 = vst [vmem:[#allocation140_spill] sm:$0xff] %v7140_v25  ;;  %10540 = vst [vmem:[#allocation54_spill] sm:$0xff] %v7144_v56  ;;  %v10543_v20 = vld [vmem:[#allocation59_spill] sm:$0xff]  ;;  %v7160_v16 = vmul.f32 0.2, %v6536_v22  ;;  %vm2450_vm6 = vcmp.ge.f32.partialorder %v10462_v31, 0.0 }
 0x2d8   :  { %10537 = vst [vmem:[#allocation57_spill] sm:$0xff] %v7134_v8  ;;  %10542 = vst [vmem:[#allocation56_spill] sm:$0xff] %v7147_v48  ;;  %v7150_v6 = vmul.f32 0.2, %v10543_v20  ;;  %v7156_v8 = vsel %vm2435_vm7, %v10431_v34, %v6898_v0  ;;  %v7163_v55 = vmul.f32 0.2, %v6540_v12 }
 0x2d9   :  { %10545 = vst [vmem:[#allocation141_spill] sm:$0xff] %v7156_v8  ;;  %10546 = vst [vmem:[#allocation142_spill] sm:$0xff] %v7160_v16  ;;  %v7166_v25 = vmul.f32 0.2, %v6544_v39  ;;  %v7176_v34 = vmul.f32 0.2, %v6548_v50 }
 0x2da   :  { %10544 = vst [vmem:[#allocation59_spill] sm:$0xff] %v7150_v6  ;;  %10547 = vst [vmem:[#allocation143_spill] sm:$0xff] %v7163_v55  ;;  %v7172_v6 = vsel %vm2436_vm8, %v10432_v21, %v6901_v57  ;;  %v7179_v0 = vmul.f32 0.2, %v6552_v60  ;;  %v7182_v8 = vmul.f32 0.2, %v6556_v2 }
 0x2db   :  { %10548 = vst [vmem:[#allocation144_spill] sm:$0xff] %v7166_v25  ;;  %10549 = vst [vmem:[#allocation145_spill] sm:$0xff] %v7172_v6  ;;  %v7188_v25 = vsel %vm2437_vm9, %v10433_v42, %v6904_v1  ;;  %v7192_v57 = vmul.f32 0.2, %v6560_v13  ;;  %v7195_v21 = vmul.f32 0.2, %v6564_v43 }
 0x2dc   :  { %10550 = vst [vmem:[#allocation146_spill] sm:$0xff] %v7176_v34  ;;  %10551 = vst [vmem:[#allocation147_spill] sm:$0xff] %v7179_v0  ;;  %v7198_v6 = vmul.f32 0.2, %v6568_v46  ;;  %v7208_v1 = vmul.f32 0.2, %v6572_v14 }
 0x2dd   :  { %10552 = vst [vmem:[#allocation148_spill] sm:$0xff] %v7182_v8  ;;  %10553 = vst [vmem:[#allocation149_spill] sm:$0xff] %v7188_v25  ;;  %v7204_v8 = vsel %vm2438_vm10, %v10435_v27, %v6913_v41  ;;  %v7211_v42 = vmul.f32 0.2, %v6576_v10  ;;  %v10560_v25 = vld [vmem:[#allocation61_spill] sm:$0xff]  ;;  %vm2451_vm7 = vcmp.ge.f32.partialorder %v10464_v62, 0.0 }
 0x2de   :  { %10554 = vst [vmem:[#allocation150_spill] sm:$0xff] %v7192_v57  ;;  %10555 = vst [vmem:[#allocation151_spill] sm:$0xff] %v7195_v21  ;;  %v7214_v57 = vmul.f32 0.2, %v10560_v25  ;;  %v10562_v21 = vld [vmem:[#allocation95_spill] sm:$0xff]  ;;  %v10564_v27 = vld [vmem:[#allocation58_spill] sm:$0xff] }
 0x2df   :  { %10556 = vst [vmem:[#allocation152_spill] sm:$0xff] %v7198_v6  ;;  %10557 = vst [vmem:[#allocation153_spill] sm:$0xff] %v7204_v8  ;;  %v7220_v6 = vsel %vm2439_vm11, %v10436_v3, %v10562_v21  ;;  %v7224_v41 = vmul.f32 0.2, %v10564_v27  ;;  %v10566_v8 = vld [vmem:[#allocation60_spill] sm:$0xff]  ;;  %vm2452_vm8 = vcmp.ge.f32.partialorder %v10466_v30, 0.0 }
 0x2e0   :  { %10558 = vst [vmem:[#allocation154_spill] sm:$0xff] %v7208_v1  ;;  %10559 = vst [vmem:[#allocation155_spill] sm:$0xff] %v7211_v42  ;;  %v7227_v0 = vmul.f32 0.2, %v10566_v8  ;;  %v10568_v1 = vld [vmem:[#allocation63_spill] sm:$0xff]  ;;  %v10570_v42 = vld [vmem:[#allocation93_spill] sm:$0xff] }
 0x2e1   :  { %10561 = vst [vmem:[#allocation61_spill] sm:$0xff] %v7214_v57  ;;  %10563 = vst [vmem:[#allocation95_spill] sm:$0xff] %v7220_v6  ;;  %v7230_v34 = vmul.f32 0.2, %v10568_v1  ;;  %v7236_v57 = vsel %vm2440_vm12, %v10438_v11, %v10570_v42  ;;  %v10572_v3 = vld [vmem:[#allocation65_spill] sm:$0xff]  ;;  %v10574_v6 = vld [vmem:[#allocation62_spill] sm:$0xff] }
 0x2e2   :  { %10565 = vst [vmem:[#allocation58_spill] sm:$0xff] %v7224_v41  ;;  %10567 = vst [vmem:[#allocation60_spill] sm:$0xff] %v7227_v0  ;;  %v7240_v21 = vmul.f32 0.2, %v10572_v3  ;;  %v7243_v55 = vmul.f32 0.2, %v10574_v6 }
 0x2e3   :  { %10569 = vst [vmem:[#allocation63_spill] sm:$0xff] %v7230_v34  ;;  %10571 = vst [vmem:[#allocation93_spill] sm:$0xff] %v7236_v57  ;;  %v10576_v41 = vld [vmem:[#allocation64_spill] sm:$0xff]  ;;  %v10580_v48 = vld [vmem:[#allocation15_spill] sm:$0xff]  ;;  %vm2454_vm10 = vcmp.ge.f32.partialorder %v10471_v32, 0.0  ;;  %vm2455_vm11 = vcmp.ge.f32.partialorder %v10473_v36, 0.0 }
 0x2e4   :  { %10573 = vst [vmem:[#allocation65_spill] sm:$0xff] %v7240_v21  ;;  %10575 = vst [vmem:[#allocation62_spill] sm:$0xff] %v7243_v55  ;;  %v7246_v16 = vmul.f32 0.2, %v10576_v41  ;;  %v10578_v0 = vld [vmem:[#allocation104_spill] sm:$0xff]  ;;  %vm2453_vm9 = vcmp.ge.f32.partialorder %v10580_v48, 0.0 }
 0x2e5   :  { %v7252_v34 = vsel %vm2441_vm13, %v10441_v45, %v10578_v0  ;;  %v10581_v11 = vld [vmem:[#allocation67_spill] sm:$0xff]  ;;  %v10583_v57 = vld [vmem:[#allocation69_spill] sm:$0xff]  ;;  %v10585_v21 = vld [vmem:[#allocation66_spill] sm:$0xff]  ;;  %vm2457_vm13 = vcmp.ge.f32.partialorder %v10478_v54, 0.0 }
 0x2e6   :  { %10577 = vst [vmem:[#allocation64_spill] sm:$0xff] %v7246_v16  ;;  %10579 = vst [vmem:[#allocation104_spill] sm:$0xff] %v7252_v34  ;;  %v7256_v42 = vmul.f32 0.2, %v10581_v11  ;;  %v7259_v56 = vmul.f32 0.2, %v10583_v57 }
 0x2e7   :  { %v7262_v38 = vmul.f32 0.2, %v10585_v21  ;;  %v10587_v55 = vld [vmem:[#allocation102_spill] sm:$0xff]  ;;  %v10589_v45 = vld [vmem:[#allocation68_spill] sm:$0xff] }
 0x2e8   :  { %10582 = vst [vmem:[#allocation15_spill] sm:$0xff] %v7256_v42  ;;  %10584 = vst [vmem:[#allocation156_spill] sm:$0xff] %v7259_v56  ;;  %v7268_v16 = vsel %vm2442_vm14, %v10443_v47, %v10587_v55  ;;  %v7272_v0 = vmul.f32 0.2, %v10589_v45  ;;  %v10591_v34 = vld [vmem:[#allocation74_spill] sm:$0xff]  ;;  %v10593_v42 = vld [vmem:[#allocation76_spill] sm:$0xff] }
 0x2e9   :  { %10586 = vst [vmem:[#allocation66_spill] sm:$0xff] %v7262_v38  ;;  %10588 = vst [vmem:[#allocation102_spill] sm:$0xff] %v7268_v16  ;;  %v7275_v11 = vmul.f32 0.2, %v10591_v34  ;;  %v7278_v57 = vmul.f32 0.2, %v10593_v42 }
 0x2ea   :  { %10590 = vst [vmem:[#allocation157_spill] sm:$0xff] %v7272_v0  ;;  %v10595_v56 = vld [vmem:[#allocation103_spill] sm:$0xff]  ;;  %v10597_v47 = vld [vmem:[#allocation73_spill] sm:$0xff]  ;;  %v10601_v0 = vld [vmem:[#allocation82_spill] sm:$0xff]  ;;  %vm2458_vm14 = vcmp.ge.f32.partialorder %v10480_v24, 0.0 }
 0x2eb   :  { %10592 = vst [vmem:[#allocation158_spill] sm:$0xff] %v7275_v11  ;;  %10594 = vst [vmem:[#allocation159_spill] sm:$0xff] %v7278_v57  ;;  %v7284_v38 = vsel %vm2443_vm15, %v10445_v19, %v10595_v56  ;;  %v7288_v55 = vmul.f32 0.2, %v10597_v47  ;;  %v10599_v16 = vld [vmem:[#allocation75_spill] sm:$0xff]  ;;  %v10603_v11 = vld [vmem:[#allocation108_spill] sm:$0xff] }
 0x2ec   :  { %10596 = vst [vmem:[#allocation103_spill] sm:$0xff] %v7284_v38  ;;  %v7291_v45 = vmul.f32 0.2, %v10599_v16  ;;  %v7294_v34 = vmul.f32 0.2, %v10601_v0  ;;  %v7300_v57 = vsel %vm2444_vm0, %v10448_v58, %v10603_v11  ;;  %v10605_v42 = vld [vmem:[#allocation16_spill] sm:$0xff] }
 0x2ed   :  { %10598 = vst [vmem:[#allocation160_spill] sm:$0xff] %v7288_v55  ;;  %10604 = vst [vmem:[#allocation108_spill] sm:$0xff] %v7300_v57  ;;  %vm2456_vm12 = vcmp.ge.f32.partialorder %v10605_v42, 0.0  ;;  %v10606_v19 = vld [vmem:[#allocation84_spill] sm:$0xff]  ;;  %v10608_v38 = vld [vmem:[#allocation81_spill] sm:$0xff]  ;;  %vm2460_vm0 = vcmp.ge.f32.partialorder %v10485_v61, 0.0 }
 0x2ee   :  { %10600 = vst [vmem:[#allocation161_spill] sm:$0xff] %v7291_v45  ;;  %10602 = vst [vmem:[#allocation82_spill] sm:$0xff] %v7294_v34  ;;  %v7304_v56 = vmul.f32 0.2, %v10606_v19  ;;  %v7307_v47 = vmul.f32 0.2, %v10608_v38 }
 0x2ef   :  { %v10610_v55 = vld [vmem:[#allocation83_spill] sm:$0xff]  ;;  %v10612_v45 = vld [vmem:[#allocation105_spill] sm:$0xff]  ;;  %v10614_v58 = vld [vmem:[#allocation90_spill] sm:$0xff] }
 0x2f0   :  { %10607 = vst [vmem:[#allocation16_spill] sm:$0xff] %v7304_v56  ;;  %10609 = vst [vmem:[#allocation162_spill] sm:$0xff] %v7307_v47  ;;  %v7310_v16 = vmul.f32 0.2, %v10610_v55  ;;  %v7316_v34 = vsel %vm2445_vm1, %v10450_v18, %v10612_v45  ;;  %v7320_v11 = vmul.f32 0.2, %v10614_v58 }
 0x2f1   :  { %10613 = vst [vmem:[#allocation105_spill] sm:$0xff] %v7316_v34  ;;  %v10616_v57 = vld [vmem:[#allocation92_spill] sm:$0xff]  ;;  %v10618_v56 = vld [vmem:[#allocation109_spill] sm:$0xff]  ;;  %v10620_v47 = vld [vmem:[#allocation107_spill] sm:$0xff] }
 0x2f2   :  { %10611 = vst [vmem:[#allocation83_spill] sm:$0xff] %v7310_v16  ;;  %10615 = vst [vmem:[#allocation163_spill] sm:$0xff] %v7320_v11  ;;  %v7323_v19 = vmul.f32 0.2, %v10616_v57  ;;  %v7326_v38 = vmul.f32 0.2, %v10618_v56  ;;  %v7332_v16 = vsel %vm2446_vm2, %v10452_v7, %v10620_v47 }
 0x2f3   :  { %10621 = vst [vmem:[#allocation107_spill] sm:$0xff] %v7332_v16  ;;  %v10622_v18 = vld [vmem:[#allocation110_spill] sm:$0xff]  ;;  %v10624_v34 = vld [vmem:[#allocation111_spill] sm:$0xff]  ;;  %v10626_v11 = vld [vmem:[#allocation89_spill] sm:$0xff]  ;;  %vm10746_vm2 = vcmp.ge.f32.partialorder %v10492_v37, 0.0 }
 0x2f4   :  { %10617 = vst [vmem:[#allocation164_spill] sm:$0xff] %v7323_v19  ;;  %10619 = vst [vmem:[#allocation165_spill] sm:$0xff] %v7326_v38  ;;  %v7336_v45 = vmul.f32 0.2, %v10622_v18  ;;  %v7339_v58 = vmul.f32 0.2, %v10624_v34 }
 0x2f5   :  { %v7342_v57 = vmul.f32 0.2, %v10626_v11  ;;  %v10628_v19 = vld [vmem:[#allocation101_spill] sm:$0xff]  ;;  %v10630_v56 = vld [vmem:[#allocation22_spill] sm:$0xff]  ;;  %v10631_v7 = vld [vmem:[#allocation91_spill] sm:$0xff] }
 0x2f6   :  { %10623 = vst [vmem:[#allocation166_spill] sm:$0xff] %v7336_v45  ;;  %10625 = vst [vmem:[#allocation167_spill] sm:$0xff] %v7339_v58  ;;  %v7348_v38 = vsel %vm2447_vm3, %v10455_v28, %v10628_v19  ;;  %vm2459_vm15 = vcmp.ge.f32.partialorder %v10630_v56, 0.0  ;;  %v7352_v47 = vmul.f32 0.2, %v10631_v7  ;;  %v10633_v16 = vld [vmem:[#allocation97_spill] sm:$0xff] }
 0x2f7   :  { %10627 = vst [vmem:[#allocation89_spill] sm:$0xff] %v7342_v57  ;;  %10629 = vst [vmem:[#allocation101_spill] sm:$0xff] %v7348_v38  ;;  %v7355_v18 = vmul.f32 0.2, %v10633_v16  ;;  %v10635_v45 = vld [vmem:[#allocation99_spill] sm:$0xff]  ;;  %v10637_v58 = vld [vmem:[#allocation100_spill] sm:$0xff] }
 0x2f8   :  { %10632 = vst [vmem:[#allocation22_spill] sm:$0xff] %v7352_v47  ;;  %v7358_v34 = vmul.f32 0.2, %v10635_v45  ;;  %v7364_v57 = vsel %vm2448_vm4, %v10457_v4, %v10637_v58  ;;  %v10639_v28 = vld [vmem:[#allocation33_spill] sm:$0xff]  ;;  %v10640_v19 = vld [vmem:[#allocation96_spill] sm:$0xff]  ;;  %v10646_v16 = vld [vmem:[#allocation3_spill] sm:$0xff] }
 0x2f9   :  { %10634 = vst [vmem:[#allocation168_spill] sm:$0xff] %v7355_v18  ;;  %10638 = vst [vmem:[#allocation100_spill] sm:$0xff] %v7364_v57  ;;  %v7371_v38 = vmul.f32 0.2, %v10640_v19  ;;  %v10642_v18 = vld [vmem:[#allocation98_spill] sm:$0xff]  ;;  %v7383_v4 = vsel %vm2449_vm5, %v10459_v33, %v10646_v16  ;;  %vm2464_vm4 = vcmp.ge.f32.partialorder %v10494_v53, 0.0 }
 0x2fa   :  { %10636 = vst [vmem:[#allocation169_spill] sm:$0xff] %v7358_v34  ;;  %v7374_v47 = vmul.f32 0.2, %v10642_v18  ;;  %v10644_v34 = vld [vmem:[#allocation19_spill] sm:$0xff]  ;;  %10647 = vst [vmem:[#allocation3_spill] sm:$0xff] %v7383_v4  ;;  %v10648_v58 = vld [vmem:[#allocation41_spill] sm:$0xff] }
 0x2fb   :  { %10641 = vst [vmem:[#allocation33_spill] sm:$0xff] %v7371_v38  ;;  %v7377_v45 = vmul.f32 0.2, %v10644_v34  ;;  %v10649_v57 = vld [vmem:[#allocation112_spill] sm:$0xff]  ;;  %v10655_v19 = vld [vmem:[#allocation2_spill] sm:$0xff]  ;;  %vm2468_vm5 = vcmp.ge.f32.partialorder %v10504_v9, 0.0 }
 0x2fc   :  { %10643 = vst [vmem:[#allocation170_spill] sm:$0xff] %v7374_v47  ;;  %v7390_v38 = vmul.f32 0.2, %v10649_v57  ;;  %v10651_v47 = vld [vmem:[#allocation21_spill] sm:$0xff]  ;;  %v7402_v33 = vsel %vm2450_vm6, %v10462_v31, %v10655_v19  ;;  %v10657_v16 = vld [vmem:[#allocation43_spill] sm:$0xff]  ;;  %v10658_v4 = vld [vmem:[#allocation20_spill] sm:$0xff] }
 0x2fd   :  { %10645 = vst [vmem:[#allocation171_spill] sm:$0xff] %v7377_v45  ;;  %v7393_v34 = vmul.f32 0.2, %v10651_v47  ;;  %v10653_v45 = vld [vmem:[#allocation18_spill] sm:$0xff]  ;;  %10656 = vst [vmem:[#allocation2_spill] sm:$0xff] %v7402_v33  ;;  %v10664_v57 = vld [vmem:[#allocation4_spill] sm:$0xff] }
 0x2fe   :  { %10650 = vst [vmem:[#allocation41_spill] sm:$0xff] %v7390_v38  ;;  %v7396_v18 = vmul.f32 0.2, %v10653_v45  ;;  %v7409_v38 = vmul.f32 0.2, %v10658_v4  ;;  %v7421_v31 = vsel %vm2451_vm7, %v10464_v62, %v10664_v57  ;;  %v10666_v19 = vld [vmem:[#allocation44_spill] sm:$0xff] }
 0x2ff   :  { %10652 = vst [vmem:[#allocation172_spill] sm:$0xff] %v7393_v34  ;;  %v10660_v34 = vld [vmem:[#allocation113_spill] sm:$0xff]  ;;  %10665 = vst [vmem:[#allocation4_spill] sm:$0xff] %v7421_v31  ;;  %vm2472_vm6 = vcmp.ge.f32.partialorder %v10666_v19, 0.0  ;;  %v10667_v33 = vld [vmem:[#allocation46_spill] sm:$0xff]  ;;  %vm2476_vm7 = vcmp.ge.f32.partialorder %v10522_v26, 0.0 }
 0x300   :  { %10654 = vst [vmem:[#allocation173_spill] sm:$0xff] %v7396_v18  ;;  %10659 = vst [vmem:[#allocation43_spill] sm:$0xff] %v7409_v38  ;;  %v7412_v45 = vmul.f32 0.2, %v10660_v34  ;;  %v10662_v18 = vld [vmem:[#allocation27_spill] sm:$0xff]  ;;  %v10668_v38 = vld [vmem:[#allocation29_spill] sm:$0xff] }
 0x301   :  { %v7415_v47 = vmul.f32 0.2, %v10662_v18  ;;  %v7428_v34 = vmul.f32 0.2, %v10668_v38  ;;  %v10674_v7 = vld [vmem:[#allocation7_spill] sm:$0xff]  ;;  %v10676_v57 = vld [vmem:[#allocation53_spill] sm:$0xff] }
 0x302   :  { %10661 = vst [vmem:[#allocation174_spill] sm:$0xff] %v7412_v45  ;;  %v10670_v45 = vld [vmem:[#allocation26_spill] sm:$0xff]  ;;  %v7440_v62 = vsel %vm2452_vm8, %v10466_v30, %v10674_v7  ;;  %v10677_v31 = vld [vmem:[#allocation115_spill] sm:$0xff]  ;;  %vm2480_vm8 = vcmp.ge.f32.partialorder %v10532_v35, 0.0 }
 0x303   :  { %10663 = vst [vmem:[#allocation175_spill] sm:$0xff] %v7415_v47  ;;  %10669 = vst [vmem:[#allocation44_spill] sm:$0xff] %v7428_v34  ;;  %v7431_v18 = vmul.f32 0.2, %v10670_v45  ;;  %v10672_v47 = vld [vmem:[#allocation114_spill] sm:$0xff]  ;;  %v10685_v7 = vld [vmem:[#allocation55_spill] sm:$0xff] }
 0x304   :  { %v7434_v4 = vmul.f32 0.2, %v10672_v47  ;;  %10675 = vst [vmem:[#allocation7_spill] sm:$0xff] %v7440_v62  ;;  %v7447_v34 = vmul.f32 0.2, %v10677_v31  ;;  %v10683_v38 = vld [vmem:[#allocation6_spill] sm:$0xff] }
 0x305   :  { %10671 = vst [vmem:[#allocation46_spill] sm:$0xff] %v7431_v18  ;;  %v10679_v18 = vld [vmem:[#allocation116_spill] sm:$0xff]  ;;  %v7459_v30 = vsel %vm2453_vm9, %v10580_v48, %v10683_v38  ;;  %v10686_v62 = vld [vmem:[#allocation118_spill] sm:$0xff]  ;;  %vm2484_vm9 = vcmp.ge.f32.partialorder %v10541_v40, 0.0  ;;  %v10694_v48 = vld [vmem:[#allocation121_spill] sm:$0xff] }
 0x306   :  { %10673 = vst [vmem:[#allocation176_spill] sm:$0xff] %v7434_v4  ;;  %10678 = vst [vmem:[#allocation53_spill] sm:$0xff] %v7447_v34  ;;  %v7450_v47 = vmul.f32 0.2, %v10679_v18  ;;  %v10681_v4 = vld [vmem:[#allocation117_spill] sm:$0xff]  ;;  %v10692_v31 = vld [vmem:[#allocation8_spill] sm:$0xff] }
 0x307   :  { %v7453_v45 = vmul.f32 0.2, %v10681_v4  ;;  %10684 = vst [vmem:[#allocation6_spill] sm:$0xff] %v7459_v30  ;;  %v7466_v34 = vmul.f32 0.2, %v10686_v62  ;;  %v7478_v38 = vsel %vm2454_vm10, %v10471_v32, %v10692_v31  ;;  %vm2488_vm10 = vcmp.ge.f32.partialorder %v6544_v39, 0.0 }
 0x308   :  { %10680 = vst [vmem:[#allocation177_spill] sm:$0xff] %v7450_v47  ;;  %v10688_v47 = vld [vmem:[#allocation119_spill] sm:$0xff]  ;;  %10693 = vst [vmem:[#allocation8_spill] sm:$0xff] %v7478_v38  ;;  %v7485_v30 = vmul.f32 0.2, %v10694_v48 }
 0x309   :  { %10682 = vst [vmem:[#allocation178_spill] sm:$0xff] %v7453_v45  ;;  %10687 = vst [vmem:[#allocation55_spill] sm:$0xff] %v7466_v34  ;;  %v7469_v4 = vmul.f32 0.2, %v10688_v47  ;;  %v10690_v45 = vld [vmem:[#allocation120_spill] sm:$0xff]  ;;  %v10700_v47 = vld [vmem:[#allocation11_spill] sm:$0xff] }
 0x30a   :  { %v7472_v18 = vmul.f32 0.2, %v10690_v45  ;;  %10695 = vst [vmem:[#allocation121_spill] sm:$0xff] %v7485_v30  ;;  %v7497_v32 = vsel %vm2455_vm11, %v10473_v36, %v10700_v47  ;;  %v10702_v31 = vld [vmem:[#allocation35_spill] sm:$0xff]  ;;  %vm2492_vm11 = vcmp.ge.f32.partialorder %v6560_v13, 0.0  ;;  %v10710_v47 = vld [vmem:[#allocation36_spill] sm:$0xff] }
 0x30b   :  { %10689 = vst [vmem:[#allocation118_spill] sm:$0xff] %v7469_v4  ;;  %v10696_v4 = vld [vmem:[#allocation122_spill] sm:$0xff]  ;;  %10701 = vst [vmem:[#allocation11_spill] sm:$0xff] %v7497_v32  ;;  %v7504_v38 = vmul.f32 0.2, %v10702_v31 }
 0x30c   :  { %10691 = vst [vmem:[#allocation179_spill] sm:$0xff] %v7472_v18  ;;  %v7488_v34 = vmul.f32 0.2, %v10696_v4  ;;  %v10698_v18 = vld [vmem:[#allocation28_spill] sm:$0xff]  ;;  %v10708_v4 = vld [vmem:[#allocation10_spill] sm:$0xff] }
 0x30d   :  { %v7491_v45 = vmul.f32 0.2, %v10698_v18  ;;  %10703 = vst [vmem:[#allocation35_spill] sm:$0xff] %v7504_v38  ;;  %v7516_v36 = vsel %vm2456_vm12, %v10605_v42, %v10708_v4  ;;  %v7523_v32 = vmul.f32 0.2, %v10710_v47  ;;  %vm2496_vm12 = vcmp.ge.f32.partialorder %v6576_v10, 0.0 }
 0x30e   :  { %10697 = vst [vmem:[#allocation180_spill] sm:$0xff] %v7488_v34  ;;  %v10704_v34 = vld [vmem:[#allocation37_spill] sm:$0xff]  ;;  %10709 = vst [vmem:[#allocation10_spill] sm:$0xff] %v7516_v36  ;;  %v10718_v4 = vld [vmem:[#allocation71_spill] sm:$0xff] }
 0x30f   :  { %10699 = vst [vmem:[#allocation181_spill] sm:$0xff] %v7491_v45  ;;  %v7507_v30 = vmul.f32 0.2, %v10704_v34  ;;  %v10706_v45 = vld [vmem:[#allocation34_spill] sm:$0xff]  ;;  %10711 = vst [vmem:[#allocation36_spill] sm:$0xff] %v7523_v32  ;;  %v10716_v34 = vld [vmem:[#allocation12_spill] sm:$0xff] }
 0x310   :  { %v7510_v18 = vmul.f32 0.2, %v10706_v45  ;;  %v7535_v42 = vsel %vm2457_vm13, %v10478_v54, %v10716_v34  ;;  %v7542_v36 = vmul.f32 0.2, %v10718_v4  ;;  %v10726_v34 = vld [vmem:[#allocation124_spill] sm:$0xff]  ;;  %vm10740_vm13 = vcmp.ge.f32.partialorder %v10487_v29, 0.0 }
 0x311   :  { %10705 = vst [vmem:[#allocation182_spill] sm:$0xff] %v7507_v30  ;;  %v10712_v30 = vld [vmem:[#allocation72_spill] sm:$0xff]  ;;  %10717 = vst [vmem:[#allocation12_spill] sm:$0xff] %v7535_v42  ;;  %v7561_v42 = vmul.f32 0.2, %v10726_v34 }
 0x312   :  { %10707 = vst [vmem:[#allocation183_spill] sm:$0xff] %v7510_v18  ;;  %v7526_v38 = vmul.f32 0.2, %v10712_v30  ;;  %v10714_v18 = vld [vmem:[#allocation70_spill] sm:$0xff]  ;;  %10719 = vst [vmem:[#allocation71_spill] sm:$0xff] %v7542_v36  ;;  %v10724_v30 = vld [vmem:[#allocation17_spill] sm:$0xff] }
 0x313   :  { %v7529_v45 = vmul.f32 0.2, %v10714_v18  ;;  %v7554_v54 = vsel %vm2458_vm14, %v10480_v24, %v10724_v30  ;;  %10727 = vst [vmem:[#allocation188_spill] sm:$0xff] %v7561_v42  ;;  %v10734_v30 = vld [vmem:[#allocation67_spill] sm:$0xff]  ;;  %v10736_v34 = vld [vmem:[#allocation68_spill] sm:$0xff]  ;;  %v10737_v42 = vld [vmem:[#allocation25_spill] sm:$0xff] }
 0x314   :  { %10713 = vst [vmem:[#allocation184_spill] sm:$0xff] %v7526_v38  ;;  %v10720_v38 = vld [vmem:[#allocation78_spill] sm:$0xff]  ;;  %10725 = vst [vmem:[#allocation17_spill] sm:$0xff] %v7554_v54  ;;  %vm2504_vm14 = vcmp.ge.f32.partialorder %v10734_v30, 0.0  ;;  %v10735_v54 = vld [vmem:[#allocation69_spill] sm:$0xff] }
 0x315   :  { %10715 = vst [vmem:[#allocation185_spill] sm:$0xff] %v7529_v45  ;;  %v7545_v32 = vmul.f32 0.2, %v10720_v38  ;;  %v10722_v45 = vld [vmem:[#allocation123_spill] sm:$0xff] }
 0x316   :  { %v7548_v18 = vmul.f32 0.2, %v10722_v45  ;;  %v10732_v38 = vld [vmem:[#allocation23_spill] sm:$0xff] }
 0x317   :  { %10721 = vst [vmem:[#allocation186_spill] sm:$0xff] %v7545_v32  ;;  %v10728_v32 = vld [vmem:[#allocation125_spill] sm:$0xff]  ;;  %v7573_v24 = vsel %vm2459_vm15, %v10630_v56, %v10732_v38  ;;  %v10742_v38 = vld [vmem:[#allocation127_spill] sm:$0xff]  ;;  %vm10743_vm15 = vcmp.ge.f32.partialorder %v10639_v28, 0.0 }
 0x318   :  { %10723 = vst [vmem:[#allocation187_spill] sm:$0xff] %v7548_v18  ;;  %v7564_v36 = vmul.f32 0.2, %v10728_v32  ;;  %v10730_v18 = vld [vmem:[#allocation126_spill] sm:$0xff]  ;;  %10733 = vst [vmem:[#allocation23_spill] sm:$0xff] %v7573_v24  ;;  %v7595_v24 = vsel %vm10743_vm15, %v10639_v28, %v10742_v38  ;;  %v10753_v38 = vld [vmem:[#allocation39_spill] sm:$0xff] }
 0x319   :  { %v7567_v45 = vmul.f32 0.2, %v10730_v18  ;;  %10744 = vst [vmem:[#allocation68_spill] sm:$0xff] %v7595_v24  ;;  %v10745_v18 = vld [vmem:[#allocation30_spill] sm:$0xff]  ;;  %vm10754_vm15 = vcmp.ge.f32.partialorder %v10497_v49, 0.0 }
 0x31a   :  { %10729 = vst [vmem:[#allocation189_spill] sm:$0xff] %v7564_v36  ;;  %v7583_v36 = vsel %vm2460_vm0, %v10485_v61, %v10737_v42  ;;  %v7601_v32 = vsel %vm10746_vm2, %v10492_v37, %v10745_v18  ;;  %v10748_v61 = vld [vmem:[#allocation74_spill] sm:$0xff]  ;;  %v10749_v42 = vld [vmem:[#allocation76_spill] sm:$0xff]  ;;  %v7617_v37 = vsel %vm10754_vm15, %v10497_v49, %v10753_v38  ;;  %v10756_v18 = vld [vmem:[#allocation129_spill] sm:$0xff]  ;;  %vm10757_vm2 = vcmp.ge.f32.partialorder %v10648_v58, 0.0 }
 0x31b   :  { %10731 = vst [vmem:[#allocation190_spill] sm:$0xff] %v7567_v45  ;;  %10738 = vst [vmem:[#allocation67_spill] sm:$0xff] %v7583_v36  ;;  %v10739_v45 = vld [vmem:[#allocation24_spill] sm:$0xff]  ;;  %vm2508_vm0 = vcmp.ge.f32.partialorder %v10748_v61, 0.0  ;;  %v10750_v36 = vld [vmem:[#allocation73_spill] sm:$0xff]  ;;  %vm10773_vm15 = vcmp.ge.f32.partialorder %v10511_v23, 0.0 }
 0x31c   :  { %v7589_v56 = vsel %vm10740_vm13, %v10487_v29, %v10739_v45  ;;  %10747 = vst [vmem:[#allocation25_spill] sm:$0xff] %v7601_v32  ;;  %v10751_v29 = vld [vmem:[#allocation75_spill] sm:$0xff]  ;;  %v10752_v45 = vld [vmem:[#allocation32_spill] sm:$0xff]  ;;  %10755 = vst [vmem:[#allocation24_spill] sm:$0xff] %v7617_v37  ;;  %v7623_v32 = vsel %vm10757_vm2, %v10648_v58, %v10756_v18  ;;  %vm10760_vm13 = vcmp.ge.f32.partialorder %v10501_v59, 0.0  ;;  %vm10767_vm2 = vcmp.ge.f32.partialorder %v10657_v16, 0.0 }
 0x31d   :  { %10741 = vst [vmem:[#allocation69_spill] sm:$0xff] %v7589_v56  ;;  %v7611_v28 = vsel %vm2464_vm4, %v10494_v53, %v10752_v45  ;;  %10758 = vst [vmem:[#allocation127_spill] sm:$0xff] %v7623_v32  ;;  %v10759_v24 = vld [vmem:[#allocation38_spill] sm:$0xff]  ;;  %vm2512_vm4 = vcmp.ge.f32.partialorder %v10601_v0, 0.0  ;;  %v10762_v53 = vld [vmem:[#allocation84_spill] sm:$0xff] }
 0x31e   :  { %v7629_v56 = vsel %vm10760_vm13, %v10501_v59, %v10759_v24  ;;  %v10763_v45 = vld [vmem:[#allocation81_spill] sm:$0xff]  ;;  %v10764_v49 = vld [vmem:[#allocation40_spill] sm:$0xff]  ;;  %v10766_v38 = vld [vmem:[#allocation131_spill] sm:$0xff]  ;;  %vm10770_vm13 = vcmp.ge.f32.partialorder %v10508_v15, 0.0 }
 0x31f   :  { %10761 = vst [vmem:[#allocation30_spill] sm:$0xff] %v7629_v56  ;;  %v7639_v58 = vsel %vm2468_vm5, %v10504_v9, %v10764_v49  ;;  %v7645_v59 = vsel %vm10767_vm2, %v10657_v16, %v10766_v38  ;;  %v10769_v24 = vld [vmem:[#allocation45_spill] sm:$0xff]  ;;  %v10772_v56 = vld [vmem:[#allocation42_spill] sm:$0xff]  ;;  %v10776_v49 = vld [vmem:[#allocation92_spill] sm:$0xff]  ;;  %vm10788_vm2 = vcmp.ge.f32.partialorder %v10667_v33, 0.0 }
 0x320   :  { %10765 = vst [vmem:[#allocation74_spill] sm:$0xff] %v7639_v58  ;;  %10768 = vst [vmem:[#allocation76_spill] sm:$0xff] %v7645_v59  ;;  %v7651_v18 = vsel %vm10770_vm13, %v10508_v15, %v10769_v24  ;;  %v7657_v32 = vsel %vm10773_vm15, %v10511_v23, %v10772_v56  ;;  %v10775_v9 = vld [vmem:[#allocation90_spill] sm:$0xff]  ;;  %v10777_v58 = vld [vmem:[#allocation109_spill] sm:$0xff]  ;;  %vm10782_vm13 = vcmp.ge.f32.partialorder %v10515_v63, 0.0  ;;  %vm10785_vm15 = vcmp.ge.f32.partialorder %v10518_v5, 0.0 }
 0x321   :  { %10771 = vst [vmem:[#allocation73_spill] sm:$0xff] %v7651_v18  ;;  %10774 = vst [vmem:[#allocation75_spill] sm:$0xff] %v7657_v32  ;;  %vm2516_vm5 = vcmp.ge.f32.partialorder %v10775_v9, 0.0  ;;  %v10778_v16 = vld [vmem:[#allocation110_spill] sm:$0xff]  ;;  %v10779_v38 = vld [vmem:[#allocation133_spill] sm:$0xff] }
 0x322   :  { %v7667_v15 = vsel %vm2472_vm6, %v10666_v19, %v10779_v38  ;;  %v10781_v24 = vld [vmem:[#allocation47_spill] sm:$0xff]  ;;  %v10784_v56 = vld [vmem:[#allocation49_spill] sm:$0xff] }
 0x323   :  { %10780 = vst [vmem:[#allocation32_spill] sm:$0xff] %v7667_v15  ;;  %v7673_v23 = vsel %vm10782_vm13, %v10515_v63, %v10781_v24  ;;  %v7679_v32 = vsel %vm10785_vm15, %v10518_v5, %v10784_v56  ;;  %v10787_v18 = vld [vmem:[#allocation135_spill] sm:$0xff]  ;;  %v10792_v63 = vld [vmem:[#allocation97_spill] sm:$0xff]  ;;  %v10793_v24 = vld [vmem:[#allocation48_spill] sm:$0xff]  ;;  %vm10796_vm15 = vcmp.ge.f32.partialorder %v10525_v52, 0.0  ;;  %vm10802_vm13 = vcmp.ge.f32.partialorder %v10529_v17, 0.0 }
 0x324   :  { %10783 = vst [vmem:[#allocation39_spill] sm:$0xff] %v7673_v23  ;;  %10786 = vst [vmem:[#allocation129_spill] sm:$0xff] %v7679_v32  ;;  %v7685_v59 = vsel %vm10788_vm2, %v10667_v33, %v10787_v18  ;;  %v10790_v19 = vld [vmem:[#allocation111_spill] sm:$0xff]  ;;  %v7695_v5 = vsel %vm2476_vm7, %v10522_v26, %v10793_v24  ;;  %v10798_v18 = vld [vmem:[#allocation137_spill] sm:$0xff]  ;;  %vm10799_vm2 = vcmp.ge.f32.partialorder %v10676_v57, 0.0 }
 0x325   :  { %10789 = vst [vmem:[#allocation38_spill] sm:$0xff] %v7685_v59  ;;  %vm2520_vm6 = vcmp.ge.f32.partialorder %v10790_v19, 0.0  ;;  %v10791_v38 = vld [vmem:[#allocation91_spill] sm:$0xff]  ;;  %10794 = vst [vmem:[#allocation84_spill] sm:$0xff] %v7695_v5  ;;  %v7707_v59 = vsel %vm10799_vm2, %v10676_v57, %v10798_v18  ;;  %v10801_v32 = vld [vmem:[#allocation50_spill] sm:$0xff]  ;;  %vm10811_vm2 = vcmp.ge.f32.partialorder %v10685_v7, 0.0 }
 0x326   :  { %v10795_v56 = vld [vmem:[#allocation51_spill] sm:$0xff]  ;;  %10800 = vst [vmem:[#allocation40_spill] sm:$0xff] %v7707_v59  ;;  %v7713_v23 = vsel %vm10802_vm13, %v10529_v17, %v10801_v32  ;;  %v10805_v24 = vld [vmem:[#allocation96_spill] sm:$0xff]  ;;  %v10806_v5 = vld [vmem:[#allocation98_spill] sm:$0xff]  ;;  %vm10814_vm13 = vcmp.ge.f32.partialorder %v10536_v51, 0.0 }
 0x327   :  { %v7701_v33 = vsel %vm10796_vm15, %v10525_v52, %v10795_v56  ;;  %10803 = vst [vmem:[#allocation131_spill] sm:$0xff] %v7713_v23  ;;  %v10804_v26 = vld [vmem:[#allocation99_spill] sm:$0xff]  ;;  %v10808_v56 = vld [vmem:[#allocation52_spill] sm:$0xff]  ;;  %v10813_v32 = vld [vmem:[#allocation57_spill] sm:$0xff]  ;;  %vm10817_vm15 = vcmp.ge.f32.partialorder %v10539_v44, 0.0 }
 0x328   :  { %10797 = vst [vmem:[#allocation81_spill] sm:$0xff] %v7701_v33  ;;  %vm2524_vm7 = vcmp.ge.f32.partialorder %v10804_v26, 0.0  ;;  %v10807_v52 = vld [vmem:[#allocation19_spill] sm:$0xff]  ;;  %v7723_v57 = vsel %vm2480_vm8, %v10532_v35, %v10808_v56  ;;  %v7735_v23 = vsel %vm10814_vm13, %v10536_v51, %v10813_v32  ;;  %v10816_v59 = vld [vmem:[#allocation54_spill] sm:$0xff]  ;;  %v10819_v35 = vld [vmem:[#allocation112_spill] sm:$0xff]  ;;  %vm10826_vm13 = vcmp.ge.f32.partialorder %v10543_v20, 0.0 }
 0x329   :  { %10809 = vst [vmem:[#allocation45_spill] sm:$0xff] %v7723_v57  ;;  %v10810_v18 = vld [vmem:[#allocation139_spill] sm:$0xff]  ;;  %10815 = vst [vmem:[#allocation90_spill] sm:$0xff] %v7735_v23  ;;  %v7741_v33 = vsel %vm10817_vm15, %v10539_v44, %v10816_v59  ;;  %vm2528_vm8 = vcmp.ge.f32.partialorder %v10819_v35, 0.0  ;;  %v10820_v56 = vld [vmem:[#allocation21_spill] sm:$0xff]  ;;  %vm10829_vm15 = vcmp.ge.f32.partialorder %v6536_v22, 0.0 }
 0x32a   :  { %v7729_v17 = vsel %vm10811_vm2, %v10685_v7, %v10810_v18  ;;  %10818 = vst [vmem:[#allocation92_spill] sm:$0xff] %v7741_v33  ;;  %v10821_v57 = vld [vmem:[#allocation18_spill] sm:$0xff]  ;;  %v10822_v7 = vld [vmem:[#allocation20_spill] sm:$0xff]  ;;  %v10825_v32 = vld [vmem:[#allocation59_spill] sm:$0xff]  ;;  %vm10832_vm2 = vcmp.ge.f32.partialorder %v6540_v12, 0.0 }
 0x32b   :  { %10812 = vst [vmem:[#allocation42_spill] sm:$0xff] %v7729_v17  ;;  %v10823_v18 = vld [vmem:[#allocation56_spill] sm:$0xff]  ;;  %v7757_v44 = vsel %vm10826_vm13, %v10543_v20, %v10825_v32  ;;  %v10828_v59 = vld [vmem:[#allocation142_spill] sm:$0xff]  ;;  %v10831_v23 = vld [vmem:[#allocation143_spill] sm:$0xff]  ;;  %vm10847_vm13 = vcmp.ge.f32.partialorder %v6556_v2, 0.0 }
 0x32c   :  { %v7751_v51 = vsel %vm2484_vm9, %v10541_v40, %v10823_v18  ;;  %10827 = vst [vmem:[#allocation110_spill] sm:$0xff] %v7757_v44  ;;  %v7763_v33 = vsel %vm10829_vm15, %v6536_v22, %v10828_v59  ;;  %v7769_v17 = vsel %vm10832_vm2, %v6540_v12, %v10831_v23  ;;  %v10834_v40 = vld [vmem:[#allocation113_spill] sm:$0xff]  ;;  %v10835_v18 = vld [vmem:[#allocation27_spill] sm:$0xff]  ;;  %v10837_v20 = vld [vmem:[#allocation26_spill] sm:$0xff]  ;;  %vm10841_vm15 = vcmp.ge.f32.partialorder %v6548_v50, 0.0 }
 0x32d   :  { %10824 = vst [vmem:[#allocation109_spill] sm:$0xff] %v7751_v51  ;;  %10830 = vst [vmem:[#allocation133_spill] sm:$0xff] %v7763_v33  ;;  %vm2532_vm9 = vcmp.ge.f32.partialorder %v10834_v40, 0.0  ;;  %v10836_v51 = vld [vmem:[#allocation29_spill] sm:$0xff]  ;;  %v10838_v32 = vld [vmem:[#allocation144_spill] sm:$0xff]  ;;  %vm10844_vm2 = vcmp.ge.f32.partialorder %v6552_v60, 0.0 }
 0x32e   :  { %10833 = vst [vmem:[#allocation47_spill] sm:$0xff] %v7769_v17  ;;  %v7779_v22 = vsel %vm2488_vm10, %v6544_v39, %v10838_v32  ;;  %v10840_v59 = vld [vmem:[#allocation146_spill] sm:$0xff]  ;;  %v10843_v23 = vld [vmem:[#allocation147_spill] sm:$0xff]  ;;  %v10846_v33 = vld [vmem:[#allocation148_spill] sm:$0xff] }
 0x32f   :  { %10839 = vst [vmem:[#allocation49_spill] sm:$0xff] %v7779_v22  ;;  %v7785_v12 = vsel %vm10841_vm15, %v6548_v50, %v10840_v59  ;;  %v7791_v17 = vsel %vm10844_vm2, %v6552_v60, %v10843_v23  ;;  %v7797_v44 = vsel %vm10847_vm13, %v6556_v2, %v10846_v33  ;;  %v10849_v39 = vld [vmem:[#allocation114_spill] sm:$0xff]  ;;  %v10850_v32 = vld [vmem:[#allocation115_spill] sm:$0xff]  ;;  %v10851_v22 = vld [vmem:[#allocation116_spill] sm:$0xff]  ;;  %vm10855_vm2 = vcmp.ge.f32.partialorder %v6564_v43, 0.0 }
 0x330   :  { %10842 = vst [vmem:[#allocation135_spill] sm:$0xff] %v7785_v12  ;;  %10845 = vst [vmem:[#allocation111_spill] sm:$0xff] %v7791_v17  ;;  %vm2536_vm10 = vcmp.ge.f32.partialorder %v10849_v39, 0.0  ;;  %v10852_v50 = vld [vmem:[#allocation117_spill] sm:$0xff]  ;;  %v10853_v59 = vld [vmem:[#allocation150_spill] sm:$0xff]  ;;  %vm10858_vm13 = vcmp.ge.f32.partialorder %v6568_v46, 0.0 }
 0x331   :  { %10848 = vst [vmem:[#allocation91_spill] sm:$0xff] %v7797_v44  ;;  %v7807_v60 = vsel %vm2492_vm11, %v6560_v13, %v10853_v59  ;;  %v10854_v23 = vld [vmem:[#allocation151_spill] sm:$0xff]  ;;  %v10857_v33 = vld [vmem:[#allocation152_spill] sm:$0xff]  ;;  %v10860_v17 = vld [vmem:[#allocation154_spill] sm:$0xff]  ;;  %vm10861_vm15 = vcmp.ge.f32.partialorder %v6572_v14, 0.0  ;;  %vm10879_vm11 = vcmp.ge.f32.partialorder %v10568_v1, 0.0 }
 0x332   :  { %v7813_v2 = vsel %vm10855_vm2, %v6564_v43, %v10854_v23  ;;  %v7819_v44 = vsel %vm10858_vm13, %v6568_v46, %v10857_v33  ;;  %v7825_v12 = vsel %vm10861_vm15, %v6572_v14, %v10860_v17  ;;  %v10863_v13 = vld [vmem:[#allocation119_spill] sm:$0xff]  ;;  %v10864_v59 = vld [vmem:[#allocation120_spill] sm:$0xff]  ;;  %v10866_v23 = vld [vmem:[#allocation61_spill] sm:$0xff]  ;;  %vm10867_vm13 = vcmp.ge.f32.partialorder %v10560_v25, 0.0 }
 0x333   :  { %10856 = vst [vmem:[#allocation97_spill] sm:$0xff] %v7813_v2  ;;  %10859 = vst [vmem:[#allocation48_spill] sm:$0xff] %v7819_v44  ;;  %v10865_v43 = vld [vmem:[#allocation155_spill] sm:$0xff]  ;;  %v7841_v14 = vsel %vm10867_vm13, %v10560_v25, %v10866_v23  ;;  %v10869_v17 = vld [vmem:[#allocation58_spill] sm:$0xff]  ;;  %vm10870_vm15 = vcmp.ge.f32.partialorder %v10564_v27, 0.0  ;;  %vm10873_vm2 = vcmp.ge.f32.partialorder %v10566_v8, 0.0 }
 0x334   :  { %10862 = vst [vmem:[#allocation51_spill] sm:$0xff] %v7825_v12  ;;  %v7835_v46 = vsel %vm2496_vm12, %v6576_v10, %v10865_v43  ;;  %10868 = vst [vmem:[#allocation137_spill] sm:$0xff] %v7841_v14  ;;  %v7847_v33 = vsel %vm10870_vm15, %v10564_v27, %v10869_v17  ;;  %v10872_v12 = vld [vmem:[#allocation60_spill] sm:$0xff]  ;;  %v10875_v10 = vld [vmem:[#allocation122_spill] sm:$0xff]  ;;  %vm10882_vm15 = vcmp.ge.f32.partialorder %v10572_v3, 0.0  ;;  %vm10888_vm13 = vcmp.ge.f32.partialorder %v10576_v41, 0.0 }
 0x335   :  { %10871 = vst [vmem:[#allocation50_spill] sm:$0xff] %v7847_v33  ;;  %v7853_v44 = vsel %vm10873_vm2, %v10566_v8, %v10872_v12  ;;  %vm2544_vm12 = vcmp.ge.f32.partialorder %v10875_v10, 0.0  ;;  %v10876_v43 = vld [vmem:[#allocation28_spill] sm:$0xff]  ;;  %v10877_v25 = vld [vmem:[#allocation37_spill] sm:$0xff]  ;;  %v10878_v23 = vld [vmem:[#allocation63_spill] sm:$0xff]  ;;  %vm10885_vm2 = vcmp.ge.f32.partialorder %v10574_v6, 0.0 }
 0x336   :  { %10874 = vst [vmem:[#allocation99_spill] sm:$0xff] %v7853_v44  ;;  %v7863_v27 = vsel %vm10879_vm11, %v10568_v1, %v10878_v23  ;;  %v10881_v17 = vld [vmem:[#allocation65_spill] sm:$0xff]  ;;  %v10884_v12 = vld [vmem:[#allocation62_spill] sm:$0xff]  ;;  %v10887_v33 = vld [vmem:[#allocation64_spill] sm:$0xff] }
 0x337   :  { %10880 = vst [vmem:[#allocation96_spill] sm:$0xff] %v7863_v27  ;;  %v7869_v8 = vsel %vm10882_vm15, %v10572_v3, %v10881_v17  ;;  %v7875_v44 = vsel %vm10885_vm2, %v10574_v6, %v10884_v12  ;;  %v7881_v14 = vsel %vm10888_vm13, %v10576_v41, %v10887_v33  ;;  %v10890_v1 = vld [vmem:[#allocation34_spill] sm:$0xff]  ;;  %v10891_v23 = vld [vmem:[#allocation72_spill] sm:$0xff]  ;;  %v10893_v17 = vld [vmem:[#allocation15_spill] sm:$0xff]  ;;  %vm10895_vm2 = vcmp.ge.f32.partialorder %v10735_v54, 0.0 }
 0x338   :  { %10883 = vst [vmem:[#allocation98_spill] sm:$0xff] %v7869_v8  ;;  %10886 = vst [vmem:[#allocation19_spill] sm:$0xff] %v7875_v44  ;;  %vm2548_vm11 = vcmp.ge.f32.partialorder %v10890_v1, 0.0  ;;  %v10892_v3 = vld [vmem:[#allocation70_spill] sm:$0xff]  ;;  %v7891_v6 = vsel %vm2504_vm14, %v10734_v30, %v10893_v17  ;;  %v10894_v12 = vld [vmem:[#allocation156_spill] sm:$0xff]  ;;  %vm10898_vm13 = vcmp.ge.f32.partialorder %v10585_v21, 0.0 }
 0x339   :  { %10889 = vst [vmem:[#allocation52_spill] sm:$0xff] %v7881_v14  ;;  %v7897_v41 = vsel %vm10895_vm2, %v10735_v54, %v10894_v12  ;;  %v10897_v33 = vld [vmem:[#allocation66_spill] sm:$0xff]  ;;  %v10900_v44 = vld [vmem:[#allocation157_spill] sm:$0xff]  ;;  %vm10901_vm15 = vcmp.ge.f32.partialorder %v10736_v34, 0.0  ;;  %vm2552_vm14 = vcmp.ge.f32.partialorder %v10718_v4, 0.0  ;;  %v10904_v17 = vld [vmem:[#allocation123_spill] sm:$0xff] }
 0x33a   :  { %10896 = vst [vmem:[#allocation139_spill] sm:$0xff] %v7897_v41  ;;  %v7903_v14 = vsel %vm10898_vm13, %v10585_v21, %v10897_v33  ;;  %v7909_v8 = vsel %vm10901_vm15, %v10736_v34, %v10900_v44  ;;  %v10903_v30 = vld [vmem:[#allocation78_spill] sm:$0xff]  ;;  %v10905_v54 = vld [vmem:[#allocation124_spill] sm:$0xff]  ;;  %v10908_v33 = vld [vmem:[#allocation159_spill] sm:$0xff]  ;;  %vm10909_vm13 = vcmp.ge.f32.partialorder %v10749_v42, 0.0  ;;  %vm10911_vm15 = vcmp.ge.f32.partialorder %v10750_v36, 0.0 }
 0x33b   :  { %10899 = vst [vmem:[#allocation57_spill] sm:$0xff] %v7903_v14  ;;  %10902 = vst [vmem:[#allocation54_spill] sm:$0xff] %v7909_v8  ;;  %vm2553_vm3 = vcmp.ge.f32.partialorder %v10903_v30, 0.0  ;;  %v10906_v12 = vld [vmem:[#allocation158_spill] sm:$0xff]  ;;  %v7925_v34 = vsel %vm10909_vm13, %v10749_v42, %v10908_v33  ;;  %v10910_v44 = vld [vmem:[#allocation160_spill] sm:$0xff]  ;;  %vm10913_vm2 = vcmp.ge.f32.partialorder %v10751_v29, 0.0 }
 0x33c   :  { %v7919_v21 = vsel %vm2508_vm0, %v10748_v61, %v10906_v12  ;;  %v7931_v8 = vsel %vm10911_vm15, %v10750_v36, %v10910_v44  ;;  %v10912_v14 = vld [vmem:[#allocation161_spill] sm:$0xff]  ;;  %v10916_v12 = vld [vmem:[#allocation126_spill] sm:$0xff]  ;;  %v10918_v33 = vld [vmem:[#allocation16_spill] sm:$0xff]  ;;  %vm10919_vm13 = vcmp.ge.f32.partialorder %v10762_v53, 0.0  ;;  %vm10923_vm15 = vcmp.ge.f32.partialorder %v10610_v55, 0.0 }
 0x33d   :  { %10907 = vst [vmem:[#allocation112_spill] sm:$0xff] %v7919_v21  ;;  %v7937_v41 = vsel %vm10913_vm2, %v10751_v29, %v10912_v14  ;;  %v10915_v61 = vld [vmem:[#allocation125_spill] sm:$0xff]  ;;  %vm2557_vm1 = vcmp.ge.f32.partialorder %v10916_v12, 0.0  ;;  %v10917_v21 = vld [vmem:[#allocation82_spill] sm:$0xff]  ;;  %v7951_v36 = vsel %vm10919_vm13, %v10762_v53, %v10918_v33  ;;  %vm10921_vm2 = vcmp.ge.f32.partialorder %v10763_v45, 0.0  ;;  %v10922_v14 = vld [vmem:[#allocation83_spill] sm:$0xff] }
 0x33e   :  { %10914 = vst [vmem:[#allocation21_spill] sm:$0xff] %v7937_v41  ;;  %vm2556_vm0 = vcmp.ge.f32.partialorder %v10915_v61, 0.0  ;;  %v7945_v42 = vsel %vm2512_vm4, %v10601_v0, %v10917_v21  ;;  %v10920_v44 = vld [vmem:[#allocation162_spill] sm:$0xff]  ;;  %v7963_v41 = vsel %vm10923_vm15, %v10610_v55, %v10922_v14  ;;  %v10924_v0 = vld [vmem:[#allocation163_spill] sm:$0xff]  ;;  %v10925_v53 = vld [vmem:[#allocation164_spill] sm:$0xff]  ;;  %vm10926_vm4 = vcmp.ge.f32.partialorder %v10776_v49, 0.0 }
 0x33f   :  { %v7957_v29 = vsel %vm10921_vm2, %v10763_v45, %v10920_v44  ;;  %v7969_v21 = vsel %vm2516_vm5, %v10775_v9, %v10924_v0  ;;  %v7975_v33 = vsel %vm10926_vm4, %v10776_v49, %v10925_v53  ;;  %v10927_v45 = vld [vmem:[#allocation165_spill] sm:$0xff]  ;;  %vm10928_vm13 = vcmp.ge.f32.partialorder %v10777_v58, 0.0  ;;  %v10929_v55 = vld [vmem:[#allocation166_spill] sm:$0xff]  ;;  %v10931_v9 = vld [vmem:[#allocation167_spill] sm:$0xff] }
 0x340   :  { %v7981_v44 = vsel %vm10928_vm13, %v10777_v58, %v10927_v45  ;;  %vm10930_vm2 = vcmp.ge.f32.partialorder %v10778_v16, 0.0  ;;  %v7993_v0 = vsel %vm2520_vm6, %v10790_v19, %v10931_v9  ;;  %v10932_v49 = vld [vmem:[#allocation89_spill] sm:$0xff]  ;;  %vm10933_vm5 = vcmp.ge.f32.partialorder %v10626_v11, 0.0  ;;  %v10934_v58 = vld [vmem:[#allocation22_spill] sm:$0xff] }
 0x341   :  { %v7987_v14 = vsel %vm10930_vm2, %v10778_v16, %v10929_v55  ;;  %v7999_v53 = vsel %vm10933_vm5, %v10626_v11, %v10932_v49  ;;  %vm10935_vm15 = vcmp.ge.f32.partialorder %v10791_v38, 0.0  ;;  %v10936_v16 = vld [vmem:[#allocation168_spill] sm:$0xff]  ;;  %vm10937_vm4 = vcmp.ge.f32.partialorder %v10792_v63, 0.0  ;;  %v10938_v19 = vld [vmem:[#allocation169_spill] sm:$0xff]  ;;  %v11090_v2 = vld [vmem:[#allocation98_spill] sm:$0xff] }
 0x342   :  { %v8005_v45 = vsel %vm10935_vm15, %v10791_v38, %v10934_v58  ;;  %v8011_v55 = vsel %vm10937_vm4, %v10792_v63, %v10936_v16  ;;  %v8017_v9 = vsel %vm2524_vm7, %v10804_v26, %v10938_v19  ;;  %v10939_v11 = vld [vmem:[#allocation33_spill] sm:$0xff]  ;;  %vm10940_vm6 = vcmp.ge.f32.partialorder %v10805_v24, 0.0  ;;  %v10941_v38 = vld [vmem:[#allocation170_spill] sm:$0xff]  ;;  %v10943_v63 = vld [vmem:[#allocation171_spill] sm:$0xff] }
 0x343   :  { %v8023_v49 = vsel %vm10940_vm6, %v10805_v24, %v10939_v11  ;;  %vm10942_vm13 = vcmp.ge.f32.partialorder %v10806_v5, 0.0  ;;  %vm10944_vm2 = vcmp.ge.f32.partialorder %v10807_v52, 0.0  ;;  %v10945_v26 = vld [vmem:[#allocation41_spill] sm:$0xff]  ;;  %v10946_v24 = vld [vmem:[#allocation172_spill] sm:$0xff]  ;;  %vm10947_vm7 = vcmp.ge.f32.partialorder %v10820_v56, 0.0  ;;  %v11093_v37 = vld [vmem:[#allocation139_spill] sm:$0xff] }
 0x344   :  { %v8029_v58 = vsel %vm10942_vm13, %v10806_v5, %v10941_v38  ;;  %v8035_v16 = vsel %vm10944_vm2, %v10807_v52, %v10943_v63  ;;  %v8041_v19 = vsel %vm2528_vm8, %v10819_v35, %v10945_v26  ;;  %v8047_v11 = vsel %vm10947_vm7, %v10820_v56, %v10946_v24  ;;  %v10948_v5 = vld [vmem:[#allocation173_spill] sm:$0xff]  ;;  %v10950_v52 = vld [vmem:[#allocation43_spill] sm:$0xff]  ;;  %v10952_v35 = vld [vmem:[#allocation174_spill] sm:$0xff] }
 0x345   :  { %vm10949_vm5 = vcmp.ge.f32.partialorder %v10821_v57, 0.0  ;;  %vm10951_vm15 = vcmp.ge.f32.partialorder %v10822_v7, 0.0  ;;  %v8065_v26 = vsel %vm2532_vm9, %v10834_v40, %v10952_v35  ;;  %v10953_v56 = vld [vmem:[#allocation175_spill] sm:$0xff]  ;;  %vm10954_vm8 = vcmp.ge.f32.partialorder %v10835_v18, 0.0  ;;  %v10959_v40 = vld [vmem:[#allocation176_spill] sm:$0xff]  ;;  %v11081_v15 = vld [vmem:[#allocation49_spill] sm:$0xff] }
 0x346   :  { %v8053_v38 = vsel %vm10949_vm5, %v10821_v57, %v10948_v5  ;;  %v8059_v63 = vsel %vm10951_vm15, %v10822_v7, %v10950_v52  ;;  %v8071_v24 = vsel %vm10954_vm8, %v10835_v18, %v10953_v56  ;;  %v10955_v57 = vld [vmem:[#allocation44_spill] sm:$0xff]  ;;  %vm10956_vm4 = vcmp.ge.f32.partialorder %v10836_v51, 0.0  ;;  %v10957_v7 = vld [vmem:[#allocation46_spill] sm:$0xff]  ;;  %v10960_v18 = vld [vmem:[#allocation53_spill] sm:$0xff] }
 0x347   :  { %v8077_v5 = vsel %vm10956_vm4, %v10836_v51, %v10955_v57  ;;  %vm10958_vm6 = vcmp.ge.f32.partialorder %v10837_v20, 0.0  ;;  %v8089_v35 = vsel %vm2536_vm10, %v10849_v39, %v10959_v40  ;;  %vm10961_vm9 = vcmp.ge.f32.partialorder %v10850_v32, 0.0  ;;  %v10962_v51 = vld [vmem:[#allocation177_spill] sm:$0xff]  ;;  %v10966_v39 = vld [vmem:[#allocation55_spill] sm:$0xff]  ;;  %v11096_v27 = vld [vmem:[#allocation112_spill] sm:$0xff] }
 0x348   :  { %v8083_v52 = vsel %vm10958_vm6, %v10837_v20, %v10957_v7  ;;  %v8095_v56 = vsel %vm10961_vm9, %v10850_v32, %v10960_v18  ;;  %vm10963_vm13 = vcmp.ge.f32.partialorder %v10851_v22, 0.0  ;;  %v10964_v20 = vld [vmem:[#allocation178_spill] sm:$0xff]  ;;  %vm10965_vm2 = vcmp.ge.f32.partialorder %v10852_v50, 0.0 }
 0x349   :  { %v8101_v57 = vsel %vm10963_vm13, %v10851_v22, %v10962_v51  ;;  %v8107_v7 = vsel %vm10965_vm2, %v10852_v50, %v10964_v20  ;;  %vm10967_vm10 = vcmp.ge.f32.partialorder %v10686_v62, 0.0  ;;  %v10968_v32 = vld [vmem:[#allocation118_spill] sm:$0xff]  ;;  %vm10969_vm7 = vcmp.ge.f32.partialorder %v10863_v13, 0.0  ;;  %v10970_v22 = vld [vmem:[#allocation179_spill] sm:$0xff]  ;;  %v10972_v50 = vld [vmem:[#allocation121_spill] sm:$0xff] }
 0x34a   :  { %v8113_v40 = vsel %vm10967_vm10, %v10686_v62, %v10966_v39  ;;  %v8119_v18 = vsel %vm10969_vm7, %v10863_v13, %v10968_v32  ;;  %vm10971_vm5 = vcmp.ge.f32.partialorder %v10864_v59, 0.0  ;;  %vm10973_vm15 = vcmp.ge.f32.partialorder %v10694_v48, 0.0  ;;  %v10975_v62 = vld [vmem:[#allocation180_spill] sm:$0xff]  ;;  %v10977_v13 = vld [vmem:[#allocation181_spill] sm:$0xff] }
 0x34b   :  { %v8125_v51 = vsel %vm10971_vm5, %v10864_v59, %v10970_v22  ;;  %v8131_v20 = vsel %vm10973_vm15, %v10694_v48, %v10972_v50  ;;  %v8137_v39 = vsel %vm2544_vm12, %v10875_v10, %v10975_v62  ;;  %vm10978_vm8 = vcmp.ge.f32.partialorder %v10876_v43, 0.0  ;;  %v10980_v59 = vld [vmem:[#allocation35_spill] sm:$0xff]  ;;  %v10983_v48 = vld [vmem:[#allocation182_spill] sm:$0xff] }
 0x34c   :  { %10974 = vst [vmem:[#allocation18_spill] sm:$0xff] %v8131_v20  ;;  %10976 = vst [vmem:[#allocation20_spill] sm:$0xff] %v8137_v39  ;;  %v8143_v32 = vsel %vm10978_vm8, %v10876_v43, %v10977_v13  ;;  %vm10981_vm4 = vcmp.ge.f32.partialorder %v10702_v31, 0.0  ;;  %vm10984_vm6 = vcmp.ge.f32.partialorder %v10877_v25, 0.0  ;;  %v10986_v10 = vld [vmem:[#allocation183_spill] sm:$0xff]  ;;  %v10988_v43 = vld [vmem:[#allocation36_spill] sm:$0xff] }
 0x34d   :  { %10979 = vst [vmem:[#allocation56_spill] sm:$0xff] %v8143_v32  ;;  %v8149_v22 = vsel %vm10981_vm4, %v10702_v31, %v10980_v59  ;;  %v8155_v50 = vsel %vm10984_vm6, %v10877_v25, %v10983_v48  ;;  %v8161_v62 = vsel %vm2548_vm11, %v10890_v1, %v10986_v10  ;;  %vm10989_vm12 = vcmp.ge.f32.partialorder %v10710_v47, 0.0  ;;  %v10991_v31 = vld [vmem:[#allocation184_spill] sm:$0xff]  ;;  %v10993_v25 = vld [vmem:[#allocation185_spill] sm:$0xff]  ;;  %v10996_v1 = vld [vmem:[#allocation71_spill] sm:$0xff] }
 0x34e   :  { %10982 = vst [vmem:[#allocation59_spill] sm:$0xff] %v8149_v22  ;;  %10985 = vst [vmem:[#allocation142_spill] sm:$0xff] %v8155_v50  ;;  %v8167_v13 = vsel %vm10989_vm12, %v10710_v47, %v10988_v43  ;;  %vm10992_vm9 = vcmp.ge.f32.partialorder %v10891_v23, 0.0  ;;  %vm10994_vm13 = vcmp.ge.f32.partialorder %v10892_v3, 0.0  ;;  %v8185_v10 = vsel %vm2552_vm14, %v10718_v4, %v10996_v1  ;;  %v10998_v47 = vld [vmem:[#allocation186_spill] sm:$0xff]  ;;  %v11006_v4 = vld [vmem:[#allocation189_spill] sm:$0xff] }
 0x34f   :  { %10987 = vst [vmem:[#allocation143_spill] sm:$0xff] %v8161_v62  ;;  %10990 = vst [vmem:[#allocation113_spill] sm:$0xff] %v8167_v13  ;;  %v8173_v59 = vsel %vm10992_vm9, %v10891_v23, %v10991_v31  ;;  %v8179_v48 = vsel %vm10994_vm13, %v10892_v3, %v10993_v25  ;;  %v8191_v43 = vsel %vm2553_vm3, %v10903_v30, %v10998_v47  ;;  %v11000_v23 = vld [vmem:[#allocation187_spill] sm:$0xff]  ;;  %vm11001_vm11 = vcmp.ge.f32.partialorder %v10904_v17, 0.0  ;;  %v11003_v3 = vld [vmem:[#allocation188_spill] sm:$0xff] }
 0x350   :  { %10995 = vst [vmem:[#allocation27_spill] sm:$0xff] %v8179_v48  ;;  %10997 = vst [vmem:[#allocation29_spill] sm:$0xff] %v8185_v10  ;;  %v8197_v31 = vsel %vm11001_vm11, %v10904_v17, %v11000_v23  ;;  %vm11004_vm2 = vcmp.ge.f32.partialorder %v10905_v54, 0.0  ;;  %v8209_v1 = vsel %vm2556_vm0, %v10915_v61, %v11006_v4  ;;  %v11008_v30 = vld [vmem:[#allocation190_spill] sm:$0xff]  ;;  %v11091_v17 = vld [vmem:[#allocation19_spill] sm:$0xff]  ;;  %v11099_v39 = vmov %v8185_v10 }
 0x351   :  { %10999 = vst [vmem:[#allocation26_spill] sm:$0xff] %v8191_v43  ;;  %11002 = vst [vmem:[#allocation144_spill] sm:$0xff] %v8197_v31  ;;  %v8203_v25 = vsel %vm11004_vm2, %v10905_v54, %v11003_v3  ;;  %v8215_v47 = vsel %vm2557_vm1, %v10916_v12, %v11008_v30  ;;  %v11052_v54 = vld [vmem:[#allocation10_spill] sm:$0xff]  ;;  %v11077_v12 = vld [vmem:[#allocation109_spill] sm:$0xff]  ;;  %v4000_v48 = vpack.c.bf16 %v11099_v39, %v11099_v39  ;;  %v11100_v32 = vmov %v8191_v43 }
 0x352   :  { %11005 = vst [vmem:[#allocation146_spill] sm:$0xff] %v8203_v25  ;;  %11007 = vst [vmem:[#allocation147_spill] sm:$0xff] %v8209_v1  ;;  %v11053_v25 = vld [vmem:[#allocation12_spill] sm:$0xff]  ;;  %v11094_v61 = vld [vmem:[#allocation57_spill] sm:$0xff]  ;;  %vm3422_vm1 = vcmask 519168  }
 0x353   :  { %11009 = vst [vmem:[#allocation148_spill] sm:$0xff] %v8215_v47  ;;  %v11078_v47 = vld [vmem:[#allocation110_spill] sm:$0xff]  ;;  %v11097_v31 = vld [vmem:[#allocation21_spill] sm:$0xff]  ;;  %v11105_v4 = vld [vmem:[#allocation80_spill] sm:$0xff] }
 0x354   :  { %v11095_v1 = vld [vmem:[#allocation54_spill] sm:$0xff]  ;;  %v11106_v20 = vpack.c.bf16 %v11105_v4, %v11105_v4  ;;  %v11107_v30 = vld [vmem:[#allocation77_spill] sm:$0xff]  ;;  %v11109_v3 = vld [vmem:[#allocation79_spill] sm:$0xff]  ;;  %3561 = vst.msk [vmem:[%s9517_s4 + $0x228] sm:$0xf] %vm3422_vm1, %v4000_v48 }
 0x355   :  { %v11108_v23 = vpack.c.bf16 %v11107_v30, %v11107_v30  ;;  %v11110_v10 = vpack.c.bf16 %v11109_v3, %v11109_v3  ;;  %v11111_v4 = vld [vmem:[#allocation88_spill] sm:$0xff] }
 0x356   :  { %3423 = vst.msk [vmem:[%s9517_s4] sm:$0xf] %vm3422_vm1, %v11106_v20  ;;  %v11112_v43 = vpack.c.bf16 %v11111_v4, %v11111_v4  ;;  %v11113_v20 = vld [vmem:[#allocation85_spill] sm:$0xff] }
 0x357   :  { %3424 = vst.msk [vmem:[%s9517_s4 + $0x4] sm:$0xf] %vm3422_vm1, %v11108_v23  ;;  %3425 = vst.msk [vmem:[%s9517_s4 + $0x8] sm:$0xf] %vm3422_vm1, %v11110_v10  ;;  %v11114_v30 = vpack.c.bf16 %v11113_v20, %v11113_v20  ;;  %v11115_v23 = vld [vmem:[#allocation87_spill] sm:$0xff]  ;;  %v11117_v10 = vld [vmem:[#allocation94_spill] sm:$0xff] }
 0x358   :  { %v11101_v22 = vld [vmem:[#allocation144_spill] sm:$0xff]  ;;  %3426 = vst.msk [vmem:[%s9517_s4 + $0xc] sm:$0xf] %vm3422_vm1, %v11112_v43  ;;  %v11116_v3 = vpack.c.bf16 %v11115_v23, %v11115_v23  ;;  %v11118_v4 = vpack.c.bf16 %v11117_v10, %v11117_v10  ;;  %v11119_v43 = vld [vmem:[#allocation106_spill] sm:$0xff] }
 0x359   :  { %v11102_v50 = vld [vmem:[#allocation146_spill] sm:$0xff]  ;;  %v11103_v62 = vld [vmem:[#allocation147_spill] sm:$0xff]  ;;  %3427 = vst.msk [vmem:[%s9517_s4 + $0x10] sm:$0xf] %vm3422_vm1, %v11114_v30  ;;  %v11120_v20 = vpack.c.bf16 %v11119_v43, %v11119_v43 }
 0x35a   :  { %v11104_v13 = vld [vmem:[#allocation148_spill] sm:$0xff]  ;;  %3428 = vst.msk [vmem:[%s9517_s4 + $0x14] sm:$0xf] %vm3422_vm1, %v11116_v3  ;;  %3429 = vst.msk [vmem:[%s9517_s4 + $0x18] sm:$0xf] %vm3422_vm1, %v11118_v4  ;;  %v11121_v30 = vld [vmem:[#allocation86_spill] sm:$0xff]  ;;  %v11333_v39 = vpack.c.bf16 %v11102_v50, %v11102_v50 }
 0x35b   :  { %3430 = vst.msk [vmem:[%s9517_s4 + $0x1c] sm:$0xf] %vm3422_vm1, %v11120_v20  ;;  %v11122_v23 = vpack.c.bf16 %v11121_v30, %v11121_v30  ;;  %v11123_v3 = vld [vmem:[#allocation5_spill] sm:$0xff] }
 0x35c   :  { %v11124_v10 = vpack.c.bf16 %v11123_v3, %v11123_v3  ;;  %v11125_v4 = vld [vmem:[#allocation9_spill] sm:$0xff]  ;;  %3564 = vst.msk [vmem:[%s9517_s4 + $0x234] sm:$0xf] %vm3422_vm1, %v11333_v39 }
 0x35d   :  { %3431 = vst.msk [vmem:[%s9517_s4 + $0x20] sm:$0xf] %vm3422_vm1, %v11122_v23  ;;  %v11126_v43 = vpack.c.bf16 %v11125_v4, %v11125_v4  ;;  %v11127_v20 = vld [vmem:[#allocation13_spill] sm:$0xff]  ;;  %v11129_v23 = vld [vmem:[#allocation14_spill] sm:$0xff] }
 0x35e   :  { %3432 = vst.msk [vmem:[%s9517_s4 + $0x24] sm:$0xf] %vm3422_vm1, %v11124_v10  ;;  %v11128_v30 = vpack.c.bf16 %v11127_v20, %v11127_v20  ;;  %v11130_v3 = vpack.c.bf16 %v11129_v23, %v11129_v23  ;;  %v11131_v10 = vld [vmem:[#allocation31_spill] sm:$0xff] }
 0x35f   :  { %3433 = vst.msk [vmem:[%s9517_s4 + $0x28] sm:$0xf] %vm3422_vm1, %v11126_v43  ;;  %v11132_v4 = vpack.c.bf16 %v11131_v10, %v11131_v10  ;;  %v11133_v43 = vld [vmem:[#allocation128_spill] sm:$0xff] }
 0x360   :  { %3434 = vst.msk [vmem:[%s9517_s4 + $0x2c] sm:$0xf] %vm3422_vm1, %v11128_v30  ;;  %3435 = vst.msk [vmem:[%s9517_s4 + $0x30] sm:$0xf] %vm3422_vm1, %v11130_v3  ;;  %v11134_v20 = vpack.c.bf16 %v11133_v43, %v11133_v43  ;;  %v11135_v30 = vld [vmem:[#allocation130_spill] sm:$0xff]  ;;  %v11137_v3 = vld [vmem:[#allocation132_spill] sm:$0xff] }
 0x361   :  { %3436 = vst.msk [vmem:[%s9517_s4 + $0x34] sm:$0xf] %vm3422_vm1, %v11132_v4  ;;  %v11136_v23 = vpack.c.bf16 %v11135_v30, %v11135_v30  ;;  %v11138_v10 = vpack.c.bf16 %v11137_v3, %v11137_v3  ;;  %v11139_v4 = vld [vmem:[#allocation134_spill] sm:$0xff] }
 0x362   :  { %3437 = vst.msk [vmem:[%s9517_s4 + $0x38] sm:$0xf] %vm3422_vm1, %v11134_v20  ;;  %v11140_v43 = vpack.c.bf16 %v11139_v4, %v11139_v4  ;;  %v11141_v20 = vld [vmem:[#allocation136_spill] sm:$0xff] }
 0x363   :  { %3438 = vst.msk [vmem:[%s9517_s4 + $0x3c] sm:$0xf] %vm3422_vm1, %v11136_v23  ;;  %3439 = vst.msk [vmem:[%s9517_s4 + $0x40] sm:$0xf] %vm3422_vm1, %v11138_v10  ;;  %v11142_v30 = vpack.c.bf16 %v11141_v20, %v11141_v20  ;;  %v11143_v23 = vld [vmem:[#allocation138_spill] sm:$0xff]  ;;  %v11145_v10 = vld [vmem:[#allocation140_spill] sm:$0xff] }
 0x364   :  { %3440 = vst.msk [vmem:[%s9517_s4 + $0x44] sm:$0xf] %vm3422_vm1, %v11140_v43  ;;  %v11144_v3 = vpack.c.bf16 %v11143_v23, %v11143_v23  ;;  %v11146_v4 = vpack.c.bf16 %v11145_v10, %v11145_v10  ;;  %v11147_v43 = vld [vmem:[#allocation141_spill] sm:$0xff] }
 0x365   :  { %3441 = vst.msk [vmem:[%s9517_s4 + $0x48] sm:$0xf] %vm3422_vm1, %v11142_v30  ;;  %v11148_v20 = vpack.c.bf16 %v11147_v43, %v11147_v43  ;;  %v11149_v30 = vld [vmem:[#allocation145_spill] sm:$0xff] }
 0x366   :  { %3442 = vst.msk [vmem:[%s9517_s4 + $0x4c] sm:$0xf] %vm3422_vm1, %v11144_v3  ;;  %3443 = vst.msk [vmem:[%s9517_s4 + $0x50] sm:$0xf] %vm3422_vm1, %v11146_v4  ;;  %v11150_v23 = vpack.c.bf16 %v11149_v30, %v11149_v30  ;;  %v11151_v3 = vld [vmem:[#allocation149_spill] sm:$0xff] }
 0x367   :  { %3444 = vst.msk [vmem:[%s9517_s4 + $0x54] sm:$0xf] %vm3422_vm1, %v11148_v20  ;;  %v11152_v10 = vpack.c.bf16 %v11151_v3, %v11151_v3  ;;  %v11153_v4 = vld [vmem:[#allocation153_spill] sm:$0xff]  ;;  %v11155_v20 = vld [vmem:[#allocation95_spill] sm:$0xff] }
 0x368   :  { %3445 = vst.msk [vmem:[%s9517_s4 + $0x58] sm:$0xf] %vm3422_vm1, %v11150_v23  ;;  %v11154_v43 = vpack.c.bf16 %v11153_v4, %v11153_v4  ;;  %v11156_v30 = vpack.c.bf16 %v11155_v20, %v11155_v20  ;;  %v11157_v23 = vld [vmem:[#allocation93_spill] sm:$0xff] }
 0x369   :  { %3446 = vst.msk [vmem:[%s9517_s4 + $0x5c] sm:$0xf] %vm3422_vm1, %v11152_v10  ;;  %v11158_v3 = vpack.c.bf16 %v11157_v23, %v11157_v23  ;;  %v11159_v10 = vld [vmem:[#allocation104_spill] sm:$0xff] }
 0x36a   :  { %3447 = vst.msk [vmem:[%s9517_s4 + $0x60] sm:$0xf] %vm3422_vm1, %v11154_v43  ;;  %3448 = vst.msk [vmem:[%s9517_s4 + $0x64] sm:$0xf] %vm3422_vm1, %v11156_v30  ;;  %v11160_v4 = vpack.c.bf16 %v11159_v10, %v11159_v10  ;;  %v11161_v43 = vld [vmem:[#allocation102_spill] sm:$0xff]  ;;  %v11163_v30 = vld [vmem:[#allocation103_spill] sm:$0xff] }
 0x36b   :  { %3449 = vst.msk [vmem:[%s9517_s4 + $0x68] sm:$0xf] %vm3422_vm1, %v11158_v3  ;;  %v11162_v20 = vpack.c.bf16 %v11161_v43, %v11161_v43  ;;  %v11164_v23 = vpack.c.bf16 %v11163_v30, %v11163_v30  ;;  %v11165_v3 = vld [vmem:[#allocation108_spill] sm:$0xff] }
 0x36c   :  { %3450 = vst.msk [vmem:[%s9517_s4 + $0x6c] sm:$0xf] %vm3422_vm1, %v11160_v4  ;;  %v11166_v10 = vpack.c.bf16 %v11165_v3, %v11165_v3  ;;  %v11167_v4 = vld [vmem:[#allocation105_spill] sm:$0xff] }
 0x36d   :  { %3451 = vst.msk [vmem:[%s9517_s4 + $0x70] sm:$0xf] %vm3422_vm1, %v11162_v20  ;;  %3452 = vst.msk [vmem:[%s9517_s4 + $0x74] sm:$0xf] %vm3422_vm1, %v11164_v23  ;;  %v11168_v43 = vpack.c.bf16 %v11167_v4, %v11167_v4  ;;  %v11169_v20 = vld [vmem:[#allocation107_spill] sm:$0xff]  ;;  %v11171_v23 = vld [vmem:[#allocation101_spill] sm:$0xff] }
 0x36e   :  { %3453 = vst.msk [vmem:[%s9517_s4 + $0x78] sm:$0xf] %vm3422_vm1, %v11166_v10  ;;  %v11170_v30 = vpack.c.bf16 %v11169_v20, %v11169_v20  ;;  %v11172_v3 = vpack.c.bf16 %v11171_v23, %v11171_v23  ;;  %v11173_v10 = vld [vmem:[#allocation100_spill] sm:$0xff] }
 0x36f   :  { %3454 = vst.msk [vmem:[%s9517_s4 + $0x7c] sm:$0xf] %vm3422_vm1, %v11168_v43  ;;  %v11174_v4 = vpack.c.bf16 %v11173_v10, %v11173_v10  ;;  %v11175_v43 = vld [vmem:[#allocation3_spill] sm:$0xff] }
 0x370   :  { %3455 = vst.msk [vmem:[%s9517_s4 + $0x80] sm:$0xf] %vm3422_vm1, %v11170_v30  ;;  %3456 = vst.msk [vmem:[%s9517_s4 + $0x84] sm:$0xf] %vm3422_vm1, %v11172_v3  ;;  %v11176_v20 = vpack.c.bf16 %v11175_v43, %v11175_v43  ;;  %v11177_v30 = vld [vmem:[#allocation2_spill] sm:$0xff]  ;;  %v11179_v3 = vld [vmem:[#allocation4_spill] sm:$0xff] }
 0x371   :  { %3457 = vst.msk [vmem:[%s9517_s4 + $0x88] sm:$0xf] %vm3422_vm1, %v11174_v4  ;;  %v11178_v23 = vpack.c.bf16 %v11177_v30, %v11177_v30  ;;  %v11180_v10 = vpack.c.bf16 %v11179_v3, %v11179_v3  ;;  %v11181_v4 = vld [vmem:[#allocation7_spill] sm:$0xff] }
 0x372   :  { %3458 = vst.msk [vmem:[%s9517_s4 + $0x8c] sm:$0xf] %vm3422_vm1, %v11176_v20  ;;  %v11182_v43 = vpack.c.bf16 %v11181_v4, %v11181_v4  ;;  %v11183_v20 = vld [vmem:[#allocation6_spill] sm:$0xff] }
 0x373   :  { %3459 = vst.msk [vmem:[%s9517_s4 + $0x90] sm:$0xf] %vm3422_vm1, %v11178_v23  ;;  %3460 = vst.msk [vmem:[%s9517_s4 + $0x94] sm:$0xf] %vm3422_vm1, %v11180_v10  ;;  %v11184_v30 = vpack.c.bf16 %v11183_v20, %v11183_v20  ;;  %v11185_v23 = vld [vmem:[#allocation8_spill] sm:$0xff]  ;;  %v11187_v10 = vld [vmem:[#allocation11_spill] sm:$0xff]  ;;  %v11190_v20 = vpack.c.bf16 %v11053_v25, %v11053_v25 }
 0x374   :  { %3461 = vst.msk [vmem:[%s9517_s4 + $0x98] sm:$0xf] %vm3422_vm1, %v11182_v43  ;;  %v11186_v3 = vpack.c.bf16 %v11185_v23, %v11185_v23  ;;  %v11188_v4 = vpack.c.bf16 %v11187_v10, %v11187_v10  ;;  %v11189_v43 = vpack.c.bf16 %v11052_v54, %v11052_v54  ;;  %v11193_v54 = vld [vmem:[#allocation23_spill] sm:$0xff] }
 0x375   :  { %3462 = vst.msk [vmem:[%s9517_s4 + $0x9c] sm:$0xf] %vm3422_vm1, %v11184_v30  ;;  %3466 = vst.msk [vmem:[%s9517_s4 + $0xac] sm:$0xf] %vm3422_vm1, %v11190_v20  ;;  %v11191_v30 = vld [vmem:[#allocation17_spill] sm:$0xff]  ;;  %v11195_v25 = vld [vmem:[#allocation67_spill] sm:$0xff] }
 0x376   :  { %3463 = vst.msk [vmem:[%s9517_s4 + $0xa0] sm:$0xf] %vm3422_vm1, %v11186_v3  ;;  %3464 = vst.msk [vmem:[%s9517_s4 + $0xa4] sm:$0xf] %vm3422_vm1, %v11188_v4  ;;  %v11192_v23 = vpack.c.bf16 %v11191_v30, %v11191_v30  ;;  %v11194_v3 = vpack.c.bf16 %v11193_v54, %v11193_v54  ;;  %v11196_v10 = vpack.c.bf16 %v11195_v25, %v11195_v25  ;;  %v11197_v4 = vld [vmem:[#allocation69_spill] sm:$0xff]  ;;  %v11199_v20 = vld [vmem:[#allocation68_spill] sm:$0xff] }
 0x377   :  { %3465 = vst.msk [vmem:[%s9517_s4 + $0xa8] sm:$0xf] %vm3422_vm1, %v11189_v43  ;;  %v11198_v43 = vpack.c.bf16 %v11197_v4, %v11197_v4  ;;  %v11200_v30 = vpack.c.bf16 %v11199_v20, %v11199_v20  ;;  %v11204_v25 = vld [vmem:[#allocation24_spill] sm:$0xff]  ;;  %v11206_v4 = vld [vmem:[#allocation127_spill] sm:$0xff] }
 0x378   :  { %3467 = vst.msk [vmem:[%s9517_s4 + $0xb0] sm:$0xf] %vm3422_vm1, %v11192_v23  ;;  %3468 = vst.msk [vmem:[%s9517_s4 + $0xb4] sm:$0xf] %vm3422_vm1, %v11194_v3  ;;  %v11201_v23 = vld [vmem:[#allocation25_spill] sm:$0xff]  ;;  %v11203_v3 = vpack.c.bf16 %v7611_v28, %v7611_v28  ;;  %v11208_v28 = vld [vmem:[#allocation30_spill] sm:$0xff] }
 0x379   :  { %3469 = vst.msk [vmem:[%s9517_s4 + $0xb8] sm:$0xf] %vm3422_vm1, %v11196_v10  ;;  %3470 = vst.msk [vmem:[%s9517_s4 + $0xbc] sm:$0xf] %vm3422_vm1, %v11198_v43  ;;  %v11202_v54 = vpack.c.bf16 %v11201_v23, %v11201_v23  ;;  %v11205_v10 = vpack.c.bf16 %v11204_v25, %v11204_v25  ;;  %v11207_v43 = vpack.c.bf16 %v11206_v4, %v11206_v4  ;;  %v11214_v25 = vld [vmem:[#allocation73_spill] sm:$0xff]  ;;  %v11216_v4 = vld [vmem:[#allocation75_spill] sm:$0xff] }
 0x37a   :  { %3471 = vst.msk [vmem:[%s9517_s4 + $0xc0] sm:$0xf] %vm3422_vm1, %v11200_v30  ;;  %3473 = vst.msk [vmem:[%s9517_s4 + $0xc8] sm:$0xf] %vm3422_vm1, %v11203_v3  ;;  %v11209_v20 = vpack.c.bf16 %v11208_v28, %v11208_v28  ;;  %v11210_v30 = vld [vmem:[#allocation74_spill] sm:$0xff]  ;;  %v11218_v28 = vld [vmem:[#allocation32_spill] sm:$0xff] }
 0x37b   :  { %3472 = vst.msk [vmem:[%s9517_s4 + $0xc4] sm:$0xf] %vm3422_vm1, %v11202_v54  ;;  %3474 = vst.msk [vmem:[%s9517_s4 + $0xcc] sm:$0xf] %vm3422_vm1, %v11205_v10  ;;  %v11211_v23 = vpack.c.bf16 %v11210_v30, %v11210_v30  ;;  %v11212_v54 = vld [vmem:[#allocation76_spill] sm:$0xff]  ;;  %v11215_v10 = vpack.c.bf16 %v11214_v25, %v11214_v25  ;;  %v11220_v30 = vld [vmem:[#allocation39_spill] sm:$0xff] }
 0x37c   :  { %3475 = vst.msk [vmem:[%s9517_s4 + $0xd0] sm:$0xf] %vm3422_vm1, %v11207_v43  ;;  %3476 = vst.msk [vmem:[%s9517_s4 + $0xd4] sm:$0xf] %vm3422_vm1, %v11209_v20  ;;  %v11213_v3 = vpack.c.bf16 %v11212_v54, %v11212_v54  ;;  %v11217_v43 = vpack.c.bf16 %v11216_v4, %v11216_v4  ;;  %v11219_v20 = vpack.c.bf16 %v11218_v28, %v11218_v28  ;;  %v11222_v54 = vld [vmem:[#allocation129_spill] sm:$0xff]  ;;  %v11224_v25 = vld [vmem:[#allocation38_spill] sm:$0xff] }
 0x37d   :  { %3477 = vst.msk [vmem:[%s9517_s4 + $0xd8] sm:$0xf] %vm3422_vm1, %v11211_v23  ;;  %3479 = vst.msk [vmem:[%s9517_s4 + $0xe0] sm:$0xf] %vm3422_vm1, %v11215_v10  ;;  %v11221_v23 = vpack.c.bf16 %v11220_v30, %v11220_v30  ;;  %v11225_v10 = vpack.c.bf16 %v11224_v25, %v11224_v25  ;;  %v11226_v4 = vld [vmem:[#allocation84_spill] sm:$0xff]  ;;  %v11228_v28 = vld [vmem:[#allocation81_spill] sm:$0xff] }
 0x37e   :  { %3478 = vst.msk [vmem:[%s9517_s4 + $0xdc] sm:$0xf] %vm3422_vm1, %v11213_v3  ;;  %3480 = vst.msk [vmem:[%s9517_s4 + $0xe4] sm:$0xf] %vm3422_vm1, %v11217_v43  ;;  %v11223_v3 = vpack.c.bf16 %v11222_v54, %v11222_v54  ;;  %v11227_v43 = vpack.c.bf16 %v11226_v4, %v11226_v4  ;;  %v11230_v30 = vld [vmem:[#allocation40_spill] sm:$0xff]  ;;  %v11232_v54 = vld [vmem:[#allocation131_spill] sm:$0xff] }
 0x37f   :  { %3481 = vst.msk [vmem:[%s9517_s4 + $0xe8] sm:$0xf] %vm3422_vm1, %v11219_v20  ;;  %3482 = vst.msk [vmem:[%s9517_s4 + $0xec] sm:$0xf] %vm3422_vm1, %v11221_v23  ;;  %v11229_v20 = vpack.c.bf16 %v11228_v28, %v11228_v28  ;;  %v11231_v23 = vpack.c.bf16 %v11230_v30, %v11230_v30  ;;  %v11234_v25 = vld [vmem:[#allocation45_spill] sm:$0xff]  ;;  %v11236_v4 = vld [vmem:[#allocation42_spill] sm:$0xff] }
 0x380   :  { %3483 = vst.msk [vmem:[%s9517_s4 + $0xf0] sm:$0xf] %vm3422_vm1, %v11223_v3  ;;  %3484 = vst.msk [vmem:[%s9517_s4 + $0xf4] sm:$0xf] %vm3422_vm1, %v11225_v10  ;;  %v11233_v3 = vpack.c.bf16 %v11232_v54, %v11232_v54  ;;  %v11235_v10 = vpack.c.bf16 %v11234_v25, %v11234_v25  ;;  %v11238_v28 = vld [vmem:[#allocation90_spill] sm:$0xff]  ;;  %v11240_v30 = vld [vmem:[#allocation92_spill] sm:$0xff]  ;;  %v11242_v54 = vpack.c.bf16 %v11077_v12, %v11077_v12 }
 0x381   :  { %3485 = vst.msk [vmem:[%s9517_s4 + $0xf8] sm:$0xf] %vm3422_vm1, %v11227_v43  ;;  %3486 = vst.msk [vmem:[%s9517_s4 + $0xfc] sm:$0xf] %vm3422_vm1, %v11229_v20  ;;  %v11237_v43 = vpack.c.bf16 %v11236_v4, %v11236_v4  ;;  %v11239_v20 = vpack.c.bf16 %v11238_v28, %v11238_v28  ;;  %v11244_v25 = vld [vmem:[#allocation133_spill] sm:$0xff]  ;;  %v11246_v12 = vld [vmem:[#allocation47_spill] sm:$0xff] }
 0x382   :  { %3487 = vst.msk [vmem:[%s9517_s4 + $0x100] sm:$0xf] %vm3422_vm1, %v11231_v23  ;;  %3488 = vst.msk [vmem:[%s9517_s4 + $0x104] sm:$0xf] %vm3422_vm1, %v11233_v3  ;;  %v11241_v23 = vpack.c.bf16 %v11240_v30, %v11240_v30  ;;  %v11243_v3 = vpack.c.bf16 %v11078_v47, %v11078_v47  ;;  %v11247_v4 = vpack.c.bf16 %v11246_v12, %v11246_v12 }
 0x383   :  { %3489 = vst.msk [vmem:[%s9517_s4 + $0x108] sm:$0xf] %vm3422_vm1, %v11235_v10  ;;  %3490 = vst.msk [vmem:[%s9517_s4 + $0x10c] sm:$0xf] %vm3422_vm1, %v11237_v43  ;;  %v11245_v10 = vpack.c.bf16 %v11244_v25, %v11244_v25  ;;  %v11248_v47 = vpack.c.bf16 %v11081_v15, %v11081_v15  ;;  %v11249_v43 = vld [vmem:[#allocation135_spill] sm:$0xff] }
 0x384   :  { %3491 = vst.msk [vmem:[%s9517_s4 + $0x110] sm:$0xf] %vm3422_vm1, %v11239_v20  ;;  %3492 = vst.msk [vmem:[%s9517_s4 + $0x114] sm:$0xf] %vm3422_vm1, %v11241_v23  ;;  %v11250_v28 = vpack.c.bf16 %v11249_v43, %v11249_v43  ;;  %v11251_v20 = vld [vmem:[#allocation111_spill] sm:$0xff]  ;;  %v11263_v43 = vld [vmem:[#allocation137_spill] sm:$0xff] }
 0x385   :  { %3493 = vst.msk [vmem:[%s9517_s4 + $0x118] sm:$0xf] %vm3422_vm1, %v11242_v54  ;;  %3494 = vst.msk [vmem:[%s9517_s4 + $0x11c] sm:$0xf] %vm3422_vm1, %v11243_v3  ;;  %v11252_v30 = vpack.c.bf16 %v11251_v20, %v11251_v20  ;;  %v11253_v15 = vld [vmem:[#allocation91_spill] sm:$0xff]  ;;  %v11255_v54 = vpack.c.bf16 %v7807_v60, %v7807_v60  ;;  %v11256_v3 = vld [vmem:[#allocation97_spill] sm:$0xff] }
 0x386   :  { %3495 = vst.msk [vmem:[%s9517_s4 + $0x120] sm:$0xf] %vm3422_vm1, %v11245_v10  ;;  %3496 = vst.msk [vmem:[%s9517_s4 + $0x124] sm:$0xf] %vm3422_vm1, %v11247_v4  ;;  %v11254_v23 = vpack.c.bf16 %v11253_v15, %v11253_v15  ;;  %v11257_v25 = vpack.c.bf16 %v11256_v3, %v11256_v3  ;;  %v11258_v10 = vld [vmem:[#allocation48_spill] sm:$0xff]  ;;  %v11260_v60 = vld [vmem:[#allocation51_spill] sm:$0xff]  ;;  %v11271_v3 = vpack.c.bf16 %v11090_v2, %v11090_v2 }
 0x387   :  { %3497 = vst.msk [vmem:[%s9517_s4 + $0x128] sm:$0xf] %vm3422_vm1, %v11248_v47  ;;  %3498 = vst.msk [vmem:[%s9517_s4 + $0x12c] sm:$0xf] %vm3422_vm1, %v11250_v28  ;;  %v11259_v12 = vpack.c.bf16 %v11258_v10, %v11258_v10  ;;  %v11261_v4 = vpack.c.bf16 %v11260_v60, %v11260_v60  ;;  %v11262_v47 = vpack.c.bf16 %v7835_v46, %v7835_v46  ;;  %v11265_v20 = vld [vmem:[#allocation50_spill] sm:$0xff]  ;;  %v11267_v46 = vld [vmem:[#allocation99_spill] sm:$0xff] }
 0x388   :  { %3499 = vst.msk [vmem:[%s9517_s4 + $0x130] sm:$0xf] %vm3422_vm1, %v11252_v30  ;;  %3500 = vst.msk [vmem:[%s9517_s4 + $0x134] sm:$0xf] %vm3422_vm1, %v11254_v23  ;;  %v11264_v28 = vpack.c.bf16 %v11263_v43, %v11263_v43  ;;  %v11266_v30 = vpack.c.bf16 %v11265_v20, %v11265_v20  ;;  %v11268_v15 = vpack.c.bf16 %v11267_v46, %v11267_v46  ;;  %v11269_v23 = vld [vmem:[#allocation96_spill] sm:$0xff] }
 0x389   :  { %3501 = vst.msk [vmem:[%s9517_s4 + $0x138] sm:$0xf] %vm3422_vm1, %v11255_v54  ;;  %3502 = vst.msk [vmem:[%s9517_s4 + $0x13c] sm:$0xf] %vm3422_vm1, %v11257_v25  ;;  %v11270_v54 = vpack.c.bf16 %v11269_v23, %v11269_v23  ;;  %v11272_v25 = vpack.c.bf16 %v11091_v17, %v11091_v17  ;;  %v11273_v10 = vld [vmem:[#allocation52_spill] sm:$0xff]  ;;  %v11275_v2 = vpack.c.bf16 %v7891_v6, %v7891_v6 }
 0x38a   :  { %3503 = vst.msk [vmem:[%s9517_s4 + $0x140] sm:$0xf] %vm3422_vm1, %v11259_v12  ;;  %3504 = vst.msk [vmem:[%s9517_s4 + $0x144] sm:$0xf] %vm3422_vm1, %v11261_v4  ;;  %v11274_v12 = vpack.c.bf16 %v11273_v10, %v11273_v10  ;;  %v11276_v17 = vpack.c.bf16 %v11093_v37, %v11093_v37  ;;  %v11277_v60 = vpack.c.bf16 %v11094_v61, %v11094_v61  ;;  %v11329_v10 = vld [vmem:[#allocation27_spill] sm:$0xff] }
 0x38b   :  { %3505 = vst.msk [vmem:[%s9517_s4 + $0x148] sm:$0xf] %vm3422_vm1, %v11262_v47  ;;  %3506 = vst.msk [vmem:[%s9517_s4 + $0x14c] sm:$0xf] %vm3422_vm1, %v11264_v28  ;;  %v11278_v6 = vpack.c.bf16 %v11095_v1, %v11095_v1  ;;  %v11279_v37 = vpack.c.bf16 %v11096_v27, %v11096_v27  ;;  %v11280_v61 = vpack.c.bf16 %v7925_v34, %v7925_v34  ;;  %v11320_v28 = vld [vmem:[#allocation59_spill] sm:$0xff] }
 0x38c   :  { %3507 = vst.msk [vmem:[%s9517_s4 + $0x150] sm:$0xf] %vm3422_vm1, %v11266_v30  ;;  %3508 = vst.msk [vmem:[%s9517_s4 + $0x154] sm:$0xf] %vm3422_vm1, %v11268_v15  ;;  %v11281_v1 = vpack.c.bf16 %v7931_v8, %v7931_v8  ;;  %v11282_v27 = vpack.c.bf16 %v11097_v31, %v11097_v31  ;;  %v11283_v34 = vpack.c.bf16 %v7945_v42, %v7945_v42  ;;  %v11322_v30 = vld [vmem:[#allocation142_spill] sm:$0xff]  ;;  %v11324_v15 = vld [vmem:[#allocation143_spill] sm:$0xff] }
 0x38d   :  { %3509 = vst.msk [vmem:[%s9517_s4 + $0x158] sm:$0xf] %vm3422_vm1, %v11270_v54  ;;  %3510 = vst.msk [vmem:[%s9517_s4 + $0x15c] sm:$0xf] %vm3422_vm1, %v11271_v3  ;;  %v11284_v8 = vpack.c.bf16 %v7951_v36, %v7951_v36  ;;  %v11285_v31 = vpack.c.bf16 %v7957_v29, %v7957_v29  ;;  %v11286_v42 = vpack.c.bf16 %v7963_v41, %v7963_v41  ;;  %v11326_v54 = vld [vmem:[#allocation113_spill] sm:$0xff] }
 0x38e   :  { %3511 = vst.msk [vmem:[%s9517_s4 + $0x160] sm:$0xf] %vm3422_vm1, %v11272_v25  ;;  %3512 = vst.msk [vmem:[%s9517_s4 + $0x164] sm:$0xf] %vm3422_vm1, %v11274_v12  ;;  %v11287_v36 = vpack.c.bf16 %v7969_v21, %v7969_v21  ;;  %v11288_v29 = vpack.c.bf16 %v7975_v33, %v7975_v33  ;;  %v11289_v41 = vpack.c.bf16 %v7981_v44, %v7981_v44 }
 0x38f   :  { %3513 = vst.msk [vmem:[%s9517_s4 + $0x168] sm:$0xf] %vm3422_vm1, %v11275_v2  ;;  %3514 = vst.msk [vmem:[%s9517_s4 + $0x16c] sm:$0xf] %vm3422_vm1, %v11276_v17  ;;  %v11290_v21 = vpack.c.bf16 %v7987_v14, %v7987_v14  ;;  %v11291_v33 = vpack.c.bf16 %v7993_v0, %v7993_v0  ;;  %v11292_v44 = vpack.c.bf16 %v7999_v53, %v7999_v53 }
 0x390   :  { %3515 = vst.msk [vmem:[%s9517_s4 + $0x170] sm:$0xf] %vm3422_vm1, %v11277_v60  ;;  %3516 = vst.msk [vmem:[%s9517_s4 + $0x174] sm:$0xf] %vm3422_vm1, %v11278_v6  ;;  %v11293_v14 = vpack.c.bf16 %v8005_v45, %v8005_v45  ;;  %v11294_v0 = vpack.c.bf16 %v8011_v55, %v8011_v55  ;;  %v11295_v53 = vpack.c.bf16 %v8017_v9, %v8017_v9 }
 0x391   :  { %3517 = vst.msk [vmem:[%s9517_s4 + $0x178] sm:$0xf] %vm3422_vm1, %v11279_v37  ;;  %3518 = vst.msk [vmem:[%s9517_s4 + $0x17c] sm:$0xf] %vm3422_vm1, %v11280_v61  ;;  %v11296_v45 = vpack.c.bf16 %v8023_v49, %v8023_v49  ;;  %v11297_v55 = vpack.c.bf16 %v8029_v58, %v8029_v58  ;;  %v11298_v9 = vpack.c.bf16 %v8035_v16, %v8035_v16 }
 0x392   :  { %3519 = vst.msk [vmem:[%s9517_s4 + $0x180] sm:$0xf] %vm3422_vm1, %v11281_v1  ;;  %3520 = vst.msk [vmem:[%s9517_s4 + $0x184] sm:$0xf] %vm3422_vm1, %v11282_v27  ;;  %v11299_v49 = vpack.c.bf16 %v8041_v19, %v8041_v19  ;;  %v11300_v58 = vpack.c.bf16 %v8047_v11, %v8047_v11  ;;  %v11301_v16 = vpack.c.bf16 %v8053_v38, %v8053_v38 }
 0x393   :  { %3521 = vst.msk [vmem:[%s9517_s4 + $0x188] sm:$0xf] %vm3422_vm1, %v11283_v34  ;;  %3522 = vst.msk [vmem:[%s9517_s4 + $0x18c] sm:$0xf] %vm3422_vm1, %v11284_v8  ;;  %v11302_v19 = vpack.c.bf16 %v8059_v63, %v8059_v63  ;;  %v11303_v11 = vpack.c.bf16 %v8065_v26, %v8065_v26  ;;  %v11304_v38 = vpack.c.bf16 %v8071_v24, %v8071_v24 }
 0x394   :  { %3523 = vst.msk [vmem:[%s9517_s4 + $0x190] sm:$0xf] %vm3422_vm1, %v11285_v31  ;;  %3524 = vst.msk [vmem:[%s9517_s4 + $0x194] sm:$0xf] %vm3422_vm1, %v11286_v42  ;;  %v11305_v63 = vpack.c.bf16 %v8077_v5, %v8077_v5  ;;  %v11306_v26 = vpack.c.bf16 %v8083_v52, %v8083_v52  ;;  %v11307_v24 = vpack.c.bf16 %v8089_v35, %v8089_v35 }
 0x395   :  { %3525 = vst.msk [vmem:[%s9517_s4 + $0x198] sm:$0xf] %vm3422_vm1, %v11287_v36  ;;  %3526 = vst.msk [vmem:[%s9517_s4 + $0x19c] sm:$0xf] %vm3422_vm1, %v11288_v29  ;;  %v11308_v5 = vpack.c.bf16 %v8095_v56, %v8095_v56  ;;  %v11309_v52 = vpack.c.bf16 %v8101_v57, %v8101_v57  ;;  %v11310_v35 = vpack.c.bf16 %v8107_v7, %v8107_v7 }
 0x396   :  { %3527 = vst.msk [vmem:[%s9517_s4 + $0x1a0] sm:$0xf] %vm3422_vm1, %v11289_v41  ;;  %3528 = vst.msk [vmem:[%s9517_s4 + $0x1a4] sm:$0xf] %vm3422_vm1, %v11290_v21  ;;  %v11311_v56 = vpack.c.bf16 %v8113_v40, %v8113_v40  ;;  %v11312_v57 = vpack.c.bf16 %v8119_v18, %v8119_v18  ;;  %v11313_v7 = vpack.c.bf16 %v8125_v51, %v8125_v51  ;;  %v11314_v40 = vld [vmem:[#allocation18_spill] sm:$0xff]  ;;  %v11316_v18 = vld [vmem:[#allocation20_spill] sm:$0xff] }
 0x397   :  { %3529 = vst.msk [vmem:[%s9517_s4 + $0x1a8] sm:$0xf] %vm3422_vm1, %v11291_v33  ;;  %3530 = vst.msk [vmem:[%s9517_s4 + $0x1ac] sm:$0xf] %vm3422_vm1, %v11292_v44  ;;  %v11315_v4 = vpack.c.bf16 %v11314_v40, %v11314_v40  ;;  %v11317_v47 = vpack.c.bf16 %v11316_v18, %v11316_v18  ;;  %v11318_v51 = vld [vmem:[#allocation56_spill] sm:$0xff]  ;;  %v11321_v20 = vpack.c.bf16 %v11320_v28, %v11320_v28 }
 0x398   :  { %3531 = vst.msk [vmem:[%s9517_s4 + $0x1b0] sm:$0xf] %vm3422_vm1, %v11293_v14  ;;  %3532 = vst.msk [vmem:[%s9517_s4 + $0x1b4] sm:$0xf] %vm3422_vm1, %v11294_v0  ;;  %v11319_v43 = vpack.c.bf16 %v11318_v51, %v11318_v51  ;;  %v11323_v46 = vpack.c.bf16 %v11322_v30, %v11322_v30  ;;  %v11325_v23 = vpack.c.bf16 %v11324_v15, %v11324_v15 }
 0x399   :  { %3533 = vst.msk [vmem:[%s9517_s4 + $0x1b8] sm:$0xf] %vm3422_vm1, %v11295_v53  ;;  %3534 = vst.msk [vmem:[%s9517_s4 + $0x1bc] sm:$0xf] %vm3422_vm1, %v11296_v45  ;;  %v11327_v3 = vpack.c.bf16 %v11326_v54, %v11326_v54  ;;  %v11328_v25 = vpack.c.bf16 %v8173_v59, %v8173_v59  ;;  %v11330_v12 = vpack.c.bf16 %v11329_v10, %v11329_v10 }
 0x39a   :  { %3535 = vst.msk [vmem:[%s9517_s4 + $0x1c0] sm:$0xf] %vm3422_vm1, %v11297_v55  ;;  %3536 = vst.msk [vmem:[%s9517_s4 + $0x1c4] sm:$0xf] %vm3422_vm1, %v11298_v9  ;;  %v11331_v59 = vpack.c.bf16 %v11100_v32, %v11100_v32  ;;  %v11332_v2 = vpack.c.bf16 %v11101_v22, %v11101_v22  ;;  %v11334_v32 = vpack.c.bf16 %v11103_v62, %v11103_v62 }
 0x39b   :  { %3537 = vst.msk [vmem:[%s9517_s4 + $0x1c8] sm:$0xf] %vm3422_vm1, %v11299_v49  ;;  %3538 = vst.msk [vmem:[%s9517_s4 + $0x1cc] sm:$0xf] %vm3422_vm1, %v11300_v58  ;;  %v11335_v22 = vpack.c.bf16 %v11104_v13, %v11104_v13 }
 0x39c   :  { %3539 = vst.msk [vmem:[%s9517_s4 + $0x1d0] sm:$0xf] %vm3422_vm1, %v11301_v16  ;;  %3540 = vst.msk [vmem:[%s9517_s4 + $0x1d4] sm:$0xf] %vm3422_vm1, %v11302_v19 }
 0x39d   :  { %3541 = vst.msk [vmem:[%s9517_s4 + $0x1d8] sm:$0xf] %vm3422_vm1, %v11303_v11  ;;  %3542 = vst.msk [vmem:[%s9517_s4 + $0x1dc] sm:$0xf] %vm3422_vm1, %v11304_v38 }
 0x39e   :  { %3543 = vst.msk [vmem:[%s9517_s4 + $0x1e0] sm:$0xf] %vm3422_vm1, %v11305_v63  ;;  %3544 = vst.msk [vmem:[%s9517_s4 + $0x1e4] sm:$0xf] %vm3422_vm1, %v11306_v26 }
 0x39f   :  { %3545 = vst.msk [vmem:[%s9517_s4 + $0x1e8] sm:$0xf] %vm3422_vm1, %v11307_v24  ;;  %3546 = vst.msk [vmem:[%s9517_s4 + $0x1ec] sm:$0xf] %vm3422_vm1, %v11308_v5 }
 0x3a0   :  { %3547 = vst.msk [vmem:[%s9517_s4 + $0x1f0] sm:$0xf] %vm3422_vm1, %v11309_v52  ;;  %3548 = vst.msk [vmem:[%s9517_s4 + $0x1f4] sm:$0xf] %vm3422_vm1, %v11310_v35 }
 0x3a1   :  { %3549 = vst.msk [vmem:[%s9517_s4 + $0x1f8] sm:$0xf] %vm3422_vm1, %v11311_v56  ;;  %3550 = vst.msk [vmem:[%s9517_s4 + $0x1fc] sm:$0xf] %vm3422_vm1, %v11312_v57 }
 0x3a2   :  { %3551 = vst.msk [vmem:[%s9517_s4 + $0x200] sm:$0xf] %vm3422_vm1, %v11313_v7  ;;  %3552 = vst.msk [vmem:[%s9517_s4 + $0x204] sm:$0xf] %vm3422_vm1, %v11315_v4 }
 0x3a3   :  { %3553 = vst.msk [vmem:[%s9517_s4 + $0x208] sm:$0xf] %vm3422_vm1, %v11317_v47  ;;  %3554 = vst.msk [vmem:[%s9517_s4 + $0x20c] sm:$0xf] %vm3422_vm1, %v11319_v43 }
 0x3a4   :  { %3555 = vst.msk [vmem:[%s9517_s4 + $0x210] sm:$0xf] %vm3422_vm1, %v11321_v20  ;;  %3556 = vst.msk [vmem:[%s9517_s4 + $0x214] sm:$0xf] %vm3422_vm1, %v11323_v46 }
 0x3a5   :  { %3557 = vst.msk [vmem:[%s9517_s4 + $0x218] sm:$0xf] %vm3422_vm1, %v11325_v23  ;;  %3558 = vst.msk [vmem:[%s9517_s4 + $0x21c] sm:$0xf] %vm3422_vm1, %v11327_v3 }
 0x3a6   :  { %3559 = vst.msk [vmem:[%s9517_s4 + $0x220] sm:$0xf] %vm3422_vm1, %v11328_v25  ;;  %3560 = vst.msk [vmem:[%s9517_s4 + $0x224] sm:$0xf] %vm3422_vm1, %v11330_v12 }
 0x3a7   :  { %3562 = vst.msk [vmem:[%s9517_s4 + $0x22c] sm:$0xf] %vm3422_vm1, %v11331_v59  ;;  %3563 = vst.msk [vmem:[%s9517_s4 + $0x230] sm:$0xf] %vm3422_vm1, %v11332_v2 }
 0x3a8   :  { %3565 = vst.msk [vmem:[%s9517_s4 + $0x238] sm:$0xf] %vm3422_vm1, %v11334_v32  ;;  %3566 = vst.msk [vmem:[%s9517_s4 + $0x23c] sm:$0xf] %vm3422_vm1, %v11335_v22 }

// kernel: discriminator_forward.6
= control target key start
LH: loop header
LB: loop body
LE: loop exit
PB: predicated region body
PF: predicated region fallthrough
CT: control target
= control target key end

     0   :  { %v3241_v0 = vmov 0   ;;  %s4507_s1 = inlined_call_operand.vmem [shape: bf16[1024,128], index: 1, kind: input, shape index: {}]   ;;  %s4508_s0 = inlined_call_operand.vmem [shape: bf16[288,1024], index: 0, kind: input, shape index: {}]   ;;  %s4509_s2 = inlined_call_operand.vmem [shape: f32[1,128], index: 2, kind: input, shape index: {}]   ;;  %s4510_s3 = inlined_call_operand.vmem [shape: f32[1,128], index: 3, kind: input, shape index: {}]   ;;  %s4511_s4 = inlined_call_operand.vmem [shape: bf16[288,128], index: 4, kind: output, shape index: {}]  }
   0x1   :  { %1394 = vmatprep.subr.bf16.mxu1 %v3241_v0  ;;  %1748 = vmatprep.subr.bf16.mxu0 %v3241_v0  ;;  %v3175_v1 = vld [vmem:[%s4507_s1] sm:$0xff]   ;;  %v3177_v3 = vld [vmem:[%s4507_s1 + $0x8] sm:$0xff]   ;;  %v3179_v5 = vld [vmem:[%s4507_s1 + $0x10] sm:$0xff]  }
   0x2   :  { %v3176_v2 = vld [vmem:[%s4507_s1 + $0x100] sm:$0xff]   ;;  %1395 = vmatpush1.bf16.msra.mxu1 %v3175_v1  ;;  %v3178_v4 = vld [vmem:[%s4507_s1 + $0x108] sm:$0xff]   ;;  %v3180_v6 = vld [vmem:[%s4507_s1 + $0x110] sm:$0xff]  }
   0x3   :  { %1749 = vmatpush1.bf16.msra.mxu0 %v3176_v2  ;;  %1396 = vmatprep.subr.bf16.mxu1 %v3241_v0  ;;  %v3181_v7 = vld [vmem:[%s4507_s1 + $0x18] sm:$0xff]   ;;  %v3183_v9 = vld [vmem:[%s4507_s1 + $0x20] sm:$0xff]   ;;  %v3185_v11 = vld [vmem:[%s4507_s1 + $0x28] sm:$0xff]  }
   0x4   :  { %1750 = vmatprep.subr.bf16.mxu0 %v3241_v0  ;;  %v3182_v8 = vld [vmem:[%s4507_s1 + $0x118] sm:$0xff]   ;;  %v3184_v10 = vld [vmem:[%s4507_s1 + $0x120] sm:$0xff]   ;;  %v3186_v12 = vld [vmem:[%s4507_s1 + $0x128] sm:$0xff]  }
   0x5   :  { %v3187_v13 = vld [vmem:[%s4507_s1 + $0x30] sm:$0xff]   ;;  %v3189_v15 = vld [vmem:[%s4507_s1 + $0x38] sm:$0xff]   ;;  %v3191_v17 = vld [vmem:[%s4507_s1 + $0x40] sm:$0xff]  }
   0x6   :  { %1397 = vmatpush1.bf16.msra.mxu1 %v3177_v3  ;;  %v3188_v14 = vld [vmem:[%s4507_s1 + $0x130] sm:$0xff]   ;;  %v3190_v16 = vld [vmem:[%s4507_s1 + $0x138] sm:$0xff]   ;;  %v3192_v18 = vld [vmem:[%s4507_s1 + $0x140] sm:$0xff]  }
   0x7   :  { %1751 = vmatpush1.bf16.msra.mxu0 %v3178_v4  ;;  %1398 = vmatprep.subr.bf16.mxu1 %v3241_v0  ;;  %v3342_v19 = vld [vmem:[%s4508_s0] sm:$0xff]  ;;  %v3352_v21 = vld [vmem:[%s4508_s0 + $0x10] sm:$0xff]  ;;  %v3193_v24 = vld [vmem:[%s4507_s1 + $0x48] sm:$0xff]  }
   0x8   :  { %1752 = vmatprep.subr.bf16.mxu0 %v3241_v0  ;;  %v3347_v20 = vld [vmem:[%s4508_s0 + $0x20] sm:$0xff]  ;;  %v24_v23 = vld [vmem:[%s4508_s0 + $0x30] sm:$0xff]  ;;  %v3194_v26 = vld [vmem:[%s4507_s1 + $0x148] sm:$0xff]  }
   0x9   :  { %v2608_v22 = vcombine.high %v3342_v19, %v3347_v20  ;;  %v2612_v25 = vcombine.high %v3352_v21, %v24_v23  ;;  %v3195_v27 = vld [vmem:[%s4507_s1 + $0x50] sm:$0xff]   ;;  %v3197_v29 = vld [vmem:[%s4507_s1 + $0x58] sm:$0xff]   ;;  %v3199_v31 = vld [vmem:[%s4507_s1 + $0x60] sm:$0xff]   ;;  %v2607_v42 = vcombine.low %v3342_v19, %v3347_v20  ;;  %v2611_v44 = vcombine.low %v3352_v21, %v24_v23 }
   0xa   :  { %1399 = vmatpush1.bf16.msra.mxu1 %v3179_v5  ;;  %v3196_v28 = vld [vmem:[%s4507_s1 + $0x150] sm:$0xff]   ;;  %v3198_v30 = vld [vmem:[%s4507_s1 + $0x158] sm:$0xff]   ;;  %v3200_v32 = vld [vmem:[%s4507_s1 + $0x160] sm:$0xff]  }
   0xb   :  { %1753 = vmatpush1.bf16.msra.mxu0 %v3180_v6  ;;  %1400 = vmatprep.subr.bf16.mxu1 %v3241_v0  ;;  %v3201_v33 = vld [vmem:[%s4507_s1 + $0x68] sm:$0xff]   ;;  %v3203_v35 = vld [vmem:[%s4507_s1 + $0x70] sm:$0xff]   ;;  %v3205_v37 = vld [vmem:[%s4507_s1 + $0x78] sm:$0xff]  }
   0xc   :  { %1754 = vmatprep.subr.bf16.mxu0 %v3241_v0  ;;  %1426 = vmatprep.mubr.bf16.mxu1 %v2608_v22  ;;  %v3202_v34 = vld [vmem:[%s4507_s1 + $0x168] sm:$0xff]   ;;  %v3204_v36 = vld [vmem:[%s4507_s1 + $0x170] sm:$0xff]   ;;  %v3206_v38 = vld [vmem:[%s4507_s1 + $0x178] sm:$0xff]  }
   0xd   :  { %1780 = vmatprep.mubr.bf16.mxu0 %v2612_v25  ;;  %v26_v39 = vld [vmem:[%s4508_s0 + $0x40] sm:$0xff]  ;;  %v28_v41 = vld [vmem:[%s4508_s0 + $0x50] sm:$0xff]  ;;  %v3209_v49 = vld [vmem:[%s4507_s1 + $0x88] sm:$0xff]  }
   0xe   :  { %1401 = vmatpush1.bf16.msra.mxu1 %v3181_v7  ;;  %v30_v40 = vld [vmem:[%s4508_s0 + $0x60] sm:$0xff]  ;;  %v32_v43 = vld [vmem:[%s4508_s0 + $0x70] sm:$0xff]  ;;  %v3210_v50 = vld [vmem:[%s4507_s1 + $0x188] sm:$0xff]  }
   0xf   :  { %1755 = vmatpush1.bf16.msra.mxu0 %v3182_v8  ;;  %1402 = vmatprep.subr.bf16.mxu1 %v3241_v0  ;;  %v3207_v45 = vld [vmem:[%s4507_s1 + $0x80] sm:$0xff]   ;;  %v2616_v47 = vcombine.high %v26_v39, %v30_v40  ;;  %v2620_v48 = vcombine.high %v28_v41, %v32_v43  ;;  %v36_v53 = vld [vmem:[%s4508_s0 + $0x90] sm:$0xff]  ;;  %v2615_v55 = vcombine.low %v26_v39, %v30_v40  ;;  %v3213_v1 = vld [vmem:[%s4507_s1 + $0x98] sm:$0xff]  }
  0x10   :  { %1756 = vmatprep.subr.bf16.mxu0 %v3241_v0  ;;  %v3208_v46 = vld [vmem:[%s4507_s1 + $0x180] sm:$0xff]   ;;  %v40_v54 = vld [vmem:[%s4508_s0 + $0xb0] sm:$0xff]  ;;  %v2619_v56 = vcombine.low %v28_v41, %v32_v43  ;;  %v3214_v3 = vld [vmem:[%s4507_s1 + $0x198] sm:$0xff]  }
  0x11   :  { %v34_v51 = vld [vmem:[%s4508_s0 + $0x80] sm:$0xff]  ;;  %v2628_v58 = vcombine.high %v36_v53, %v40_v54  ;;  %v3211_v59 = vld [vmem:[%s4507_s1 + $0x90] sm:$0xff]   ;;  %v2627_v5 = vcombine.low %v36_v53, %v40_v54  ;;  %v3226_v39 = vld [vmem:[%s4507_s1 + $0x1c8] sm:$0xff]  }
  0x12   :  { %1403 = vmatpush1.bf16.msra.mxu1 %v3183_v9  ;;  %v38_v52 = vld [vmem:[%s4508_s0 + $0xa0] sm:$0xff]  ;;  %v3212_v60 = vld [vmem:[%s4507_s1 + $0x190] sm:$0xff]  }
  0x13   :  { %1757 = vmatpush1.bf16.msra.mxu0 %v3184_v10  ;;  %1404 = vmatprep.subr.bf16.mxu1 %v3241_v0  ;;  %v2624_v57 = vcombine.high %v34_v51, %v38_v52  ;;  %v42_v61 = vld [vmem:[%s4508_s0 + $0xc0] sm:$0xff]  ;;  %v44_v63 = vld [vmem:[%s4508_s0 + $0xd0] sm:$0xff]  ;;  %v2623_v4 = vcombine.low %v34_v51, %v38_v52  ;;  %v3230_v51 = vld [vmem:[%s4507_s1 + $0x1d8] sm:$0xff]  }
  0x14   :  { %1758 = vmatprep.subr.bf16.mxu0 %v3241_v0  ;;  %v46_v62 = vld [vmem:[%s4508_s0 + $0xe0] sm:$0xff]  ;;  %v48_v2 = vld [vmem:[%s4508_s0 + $0xf0] sm:$0xff] }
  0x15   :  { %v2632_v6 = vcombine.high %v42_v61, %v46_v62  ;;  %v2636_v7 = vcombine.high %v44_v63, %v48_v2  ;;  %v3215_v8 = vld [vmem:[%s4507_s1 + $0xa0] sm:$0xff]   ;;  %v3219_v20 = vld [vmem:[%s4507_s1 + $0xb0] sm:$0xff]  }
  0x16   :  { %1405 = vmatpush1.bf16.msra.mxu1 %v3185_v11  ;;  %v3216_v9 = vld [vmem:[%s4507_s1 + $0x1a0] sm:$0xff]   ;;  %v3220_v21 = vld [vmem:[%s4507_s1 + $0x1b0] sm:$0xff]  }
  0x17   :  { %1759 = vmatpush1.bf16.msra.mxu0 %v3186_v12  ;;  %1406 = vmatprep.subr.bf16.mxu1 %v3241_v0  ;;  %v50_v10 = vld [vmem:[%s4508_s0 + $0x100] sm:$0xff]  ;;  %v52_v12 = vld [vmem:[%s4508_s0 + $0x110] sm:$0xff] }
  0x18   :  { %1760 = vmatprep.subr.bf16.mxu0 %v3241_v0  ;;  %v54_v11 = vld [vmem:[%s4508_s0 + $0x120] sm:$0xff]  ;;  %v60_v25 = vld [vmem:[%s4508_s0 + $0x150] sm:$0xff] }
  0x19   :  { %v58_v22 = vld [vmem:[%s4508_s0 + $0x140] sm:$0xff] }
  0x1a   :  { %1407 = vmatpush1.bf16.msra.mxu1 %v3187_v13  ;;  %v3217_v13 = vld [vmem:[%s4507_s1 + $0xa8] sm:$0xff]   ;;  %v62_v23 = vld [vmem:[%s4508_s0 + $0x160] sm:$0xff] }
  0x1b   :  { %1761 = vmatpush1.bf16.msra.mxu0 %v3188_v14  ;;  %1408 = vmatprep.subr.bf16.mxu1 %v3241_v0  ;;  %v56_v14 = vld [vmem:[%s4508_s0 + $0x130] sm:$0xff]  ;;  %v2647_v40 = vcombine.low %v58_v22, %v62_v23 }
  0x1c   :  { %1762 = vmatprep.subr.bf16.mxu0 %v3241_v0  ;;  %v2644_v19 = vcombine.high %v52_v12, %v56_v14 }
  0x1e   :  { %1409 = vmatpush1.bf16.msra.mxu1 %v3189_v15  ;;  %v3218_v15 = vld [vmem:[%s4507_s1 + $0x1a8] sm:$0xff]  }
  0x1f   :  { %1763 = vmatpush1.bf16.msra.mxu0 %v3190_v16  ;;  %1410 = vmatprep.subr.bf16.mxu1 %v3241_v0  ;;  %v2631_v16 = vcombine.low %v42_v61, %v46_v62  ;;  %v84_v61 = vld [vmem:[%s4508_s0 + $0x210] sm:$0xff] }
  0x20   :  { %1764 = vmatprep.subr.bf16.mxu0 %v3241_v0  ;;  %v88_v62 = vld [vmem:[%s4508_s0 + $0x230] sm:$0xff] }
  0x22   :  { %1411 = vmatpush1.bf16.msra.mxu1 %v3191_v17  ;;  %v2635_v17 = vcombine.low %v44_v63, %v48_v2  ;;  %v3234_v63 = vld [vmem:[%s4507_s1 + $0x1e8] sm:$0xff]  }
  0x23   :  { %1765 = vmatpush1.bf16.msra.mxu0 %v3192_v18  ;;  %1412 = vmatprep.subr.bf16.mxu1 %v3241_v0  ;;  %v2640_v18 = vcombine.high %v50_v10, %v54_v11 }
  0x24   :  { %1766 = vmatprep.subr.bf16.mxu0 %v3241_v0 }
  0x26   :  { %1413 = vmatpush1.bf16.msra.mxu1 %v3193_v24  ;;  %v3221_v24 = vld [vmem:[%s4507_s1 + $0xb8] sm:$0xff]  }
  0x27   :  { %1767 = vmatpush1.bf16.msra.mxu0 %v3194_v26  ;;  %1414 = vmatprep.subr.bf16.mxu1 %v3241_v0  ;;  %v64_v26 = vld [vmem:[%s4508_s0 + $0x170] sm:$0xff] }
  0x28   :  { %1768 = vmatprep.subr.bf16.mxu0 %v3241_v0  ;;  %v2651_v41 = vcombine.low %v60_v25, %v64_v26 }
  0x2a   :  { %1415 = vmatpush1.bf16.msra.mxu1 %v3195_v27  ;;  %v3222_v27 = vld [vmem:[%s4507_s1 + $0x1b8] sm:$0xff]  }
  0x2b   :  { %1769 = vmatpush1.bf16.msra.mxu0 %v3196_v28  ;;  %1416 = vmatprep.subr.bf16.mxu1 %v3241_v0  ;;  %v2639_v28 = vcombine.low %v50_v10, %v54_v11  ;;  %v92_v10 = vld [vmem:[%s4508_s0 + $0x250] sm:$0xff] }
  0x2c   :  { %1770 = vmatprep.subr.bf16.mxu0 %v3241_v0  ;;  %v96_v11 = vld [vmem:[%s4508_s0 + $0x270] sm:$0xff] }
  0x2e   :  { %1417 = vmatpush1.bf16.msra.mxu1 %v3197_v29  ;;  %v2643_v29 = vcombine.low %v52_v12, %v56_v14  ;;  %v3238_v12 = vld [vmem:[%s4507_s1 + $0x1f8] sm:$0xff]   ;;  %v2675_v14 = vcombine.low %v84_v61, %v88_v62 }
  0x2f   :  { %1771 = vmatpush1.bf16.msra.mxu0 %v3198_v30  ;;  %1418 = vmatprep.subr.bf16.mxu1 %v3241_v0  ;;  %v2648_v30 = vcombine.high %v58_v22, %v62_v23 }
  0x30   :  { %1772 = vmatprep.subr.bf16.mxu0 %v3241_v0 }
  0x32   :  { %1419 = vmatpush1.bf16.msra.mxu1 %v3199_v31  ;;  %v2652_v31 = vcombine.high %v60_v25, %v64_v26  ;;  %v110_v25 = vld [vmem:[%s4508_s0 + $0x2e0] sm:$0xff]  ;;  %v108_v26 = vld [vmem:[%s4508_s0 + $0x2d0] sm:$0xff] }
  0x33   :  { %1773 = vmatpush1.bf16.msra.mxu0 %v3200_v32  ;;  %1420 = vmatprep.subr.bf16.mxu1 %v3241_v0  ;;  %v3223_v32 = vld [vmem:[%s4507_s1 + $0xc0] sm:$0xff]  }
  0x34   :  { %1774 = vmatprep.subr.bf16.mxu0 %v3241_v0 }
  0x36   :  { %1421 = vmatpush1.bf16.msra.mxu1 %v3201_v33  ;;  %v3224_v33 = vld [vmem:[%s4507_s1 + $0x1c0] sm:$0xff]  }
  0x37   :  { %1775 = vmatpush1.bf16.msra.mxu0 %v3202_v34  ;;  %1422 = vmatprep.subr.bf16.mxu1 %v3241_v0  ;;  %v66_v34 = vld [vmem:[%s4508_s0 + $0x180] sm:$0xff] }
  0x38   :  { %1776 = vmatprep.subr.bf16.mxu0 %v3241_v0 }
  0x3a   :  { %1423 = vmatpush1.bf16.msra.mxu1 %v3203_v35  ;;  %v70_v35 = vld [vmem:[%s4508_s0 + $0x1a0] sm:$0xff] }
  0x3b   :  { %1777 = vmatpush1.bf16.msra.mxu0 %v3204_v36  ;;  %1424 = vmatprep.subr.bf16.mxu1 %v3241_v0  ;;  %v3225_v36 = vld [vmem:[%s4507_s1 + $0xc8] sm:$0xff]   ;;  %v2655_v52 = vcombine.low %v66_v34, %v70_v35 }
  0x3c   :  { %1778 = vmatprep.subr.bf16.mxu0 %v3241_v0 }
  0x3e   :  { %1425 = vmatpush1.bf16.msra.mxu1 %v3205_v37  ;;  %v68_v37 = vld [vmem:[%s4508_s0 + $0x190] sm:$0xff] }
  0x3f   :  { %1779 = vmatpush1.bf16.msra.mxu0 %v3206_v38  ;;  %1571 = vmatprep.subr.bf16.mxu1 %v3241_v0  ;;  %v72_v38 = vld [vmem:[%s4508_s0 + $0x1b0] sm:$0xff] }
  0x40   :  { %1925 = vmatprep.subr.bf16.mxu0 %v3241_v0  ;;  %v2660_v43 = vcombine.high %v68_v37, %v72_v38  ;;  %v2659_v53 = vcombine.low %v68_v37, %v72_v38 }
  0x41   :  { %1427 = vmatmul.mubr.bf16.vlgmr.msra.gmra.mrb[0].mxu1 %v2607_v42  ;;  %v2656_v42 = vcombine.high %v66_v34, %v70_v35  ;;  %v116_v34 = vld [vmem:[%s4508_s0 + $0x310] sm:$0xff] }
  0x42   :  { %1781 = vmatmul.mubr.bf16.vlgmr.msra.gmra.mrb[0].mxu0 %v2611_v44  ;;  %1572 = vmatpush1.bf16.msra.mxu1 %v3207_v45  ;;  %v3227_v44 = vld [vmem:[%s4507_s1 + $0xd0] sm:$0xff]  }
  0x43   :  { %1926 = vmatpush1.bf16.msra.mxu0 %v3208_v46  ;;  %1434 = vmatprep.mubr.bf16.mxu1 %v2616_v47  ;;  %v3228_v45 = vld [vmem:[%s4507_s1 + $0x1d0] sm:$0xff]   ;;  %v74_v46 = vld [vmem:[%s4508_s0 + $0x1c0] sm:$0xff] }
  0x44   :  { %1788 = vmatprep.mubr.bf16.mxu0 %v2620_v48  ;;  %1573 = vmatprep.subr.bf16.mxu1 %v3241_v0  ;;  %v78_v47 = vld [vmem:[%s4508_s0 + $0x1e0] sm:$0xff]  ;;  %v3229_v48 = vld [vmem:[%s4507_s1 + $0xd8] sm:$0xff]   ;;  %v120_v35 = vld [vmem:[%s4508_s0 + $0x330] sm:$0xff] }
  0x45   :  { %1927 = vmatprep.subr.bf16.mxu0 %v3241_v0  ;;  %v2664_v54 = vcombine.high %v74_v46, %v78_v47 }
  0x46   :  { %1574 = vmatpush1.bf16.msra.mxu1 %v3209_v49  ;;  %v76_v49 = vld [vmem:[%s4508_s0 + $0x1d0] sm:$0xff] }
  0x47   :  { %1928 = vmatpush1.bf16.msra.mxu0 %v3210_v50  ;;  %1575 = vmatprep.subr.bf16.mxu1 %v3241_v0  ;;  %v80_v50 = vld [vmem:[%s4508_s0 + $0x1f0] sm:$0xff] }
  0x48   :  { %1929 = vmatprep.subr.bf16.mxu0 %v3241_v0  ;;  %v2667_v2 = vcombine.low %v76_v49, %v80_v50 }
  0x49   :  { %1435 = vmatmul.mubr.bf16.gmra.mrb[4].mxu1 %v2615_v55  ;;  %v2668_v55 = vcombine.high %v76_v49, %v80_v50  ;;  %v134_v49 = vld [vmem:[%s4508_s0 + $0x3a0] sm:$0xff]  ;;  %v132_v50 = vld [vmem:[%s4508_s0 + $0x390] sm:$0xff] }
  0x4a   :  { %1789 = vmatmul.mubr.bf16.gmra.mrb[4].mxu0 %v2619_v56  ;;  %1442 = vmatprep.mubr.bf16.mxu1 %v2624_v57  ;;  %v3231_v56 = vld [vmem:[%s4507_s1 + $0xe0] sm:$0xff]  }
  0x4b   :  { %1796 = vmatprep.mubr.bf16.mxu0 %v2628_v58  ;;  %1576 = vmatpush1.bf16.msra.mxu1 %v3211_v59  ;;  %v3232_v57 = vld [vmem:[%s4507_s1 + $0x1e0] sm:$0xff]  }
  0x4c   :  { %1930 = vmatpush1.bf16.msra.mxu0 %v3212_v60  ;;  %1577 = vmatprep.subr.bf16.mxu1 %v3241_v0  ;;  %v82_v58 = vld [vmem:[%s4508_s0 + $0x200] sm:$0xff]  ;;  %v3233_v60 = vld [vmem:[%s4507_s1 + $0xe8] sm:$0xff]  }
  0x4d   :  { %1931 = vmatprep.subr.bf16.mxu0 %v3241_v0  ;;  %v86_v59 = vld [vmem:[%s4508_s0 + $0x220] sm:$0xff] }
  0x4f   :  { %1578 = vmatpush1.bf16.msra.mxu1 %v3213_v1  ;;  %v2663_v1 = vcombine.low %v74_v46, %v78_v47 }
  0x50   :  { %1932 = vmatpush1.bf16.msra.mxu0 %v3214_v3  ;;  %1579 = vmatprep.subr.bf16.mxu1 %v3241_v0  ;;  %v2672_v3 = vcombine.high %v82_v58, %v86_v59 }
  0x51   :  { %1443 = vmatmul.mubr.bf16.gmra.mrb[8].mxu1 %v2623_v4  ;;  %1933 = vmatprep.subr.bf16.mxu0 %v3241_v0  ;;  %v2676_v4 = vcombine.high %v84_v61, %v88_v62 }
  0x52   :  { %1797 = vmatmul.mubr.bf16.gmra.mrb[8].mxu0 %v2627_v5  ;;  %1450 = vmatprep.mubr.bf16.mxu1 %v2632_v6  ;;  %v3235_v5 = vld [vmem:[%s4507_s1 + $0xf0] sm:$0xff]  }
  0x53   :  { %1804 = vmatprep.mubr.bf16.mxu0 %v2636_v7  ;;  %1580 = vmatpush1.bf16.msra.mxu1 %v3215_v8  ;;  %v3236_v6 = vld [vmem:[%s4507_s1 + $0x1f0] sm:$0xff]   ;;  %v90_v7 = vld [vmem:[%s4508_s0 + $0x240] sm:$0xff] }
  0x54   :  { %1934 = vmatpush1.bf16.msra.mxu0 %v3216_v9  ;;  %1581 = vmatprep.subr.bf16.mxu1 %v3241_v0  ;;  %v94_v8 = vld [vmem:[%s4508_s0 + $0x260] sm:$0xff]  ;;  %v3237_v9 = vld [vmem:[%s4507_s1 + $0xf8] sm:$0xff]  }
  0x55   :  { %1935 = vmatprep.subr.bf16.mxu0 %v3241_v0 }
  0x57   :  { %1582 = vmatpush1.bf16.msra.mxu1 %v3217_v13  ;;  %v2671_v13 = vcombine.low %v82_v58, %v86_v59  ;;  %v140_v58 = vld [vmem:[%s4508_s0 + $0x3d0] sm:$0xff] }
  0x58   :  { %1936 = vmatpush1.bf16.msra.mxu0 %v3218_v15  ;;  %1583 = vmatprep.subr.bf16.mxu1 %v3241_v0  ;;  %v2680_v15 = vcombine.high %v90_v7, %v94_v8  ;;  %v144_v59 = vld [vmem:[%s4508_s0 + $0x3f0] sm:$0xff] }
  0x59   :  { %1451 = vmatmul.mubr.bf16.gmra.mrb[12].mxu1 %v2631_v16  ;;  %1937 = vmatprep.subr.bf16.mxu0 %v3241_v0  ;;  %v2684_v16 = vcombine.high %v92_v10, %v96_v11 }
  0x5a   :  { %1805 = vmatmul.mubr.bf16.gmra.mrb[12].mxu0 %v2635_v17  ;;  %1458 = vmatprep.mubr.bf16.mxu1 %v2640_v18  ;;  %v98_v17 = vld [vmem:[%s4508_s0 + $0x280] sm:$0xff] }
  0x5b   :  { %1812 = vmatprep.mubr.bf16.mxu0 %v2644_v19  ;;  %1584 = vmatpush1.bf16.msra.mxu1 %v3219_v20  ;;  %v102_v18 = vld [vmem:[%s4508_s0 + $0x2a0] sm:$0xff]  ;;  %v104_v19 = vld [vmem:[%s4508_s0 + $0x2b0] sm:$0xff]  ;;  %v2679_v20 = vcombine.low %v90_v7, %v94_v8 }
  0x5c   :  { %1938 = vmatpush1.bf16.msra.mxu0 %v3220_v21  ;;  %1585 = vmatprep.subr.bf16.mxu1 %v3241_v0  ;;  %v2683_v21 = vcombine.low %v92_v10, %v96_v11  ;;  %v2688_v22 = vcombine.high %v98_v17, %v102_v18  ;;  %v158_v10 = vld [vmem:[%s4508_s0 + $0x460] sm:$0xff]  ;;  %v156_v11 = vld [vmem:[%s4508_s0 + $0x450] sm:$0xff] }
  0x5d   :  { %1939 = vmatprep.subr.bf16.mxu0 %v3241_v0 }
  0x5f   :  { %1586 = vmatpush1.bf16.msra.mxu1 %v3221_v24  ;;  %v106_v24 = vld [vmem:[%s4508_s0 + $0x2c0] sm:$0xff] }
  0x60   :  { %1940 = vmatpush1.bf16.msra.mxu0 %v3222_v27  ;;  %1587 = vmatprep.subr.bf16.mxu1 %v3241_v0  ;;  %v112_v27 = vld [vmem:[%s4508_s0 + $0x2f0] sm:$0xff] }
  0x61   :  { %1459 = vmatmul.mubr.bf16.gmra.mrb[16].mxu1 %v2639_v28  ;;  %1941 = vmatprep.subr.bf16.mxu0 %v3241_v0  ;;  %v2687_v28 = vcombine.low %v98_v17, %v102_v18  ;;  %v2699_v37 = vcombine.low %v108_v26, %v112_v27  ;;  %v19_v17 = vld [vmem:[%s4508_s0 + $0x8] sm:$0xff] }
  0x62   :  { %1813 = vmatmul.mubr.bf16.gmra.mrb[16].mxu0 %v2643_v29  ;;  %1466 = vmatprep.mubr.bf16.mxu1 %v2648_v30  ;;  %v2696_v30 = vcombine.high %v106_v24, %v110_v25  ;;  %v23_v18 = vld [vmem:[%s4508_s0 + $0x28] sm:$0xff] }
  0x63   :  { %1820 = vmatprep.mubr.bf16.mxu0 %v2652_v31  ;;  %1588 = vmatpush1.bf16.msra.mxu1 %v3223_v32  ;;  %v2700_v31 = vcombine.high %v108_v26, %v112_v27  ;;  %v114_v32 = vld [vmem:[%s4508_s0 + $0x300] sm:$0xff]  ;;  %v29_v26 = vld [vmem:[%s4508_s0 + $0x58] sm:$0xff] }
  0x64   :  { %1942 = vmatpush1.bf16.msra.mxu0 %v3224_v33  ;;  %1589 = vmatprep.subr.bf16.mxu1 %v3241_v0  ;;  %v118_v33 = vld [vmem:[%s4508_s0 + $0x320] sm:$0xff]  ;;  %v33_v27 = vld [vmem:[%s4508_s0 + $0x78] sm:$0xff] }
  0x65   :  { %1943 = vmatprep.subr.bf16.mxu0 %v3241_v0  ;;  %v2704_v38 = vcombine.high %v114_v32, %v118_v33 }
  0x67   :  { %1590 = vmatpush1.bf16.msra.mxu1 %v3225_v36  ;;  %v2695_v36 = vcombine.low %v106_v24, %v110_v25  ;;  %v27_v24 = vld [vmem:[%s4508_s0 + $0x48] sm:$0xff] }
  0x68   :  { %1944 = vmatpush1.bf16.msra.mxu0 %v3226_v39  ;;  %1591 = vmatprep.subr.bf16.mxu1 %v3241_v0  ;;  %v2708_v39 = vcombine.high %v116_v34, %v120_v35  ;;  %v31_v25 = vld [vmem:[%s4508_s0 + $0x68] sm:$0xff] }
  0x69   :  { %1467 = vmatmul.mubr.bf16.gmra.mrb[20].mxu1 %v2647_v40  ;;  %1945 = vmatprep.subr.bf16.mxu0 %v3241_v0  ;;  %v122_v40 = vld [vmem:[%s4508_s0 + $0x340] sm:$0xff] }
  0x6a   :  { %1821 = vmatmul.mubr.bf16.gmra.mrb[20].mxu0 %v2651_v41  ;;  %1474 = vmatprep.mubr.bf16.mxu1 %v2656_v42  ;;  %v126_v41 = vld [vmem:[%s4508_s0 + $0x360] sm:$0xff]  ;;  %v124_v42 = vld [vmem:[%s4508_s0 + $0x350] sm:$0xff] }
  0x6b   :  { %1828 = vmatprep.mubr.bf16.mxu0 %v2660_v43  ;;  %1592 = vmatpush1.bf16.msra.mxu1 %v3227_v44  ;;  %v128_v43 = vld [vmem:[%s4508_s0 + $0x370] sm:$0xff]  ;;  %v2703_v44 = vcombine.low %v114_v32, %v118_v33  ;;  %v2712_v46 = vcombine.high %v122_v40, %v126_v41  ;;  %v35_v32 = vld [vmem:[%s4508_s0 + $0x88] sm:$0xff] }
  0x6c   :  { %1946 = vmatpush1.bf16.msra.mxu0 %v3228_v45  ;;  %1593 = vmatprep.subr.bf16.mxu1 %v3241_v0  ;;  %v2707_v45 = vcombine.low %v116_v34, %v120_v35  ;;  %v2716_v47 = vcombine.high %v124_v42, %v128_v43  ;;  %v39_v33 = vld [vmem:[%s4508_s0 + $0xa8] sm:$0xff]  ;;  %v37_v34 = vld [vmem:[%s4508_s0 + $0x98] sm:$0xff] }
  0x6d   :  { %1947 = vmatprep.subr.bf16.mxu0 %v3241_v0  ;;  %v41_v35 = vld [vmem:[%s4508_s0 + $0xb8] sm:$0xff] }
  0x6f   :  { %1594 = vmatpush1.bf16.msra.mxu1 %v3229_v48  ;;  %v130_v48 = vld [vmem:[%s4508_s0 + $0x380] sm:$0xff] }
  0x70   :  { %1948 = vmatpush1.bf16.msra.mxu0 %v3230_v51  ;;  %1595 = vmatprep.subr.bf16.mxu1 %v3241_v0  ;;  %v136_v51 = vld [vmem:[%s4508_s0 + $0x3b0] sm:$0xff] }
  0x71   :  { %1475 = vmatmul.mubr.bf16.gmra.mrb[24].mxu1 %v2655_v52  ;;  %1949 = vmatprep.subr.bf16.mxu0 %v3241_v0  ;;  %v2711_v52 = vcombine.low %v122_v40, %v126_v41  ;;  %v2723_v61 = vcombine.low %v132_v50, %v136_v51  ;;  %v43_v40 = vld [vmem:[%s4508_s0 + $0xc8] sm:$0xff] }
  0x72   :  { %1829 = vmatmul.mubr.bf16.gmra.mrb[24].mxu0 %v2659_v53  ;;  %1482 = vmatprep.mubr.bf16.mxu1 %v2664_v54  ;;  %v2715_v53 = vcombine.low %v124_v42, %v128_v43  ;;  %v2720_v54 = vcombine.high %v130_v48, %v134_v49  ;;  %v47_v41 = vld [vmem:[%s4508_s0 + $0xe8] sm:$0xff]  ;;  %v45_v42 = vld [vmem:[%s4508_s0 + $0xd8] sm:$0xff] }
  0x73   :  { %1836 = vmatprep.mubr.bf16.mxu0 %v2668_v55  ;;  %1596 = vmatpush1.bf16.msra.mxu1 %v3231_v56  ;;  %v2724_v55 = vcombine.high %v132_v50, %v136_v51  ;;  %v138_v56 = vld [vmem:[%s4508_s0 + $0x3c0] sm:$0xff]  ;;  %v49_v43 = vld [vmem:[%s4508_s0 + $0xf8] sm:$0xff] }
  0x74   :  { %1950 = vmatpush1.bf16.msra.mxu0 %v3232_v57  ;;  %1597 = vmatprep.subr.bf16.mxu1 %v3241_v0  ;;  %v142_v57 = vld [vmem:[%s4508_s0 + $0x3e0] sm:$0xff]  ;;  %v53_v50 = vld [vmem:[%s4508_s0 + $0x118] sm:$0xff] }
  0x75   :  { %1951 = vmatprep.subr.bf16.mxu0 %v3241_v0  ;;  %v2728_v62 = vcombine.high %v138_v56, %v142_v57  ;;  %v57_v51 = vld [vmem:[%s4508_s0 + $0x138] sm:$0xff] }
  0x77   :  { %1598 = vmatpush1.bf16.msra.mxu1 %v3233_v60  ;;  %v2719_v60 = vcombine.low %v130_v48, %v134_v49  ;;  %v51_v48 = vld [vmem:[%s4508_s0 + $0x108] sm:$0xff] }
  0x78   :  { %1952 = vmatpush1.bf16.msra.mxu0 %v3234_v63  ;;  %1599 = vmatprep.subr.bf16.mxu1 %v3241_v0  ;;  %v2732_v63 = vcombine.high %v140_v58, %v144_v59  ;;  %v55_v49 = vld [vmem:[%s4508_s0 + $0x128] sm:$0xff] }
  0x79   :  { %1483 = vmatmul.mubr.bf16.gmra.mrb[28].mxu1 %v2663_v1  ;;  %1953 = vmatprep.subr.bf16.mxu0 %v3241_v0  ;;  %v146_v1 = vld [vmem:[%s4508_s0 + $0x400] sm:$0xff] }
  0x7a   :  { %1837 = vmatmul.mubr.bf16.gmra.mrb[28].mxu0 %v2667_v2  ;;  %1490 = vmatprep.mubr.bf16.mxu1 %v2672_v3  ;;  %v150_v2 = vld [vmem:[%s4508_s0 + $0x420] sm:$0xff]  ;;  %v148_v3 = vld [vmem:[%s4508_s0 + $0x410] sm:$0xff] }
  0x7b   :  { %1844 = vmatprep.mubr.bf16.mxu0 %v2676_v4  ;;  %1600 = vmatpush1.bf16.msra.mxu1 %v3235_v5  ;;  %v152_v4 = vld [vmem:[%s4508_s0 + $0x430] sm:$0xff]  ;;  %v2727_v5 = vcombine.low %v138_v56, %v142_v57  ;;  %v2736_v7 = vcombine.high %v146_v1, %v150_v2  ;;  %v59_v56 = vld [vmem:[%s4508_s0 + $0x148] sm:$0xff] }
  0x7c   :  { %1954 = vmatpush1.bf16.msra.mxu0 %v3236_v6  ;;  %1601 = vmatprep.subr.bf16.mxu1 %v3241_v0  ;;  %v2731_v6 = vcombine.low %v140_v58, %v144_v59  ;;  %v2740_v8 = vcombine.high %v148_v3, %v152_v4  ;;  %v63_v57 = vld [vmem:[%s4508_s0 + $0x168] sm:$0xff]  ;;  %v61_v58 = vld [vmem:[%s4508_s0 + $0x158] sm:$0xff] }
  0x7d   :  { %1955 = vmatprep.subr.bf16.mxu0 %v3241_v0  ;;  %v100_v0 = vld [vmem:[%s4508_s0 + $0x290] sm:$0xff]  ;;  %v65_v59 = vld [vmem:[%s4508_s0 + $0x178] sm:$0xff] }
  0x7e   :  { %v2692_v23 = vcombine.high %v100_v0, %v104_v19  ;;  %v2691_v29 = vcombine.low %v100_v0, %v104_v19  ;;  %v21_v0 = vld [vmem:[%s4508_s0 + $0x18] sm:$0xff] }
  0x7f   :  { %1602 = vmatpush1.bf16.msra.mxu1 %v3237_v9  ;;  %v154_v9 = vld [vmem:[%s4508_s0 + $0x440] sm:$0xff]  ;;  %v25_v19 = vld [vmem:[%s4508_s0 + $0x38] sm:$0xff] }
  0x80   :  { %1956 = vmatpush1.bf16.msra.mxu0 %v3238_v12  ;;  %v160_v12 = vld [vmem:[%s4508_s0 + $0x470] sm:$0xff] }
  0x81   :  { %1491 = vmatmul.mubr.bf16.gmra.mrb[32].mxu1 %v2671_v13  ;;  %v2735_v13 = vcombine.low %v146_v1, %v150_v2  ;;  %v67_v1 = vld [vmem:[%s4508_s0 + $0x188] sm:$0xff] }
  0x82   :  { %1845 = vmatmul.mubr.bf16.gmra.mrb[32].mxu0 %v2675_v14  ;;  %1498 = vmatprep.mubr.bf16.mxu1 %v2680_v15  ;;  %v2739_v14 = vcombine.low %v148_v3, %v152_v4  ;;  %v2744_v15 = vcombine.high %v154_v9, %v158_v10  ;;  %v71_v2 = vld [vmem:[%s4508_s0 + $0x1a8] sm:$0xff]  ;;  %v69_v3 = vld [vmem:[%s4508_s0 + $0x198] sm:$0xff] }
  0x83   :  { %1852 = vmatprep.mubr.bf16.mxu0 %v2684_v16  ;;  %v2748_v16 = vcombine.high %v156_v11, %v160_v12  ;;  %v73_v4 = vld [vmem:[%s4508_s0 + $0x1b8] sm:$0xff] }
  0x89   :  { %1499 = vmatmul.mubr.bf16.gmra.mrb[36].mxu1 %v2679_v20  ;;  %v2743_v20 = vcombine.low %v154_v9, %v158_v10  ;;  %v75_v9 = vld [vmem:[%s4508_s0 + $0x1c8] sm:$0xff] }
  0x8a   :  { %1853 = vmatmul.mubr.bf16.gmra.mrb[36].mxu0 %v2683_v21  ;;  %1506 = vmatprep.mubr.bf16.mxu1 %v2688_v22  ;;  %v2747_v21 = vcombine.low %v156_v11, %v160_v12  ;;  %v2610_v22 = vcombine.high %v19_v17, %v23_v18  ;;  %v79_v10 = vld [vmem:[%s4508_s0 + $0x1e8] sm:$0xff]  ;;  %v77_v11 = vld [vmem:[%s4508_s0 + $0x1d8] sm:$0xff] }
  0x8b   :  { %1860 = vmatprep.mubr.bf16.mxu0 %v2692_v23  ;;  %v2614_v23 = vcombine.high %v21_v0, %v25_v19  ;;  %v81_v12 = vld [vmem:[%s4508_s0 + $0x1f8] sm:$0xff] }
  0x91   :  { %1507 = vmatmul.mubr.bf16.gmra.mrb[40].mxu1 %v2687_v28  ;;  %v2609_v28 = vcombine.low %v19_v17, %v23_v18  ;;  %v83_v17 = vld [vmem:[%s4508_s0 + $0x208] sm:$0xff] }
  0x92   :  { %1861 = vmatmul.mubr.bf16.gmra.mrb[40].mxu0 %v2691_v29  ;;  %1514 = vmatprep.mubr.bf16.mxu1 %v2696_v30  ;;  %v2613_v29 = vcombine.low %v21_v0, %v25_v19  ;;  %v2618_v30 = vcombine.high %v27_v24, %v31_v25  ;;  %v87_v18 = vld [vmem:[%s4508_s0 + $0x228] sm:$0xff]  ;;  %v85_v0 = vld [vmem:[%s4508_s0 + $0x218] sm:$0xff] }
  0x93   :  { %1868 = vmatprep.mubr.bf16.mxu0 %v2700_v31  ;;  %v2622_v31 = vcombine.high %v29_v26, %v33_v27  ;;  %v89_v19 = vld [vmem:[%s4508_s0 + $0x238] sm:$0xff] }
  0x99   :  { %1515 = vmatmul.mubr.bf16.gmra.mrb[44].mxu1 %v2695_v36  ;;  %v2617_v36 = vcombine.low %v27_v24, %v31_v25  ;;  %v91_v24 = vld [vmem:[%s4508_s0 + $0x248] sm:$0xff] }
  0x9a   :  { %1869 = vmatmul.mubr.bf16.gmra.mrb[44].mxu0 %v2699_v37  ;;  %1522 = vmatprep.mubr.bf16.mxu1 %v2704_v38  ;;  %v2621_v37 = vcombine.low %v29_v26, %v33_v27  ;;  %v2626_v38 = vcombine.high %v35_v32, %v39_v33  ;;  %v95_v25 = vld [vmem:[%s4508_s0 + $0x268] sm:$0xff]  ;;  %v93_v26 = vld [vmem:[%s4508_s0 + $0x258] sm:$0xff] }
  0x9b   :  { %1876 = vmatprep.mubr.bf16.mxu0 %v2708_v39  ;;  %v2630_v39 = vcombine.high %v37_v34, %v41_v35  ;;  %v97_v27 = vld [vmem:[%s4508_s0 + $0x278] sm:$0xff] }
  0xa1   :  { %1523 = vmatmul.mubr.bf16.gmra.mrb[48].mxu1 %v2703_v44  ;;  %v2625_v44 = vcombine.low %v35_v32, %v39_v33  ;;  %v99_v32 = vld [vmem:[%s4508_s0 + $0x288] sm:$0xff] }
  0xa2   :  { %1877 = vmatmul.mubr.bf16.gmra.mrb[48].mxu0 %v2707_v45  ;;  %1530 = vmatprep.mubr.bf16.mxu1 %v2712_v46  ;;  %v2629_v45 = vcombine.low %v37_v34, %v41_v35  ;;  %v2634_v46 = vcombine.high %v43_v40, %v47_v41  ;;  %v103_v33 = vld [vmem:[%s4508_s0 + $0x2a8] sm:$0xff]  ;;  %v101_v34 = vld [vmem:[%s4508_s0 + $0x298] sm:$0xff] }
  0xa3   :  { %1884 = vmatprep.mubr.bf16.mxu0 %v2716_v47  ;;  %v2638_v47 = vcombine.high %v45_v42, %v49_v43  ;;  %v105_v35 = vld [vmem:[%s4508_s0 + $0x2b8] sm:$0xff] }
  0xa9   :  { %1531 = vmatmul.mubr.bf16.gmra.mrb[52].mxu1 %v2711_v52  ;;  %v2633_v52 = vcombine.low %v43_v40, %v47_v41  ;;  %v107_v40 = vld [vmem:[%s4508_s0 + $0x2c8] sm:$0xff] }
  0xaa   :  { %1885 = vmatmul.mubr.bf16.gmra.mrb[52].mxu0 %v2715_v53  ;;  %1538 = vmatprep.mubr.bf16.mxu1 %v2720_v54  ;;  %v2637_v53 = vcombine.low %v45_v42, %v49_v43  ;;  %v2642_v54 = vcombine.high %v51_v48, %v55_v49  ;;  %v111_v41 = vld [vmem:[%s4508_s0 + $0x2e8] sm:$0xff]  ;;  %v109_v42 = vld [vmem:[%s4508_s0 + $0x2d8] sm:$0xff] }
  0xab   :  { %1892 = vmatprep.mubr.bf16.mxu0 %v2724_v55  ;;  %v2646_v55 = vcombine.high %v53_v50, %v57_v51  ;;  %v113_v43 = vld [vmem:[%s4508_s0 + $0x2f8] sm:$0xff] }
  0xb1   :  { %1539 = vmatmul.mubr.bf16.gmra.mrb[56].mxu1 %v2719_v60  ;;  %v2641_v60 = vcombine.low %v51_v48, %v55_v49  ;;  %v115_v48 = vld [vmem:[%s4508_s0 + $0x308] sm:$0xff] }
  0xb2   :  { %1893 = vmatmul.mubr.bf16.gmra.mrb[56].mxu0 %v2723_v61  ;;  %1546 = vmatprep.mubr.bf16.mxu1 %v2728_v62  ;;  %v2645_v61 = vcombine.low %v53_v50, %v57_v51  ;;  %v2650_v62 = vcombine.high %v59_v56, %v63_v57  ;;  %v119_v49 = vld [vmem:[%s4508_s0 + $0x328] sm:$0xff]  ;;  %v117_v50 = vld [vmem:[%s4508_s0 + $0x318] sm:$0xff] }
  0xb3   :  { %1900 = vmatprep.mubr.bf16.mxu0 %v2732_v63  ;;  %v2654_v63 = vcombine.high %v61_v58, %v65_v59  ;;  %v121_v51 = vld [vmem:[%s4508_s0 + $0x338] sm:$0xff] }
  0xb9   :  { %1547 = vmatmul.mubr.bf16.gmra.mrb[60].mxu1 %v2727_v5  ;;  %v2649_v5 = vcombine.low %v59_v56, %v63_v57  ;;  %v123_v56 = vld [vmem:[%s4508_s0 + $0x348] sm:$0xff] }
  0xba   :  { %1901 = vmatmul.mubr.bf16.gmra.mrb[60].mxu0 %v2731_v6  ;;  %1554 = vmatprep.mubr.bf16.mxu1 %v2736_v7  ;;  %v2653_v6 = vcombine.low %v61_v58, %v65_v59  ;;  %v2658_v7 = vcombine.high %v67_v1, %v71_v2  ;;  %v127_v57 = vld [vmem:[%s4508_s0 + $0x368] sm:$0xff]  ;;  %v125_v58 = vld [vmem:[%s4508_s0 + $0x358] sm:$0xff] }
  0xbb   :  { %1908 = vmatprep.mubr.bf16.mxu0 %v2740_v8  ;;  %v2662_v8 = vcombine.high %v69_v3, %v73_v4  ;;  %v129_v59 = vld [vmem:[%s4508_s0 + $0x378] sm:$0xff] }
  0xc1   :  { %1555 = vmatmul.mubr.bf16.gmra.mrb[64].mxu1 %v2735_v13  ;;  %v2657_v13 = vcombine.low %v67_v1, %v71_v2  ;;  %v131_v1 = vld [vmem:[%s4508_s0 + $0x388] sm:$0xff] }
  0xc2   :  { %1909 = vmatmul.mubr.bf16.gmra.mrb[64].mxu0 %v2739_v14  ;;  %1562 = vmatprep.mubr.bf16.mxu1 %v2744_v15  ;;  %v2661_v14 = vcombine.low %v69_v3, %v73_v4  ;;  %v2666_v15 = vcombine.high %v75_v9, %v79_v10  ;;  %v135_v2 = vld [vmem:[%s4508_s0 + $0x3a8] sm:$0xff]  ;;  %v133_v3 = vld [vmem:[%s4508_s0 + $0x398] sm:$0xff] }
  0xc3   :  { %1916 = vmatprep.mubr.bf16.mxu0 %v2748_v16  ;;  %v2670_v16 = vcombine.high %v77_v11, %v81_v12  ;;  %v137_v4 = vld [vmem:[%s4508_s0 + $0x3b8] sm:$0xff] }
  0xc9   :  { %1563 = vmatmul.mubr.bf16.gmra.mrb[68].mxu1 %v2743_v20  ;;  %v2665_v20 = vcombine.low %v75_v9, %v79_v10  ;;  %v139_v9 = vld [vmem:[%s4508_s0 + $0x3c8] sm:$0xff] }
  0xca   :  { %1917 = vmatmul.mubr.bf16.gmra.mrb[68].mxu0 %v2747_v21  ;;  %1603 = vmatprep.mubr.bf16.mxu1 %v2610_v22  ;;  %v2669_v21 = vcombine.low %v77_v11, %v81_v12  ;;  %v2674_v22 = vcombine.high %v83_v17, %v87_v18  ;;  %v143_v10 = vld [vmem:[%s4508_s0 + $0x3e8] sm:$0xff]  ;;  %v141_v11 = vld [vmem:[%s4508_s0 + $0x3d8] sm:$0xff] }
  0xcb   :  { %1957 = vmatprep.mubr.bf16.mxu0 %v2614_v23  ;;  %v2678_v23 = vcombine.high %v85_v0, %v89_v19  ;;  %v145_v12 = vld [vmem:[%s4508_s0 + $0x3f8] sm:$0xff] }
  0xd1   :  { %1604 = vmatmul.mubr.bf16.vlgmr.msra.gmra.mrb[0].mxu1 %v2609_v28  ;;  %v2673_v28 = vcombine.low %v83_v17, %v87_v18  ;;  %v147_v17 = vld [vmem:[%s4508_s0 + $0x408] sm:$0xff] }
  0xd2   :  { %1958 = vmatmul.mubr.bf16.vlgmr.msra.gmra.mrb[0].mxu0 %v2613_v29  ;;  %1611 = vmatprep.mubr.bf16.mxu1 %v2618_v30  ;;  %v2677_v29 = vcombine.low %v85_v0, %v89_v19  ;;  %v2682_v30 = vcombine.high %v91_v24, %v95_v25  ;;  %v151_v18 = vld [vmem:[%s4508_s0 + $0x428] sm:$0xff]  ;;  %v149_v0 = vld [vmem:[%s4508_s0 + $0x418] sm:$0xff] }
  0xd3   :  { %1965 = vmatprep.mubr.bf16.mxu0 %v2622_v31  ;;  %v2686_v31 = vcombine.high %v93_v26, %v97_v27  ;;  %v153_v19 = vld [vmem:[%s4508_s0 + $0x438] sm:$0xff] }
  0xd9   :  { %1612 = vmatmul.mubr.bf16.gmra.mrb[4].mxu1 %v2617_v36  ;;  %v2681_v36 = vcombine.low %v91_v24, %v95_v25  ;;  %v155_v24 = vld [vmem:[%s4508_s0 + $0x448] sm:$0xff] }
  0xda   :  { %1966 = vmatmul.mubr.bf16.gmra.mrb[4].mxu0 %v2621_v37  ;;  %1619 = vmatprep.mubr.bf16.mxu1 %v2626_v38  ;;  %v2685_v37 = vcombine.low %v93_v26, %v97_v27  ;;  %v2690_v38 = vcombine.high %v99_v32, %v103_v33  ;;  %v159_v25 = vld [vmem:[%s4508_s0 + $0x468] sm:$0xff]  ;;  %v157_v26 = vld [vmem:[%s4508_s0 + $0x458] sm:$0xff] }
  0xdb   :  { %1973 = vmatprep.mubr.bf16.mxu0 %v2630_v39  ;;  %v2694_v39 = vcombine.high %v101_v34, %v105_v35  ;;  %v161_v27 = vld [vmem:[%s4508_s0 + $0x478] sm:$0xff] }
  0xe1   :  { %1620 = vmatmul.mubr.bf16.gmra.mrb[8].mxu1 %v2625_v44  ;;  %v2689_v44 = vcombine.low %v99_v32, %v103_v33  ;;  %v2745_v32 = vcombine.low %v155_v24, %v159_v25  ;;  %v2749_v33 = vcombine.low %v157_v26, %v161_v27 }
  0xe2   :  { %1974 = vmatmul.mubr.bf16.gmra.mrb[8].mxu0 %v2629_v45  ;;  %1627 = vmatprep.mubr.bf16.mxu1 %v2634_v46  ;;  %v2693_v45 = vcombine.low %v101_v34, %v105_v35  ;;  %v2698_v46 = vcombine.high %v107_v40, %v111_v41 }
  0xe3   :  { %1981 = vmatprep.mubr.bf16.mxu0 %v2638_v47  ;;  %v2702_v47 = vcombine.high %v109_v42, %v113_v43 }
  0xe9   :  { %1628 = vmatmul.mubr.bf16.gmra.mrb[12].mxu1 %v2633_v52  ;;  %v2697_v52 = vcombine.low %v107_v40, %v111_v41 }
  0xea   :  { %1982 = vmatmul.mubr.bf16.gmra.mrb[12].mxu0 %v2637_v53  ;;  %1635 = vmatprep.mubr.bf16.mxu1 %v2642_v54  ;;  %v2701_v53 = vcombine.low %v109_v42, %v113_v43  ;;  %v2706_v54 = vcombine.high %v115_v48, %v119_v49 }
  0xeb   :  { %1989 = vmatprep.mubr.bf16.mxu0 %v2646_v55  ;;  %v2710_v55 = vcombine.high %v117_v50, %v121_v51 }
  0xf1   :  { %1636 = vmatmul.mubr.bf16.gmra.mrb[16].mxu1 %v2641_v60  ;;  %v2705_v60 = vcombine.low %v115_v48, %v119_v49 }
  0xf2   :  { %1990 = vmatmul.mubr.bf16.gmra.mrb[16].mxu0 %v2645_v61  ;;  %1643 = vmatprep.mubr.bf16.mxu1 %v2650_v62  ;;  %v2709_v61 = vcombine.low %v117_v50, %v121_v51  ;;  %v2714_v62 = vcombine.high %v123_v56, %v127_v57 }
  0xf3   :  { %1997 = vmatprep.mubr.bf16.mxu0 %v2654_v63  ;;  %v2718_v63 = vcombine.high %v125_v58, %v129_v59 }
  0xf9   :  { %1644 = vmatmul.mubr.bf16.gmra.mrb[20].mxu1 %v2649_v5  ;;  %v2713_v5 = vcombine.low %v123_v56, %v127_v57 }
  0xfa   :  { %1998 = vmatmul.mubr.bf16.gmra.mrb[20].mxu0 %v2653_v6  ;;  %1651 = vmatprep.mubr.bf16.mxu1 %v2658_v7  ;;  %v2717_v6 = vcombine.low %v125_v58, %v129_v59  ;;  %v2722_v7 = vcombine.high %v131_v1, %v135_v2 }
  0xfb   :  { %2005 = vmatprep.mubr.bf16.mxu0 %v2662_v8  ;;  %v2726_v8 = vcombine.high %v133_v3, %v137_v4 }
 0x101   :  { %1652 = vmatmul.mubr.bf16.gmra.mrb[24].mxu1 %v2657_v13  ;;  %v2721_v13 = vcombine.low %v131_v1, %v135_v2 }
 0x102   :  { %2006 = vmatmul.mubr.bf16.gmra.mrb[24].mxu0 %v2661_v14  ;;  %1659 = vmatprep.mubr.bf16.mxu1 %v2666_v15  ;;  %v2725_v14 = vcombine.low %v133_v3, %v137_v4  ;;  %v2730_v15 = vcombine.high %v139_v9, %v143_v10 }
 0x103   :  { %2013 = vmatprep.mubr.bf16.mxu0 %v2670_v16  ;;  %v2734_v16 = vcombine.high %v141_v11, %v145_v12 }
 0x109   :  { %1660 = vmatmul.mubr.bf16.gmra.mrb[28].mxu1 %v2665_v20  ;;  %v2729_v20 = vcombine.low %v139_v9, %v143_v10 }
 0x10a   :  { %2014 = vmatmul.mubr.bf16.gmra.mrb[28].mxu0 %v2669_v21  ;;  %1667 = vmatprep.mubr.bf16.mxu1 %v2674_v22  ;;  %v2733_v21 = vcombine.low %v141_v11, %v145_v12  ;;  %v2738_v22 = vcombine.high %v147_v17, %v151_v18 }
 0x10b   :  { %2021 = vmatprep.mubr.bf16.mxu0 %v2678_v23  ;;  %v2742_v23 = vcombine.high %v149_v0, %v153_v19 }
 0x111   :  { %1668 = vmatmul.mubr.bf16.gmra.mrb[32].mxu1 %v2673_v28  ;;  %v2737_v28 = vcombine.low %v147_v17, %v151_v18 }
 0x112   :  { %2022 = vmatmul.mubr.bf16.gmra.mrb[32].mxu0 %v2677_v29  ;;  %1675 = vmatprep.mubr.bf16.mxu1 %v2682_v30  ;;  %v2741_v29 = vcombine.low %v149_v0, %v153_v19  ;;  %v2746_v30 = vcombine.high %v155_v24, %v159_v25 }
 0x113   :  { %2029 = vmatprep.mubr.bf16.mxu0 %v2686_v31  ;;  %v2750_v31 = vcombine.high %v157_v26, %v161_v27 }
 0x119   :  { %1676 = vmatmul.mubr.bf16.gmra.mrb[36].mxu1 %v2681_v36 }
 0x11a   :  { %2030 = vmatmul.mubr.bf16.gmra.mrb[36].mxu0 %v2685_v37  ;;  %1683 = vmatprep.mubr.bf16.mxu1 %v2690_v38 }
 0x11b   :  { %2037 = vmatprep.mubr.bf16.mxu0 %v2694_v39 }
 0x121   :  { %1684 = vmatmul.mubr.bf16.gmra.mrb[40].mxu1 %v2689_v44 }
 0x122   :  { %2038 = vmatmul.mubr.bf16.gmra.mrb[40].mxu0 %v2693_v45  ;;  %1691 = vmatprep.mubr.bf16.mxu1 %v2698_v46 }
 0x123   :  { %2045 = vmatprep.mubr.bf16.mxu0 %v2702_v47 }
 0x129   :  { %1692 = vmatmul.mubr.bf16.gmra.mrb[44].mxu1 %v2697_v52 }
 0x12a   :  { %2046 = vmatmul.mubr.bf16.gmra.mrb[44].mxu0 %v2701_v53  ;;  %1699 = vmatprep.mubr.bf16.mxu1 %v2706_v54 }
 0x12b   :  { %2053 = vmatprep.mubr.bf16.mxu0 %v2710_v55 }
 0x131   :  { %1700 = vmatmul.mubr.bf16.gmra.mrb[48].mxu1 %v2705_v60 }
 0x132   :  { %2054 = vmatmul.mubr.bf16.gmra.mrb[48].mxu0 %v2709_v61  ;;  %1707 = vmatprep.mubr.bf16.mxu1 %v2714_v62 }
 0x133   :  { %2061 = vmatprep.mubr.bf16.mxu0 %v2718_v63 }
 0x139   :  { %1708 = vmatmul.mubr.bf16.gmra.mrb[52].mxu1 %v2713_v5 }
 0x13a   :  { %2062 = vmatmul.mubr.bf16.gmra.mrb[52].mxu0 %v2717_v6  ;;  %1715 = vmatprep.mubr.bf16.mxu1 %v2722_v7 }
 0x13b   :  { %2069 = vmatprep.mubr.bf16.mxu0 %v2726_v8 }
 0x141   :  { %1716 = vmatmul.mubr.bf16.gmra.mrb[56].mxu1 %v2721_v13 }
 0x142   :  { %2070 = vmatmul.mubr.bf16.gmra.mrb[56].mxu0 %v2725_v14  ;;  %1723 = vmatprep.mubr.bf16.mxu1 %v2730_v15 }
 0x143   :  { %2077 = vmatprep.mubr.bf16.mxu0 %v2734_v16 }
 0x149   :  { %1724 = vmatmul.mubr.bf16.gmra.mrb[60].mxu1 %v2729_v20 }
 0x14a   :  { %2078 = vmatmul.mubr.bf16.gmra.mrb[60].mxu0 %v2733_v21  ;;  %1731 = vmatprep.mubr.bf16.mxu1 %v2738_v22 }
 0x14b   :  { %2085 = vmatprep.mubr.bf16.mxu0 %v2742_v23 }
 0x151   :  { %1732 = vmatmul.mubr.bf16.gmra.mrb[64].mxu1 %v2737_v28 }
 0x152   :  { %2086 = vmatmul.mubr.bf16.gmra.mrb[64].mxu0 %v2741_v29  ;;  %1739 = vmatprep.mubr.bf16.mxu1 %v2746_v30 }
 0x153   :  { %2093 = vmatprep.mubr.bf16.mxu0 %v2750_v31 }
 0x159   :  { %1740 = vmatmul.mubr.bf16.gmra.mrb[68].mxu1 %v2745_v32 }
 0x15a   :  { %2094 = vmatmul.mubr.bf16.gmra.mrb[68].mxu0 %v2749_v33 }
 0x1a4   :  { %v1605_v34 = vpop.f32.mrb[0].mxu1 }
 0x1a5   :  { %v1959_v35 = vpop.f32.mrb[0].mxu0  ;;  %v1607_v36 = vpop.f32.mrb[1].mxu1 }
 0x1a6   :  { %v3967_v37 = vadd.f32 %v1959_v35, %v1605_v34  ;;  %v1961_v38 = vpop.f32.mrb[1].mxu0  ;;  %v1608_v39 = vpop.f32.mrb[2].mxu1 }
 0x1a7   :  { %v1962_v40 = vpop.f32.mrb[2].mxu0  ;;  %v1610_v41 = vpop.f32.mrb[3].mxu1 }
 0x1a8   :  { %v3969_v42 = vadd.f32 %v1962_v40, %v1608_v39  ;;  %v1964_v43 = vpop.f32.mrb[3].mxu0  ;;  %v2143_v12 = vmul.f32 %v3967_v37, %v3967_v37 }
 0x1aa   :  { %v2144_v11 = vmul.f32 %v3969_v42, %v3969_v42  ;;  %v2102_v13 = vadd.f32 %v3969_v42, %v3967_v37 }
 0x1ac   :  { %v1613_v44 = vpop.f32.mrb[4].mxu1  ;;  %v2179_v18 = vadd.f32 %v2144_v11, %v2143_v12 }
 0x1ad   :  { %v1967_v45 = vpop.f32.mrb[4].mxu0  ;;  %v1615_v46 = vpop.f32.mrb[5].mxu1 }
 0x1ae   :  { %v3971_v47 = vadd.f32 %v1967_v45, %v1613_v44  ;;  %v1969_v48 = vpop.f32.mrb[5].mxu0  ;;  %v1616_v49 = vpop.f32.mrb[6].mxu1 }
 0x1af   :  { %v1970_v50 = vpop.f32.mrb[6].mxu0  ;;  %v1618_v51 = vpop.f32.mrb[7].mxu1 }
 0x1b0   :  { %v3973_v52 = vadd.f32 %v1970_v50, %v1616_v49  ;;  %v1972_v53 = vpop.f32.mrb[7].mxu0  ;;  %v2145_v14 = vmul.f32 %v3971_v47, %v3971_v47  ;;  %v2103_v0 = vadd.f32 %v3971_v47, %v2102_v13 }
 0x1b2   :  { %v2180_v24 = vadd.f32 %v2179_v18, %v2145_v14  ;;  %v2146_v25 = vmul.f32 %v3973_v52, %v3973_v52  ;;  %v2104_v28 = vadd.f32 %v3973_v52, %v2103_v0 }
 0x1b4   :  { %v1621_v54 = vpop.f32.mrb[8].mxu1  ;;  %v2181_v30 = vadd.f32 %v2180_v24, %v2146_v25 }
 0x1b5   :  { %v1975_v55 = vpop.f32.mrb[8].mxu0  ;;  %v1623_v56 = vpop.f32.mrb[9].mxu1 }
 0x1b6   :  { %v3975_v57 = vadd.f32 %v1975_v55, %v1621_v54  ;;  %v1977_v58 = vpop.f32.mrb[9].mxu0  ;;  %v1624_v59 = vpop.f32.mrb[10].mxu1 }
 0x1b7   :  { %v1978_v60 = vpop.f32.mrb[10].mxu0  ;;  %v1626_v61 = vpop.f32.mrb[11].mxu1 }
 0x1b8   :  { %v3977_v62 = vadd.f32 %v1978_v60, %v1624_v59  ;;  %v1980_v63 = vpop.f32.mrb[11].mxu0  ;;  %v2147_v29 = vmul.f32 %v3975_v57, %v3975_v57  ;;  %v2105_v31 = vadd.f32 %v3975_v57, %v2104_v28 }
 0x1ba   :  { %v2182_v35 = vadd.f32 %v2181_v30, %v2147_v29  ;;  %v2148_v36 = vmul.f32 %v3977_v62, %v3977_v62  ;;  %v2106_v44 = vadd.f32 %v3977_v62, %v2105_v31 }
 0x1bc   :  { %v1629_v1 = vpop.f32.mrb[12].mxu1  ;;  %v2183_v49 = vadd.f32 %v2182_v35, %v2148_v36 }
 0x1bd   :  { %v1983_v2 = vpop.f32.mrb[12].mxu0  ;;  %v1631_v3 = vpop.f32.mrb[13].mxu1 }
 0x1be   :  { %v3979_v4 = vadd.f32 %v1983_v2, %v1629_v1  ;;  %v1985_v5 = vpop.f32.mrb[13].mxu0  ;;  %v1632_v6 = vpop.f32.mrb[14].mxu1 }
 0x1bf   :  { %v1986_v7 = vpop.f32.mrb[14].mxu0  ;;  %v1634_v8 = vpop.f32.mrb[15].mxu1 }
 0x1c0   :  { %v3981_v9 = vadd.f32 %v1986_v7, %v1632_v6  ;;  %v1988_v10 = vpop.f32.mrb[15].mxu0  ;;  %v2149_v45 = vmul.f32 %v3979_v4, %v3979_v4  ;;  %v2107_v50 = vadd.f32 %v3979_v4, %v2106_v44 }
 0x1c2   :  { %v2184_v51 = vadd.f32 %v2183_v49, %v2149_v45  ;;  %v2150_v53 = vmul.f32 %v3981_v9, %v3981_v9  ;;  %v2108_v58 = vadd.f32 %v3981_v9, %v2107_v50 }
 0x1c4   :  { %v1637_v15 = vpop.f32.mrb[16].mxu1  ;;  %v2185_v3 = vadd.f32 %v2184_v51, %v2150_v53 }
 0x1c5   :  { %v1991_v16 = vpop.f32.mrb[16].mxu0  ;;  %v1639_v17 = vpop.f32.mrb[17].mxu1 }
 0x1c6   :  { %v3992_v19 = vadd.f32 %v1991_v16, %v1637_v15  ;;  %v1993_v20 = vpop.f32.mrb[17].mxu0  ;;  %v1640_v21 = vpop.f32.mrb[18].mxu1 }
 0x1c7   :  { %v1994_v22 = vpop.f32.mrb[18].mxu0  ;;  %v1642_v23 = vpop.f32.mrb[19].mxu1 }
 0x1c8   :  { %v3996_v26 = vadd.f32 %v1994_v22, %v1640_v21  ;;  %v1996_v27 = vpop.f32.mrb[19].mxu0  ;;  %v2151_v59 = vmul.f32 %v3992_v19, %v3992_v19  ;;  %v2109_v5 = vadd.f32 %v3992_v19, %v2108_v58 }
 0x1ca   :  { %v2186_v8 = vadd.f32 %v2185_v3, %v2151_v59  ;;  %v2152_v10 = vmul.f32 %v3996_v26, %v3996_v26  ;;  %v2110_v11 = vadd.f32 %v3996_v26, %v2109_v5 }
 0x1cc   :  { %v1645_v32 = vpop.f32.mrb[20].mxu1  ;;  %v2187_v16 = vadd.f32 %v2186_v8, %v2152_v10 }
 0x1cd   :  { %v1999_v33 = vpop.f32.mrb[20].mxu0  ;;  %v1647_v34 = vpop.f32.mrb[21].mxu1 }
 0x1ce   :  { %v4004_v38 = vadd.f32 %v1999_v33, %v1645_v32  ;;  %v2001_v39 = vpop.f32.mrb[21].mxu0  ;;  %v1648_v40 = vpop.f32.mrb[22].mxu1 }
 0x1cf   :  { %v2002_v41 = vpop.f32.mrb[22].mxu0  ;;  %v1650_v43 = vpop.f32.mrb[23].mxu1 }
 0x1d0   :  { %v4009_v46 = vadd.f32 %v2002_v41, %v1648_v40  ;;  %v2004_v48 = vpop.f32.mrb[23].mxu0  ;;  %v2153_v12 = vmul.f32 %v4004_v38, %v4004_v38  ;;  %v2111_v17 = vadd.f32 %v4004_v38, %v2110_v11 }
 0x1d2   :  { %v2188_v23 = vadd.f32 %v2187_v16, %v2153_v12  ;;  %v2154_v24 = vmul.f32 %v4009_v46, %v4009_v46  ;;  %v2112_v28 = vadd.f32 %v4009_v46, %v2111_v17 }
 0x1d4   :  { %v1653_v54 = vpop.f32.mrb[24].mxu1  ;;  %v2189_v30 = vadd.f32 %v2188_v23, %v2154_v24 }
 0x1d5   :  { %v2007_v55 = vpop.f32.mrb[24].mxu0  ;;  %v1655_v56 = vpop.f32.mrb[25].mxu1 }
 0x1d6   :  { %v4017_v60 = vadd.f32 %v2007_v55, %v1653_v54  ;;  %v2009_v61 = vpop.f32.mrb[25].mxu0  ;;  %v1656_v63 = vpop.f32.mrb[26].mxu1 }
 0x1d7   :  { %v2010_v1 = vpop.f32.mrb[26].mxu0  ;;  %v1658_v2 = vpop.f32.mrb[27].mxu1 }
 0x1d8   :  { %v4020_v6 = vadd.f32 %v2010_v1, %v1656_v63  ;;  %v2012_v7 = vpop.f32.mrb[27].mxu0  ;;  %v2155_v29 = vmul.f32 %v4017_v60, %v4017_v60  ;;  %v2113_v31 = vadd.f32 %v4017_v60, %v2112_v28 }
 0x1da   :  { %v2190_v35 = vadd.f32 %v2189_v30, %v2155_v29  ;;  %v2156_v36 = vmul.f32 %v4020_v6, %v4020_v6  ;;  %v2114_v45 = vadd.f32 %v4020_v6, %v2113_v31 }
 0x1dc   :  { %v1661_v13 = vpop.f32.mrb[28].mxu1  ;;  %v2191_v51 = vadd.f32 %v2190_v35, %v2156_v36 }
 0x1dd   :  { %v2015_v14 = vpop.f32.mrb[28].mxu0  ;;  %v1663_v15 = vpop.f32.mrb[29].mxu1 }
 0x1de   :  { %v4028_v18 = vadd.f32 %v2015_v14, %v1661_v13  ;;  %v2017_v0 = vpop.f32.mrb[29].mxu0  ;;  %v1664_v20 = vpop.f32.mrb[30].mxu1 }
 0x1df   :  { %v2018_v21 = vpop.f32.mrb[30].mxu0  ;;  %v1666_v22 = vpop.f32.mrb[31].mxu1 }
 0x1e0   :  { %v4032_v25 = vadd.f32 %v2018_v21, %v1664_v20  ;;  %v2020_v27 = vpop.f32.mrb[31].mxu0  ;;  %v2157_v48 = vmul.f32 %v4028_v18, %v4028_v18  ;;  %v2115_v53 = vadd.f32 %v4028_v18, %v2114_v45 }
 0x1e2   :  { %v2192_v54 = vadd.f32 %v2191_v51, %v2157_v48  ;;  %v2158_v55 = vmul.f32 %v4032_v25, %v4032_v25  ;;  %v2116_v61 = vadd.f32 %v4032_v25, %v2115_v53 }
 0x1e4   :  { %v1669_v32 = vpop.f32.mrb[32].mxu1  ;;  %v2193_v8 = vadd.f32 %v2192_v54, %v2158_v55 }
 0x1e5   :  { %v2023_v33 = vpop.f32.mrb[32].mxu0  ;;  %v1671_v34 = vpop.f32.mrb[33].mxu1 }
 0x1e6   :  { %v4040_v39 = vadd.f32 %v2023_v33, %v1669_v32  ;;  %v2025_v40 = vpop.f32.mrb[33].mxu0  ;;  %v1672_v41 = vpop.f32.mrb[34].mxu1 }
 0x1e7   :  { %v2026_v43 = vpop.f32.mrb[34].mxu0  ;;  %v1674_v44 = vpop.f32.mrb[35].mxu1 }
 0x1e8   :  { %v4045_v49 = vadd.f32 %v2026_v43, %v1672_v41  ;;  %v2028_v50 = vpop.f32.mrb[35].mxu0  ;;  %v2159_v63 = vmul.f32 %v4040_v39, %v4040_v39  ;;  %v2117_v10 = vadd.f32 %v4040_v39, %v2116_v61 }
 0x1ea   :  { %v2194_v13 = vadd.f32 %v2193_v8, %v2159_v63  ;;  %v2160_v14 = vmul.f32 %v4045_v49, %v4045_v49  ;;  %v2118_v15 = vadd.f32 %v4045_v49, %v2117_v10 }
 0x1ec   :  { %v1677_v56 = vpop.f32.mrb[36].mxu1  ;;  %v2195_v21 = vadd.f32 %v2194_v13, %v2160_v14 }
 0x1ed   :  { %v2031_v58 = vpop.f32.mrb[36].mxu0  ;;  %v1679_v59 = vpop.f32.mrb[37].mxu1 }
 0x1ee   :  { %v4053_v1 = vadd.f32 %v2031_v58, %v1677_v56  ;;  %v2033_v2 = vpop.f32.mrb[37].mxu0  ;;  %v1680_v3 = vpop.f32.mrb[38].mxu1 }
 0x1ef   :  { %v2034_v5 = vpop.f32.mrb[38].mxu0  ;;  %v1682_v7 = vpop.f32.mrb[39].mxu1 }
 0x1f0   :  { %v4056_v11 = vadd.f32 %v2034_v5, %v1680_v3  ;;  %v2036_v12 = vpop.f32.mrb[39].mxu0  ;;  %v2161_v16 = vmul.f32 %v4053_v1, %v4053_v1  ;;  %v2119_v22 = vadd.f32 %v4053_v1, %v2118_v15 }
 0x1f2   :  { %v2196_v30 = vadd.f32 %v2195_v21, %v2161_v16  ;;  %v2162_v31 = vmul.f32 %v4056_v11, %v4056_v11  ;;  %v2120_v34 = vadd.f32 %v4056_v11, %v2119_v22 }
 0x1f4   :  { %v1685_v17 = vpop.f32.mrb[40].mxu1  ;;  %v2197_v36 = vadd.f32 %v2196_v30, %v2162_v31 }
 0x1f5   :  { %v2039_v0 = vpop.f32.mrb[40].mxu0  ;;  %v1687_v20 = vpop.f32.mrb[41].mxu1 }
 0x1f6   :  { %v4064_v23 = vadd.f32 %v2039_v0, %v1685_v17  ;;  %v2041_v24 = vpop.f32.mrb[41].mxu0  ;;  %v1688_v27 = vpop.f32.mrb[42].mxu1 }
 0x1f7   :  { %v2042_v28 = vpop.f32.mrb[42].mxu0  ;;  %v1690_v29 = vpop.f32.mrb[43].mxu1 }
 0x1f8   :  { %v4068_v32 = vadd.f32 %v2042_v28, %v1688_v27  ;;  %v2044_v33 = vpop.f32.mrb[43].mxu0  ;;  %v2163_v35 = vmul.f32 %v4064_v23, %v4064_v23  ;;  %v2121_v40 = vadd.f32 %v4064_v23, %v2120_v34 }
 0x1fa   :  { %v2198_v45 = vadd.f32 %v2197_v36, %v2163_v35  ;;  %v2164_v48 = vmul.f32 %v4068_v32, %v4068_v32  ;;  %v2122_v56 = vadd.f32 %v4068_v32, %v2121_v40 }
 0x1fc   :  { %v1693_v41 = vpop.f32.mrb[44].mxu1  ;;  %v2199_v63 = vadd.f32 %v2198_v45, %v2164_v48 }
 0x1fd   :  { %v2047_v43 = vpop.f32.mrb[44].mxu0  ;;  %v1695_v44 = vpop.f32.mrb[45].mxu1 }
 0x1fe   :  { %v4076_v50 = vadd.f32 %v2047_v43, %v1693_v41  ;;  %v2049_v51 = vpop.f32.mrb[45].mxu0  ;;  %v1696_v53 = vpop.f32.mrb[46].mxu1 }
 0x1ff   :  { %v2050_v54 = vpop.f32.mrb[46].mxu0  ;;  %v1698_v55 = vpop.f32.mrb[47].mxu1 }
 0x200   :  { %v2165_v58 = vmul.f32 %v4076_v50, %v4076_v50  ;;  %v4081_v59 = vadd.f32 %v2050_v54, %v1696_v53  ;;  %v2052_v61 = vpop.f32.mrb[47].mxu0  ;;  %v2123_v2 = vadd.f32 %v4076_v50, %v2122_v56 }
 0x202   :  { %v2200_v3 = vadd.f32 %v2199_v63, %v2165_v58  ;;  %v2166_v5 = vmul.f32 %v4081_v59, %v4081_v59  ;;  %v2124_v12 = vadd.f32 %v4081_v59, %v2123_v2 }
 0x204   :  { %v1701_v7 = vpop.f32.mrb[48].mxu1  ;;  %v2201_v0 = vadd.f32 %v2200_v3, %v2166_v5 }
 0x205   :  { %v2055_v8 = vpop.f32.mrb[48].mxu0  ;;  %v1703_v10 = vpop.f32.mrb[49].mxu1 }
 0x206   :  { %v4087_v13 = vadd.f32 %v2055_v8, %v1701_v7  ;;  %v2057_v14 = vpop.f32.mrb[49].mxu0  ;;  %v1704_v15 = vpop.f32.mrb[50].mxu1 }
 0x207   :  { %v2058_v16 = vpop.f32.mrb[50].mxu0  ;;  %v1706_v17 = vpop.f32.mrb[51].mxu1 }
 0x208   :  { %v2125_v20 = vadd.f32 %v4087_v13, %v2124_v12  ;;  %v2167_v21 = vmul.f32 %v4087_v13, %v4087_v13  ;;  %v4092_v22 = vadd.f32 %v2058_v16, %v1704_v15  ;;  %v2060_v24 = vpop.f32.mrb[51].mxu0 }
 0x20a   :  { %v2202_v27 = vadd.f32 %v2201_v0, %v2167_v21  ;;  %v2126_v28 = vadd.f32 %v4092_v22, %v2125_v20  ;;  %v2168_v29 = vmul.f32 %v4092_v22, %v4092_v22 }
 0x20c   :  { %v2203_v30 = vadd.f32 %v2202_v27, %v2168_v29  ;;  %v1709_v31 = vpop.f32.mrb[52].mxu1 }
 0x20d   :  { %v2063_v33 = vpop.f32.mrb[52].mxu0  ;;  %v1711_v34 = vpop.f32.mrb[53].mxu1 }
 0x20e   :  { %v4097_v35 = vadd.f32 %v2063_v33, %v1709_v31  ;;  %v2065_v36 = vpop.f32.mrb[53].mxu0  ;;  %v1712_v40 = vpop.f32.mrb[54].mxu1 }
 0x20f   :  { %v2066_v41 = vpop.f32.mrb[54].mxu0  ;;  %v1714_v43 = vpop.f32.mrb[55].mxu1 }
 0x210   :  { %v2127_v44 = vadd.f32 %v4097_v35, %v2126_v28  ;;  %v2169_v45 = vmul.f32 %v4097_v35, %v4097_v35  ;;  %v4102_v48 = vadd.f32 %v2066_v41, %v1712_v40  ;;  %v2068_v51 = vpop.f32.mrb[55].mxu0 }
 0x212   :  { %v2204_v53 = vadd.f32 %v2203_v30, %v2169_v45  ;;  %v2128_v54 = vadd.f32 %v4102_v48, %v2127_v44  ;;  %v2170_v55 = vmul.f32 %v4102_v48, %v4102_v48 }
 0x214   :  { %v2205_v56 = vadd.f32 %v2204_v53, %v2170_v55  ;;  %v1717_v58 = vpop.f32.mrb[56].mxu1 }
 0x215   :  { %v2071_v61 = vpop.f32.mrb[56].mxu0  ;;  %v1719_v63 = vpop.f32.mrb[57].mxu1 }
 0x216   :  { %v4107_v2 = vadd.f32 %v2071_v61, %v1717_v58  ;;  %v2073_v3 = vpop.f32.mrb[57].mxu0  ;;  %v1720_v5 = vpop.f32.mrb[58].mxu1 }
 0x217   :  { %v2074_v7 = vpop.f32.mrb[58].mxu0  ;;  %v1722_v8 = vpop.f32.mrb[59].mxu1 }
 0x218   :  { %v2129_v10 = vadd.f32 %v4107_v2, %v2128_v54  ;;  %v2171_v12 = vmul.f32 %v4107_v2, %v4107_v2  ;;  %v4112_v14 = vadd.f32 %v2074_v7, %v1720_v5  ;;  %v2076_v15 = vpop.f32.mrb[59].mxu0 }
 0x21a   :  { %v2206_v16 = vadd.f32 %v2205_v56, %v2171_v12  ;;  %v2130_v17 = vadd.f32 %v4112_v14, %v2129_v10  ;;  %v2172_v0 = vmul.f32 %v4112_v14, %v4112_v14 }
 0x21c   :  { %v2207_v20 = vadd.f32 %v2206_v16, %v2172_v0  ;;  %v1725_v21 = vpop.f32.mrb[60].mxu1 }
 0x21d   :  { %v2079_v24 = vpop.f32.mrb[60].mxu0  ;;  %v1727_v27 = vpop.f32.mrb[61].mxu1 }
 0x21e   :  { %v4117_v28 = vadd.f32 %v2079_v24, %v1725_v21  ;;  %v2081_v29 = vpop.f32.mrb[61].mxu0  ;;  %v1728_v30 = vpop.f32.mrb[62].mxu1 }
 0x21f   :  { %v2082_v31 = vpop.f32.mrb[62].mxu0  ;;  %v1730_v33 = vpop.f32.mrb[63].mxu1 }
 0x220   :  { %v2131_v34 = vadd.f32 %v4117_v28, %v2130_v17  ;;  %v2173_v36 = vmul.f32 %v4117_v28, %v4117_v28  ;;  %v4122_v40 = vadd.f32 %v2082_v31, %v1728_v30  ;;  %v2084_v41 = vpop.f32.mrb[63].mxu0 }
 0x222   :  { %v2208_v43 = vadd.f32 %v2207_v20, %v2173_v36  ;;  %v2132_v44 = vadd.f32 %v4122_v40, %v2131_v34  ;;  %v2174_v45 = vmul.f32 %v4122_v40, %v4122_v40 }
 0x224   :  { %v2209_v51 = vadd.f32 %v2208_v43, %v2174_v45  ;;  %v1733_v53 = vpop.f32.mrb[64].mxu1 }
 0x225   :  { %v2087_v54 = vpop.f32.mrb[64].mxu0  ;;  %v1735_v55 = vpop.f32.mrb[65].mxu1 }
 0x226   :  { %v4127_v56 = vadd.f32 %v2087_v54, %v1733_v53  ;;  %v2089_v58 = vpop.f32.mrb[65].mxu0  ;;  %v1736_v61 = vpop.f32.mrb[66].mxu1 }
 0x227   :  { %v2090_v63 = vpop.f32.mrb[66].mxu0  ;;  %v1738_v3 = vpop.f32.mrb[67].mxu1 }
 0x228   :  { %v2133_v5 = vadd.f32 %v4127_v56, %v2132_v44  ;;  %v2175_v7 = vmul.f32 %v4127_v56, %v4127_v56  ;;  %v4132_v8 = vadd.f32 %v2090_v63, %v1736_v61  ;;  %v2092_v10 = vpop.f32.mrb[67].mxu0 }
 0x22a   :  { %v2210_v12 = vadd.f32 %v2209_v51, %v2175_v7  ;;  %v2134_v15 = vadd.f32 %v4132_v8, %v2133_v5  ;;  %v2176_v16 = vmul.f32 %v4132_v8, %v4132_v8 }
 0x22c   :  { %v2211_v17 = vadd.f32 %v2210_v12, %v2176_v16  ;;  %v1741_v0 = vpop.f32.mrb[68].mxu1 }
 0x22d   :  { %v2095_v20 = vpop.f32.mrb[68].mxu0  ;;  %v1743_v21 = vpop.f32.mrb[69].mxu1 }
 0x22e   :  { %v4137_v24 = vadd.f32 %v2095_v20, %v1741_v0  ;;  %v2097_v27 = vpop.f32.mrb[69].mxu0  ;;  %v1744_v29 = vpop.f32.mrb[70].mxu1 }
 0x22f   :  { %v2098_v30 = vpop.f32.mrb[70].mxu0  ;;  %v1746_v31 = vpop.f32.mrb[71].mxu1  ;;  %v2232_v27 = vlaneseq }
 0x230   :  { %v2135_v33 = vadd.f32 %v4137_v24, %v2134_v15  ;;  %v2177_v34 = vmul.f32 %v4137_v24, %v4137_v24  ;;  %v4142_v36 = vadd.f32 %v2098_v30, %v1744_v29  ;;  %v2100_v41 = vpop.f32.mrb[71].mxu0  ;;  %v2224_v30 = vld [vmem:[%s4509_s2] sm:$0x1] }
 0x231   :  { %v2233_v29 = vshrl.u32 %v2232_v27, 7  ;;  %v2228_v41 = vld [vmem:[%s4510_s3] sm:$0x1] }
 0x232   :  { %v2212_v43 = vadd.f32 %v2211_v17, %v2177_v34  ;;  %v2136_v44 = vadd.f32 %v4142_v36, %v2135_v33  ;;  %v2178_v45 = vmul.f32 %v4142_v36, %v4142_v36 }
 0x233   :  { %v2234_v31 = vsub.s32 0, %v2233_v29 }
 0x234   :  { %v2137_v51 = vrot.slane %v2136_v44, 4  ;;  %v2213_v53 = vadd.f32 %v2212_v43, %v2178_v45 }
 0x236   :  { %v2138_v54 = vadd.f32 %v2137_v51, %v2136_v44  ;;  %v2214_v55 = vrot.slane %v2213_v53, 4 }
 0x238   :  { %v2139_v58 = vrot.slane %v2138_v54, 2  ;;  %v2215_v61 = vadd.f32 %v2214_v55, %v2213_v53 }
 0x23a   :  { %v2140_v63 = vadd.f32 %v2139_v58, %v2138_v54  ;;  %v2216_v3 = vrot.slane %v2215_v61, 2 }
 0x23c   :  { %v2141_v5 = vrot.slane %v2140_v63, 1  ;;  %v2217_v7 = vadd.f32 %v2216_v3, %v2215_v61 }
 0x23e   :  { %v2142_v10 = vadd.f32 %v2141_v5, %v2140_v63  ;;  %v2218_v12 = vrot.slane %v2217_v7, 1 }
 0x240   :  { %v2219_v15 = vadd.f32 %v2218_v12, %v2217_v7  ;;  %v2220_v16 = vmul.f32 0.0034722222, %v2142_v10 }
 0x242   :  { %v2221_v17 = vmul.f32 0.0034722222, %v2219_v15  ;;  %v2222_v0 = vmul.f32 %v2220_v16, %v2220_v16 }
 0x244   :  { %v2223_v20 = vsub.f32 %v2221_v17, %v2222_v0 }
 0x246   :  { %v2225_v21 = vadd.f32 1e-05, %v2223_v20 }
 0x248   :  { %3239 = vrsqrt.f32 %v2225_v21 }
 0x252   :  { %v3240_v33 = vpop.eup %3239 }
 0x253   :  { %v2227_v34 = vmul.f32 %v3240_v33, %v2224_v30 }
 0x255   :  { %v2229_v43 = vmul.f32 %v2227_v34, %v2220_v16  ;;  %v2235_v44 = vrot.slane %v2227_v34, %v2234_v31 }
 0x257   :  { %v2230_v45 = vsub.f32 %v2228_v41, %v2229_v43  ;;  %v2237_v51 = vmul.f32 %v3967_v37, %v2235_v44  ;;  %v2238_v53 = vmul.f32 %v3969_v42, %v2235_v44  ;;  %v2239_v54 = vmul.f32 %v3971_v47, %v2235_v44 }
 0x258   :  { %v2240_v55 = vmul.f32 %v3973_v52, %v2235_v44  ;;  %v2241_v58 = vmul.f32 %v3975_v57, %v2235_v44  ;;  %v2242_v61 = vmul.f32 %v3977_v62, %v2235_v44  ;;  %v2243_v63 = vmul.f32 %v3979_v4, %v2235_v44 }
 0x259   :  { %v2244_v3 = vmul.f32 %v3981_v9, %v2235_v44  ;;  %v2245_v5 = vmul.f32 %v3992_v19, %v2235_v44  ;;  %v2246_v7 = vmul.f32 %v3996_v26, %v2235_v44  ;;  %v2247_v37 = vmul.f32 %v4004_v38, %v2235_v44 }
 0x25a   :  { %v2248_v42 = vmul.f32 %v4009_v46, %v2235_v44  ;;  %v2249_v47 = vmul.f32 %v4017_v60, %v2235_v44  ;;  %v2250_v52 = vmul.f32 %v4020_v6, %v2235_v44  ;;  %v2251_v57 = vmul.f32 %v4028_v18, %v2235_v44 }
 0x25b   :  { %v2252_v62 = vmul.f32 %v4032_v25, %v2235_v44  ;;  %v2253_v4 = vmul.f32 %v4040_v39, %v2235_v44  ;;  %v2254_v9 = vmul.f32 %v4045_v49, %v2235_v44  ;;  %v2261_v19 = vmul.f32 %v4087_v13, %v2235_v44 }
 0x25c   :  { %v2262_v26 = vmul.f32 %v4092_v22, %v2235_v44  ;;  %v2263_v38 = vmul.f32 %v4097_v35, %v2235_v44  ;;  %v2264_v46 = vmul.f32 %v4102_v48, %v2235_v44  ;;  %v2265_v60 = vmul.f32 %v4107_v2, %v2235_v44 }
 0x25d   :  { %v2266_v6 = vmul.f32 %v4112_v14, %v2235_v44  ;;  %v2267_v18 = vmul.f32 %v4117_v28, %v2235_v44  ;;  %v2268_v25 = vmul.f32 %v4122_v40, %v2235_v44  ;;  %v2269_v39 = vmul.f32 %v4127_v56, %v2235_v44 }
 0x25e   :  { %v2270_v49 = vmul.f32 %v4132_v8, %v2235_v44  ;;  %v2271_v13 = vmul.f32 %v4137_v24, %v2235_v44  ;;  %v2255_v22 = vmul.f32 %v4053_v1, %v2235_v44  ;;  %v2256_v35 = vmul.f32 %v4056_v11, %v2235_v44 }
 0x25f   :  { %v2272_v48 = vmul.f32 %v4142_v36, %v2235_v44  ;;  %v2277_v10 = vrot.slane %v2230_v45, %v2234_v31  ;;  %v2257_v2 = vmul.f32 %v4064_v23, %v2235_v44  ;;  %v2258_v14 = vmul.f32 %v4068_v32, %v2235_v44 }
 0x260   :  { %v2259_v28 = vmul.f32 %v4076_v50, %v2235_v44  ;;  %v2260_v40 = vmul.f32 %v4081_v59, %v2235_v44 }
 0x261   :  { %v4189_v56 = vadd.f32 %v2277_v10, %v2237_v51  ;;  %v4191_v8 = vadd.f32 %v2277_v10, %v2238_v53  ;;  %v4193_v24 = vadd.f32 %v2277_v10, %v2239_v54  ;;  %v4195_v1 = vadd.f32 %v2277_v10, %v2240_v55 }
 0x262   :  { %v4197_v11 = vadd.f32 %v2277_v10, %v2241_v58  ;;  %v4199_v36 = vadd.f32 %v2277_v10, %v2242_v61  ;;  %v4201_v12 = vadd.f32 %v2277_v10, %v2243_v63  ;;  %v4203_v23 = vadd.f32 %v2277_v10, %v2244_v3 }
 0x263   :  { %v4205_v32 = vadd.f32 %v2277_v10, %v2245_v5  ;;  %v4207_v50 = vadd.f32 %v2277_v10, %v2246_v7  ;;  %v4209_v59 = vadd.f32 %v2277_v10, %v2247_v37  ;;  %v4211_v15 = vadd.f32 %v2277_v10, %v2248_v42 }
 0x264   :  { %v4213_v16 = vadd.f32 %v2277_v10, %v2249_v47  ;;  %v4215_v17 = vadd.f32 %v2277_v10, %v2250_v52  ;;  %v4217_v0 = vadd.f32 %v2277_v10, %v2251_v57  ;;  %v4219_v20 = vadd.f32 %v2277_v10, %v2252_v62 }
 0x265   :  { %v4221_v21 = vadd.f32 %v2277_v10, %v2253_v4  ;;  %v4223_v27 = vadd.f32 %v2277_v10, %v2254_v9  ;;  %v4225_v29 = vadd.f32 %v2277_v10, %v2255_v22  ;;  %v4227_v30 = vadd.f32 %v2277_v10, %v2256_v35 }
 0x266   :  { %v4229_v31 = vadd.f32 %v2277_v10, %v2257_v2  ;;  %v4231_v33 = vadd.f32 %v2277_v10, %v2258_v14  ;;  %v4233_v34 = vadd.f32 %v2277_v10, %v2259_v28  ;;  %v4235_v41 = vadd.f32 %v2277_v10, %v2260_v40 }
 0x267   :  { %v4237_v43 = vadd.f32 %v2277_v10, %v2261_v19  ;;  %v4239_v44 = vadd.f32 %v2277_v10, %v2262_v26  ;;  %v4241_v45 = vadd.f32 %v2277_v10, %v2263_v38  ;;  %v4243_v51 = vadd.f32 %v2277_v10, %v2264_v46 }
 0x268   :  { %v4245_v53 = vadd.f32 %v2277_v10, %v2265_v60  ;;  %v4247_v54 = vadd.f32 %v2277_v10, %v2266_v6  ;;  %v4249_v55 = vadd.f32 %v2277_v10, %v2267_v18  ;;  %v4251_v58 = vadd.f32 %v2277_v10, %v2268_v25 }
 0x269   :  { %v4253_v61 = vadd.f32 %v2277_v10, %v2269_v39  ;;  %v4255_v63 = vadd.f32 %v2277_v10, %v2270_v49  ;;  %v4257_v3 = vadd.f32 %v2277_v10, %v2271_v13  ;;  %v4259_v5 = vadd.f32 %v2277_v10, %v2272_v48 }
 0x26a   :  { %vm2315_vm0 = vcmp.ge.f32.partialorder %v4189_v56, 0.0  ;;  %vm2316_vm1 = vcmp.ge.f32.partialorder %v4191_v8, 0.0  ;;  %vm2317_vm2 = vcmp.ge.f32.partialorder %v4193_v24, 0.0  ;;  %vm2318_vm3 = vcmp.ge.f32.partialorder %v4195_v1, 0.0 }
 0x26b   :  { %vm2319_vm4 = vcmp.ge.f32.partialorder %v4197_v11, 0.0  ;;  %vm2320_vm5 = vcmp.ge.f32.partialorder %v4199_v36, 0.0  ;;  %vm2321_vm6 = vcmp.ge.f32.partialorder %v4201_v12, 0.0  ;;  %vm2322_vm7 = vcmp.ge.f32.partialorder %v4203_v23, 0.0 }
 0x26c   :  { %vm2323_vm8 = vcmp.ge.f32.partialorder %v4205_v32, 0.0  ;;  %v2351_v7 = vmul.f32 0.2, %v4189_v56  ;;  %v2352_v37 = vmul.f32 0.2, %v4191_v8  ;;  %vm2326_vm11 = vcmp.ge.f32.partialorder %v4211_v15, 0.0 }
 0x26d   :  { %v2353_v42 = vmul.f32 0.2, %v4193_v24  ;;  %vm2327_vm12 = vcmp.ge.f32.partialorder %v4213_v16, 0.0  ;;  %v2354_v47 = vmul.f32 0.2, %v4195_v1  ;;  %vm2332_vm10 = vcmp.ge.f32.partialorder %v4223_v27, 0.0 }
 0x26e   :  { %v2355_v52 = vmul.f32 0.2, %v4197_v11  ;;  %v2356_v57 = vmul.f32 0.2, %v4199_v36  ;;  %v2357_v62 = vmul.f32 0.2, %v4201_v12  ;;  %v4291_v19 = vsel %vm2315_vm0, %v4189_v56, %v2351_v7 }
 0x26f   :  { %v2358_v4 = vmul.f32 0.2, %v4203_v23  ;;  %v2359_v9 = vmul.f32 0.2, %v4205_v32  ;;  %4512 = vst [vmem:[#allocation2_spill] sm:$0xff] %v4291_v19  ;;  %vm2336_vm9 = vcmp.ge.f32.partialorder %v4231_v33, 0.0  ;;  %v4303_v60 = vsel %vm2316_vm1, %v4191_v8, %v2352_v37 }
 0x270   :  { %v2360_v26 = vmul.f32 0.2, %v4207_v50  ;;  %v2361_v38 = vmul.f32 0.2, %v4209_v59  ;;  %v2362_v46 = vmul.f32 0.2, %v4211_v15  ;;  %v4315_v39 = vsel %vm2317_vm2, %v4193_v24, %v2353_v42 }
 0x271   :  { %4513 = vst [vmem:[#allocation3_spill] sm:$0xff] %v4303_v60  ;;  %vm2340_vm15 = vcmp.ge.f32.partialorder %v4239_v44, 0.0  ;;  %v2363_v6 = vmul.f32 0.2, %v4213_v16  ;;  %v2364_v18 = vmul.f32 0.2, %v4215_v17  ;;  %v4327_v35 = vsel %vm2318_vm3, %v4195_v1, %v2354_v47 }
 0x272   :  { %v2365_v25 = vmul.f32 0.2, %v4217_v0  ;;  %4514 = vst [vmem:[#allocation4_spill] sm:$0xff] %v4315_v39  ;;  %vm2344_vm14 = vcmp.ge.f32.partialorder %v4247_v54, 0.0  ;;  %v2366_v49 = vmul.f32 0.2, %v4219_v20  ;;  %v2391_v14 = vsel %vm2319_vm4, %v4197_v11, %v2355_v52 }
 0x273   :  { %v2367_v13 = vmul.f32 0.2, %v4221_v21  ;;  %v2368_v22 = vmul.f32 0.2, %v4223_v27  ;;  %4515 = vst [vmem:[#allocation5_spill] sm:$0xff] %v4327_v35  ;;  %vm2346_vm1 = vcmp.ge.f32.partialorder %v4251_v58, 0.0  ;;  %v2392_v8 = vsel %vm2320_vm5, %v4199_v36, %v2356_v57 }
 0x274   :  { %vm2347_vm0 = vcmp.ge.f32.partialorder %v4253_v61, 0.0  ;;  %vm2348_vm13 = vcmp.ge.f32.partialorder %v4255_v63, 0.0  ;;  %v2369_v48 = vmul.f32 0.2, %v4225_v29  ;;  %v2370_v10 = vmul.f32 0.2, %v4227_v30 }
 0x275   :  { %v2371_v2 = vmul.f32 0.2, %v4229_v31  ;;  %vm2349_vm3 = vcmp.ge.f32.partialorder %v4257_v3, 0.0  ;;  %vm2350_vm2 = vcmp.ge.f32.partialorder %v4259_v5, 0.0  ;;  %v2372_v28 = vmul.f32 0.2, %v4231_v33 }
 0x276   :  { %v2373_v40 = vmul.f32 0.2, %v4233_v34  ;;  %v2374_v56 = vmul.f32 0.2, %v4235_v41  ;;  %v2375_v24 = vmul.f32 0.2, %v4237_v43  ;;  %v2393_v7 = vsel %vm2321_vm6, %v4201_v12, %v2357_v62 }
 0x277   :  { %v2376_v1 = vmul.f32 0.2, %v4239_v44  ;;  %v2377_v11 = vmul.f32 0.2, %v4241_v45  ;;  %v2378_v37 = vmul.f32 0.2, %v4243_v51  ;;  %v2394_v36 = vsel %vm2322_vm7, %v4203_v23, %v2358_v4 }
 0x278   :  { %v2379_v42 = vmul.f32 0.2, %v4245_v53  ;;  %v2380_v47 = vmul.f32 0.2, %v4247_v54  ;;  %v2381_v52 = vmul.f32 0.2, %v4249_v55  ;;  %v2395_v12 = vsel %vm2323_vm8, %v4205_v32, %v2359_v9 }
 0x279   :  { %v2382_v57 = vmul.f32 0.2, %v4251_v58  ;;  %v2383_v35 = vmul.f32 0.2, %v4253_v61  ;;  %v2384_v62 = vmul.f32 0.2, %v4255_v63  ;;  %v2398_v19 = vsel %vm2326_vm11, %v4211_v15, %v2362_v46 }
 0x27a   :  { %v2385_v39 = vmul.f32 0.2, %v4257_v3  ;;  %v2386_v60 = vmul.f32 0.2, %v4259_v5  ;;  %vm4516_vm4 = vcmp.ge.f32.partialorder %v4207_v50, 0.0  ;;  %vm4517_vm5 = vcmp.ge.f32.partialorder %v4209_v59, 0.0 }
 0x27b   :  { %v2396_v23 = vsel %vm4516_vm4, %v4207_v50, %v2360_v26  ;;  %v2397_v4 = vsel %vm4517_vm5, %v4209_v59, %v2361_v38  ;;  %v2399_v32 = vsel %vm2327_vm12, %v4213_v16, %v2363_v6  ;;  %vm4518_vm6 = vcmp.ge.f32.partialorder %v4215_v17, 0.0  ;;  %v4532_v26 = vld [vmem:[#allocation2_spill] sm:$0xff]  ;;  %v4533_v38 = vld [vmem:[#allocation3_spill] sm:$0xff]  ;;  %v4535_v6 = vld [vmem:[#allocation5_spill] sm:$0xff] }
 0x27c   :  { %v2400_v9 = vsel %vm4518_vm6, %v4215_v17, %v2364_v18  ;;  %vm4519_vm7 = vcmp.ge.f32.partialorder %v4217_v0, 0.0  ;;  %vm4520_vm8 = vcmp.ge.f32.partialorder %v4219_v20, 0.0  ;;  %vm4521_vm4 = vcmp.ge.f32.partialorder %v4221_v21, 0.0 }
 0x27d   :  { %v2401_v50 = vsel %vm4519_vm7, %v4217_v0, %v2365_v25  ;;  %v2402_v59 = vsel %vm4520_vm8, %v4219_v20, %v2366_v49  ;;  %v2403_v15 = vsel %vm4521_vm4, %v4221_v21, %v2367_v13  ;;  %v2404_v16 = vsel %vm2332_vm10, %v4223_v27, %v2368_v22 }
 0x27e   :  { %vm4522_vm11 = vcmp.ge.f32.partialorder %v4225_v29, 0.0  ;;  %vm4523_vm12 = vcmp.ge.f32.partialorder %v4227_v30, 0.0  ;;  %vm4524_vm5 = vcmp.ge.f32.partialorder %v4229_v31, 0.0  ;;  %v2408_v21 = vsel %vm2336_vm9, %v4231_v33, %v2372_v28 }
 0x27f   :  { %v2405_v17 = vsel %vm4522_vm11, %v4225_v29, %v2369_v48  ;;  %v2406_v0 = vsel %vm4523_vm12, %v4227_v30, %v2370_v10  ;;  %v2407_v20 = vsel %vm4524_vm5, %v4229_v31, %v2371_v2  ;;  %vm4525_vm6 = vcmp.ge.f32.partialorder %v4233_v34, 0.0 }
 0x280   :  { %v2409_v27 = vsel %vm4525_vm6, %v4233_v34, %v2373_v40  ;;  %vm4526_vm10 = vcmp.ge.f32.partialorder %v4235_v41, 0.0  ;;  %vm4527_vm7 = vcmp.ge.f32.partialorder %v4237_v43, 0.0  ;;  %v2412_v31 = vsel %vm2340_vm15, %v4239_v44, %v2376_v1 }
 0x281   :  { %v2410_v29 = vsel %vm4526_vm10, %v4235_v41, %v2374_v56  ;;  %v2411_v30 = vsel %vm4527_vm7, %v4237_v43, %v2375_v24  ;;  %vm4528_vm8 = vcmp.ge.f32.partialorder %v4241_v45, 0.0  ;;  %vm4529_vm9 = vcmp.ge.f32.partialorder %v4243_v51, 0.0 }
 0x282   :  { %v2413_v33 = vsel %vm4528_vm8, %v4241_v45, %v2377_v11  ;;  %v2414_v34 = vsel %vm4529_vm9, %v4243_v51, %v2378_v37  ;;  %vm4530_vm4 = vcmp.ge.f32.partialorder %v4245_v53, 0.0  ;;  %v2416_v43 = vsel %vm2344_vm14, %v4247_v54, %v2380_v47 }
 0x283   :  { %v2415_v41 = vsel %vm4530_vm4, %v4245_v53, %v2379_v42  ;;  %vm4531_vm11 = vcmp.ge.f32.partialorder %v4249_v55, 0.0  ;;  %v2418_v45 = vsel %vm2346_vm1, %v4251_v58, %v2382_v57  ;;  %v2419_v51 = vsel %vm2347_vm0, %v4253_v61, %v2383_v35  ;;  %v4534_v58 = vld [vmem:[#allocation4_spill] sm:$0xff] }
 0x284   :  { %v2417_v44 = vsel %vm4531_vm11, %v4249_v55, %v2381_v52  ;;  %v2420_v53 = vsel %vm2348_vm13, %v4255_v63, %v2384_v62  ;;  %v2421_v54 = vsel %vm2349_vm3, %v4257_v3, %v2385_v39  ;;  %v2422_v55 = vsel %vm2350_vm2, %v4259_v5, %v2386_v60 }
 0x285   :  { %v2890_v46 = vpack.c.bf16 %v4533_v38, %v4532_v26  ;;  %v2895_v18 = vpack.c.bf16 %v4535_v6, %v4534_v58  ;;  %v2900_v25 = vpack.c.bf16 %v2392_v8, %v2391_v14  ;;  %v2905_v61 = vpack.c.bf16 %v2394_v36, %v2393_v7 }
 0x286   :  { %v2910_v49 = vpack.c.bf16 %v2396_v23, %v2395_v12  ;;  %v2915_v13 = vpack.c.bf16 %v2398_v19, %v2397_v4  ;;  %v2920_v63 = vpack.c.bf16 %v2400_v9, %v2399_v32  ;;  %v2925_v3 = vpack.c.bf16 %v2402_v59, %v2401_v50 }
 0x287   :  { %2891 = vst [vmem:[%s4511_s4] sm:$0xff] %v2890_v46   ;;  %2977 = vst [vmem:[%s4511_s4 + $0x8] sm:$0xff] %v2895_v18   ;;  %v2930_v5 = vpack.c.bf16 %v2404_v16, %v2403_v15  ;;  %v2935_v60 = vpack.c.bf16 %v2406_v0, %v2405_v17  ;;  %v2940_v19 = vpack.c.bf16 %v2408_v21, %v2407_v20 }
 0x288   :  { %2978 = vst [vmem:[%s4511_s4 + $0x10] sm:$0xff] %v2900_v25   ;;  %2979 = vst [vmem:[%s4511_s4 + $0x18] sm:$0xff] %v2905_v61   ;;  %v2945_v39 = vpack.c.bf16 %v2410_v29, %v2409_v27  ;;  %v2950_v22 = vpack.c.bf16 %v2412_v31, %v2411_v30  ;;  %v2955_v35 = vpack.c.bf16 %v2414_v34, %v2413_v33 }
 0x289   :  { %2980 = vst [vmem:[%s4511_s4 + $0x20] sm:$0xff] %v2910_v49   ;;  %2981 = vst [vmem:[%s4511_s4 + $0x28] sm:$0xff] %v2915_v13   ;;  %v2960_v48 = vpack.c.bf16 %v2416_v43, %v2415_v41  ;;  %v2965_v10 = vpack.c.bf16 %v2418_v45, %v2417_v44  ;;  %v2970_v2 = vpack.c.bf16 %v2420_v53, %v2419_v51 }
 0x28a   :  { %2982 = vst [vmem:[%s4511_s4 + $0x30] sm:$0xff] %v2920_v63   ;;  %2983 = vst [vmem:[%s4511_s4 + $0x38] sm:$0xff] %v2925_v3   ;;  %v2975_v14 = vpack.c.bf16 %v2422_v55, %v2421_v54 }
 0x28b   :  { %2984 = vst [vmem:[%s4511_s4 + $0x40] sm:$0xff] %v2930_v5   ;;  %2985 = vst [vmem:[%s4511_s4 + $0x48] sm:$0xff] %v2935_v60  }
 0x28c   :  { %2986 = vst [vmem:[%s4511_s4 + $0x50] sm:$0xff] %v2940_v19   ;;  %2987 = vst [vmem:[%s4511_s4 + $0x58] sm:$0xff] %v2945_v39  }
 0x28d   :  { %2988 = vst [vmem:[%s4511_s4 + $0x60] sm:$0xff] %v2950_v22   ;;  %2989 = vst [vmem:[%s4511_s4 + $0x68] sm:$0xff] %v2955_v35  }
 0x28e   :  { %2990 = vst [vmem:[%s4511_s4 + $0x70] sm:$0xff] %v2960_v48   ;;  %2991 = vst [vmem:[%s4511_s4 + $0x78] sm:$0xff] %v2965_v10  }
 0x28f   :  { %2992 = vst [vmem:[%s4511_s4 + $0x80] sm:$0xff] %v2970_v2   ;;  %2993 = vst [vmem:[%s4511_s4 + $0x88] sm:$0xff] %v2975_v14  }

// kernel: discriminator_forward.7
= control target key start
LH: loop header
LB: loop body
LE: loop exit
PB: predicated region body
PF: predicated region fallthrough
CT: control target
= control target key end

     0   :  { %s2202_s1 = inlined_call_operand.vmem [shape: bf16[512,256], index: 1, kind: input, shape index: {}]   ;;  %s2203_s0 = inlined_call_operand.vmem [shape: bf16[112,512], index: 0, kind: input, shape index: {}]   ;;  %s2204_s2 = inlined_call_operand.vmem [shape: f32[1,256], index: 2, kind: input, shape index: {}]   ;;  %s2205_s3 = inlined_call_operand.vmem [shape: f32[1,256], index: 3, kind: input, shape index: {}]   ;;  %s2206_s4 = inlined_call_operand.vmem [shape: bf16[112,256], index: 4, kind: output, shape index: {}]  }
   0x1   :  { %v1346_v0 = vld [vmem:[%s2202_s1 + $0x4] ss:$8 sps:$4 sm:$0xff]   ;;  %v1350_v2 = vld [vmem:[%s2202_s1] ss:$8 sps:$4 sm:$0xff]   ;;  %v1352_v4 = vld [vmem:[%s2202_s1 + $0x14] ss:$8 sps:$4 sm:$0xff]  }
   0x2   :  { %v1348_v1 = vld [vmem:[%s2202_s1 + $0x104] ss:$8 sps:$4 sm:$0xff]   ;;  %569 = vmatprep.subr.bf16.mxu1 %v1346_v0  ;;  %v1351_v3 = vld [vmem:[%s2202_s1 + $0x100] ss:$8 sps:$4 sm:$0xff]   ;;  %v1354_v5 = vld [vmem:[%s2202_s1 + $0x114] ss:$8 sps:$4 sm:$0xff]  }
   0x3   :  { %672 = vmatprep.subr.bf16.mxu0 %v1348_v1  ;;  %570 = vmatpush1.bf16.msra.mxu1 %v1350_v2  ;;  %v1356_v6 = vld [vmem:[%s2202_s1 + $0x10] ss:$8 sps:$4 sm:$0xff]   ;;  %v1358_v8 = vld [vmem:[%s2202_s1 + $0x24] ss:$8 sps:$4 sm:$0xff]   ;;  %v1362_v10 = vld [vmem:[%s2202_s1 + $0x20] ss:$8 sps:$4 sm:$0xff]  }
   0x4   :  { %673 = vmatpush1.bf16.msra.mxu0 %v1351_v3  ;;  %571 = vmatprep.subr.bf16.mxu1 %v1352_v4  ;;  %v1357_v7 = vld [vmem:[%s2202_s1 + $0x110] ss:$8 sps:$4 sm:$0xff]   ;;  %v1360_v9 = vld [vmem:[%s2202_s1 + $0x124] ss:$8 sps:$4 sm:$0xff]   ;;  %v1363_v11 = vld [vmem:[%s2202_s1 + $0x120] ss:$8 sps:$4 sm:$0xff]  }
   0x5   :  { %674 = vmatprep.subr.bf16.mxu0 %v1354_v5  ;;  %v1364_v12 = vld [vmem:[%s2202_s1 + $0x34] ss:$8 sps:$4 sm:$0xff]   ;;  %v1368_v14 = vld [vmem:[%s2202_s1 + $0x30] ss:$8 sps:$4 sm:$0xff]   ;;  %v1370_v16 = vld [vmem:[%s2202_s1 + $0x44] ss:$8 sps:$4 sm:$0xff]  }
   0x6   :  { %v1366_v13 = vld [vmem:[%s2202_s1 + $0x134] ss:$8 sps:$4 sm:$0xff]   ;;  %v1369_v15 = vld [vmem:[%s2202_s1 + $0x130] ss:$8 sps:$4 sm:$0xff]   ;;  %v1372_v17 = vld [vmem:[%s2202_s1 + $0x144] ss:$8 sps:$4 sm:$0xff]  }
   0x7   :  { %572 = vmatpush1.bf16.msra.mxu1 %v1356_v6  ;;  %v1374_v18 = vld [vmem:[%s2202_s1 + $0x40] ss:$8 sps:$4 sm:$0xff]   ;;  %v1376_v20 = vld [vmem:[%s2202_s1 + $0x54] ss:$8 sps:$4 sm:$0xff]   ;;  %v1380_v22 = vld [vmem:[%s2202_s1 + $0x50] ss:$8 sps:$4 sm:$0xff]  }
   0x8   :  { %675 = vmatpush1.bf16.msra.mxu0 %v1357_v7  ;;  %573 = vmatprep.subr.bf16.mxu1 %v1358_v8  ;;  %v1375_v19 = vld [vmem:[%s2202_s1 + $0x140] ss:$8 sps:$4 sm:$0xff]   ;;  %v1378_v21 = vld [vmem:[%s2202_s1 + $0x154] ss:$8 sps:$4 sm:$0xff]   ;;  %v1381_v23 = vld [vmem:[%s2202_s1 + $0x150] ss:$8 sps:$4 sm:$0xff]  }
   0x9   :  { %676 = vmatprep.subr.bf16.mxu0 %v1360_v9  ;;  %v1382_v24 = vld [vmem:[%s2202_s1 + $0x64] ss:$8 sps:$4 sm:$0xff]   ;;  %v1386_v26 = vld [vmem:[%s2202_s1 + $0x60] ss:$8 sps:$4 sm:$0xff]   ;;  %v1388_v28 = vld [vmem:[%s2202_s1 + $0x74] ss:$8 sps:$4 sm:$0xff]  }
   0xa   :  { %v1384_v25 = vld [vmem:[%s2202_s1 + $0x164] ss:$8 sps:$4 sm:$0xff]   ;;  %v1387_v27 = vld [vmem:[%s2202_s1 + $0x160] ss:$8 sps:$4 sm:$0xff]   ;;  %v1390_v29 = vld [vmem:[%s2202_s1 + $0x174] ss:$8 sps:$4 sm:$0xff]  }
   0xb   :  { %574 = vmatpush1.bf16.msra.mxu1 %v1362_v10  ;;  %v1392_v30 = vld [vmem:[%s2202_s1 + $0x70] ss:$8 sps:$4 sm:$0xff]   ;;  %v1394_v32 = vld [vmem:[%s2202_s1 + $0x84] ss:$8 sps:$4 sm:$0xff]   ;;  %v1398_v34 = vld [vmem:[%s2202_s1 + $0x80] ss:$8 sps:$4 sm:$0xff]  }
   0xc   :  { %677 = vmatpush1.bf16.msra.mxu0 %v1363_v11  ;;  %575 = vmatprep.subr.bf16.mxu1 %v1364_v12  ;;  %v1393_v31 = vld [vmem:[%s2202_s1 + $0x170] ss:$8 sps:$4 sm:$0xff]   ;;  %v1396_v33 = vld [vmem:[%s2202_s1 + $0x184] ss:$8 sps:$4 sm:$0xff]   ;;  %v1399_v35 = vld [vmem:[%s2202_s1 + $0x180] ss:$8 sps:$4 sm:$0xff]  }
   0xd   :  { %678 = vmatprep.subr.bf16.mxu0 %v1366_v13  ;;  %v1400_v36 = vld [vmem:[%s2202_s1 + $0x94] ss:$8 sps:$4 sm:$0xff]   ;;  %v1404_v38 = vld [vmem:[%s2202_s1 + $0x90] ss:$8 sps:$4 sm:$0xff]   ;;  %v1406_v40 = vld [vmem:[%s2202_s1 + $0xa4] ss:$8 sps:$4 sm:$0xff]  }
   0xe   :  { %v1402_v37 = vld [vmem:[%s2202_s1 + $0x194] ss:$8 sps:$4 sm:$0xff]   ;;  %v1405_v39 = vld [vmem:[%s2202_s1 + $0x190] ss:$8 sps:$4 sm:$0xff]   ;;  %v1408_v41 = vld [vmem:[%s2202_s1 + $0x1a4] ss:$8 sps:$4 sm:$0xff]  }
   0xf   :  { %576 = vmatpush1.bf16.msra.mxu1 %v1368_v14  ;;  %v1410_v42 = vld [vmem:[%s2202_s1 + $0xa0] ss:$8 sps:$4 sm:$0xff]   ;;  %v1412_v44 = vld [vmem:[%s2202_s1 + $0xb4] ss:$8 sps:$4 sm:$0xff]   ;;  %v1416_v46 = vld [vmem:[%s2202_s1 + $0xb0] ss:$8 sps:$4 sm:$0xff]  }
  0x10   :  { %679 = vmatpush1.bf16.msra.mxu0 %v1369_v15  ;;  %577 = vmatprep.subr.bf16.mxu1 %v1370_v16  ;;  %v1411_v43 = vld [vmem:[%s2202_s1 + $0x1a0] ss:$8 sps:$4 sm:$0xff]   ;;  %v1414_v45 = vld [vmem:[%s2202_s1 + $0x1b4] ss:$8 sps:$4 sm:$0xff]   ;;  %v1417_v47 = vld [vmem:[%s2202_s1 + $0x1b0] ss:$8 sps:$4 sm:$0xff]  }
  0x11   :  { %680 = vmatprep.subr.bf16.mxu0 %v1372_v17  ;;  %v1418_v48 = vld [vmem:[%s2202_s1 + $0xc4] ss:$8 sps:$4 sm:$0xff]   ;;  %v1422_v52 = vld [vmem:[%s2202_s1 + $0xc0] ss:$8 sps:$4 sm:$0xff]   ;;  %v1424_v54 = vld [vmem:[%s2202_s1 + $0xd4] ss:$8 sps:$4 sm:$0xff]  }
  0x12   :  { %v1444_v49 = vld [vmem:[%s2203_s0 + $0x4] ss:$16 sps:$4 sm:$0xff]   ;;  %v1447_v51 = vld [vmem:[%s2203_s0 + $0xc] ss:$16 sps:$4 sm:$0xff]   ;;  %v1423_v53 = vld [vmem:[%s2202_s1 + $0x1c0] ss:$8 sps:$4 sm:$0xff]  }
  0x13   :  { %578 = vmatpush1.bf16.msra.mxu1 %v1374_v18  ;;  %v1420_v50 = vld [vmem:[%s2202_s1 + $0x1c4] ss:$8 sps:$4 sm:$0xff]   ;;  %601 = vmatprep.mubr.bf16.mxu1 %v1444_v49  ;;  %v1426_v55 = vld [vmem:[%s2202_s1 + $0x1d4] ss:$8 sps:$4 sm:$0xff]   ;;  %v1428_v56 = vld [vmem:[%s2202_s1 + $0xd0] ss:$8 sps:$4 sm:$0xff]  }
  0x14   :  { %681 = vmatpush1.bf16.msra.mxu0 %v1375_v19  ;;  %579 = vmatprep.subr.bf16.mxu1 %v1376_v20  ;;  %v1429_v57 = vld [vmem:[%s2202_s1 + $0x1d0] ss:$8 sps:$4 sm:$0xff]   ;;  %v1430_v58 = vld [vmem:[%s2202_s1 + $0xe4] ss:$8 sps:$4 sm:$0xff]   ;;  %v1434_v60 = vld [vmem:[%s2202_s1 + $0xe0] ss:$8 sps:$4 sm:$0xff]  }
  0x15   :  { %682 = vmatprep.subr.bf16.mxu0 %v1378_v21  ;;  %704 = vmatprep.mubr.bf16.mxu0 %v1447_v51  ;;  %v1432_v59 = vld [vmem:[%s2202_s1 + $0x1e4] ss:$8 sps:$4 sm:$0xff]   ;;  %v1435_v61 = vld [vmem:[%s2202_s1 + $0x1e0] ss:$8 sps:$4 sm:$0xff]   ;;  %v1436_v62 = vld [vmem:[%s2202_s1 + $0xf4] ss:$8 sps:$4 sm:$0xff]  }
  0x16   :  { %v1438_v63 = vld [vmem:[%s2202_s1 + $0x1f4] ss:$8 sps:$4 sm:$0xff]   ;;  %v1440_v0 = vld [vmem:[%s2202_s1 + $0xf0] ss:$8 sps:$4 sm:$0xff]  }
  0x17   :  { %580 = vmatpush1.bf16.msra.mxu1 %v1380_v22  ;;  %v1441_v1 = vld [vmem:[%s2202_s1 + $0x1f0] ss:$8 sps:$4 sm:$0xff]   ;;  %v1448_v4 = vld [vmem:[%s2203_s0 + $0x24] ss:$16 sps:$4 sm:$0xff]   ;;  %v1450_v5 = vld [vmem:[%s2203_s0 + $0x2c] ss:$16 sps:$4 sm:$0xff]  }
  0x18   :  { %683 = vmatpush1.bf16.msra.mxu0 %v1381_v23  ;;  %581 = vmatprep.subr.bf16.mxu1 %v1382_v24  ;;  %v1442_v2 = vld [vmem:[%s2203_s0] ss:$16 sps:$4 sm:$0xff]   ;;  %v1445_v3 = vld [vmem:[%s2203_s0 + $0x8] ss:$16 sps:$4 sm:$0xff]   ;;  %v1454_v8 = vld [vmem:[%s2203_s0 + $0x44] ss:$16 sps:$4 sm:$0xff]  }
  0x19   :  { %684 = vmatprep.subr.bf16.mxu0 %v1384_v25  ;;  %v1452_v6 = vld [vmem:[%s2203_s0 + $0x20] ss:$16 sps:$4 sm:$0xff]   ;;  %v1453_v7 = vld [vmem:[%s2203_s0 + $0x28] ss:$16 sps:$4 sm:$0xff]   ;;  %v1456_v9 = vld [vmem:[%s2203_s0 + $0x4c] ss:$16 sps:$4 sm:$0xff]  }
  0x1a   :  { %v1458_v10 = vld [vmem:[%s2203_s0 + $0x40] ss:$16 sps:$4 sm:$0xff]   ;;  %v1459_v11 = vld [vmem:[%s2203_s0 + $0x48] ss:$16 sps:$4 sm:$0xff]   ;;  %v1460_v12 = vld [vmem:[%s2203_s0 + $0x64] ss:$16 sps:$4 sm:$0xff]  }
  0x1b   :  { %582 = vmatpush1.bf16.msra.mxu1 %v1386_v26  ;;  %v1462_v13 = vld [vmem:[%s2203_s0 + $0x6c] ss:$16 sps:$4 sm:$0xff]   ;;  %v1464_v14 = vld [vmem:[%s2203_s0 + $0x60] ss:$16 sps:$4 sm:$0xff]   ;;  %v1465_v15 = vld [vmem:[%s2203_s0 + $0x68] ss:$16 sps:$4 sm:$0xff]  }
  0x1c   :  { %685 = vmatpush1.bf16.msra.mxu0 %v1387_v27  ;;  %583 = vmatprep.subr.bf16.mxu1 %v1388_v28  ;;  %v1466_v16 = vld [vmem:[%s2203_s0 + $0x84] ss:$16 sps:$4 sm:$0xff]   ;;  %v1468_v17 = vld [vmem:[%s2203_s0 + $0x8c] ss:$16 sps:$4 sm:$0xff]   ;;  %v1470_v18 = vld [vmem:[%s2203_s0 + $0x80] ss:$16 sps:$4 sm:$0xff]  }
  0x1d   :  { %686 = vmatprep.subr.bf16.mxu0 %v1390_v29  ;;  %v1471_v19 = vld [vmem:[%s2203_s0 + $0x88] ss:$16 sps:$4 sm:$0xff]   ;;  %v1472_v20 = vld [vmem:[%s2203_s0 + $0xa4] ss:$16 sps:$4 sm:$0xff]   ;;  %v1474_v21 = vld [vmem:[%s2203_s0 + $0xac] ss:$16 sps:$4 sm:$0xff]  }
  0x1e   :  { %v1476_v22 = vld [vmem:[%s2203_s0 + $0xa0] ss:$16 sps:$4 sm:$0xff]   ;;  %v1477_v23 = vld [vmem:[%s2203_s0 + $0xa8] ss:$16 sps:$4 sm:$0xff]   ;;  %v1478_v24 = vld [vmem:[%s2203_s0 + $0xc4] ss:$16 sps:$4 sm:$0xff]  }
  0x1f   :  { %584 = vmatpush1.bf16.msra.mxu1 %v1392_v30  ;;  %v1480_v25 = vld [vmem:[%s2203_s0 + $0xcc] ss:$16 sps:$4 sm:$0xff]   ;;  %v1482_v26 = vld [vmem:[%s2203_s0 + $0xc0] ss:$16 sps:$4 sm:$0xff]   ;;  %v1483_v27 = vld [vmem:[%s2203_s0 + $0xc8] ss:$16 sps:$4 sm:$0xff]  }
  0x20   :  { %687 = vmatpush1.bf16.msra.mxu0 %v1393_v31  ;;  %585 = vmatprep.subr.bf16.mxu1 %v1394_v32 }
  0x21   :  { %688 = vmatprep.subr.bf16.mxu0 %v1396_v33 }
  0x23   :  { %586 = vmatpush1.bf16.msra.mxu1 %v1398_v34 }
  0x24   :  { %689 = vmatpush1.bf16.msra.mxu0 %v1399_v35  ;;  %587 = vmatprep.subr.bf16.mxu1 %v1400_v36 }
  0x25   :  { %690 = vmatprep.subr.bf16.mxu0 %v1402_v37 }
  0x27   :  { %588 = vmatpush1.bf16.msra.mxu1 %v1404_v38 }
  0x28   :  { %691 = vmatpush1.bf16.msra.mxu0 %v1405_v39  ;;  %589 = vmatprep.subr.bf16.mxu1 %v1406_v40 }
  0x29   :  { %692 = vmatprep.subr.bf16.mxu0 %v1408_v41 }
  0x2b   :  { %590 = vmatpush1.bf16.msra.mxu1 %v1410_v42 }
  0x2c   :  { %693 = vmatpush1.bf16.msra.mxu0 %v1411_v43  ;;  %591 = vmatprep.subr.bf16.mxu1 %v1412_v44 }
  0x2d   :  { %694 = vmatprep.subr.bf16.mxu0 %v1414_v45 }
  0x2f   :  { %592 = vmatpush1.bf16.msra.mxu1 %v1416_v46 }
  0x30   :  { %695 = vmatpush1.bf16.msra.mxu0 %v1417_v47  ;;  %593 = vmatprep.subr.bf16.mxu1 %v1418_v48 }
  0x31   :  { %696 = vmatprep.subr.bf16.mxu0 %v1420_v50 }
  0x33   :  { %594 = vmatpush1.bf16.msra.mxu1 %v1422_v52 }
  0x34   :  { %697 = vmatpush1.bf16.msra.mxu0 %v1423_v53  ;;  %595 = vmatprep.subr.bf16.mxu1 %v1424_v54 }
  0x35   :  { %698 = vmatprep.subr.bf16.mxu0 %v1426_v55 }
  0x37   :  { %596 = vmatpush1.bf16.msra.mxu1 %v1428_v56 }
  0x38   :  { %699 = vmatpush1.bf16.msra.mxu0 %v1429_v57  ;;  %597 = vmatprep.subr.bf16.mxu1 %v1430_v58 }
  0x39   :  { %700 = vmatprep.subr.bf16.mxu0 %v1432_v59 }
  0x3b   :  { %598 = vmatpush1.bf16.msra.mxu1 %v1434_v60 }
  0x3c   :  { %701 = vmatpush1.bf16.msra.mxu0 %v1435_v61  ;;  %599 = vmatprep.subr.bf16.mxu1 %v1436_v62 }
  0x3d   :  { %702 = vmatprep.subr.bf16.mxu0 %v1438_v63 }
  0x3f   :  { %600 = vmatpush1.bf16.msra.mxu1 %v1440_v0 }
  0x40   :  { %703 = vmatpush1.bf16.msra.mxu0 %v1441_v1 }
  0x42   :  { %602 = vmatmul.mubr.bf16.vlgmr.msra.gmra.mrb[0].mxu1 %v1442_v2 }
  0x43   :  { %705 = vmatmul.mubr.bf16.vlgmr.msra.gmra.mrb[0].mxu0 %v1445_v3  ;;  %611 = vmatprep.mubr.bf16.mxu1 %v1448_v4 }
  0x44   :  { %714 = vmatprep.mubr.bf16.mxu0 %v1450_v5 }
  0x4a   :  { %612 = vmatmul.mubr.bf16.gmra.mrb[4].mxu1 %v1452_v6 }
  0x4b   :  { %715 = vmatmul.mubr.bf16.gmra.mrb[4].mxu0 %v1453_v7  ;;  %621 = vmatprep.mubr.bf16.mxu1 %v1454_v8 }
  0x4c   :  { %724 = vmatprep.mubr.bf16.mxu0 %v1456_v9 }
  0x52   :  { %622 = vmatmul.mubr.bf16.gmra.mrb[8].mxu1 %v1458_v10 }
  0x53   :  { %725 = vmatmul.mubr.bf16.gmra.mrb[8].mxu0 %v1459_v11  ;;  %631 = vmatprep.mubr.bf16.mxu1 %v1460_v12 }
  0x54   :  { %734 = vmatprep.mubr.bf16.mxu0 %v1462_v13 }
  0x5a   :  { %632 = vmatmul.mubr.bf16.gmra.mrb[12].mxu1 %v1464_v14 }
  0x5b   :  { %735 = vmatmul.mubr.bf16.gmra.mrb[12].mxu0 %v1465_v15  ;;  %641 = vmatprep.mubr.bf16.mxu1 %v1466_v16 }
  0x5c   :  { %744 = vmatprep.mubr.bf16.mxu0 %v1468_v17 }
  0x62   :  { %642 = vmatmul.mubr.bf16.gmra.mrb[16].mxu1 %v1470_v18 }
  0x63   :  { %745 = vmatmul.mubr.bf16.gmra.mrb[16].mxu0 %v1471_v19  ;;  %651 = vmatprep.mubr.bf16.mxu1 %v1472_v20 }
  0x64   :  { %754 = vmatprep.mubr.bf16.mxu0 %v1474_v21 }
  0x6a   :  { %652 = vmatmul.mubr.bf16.gmra.mrb[20].mxu1 %v1476_v22 }
  0x6b   :  { %755 = vmatmul.mubr.bf16.gmra.mrb[20].mxu0 %v1477_v23  ;;  %661 = vmatprep.mubr.bf16.mxu1 %v1478_v24 }
  0x6c   :  { %764 = vmatprep.mubr.bf16.mxu0 %v1480_v25 }
  0x72   :  { %662 = vmatmul.mubr.bf16.gmra.mrb[24].mxu1 %v1482_v26 }
  0x73   :  { %765 = vmatmul.mubr.bf16.gmra.mrb[24].mxu0 %v1483_v27 }
 0x115   :  { %v603_v28 = vpop.f32.mrb[0].mxu1 }
 0x116   :  { %v706_v29 = vpop.f32.mrb[0].mxu0  ;;  %v605_v31 = vpop.f32.mrb[1].mxu1 }
 0x117   :  { %v1790_v30 = vadd.f32 %v706_v29, %v603_v28  ;;  %v708_v32 = vpop.f32.mrb[1].mxu0  ;;  %v607_v34 = vpop.f32.mrb[2].mxu1 }
 0x118   :  { %v1792_v33 = vadd.f32 %v708_v32, %v605_v31  ;;  %v710_v35 = vpop.f32.mrb[2].mxu0  ;;  %v609_v37 = vpop.f32.mrb[3].mxu1 }
 0x119   :  { %v1794_v36 = vadd.f32 %v710_v35, %v607_v34  ;;  %v712_v38 = vpop.f32.mrb[3].mxu0  ;;  %v813_v56 = vmul.f32 %v1790_v30, %v1790_v30 }
 0x11a   :  { %v1796_v39 = vadd.f32 %v712_v38, %v609_v37  ;;  %v814_v62 = vmul.f32 %v1792_v33, %v1792_v33 }
 0x11b   :  { %v815_v52 = vmul.f32 %v1794_v36, %v1794_v36  ;;  %v775_v57 = vadd.f32 %v1794_v36, %v1790_v30 }
 0x11c   :  { %v816_v53 = vmul.f32 %v1796_v39, %v1796_v39  ;;  %v794_v63 = vadd.f32 %v1796_v39, %v1792_v33 }
 0x11d   :  { %v613_v40 = vpop.f32.mrb[4].mxu1  ;;  %v841_v4 = vadd.f32 %v815_v52, %v813_v56 }
 0x11e   :  { %v716_v41 = vpop.f32.mrb[4].mxu0  ;;  %v615_v43 = vpop.f32.mrb[5].mxu1  ;;  %v860_v9 = vadd.f32 %v816_v53, %v814_v62 }
 0x11f   :  { %v1798_v42 = vadd.f32 %v716_v41, %v613_v40  ;;  %v718_v44 = vpop.f32.mrb[5].mxu0  ;;  %v617_v46 = vpop.f32.mrb[6].mxu1 }
 0x120   :  { %v1800_v45 = vadd.f32 %v718_v44, %v615_v43  ;;  %v720_v47 = vpop.f32.mrb[6].mxu0  ;;  %v619_v49 = vpop.f32.mrb[7].mxu1 }
 0x121   :  { %v1802_v48 = vadd.f32 %v720_v47, %v617_v46  ;;  %v722_v50 = vpop.f32.mrb[7].mxu0  ;;  %v817_v58 = vmul.f32 %v1798_v42, %v1798_v42  ;;  %v776_v5 = vadd.f32 %v775_v57, %v1798_v42 }
 0x122   :  { %v1804_v51 = vadd.f32 %v722_v50, %v619_v49  ;;  %v818_v0 = vmul.f32 %v1800_v45, %v1800_v45  ;;  %v795_v10 = vadd.f32 %v794_v63, %v1800_v45 }
 0x123   :  { %v842_v12 = vadd.f32 %v841_v4, %v817_v58  ;;  %v819_v13 = vmul.f32 %v1802_v48, %v1802_v48  ;;  %v777_v16 = vadd.f32 %v776_v5, %v1802_v48 }
 0x124   :  { %v861_v14 = vadd.f32 %v860_v9, %v818_v0  ;;  %v820_v15 = vmul.f32 %v1804_v51, %v1804_v51  ;;  %v796_v18 = vadd.f32 %v795_v10, %v1804_v51 }
 0x125   :  { %v623_v54 = vpop.f32.mrb[8].mxu1  ;;  %v843_v22 = vadd.f32 %v842_v12, %v819_v13 }
 0x126   :  { %v726_v55 = vpop.f32.mrb[8].mxu0  ;;  %v625_v60 = vpop.f32.mrb[9].mxu1  ;;  %v862_v27 = vadd.f32 %v861_v14, %v820_v15 }
 0x127   :  { %v1816_v59 = vadd.f32 %v726_v55, %v623_v54  ;;  %v728_v61 = vpop.f32.mrb[9].mxu0  ;;  %v627_v2 = vpop.f32.mrb[10].mxu1 }
 0x128   :  { %v1824_v1 = vadd.f32 %v728_v61, %v625_v60  ;;  %v730_v3 = vpop.f32.mrb[10].mxu0  ;;  %v629_v7 = vpop.f32.mrb[11].mxu1 }
 0x129   :  { %v1827_v6 = vadd.f32 %v730_v3, %v627_v2  ;;  %v732_v8 = vpop.f32.mrb[11].mxu0  ;;  %v821_v17 = vmul.f32 %v1816_v59, %v1816_v59  ;;  %v778_v23 = vadd.f32 %v777_v16, %v1816_v59 }
 0x12a   :  { %v1830_v11 = vadd.f32 %v732_v8, %v629_v7  ;;  %v822_v19 = vmul.f32 %v1824_v1, %v1824_v1  ;;  %v797_v28 = vadd.f32 %v796_v18, %v1824_v1 }
 0x12b   :  { %v844_v34 = vadd.f32 %v843_v22, %v821_v17  ;;  %v823_v35 = vmul.f32 %v1827_v6, %v1827_v6  ;;  %v779_v46 = vadd.f32 %v778_v23, %v1827_v6 }
 0x12c   :  { %v863_v41 = vadd.f32 %v862_v27, %v822_v19  ;;  %v824_v43 = vmul.f32 %v1830_v11, %v1830_v11  ;;  %v798_v49 = vadd.f32 %v797_v28, %v1830_v11 }
 0x12d   :  { %v633_v20 = vpop.f32.mrb[12].mxu1  ;;  %v845_v52 = vadd.f32 %v844_v34, %v823_v35 }
 0x12e   :  { %v736_v21 = vpop.f32.mrb[12].mxu0  ;;  %v635_v25 = vpop.f32.mrb[13].mxu1  ;;  %v864_v54 = vadd.f32 %v863_v41, %v824_v43 }
 0x12f   :  { %v1843_v24 = vadd.f32 %v736_v21, %v633_v20  ;;  %v738_v26 = vpop.f32.mrb[13].mxu0  ;;  %v637_v31 = vpop.f32.mrb[14].mxu1 }
 0x130   :  { %v1846_v29 = vadd.f32 %v738_v26, %v635_v25  ;;  %v740_v32 = vpop.f32.mrb[14].mxu0  ;;  %v639_v38 = vpop.f32.mrb[15].mxu1 }
 0x131   :  { %v1850_v37 = vadd.f32 %v740_v32, %v637_v31  ;;  %v742_v40 = vpop.f32.mrb[15].mxu0  ;;  %v825_v47 = vmul.f32 %v1843_v24, %v1843_v24  ;;  %v780_v53 = vadd.f32 %v779_v46, %v1843_v24 }
 0x132   :  { %v1854_v44 = vadd.f32 %v742_v40, %v639_v38  ;;  %v826_v50 = vmul.f32 %v1846_v29, %v1846_v29  ;;  %v799_v55 = vadd.f32 %v798_v49, %v1846_v29 }
 0x133   :  { %v846_v58 = vadd.f32 %v845_v52, %v825_v47  ;;  %v827_v60 = vmul.f32 %v1850_v37, %v1850_v37  ;;  %v781_v7 = vadd.f32 %v780_v53, %v1850_v37 }
 0x134   :  { %v865_v0 = vadd.f32 %v864_v54, %v826_v50  ;;  %v828_v2 = vmul.f32 %v1854_v44, %v1854_v44  ;;  %v800_v13 = vadd.f32 %v799_v55, %v1854_v44 }
 0x135   :  { %v643_v56 = vpop.f32.mrb[16].mxu1  ;;  %v847_v16 = vadd.f32 %v846_v58, %v827_v60 }
 0x136   :  { %v746_v57 = vpop.f32.mrb[16].mxu0  ;;  %v645_v62 = vpop.f32.mrb[17].mxu1  ;;  %v866_v18 = vadd.f32 %v865_v0, %v828_v2 }
 0x137   :  { %v1866_v61 = vadd.f32 %v746_v57, %v643_v56  ;;  %v748_v63 = vpop.f32.mrb[17].mxu0  ;;  %v647_v4 = vpop.f32.mrb[18].mxu1 }
 0x138   :  { %v1870_v3 = vadd.f32 %v748_v63, %v645_v62  ;;  %v750_v5 = vpop.f32.mrb[18].mxu0  ;;  %v649_v10 = vpop.f32.mrb[19].mxu1 }
 0x139   :  { %v829_v8 = vmul.f32 %v1866_v61, %v1866_v61  ;;  %v1875_v9 = vadd.f32 %v750_v5, %v647_v4  ;;  %v752_v12 = vpop.f32.mrb[19].mxu0  ;;  %v782_v17 = vadd.f32 %v781_v7, %v1866_v61 }
 0x13a   :  { %v830_v14 = vmul.f32 %v1870_v3, %v1870_v3  ;;  %v1880_v15 = vadd.f32 %v752_v12, %v649_v10  ;;  %v801_v19 = vadd.f32 %v800_v13, %v1870_v3 }
 0x13b   :  { %v848_v20 = vadd.f32 %v847_v16, %v829_v8  ;;  %v831_v21 = vmul.f32 %v1875_v9, %v1875_v9  ;;  %v783_v27 = vadd.f32 %v782_v17, %v1875_v9 }
 0x13c   :  { %v867_v22 = vadd.f32 %v866_v18, %v830_v14  ;;  %v832_v23 = vmul.f32 %v1880_v15, %v1880_v15  ;;  %v802_v34 = vadd.f32 %v801_v19, %v1880_v15 }
 0x13d   :  { %v653_v25 = vpop.f32.mrb[20].mxu1  ;;  %v849_v41 = vadd.f32 %v848_v20, %v831_v21 }
 0x13e   :  { %v756_v26 = vpop.f32.mrb[20].mxu0  ;;  %v655_v31 = vpop.f32.mrb[21].mxu1  ;;  %v868_v52 = vadd.f32 %v867_v22, %v832_v23 }
 0x13f   :  { %v1889_v28 = vadd.f32 %v756_v26, %v653_v25  ;;  %v758_v32 = vpop.f32.mrb[21].mxu0  ;;  %v657_v38 = vpop.f32.mrb[22].mxu1 }
 0x140   :  { %v1892_v35 = vadd.f32 %v758_v32, %v655_v31  ;;  %v760_v40 = vpop.f32.mrb[22].mxu0  ;;  %v659_v49 = vpop.f32.mrb[23].mxu1 }
 0x141   :  { %v784_v43 = vadd.f32 %v783_v27, %v1889_v28  ;;  %v833_v46 = vmul.f32 %v1889_v28, %v1889_v28  ;;  %v1897_v47 = vadd.f32 %v760_v40, %v657_v38  ;;  %v762_v50 = vpop.f32.mrb[23].mxu0 }
 0x142   :  { %v803_v53 = vadd.f32 %v802_v34, %v1892_v35  ;;  %v834_v54 = vmul.f32 %v1892_v35, %v1892_v35  ;;  %v1902_v55 = vadd.f32 %v762_v50, %v659_v49 }
 0x143   :  { %v850_v56 = vadd.f32 %v849_v41, %v833_v46  ;;  %v785_v57 = vadd.f32 %v784_v43, %v1897_v47  ;;  %v835_v58 = vmul.f32 %v1897_v47, %v1897_v47 }
 0x144   :  { %v869_v60 = vadd.f32 %v868_v52, %v834_v54  ;;  %v804_v62 = vadd.f32 %v803_v53, %v1902_v55  ;;  %v836_v63 = vmul.f32 %v1902_v55, %v1902_v55 }
 0x145   :  { %v851_v0 = vadd.f32 %v850_v56, %v835_v58  ;;  %v663_v4 = vpop.f32.mrb[24].mxu1 }
 0x146   :  { %v870_v2 = vadd.f32 %v869_v60, %v836_v63  ;;  %v766_v5 = vpop.f32.mrb[24].mxu0  ;;  %v665_v8 = vpop.f32.mrb[25].mxu1 }
 0x147   :  { %v1910_v7 = vadd.f32 %v766_v5, %v663_v4  ;;  %v768_v10 = vpop.f32.mrb[25].mxu0  ;;  %v667_v13 = vpop.f32.mrb[26].mxu1 }
 0x148   :  { %v1912_v12 = vadd.f32 %v768_v10, %v665_v8  ;;  %v770_v14 = vpop.f32.mrb[26].mxu0  ;;  %v669_v19 = vpop.f32.mrb[27].mxu1 }
 0x149   :  { %v786_v16 = vadd.f32 %v785_v57, %v1910_v7  ;;  %v837_v17 = vmul.f32 %v1910_v7, %v1910_v7  ;;  %v1917_v18 = vadd.f32 %v770_v14, %v667_v13  ;;  %v772_v20 = vpop.f32.mrb[27].mxu0 }
 0x14a   :  { %v805_v21 = vadd.f32 %v804_v62, %v1912_v12  ;;  %v838_v22 = vmul.f32 %v1912_v12, %v1912_v12  ;;  %v1922_v23 = vadd.f32 %v772_v20, %v669_v19 }
 0x14b   :  { %v852_v25 = vadd.f32 %v851_v0, %v837_v17  ;;  %v787_v26 = vadd.f32 %v786_v16, %v1917_v18  ;;  %v839_v27 = vmul.f32 %v1917_v18, %v1917_v18 }
 0x14c   :  { %v871_v31 = vadd.f32 %v870_v2, %v838_v22  ;;  %v806_v32 = vadd.f32 %v805_v21, %v1922_v23  ;;  %v840_v34 = vmul.f32 %v1922_v23, %v1922_v23 }
 0x14d   :  { %v788_v38 = vrot.slane %v787_v26, 4  ;;  %v853_v40 = vadd.f32 %v852_v25, %v839_v27 }
 0x14e   :  { %v807_v41 = vrot.slane %v806_v32, 4  ;;  %v872_v43 = vadd.f32 %v871_v31, %v840_v34 }
 0x14f   :  { %v789_v46 = vadd.f32 %v788_v38, %v787_v26  ;;  %v854_v49 = vrot.slane %v853_v40, 4  ;;  %v1488_v38 = vmov 1966171168  }
 0x150   :  { %v808_v50 = vadd.f32 %v807_v41, %v806_v32  ;;  %v873_v52 = vrot.slane %v872_v43, 4  ;;  %v898_v41 = vlaneseq }
 0x151   :  { %v790_v53 = vrot.slane %v789_v46, 2  ;;  %v855_v54 = vadd.f32 %v854_v49, %v853_v40  ;;  %v896_v40 = vunpack.c.l.s4 %v1488_v38 }
 0x152   :  { %v809_v56 = vrot.slane %v808_v50, 2  ;;  %v874_v57 = vadd.f32 %v873_v52, %v872_v43 }
 0x153   :  { %v791_v58 = vadd.f32 %v790_v53, %v789_v46  ;;  %v856_v60 = vrot.slane %v855_v54, 2  ;;  %v897_v43 = vunpack.c.0.s8 %v896_v40  ;;  %v899_v46 = vshrl.u32 %v898_v41, 7 }
 0x154   :  { %v810_v62 = vadd.f32 %v809_v56, %v808_v50  ;;  %v875_v63 = vrot.slane %v874_v57, 2  ;;  %v887_v56 = vld [vmem:[%s2204_s2] sm:$0x3] }
 0x155   :  { %v792_v0 = vrot.slane %v791_v58, 1  ;;  %v857_v2 = vadd.f32 %v856_v60, %v855_v54  ;;  %v900_v50 = vsub.s32 %v897_v43, %v899_v46  ;;  %v919_v60 = vsub.s32 1, %v899_v46 }
 0x156   :  { %v811_v4 = vrot.slane %v810_v62, 1  ;;  %v876_v5 = vadd.f32 %v875_v63, %v874_v57 }
 0x157   :  { %v793_v8 = vadd.f32 %v792_v0, %v791_v58  ;;  %v858_v10 = vrot.slane %v857_v2, 1  ;;  %v915_v58 = vsub.s32 0, %v899_v46 }
 0x158   :  { %v812_v13 = vadd.f32 %v811_v4, %v810_v62  ;;  %v877_v14 = vrot.slane %v876_v5, 1 }
 0x159   :  { %v859_v16 = vadd.f32 %v858_v10, %v857_v2  ;;  %v879_v17 = vmul.f32 0.010204081, %v793_v8 }
 0x15a   :  { %v878_v19 = vadd.f32 %v877_v14, %v876_v5  ;;  %v880_v20 = vmul.f32 0.010204081, %v812_v13 }
 0x15b   :  { %v881_v21 = vmul.f32 0.010204081, %v859_v16  ;;  %v883_v22 = vmul.f32 %v879_v17, %v879_v17 }
 0x15c   :  { %v882_v25 = vmul.f32 0.010204081, %v878_v19  ;;  %v884_v26 = vmul.f32 %v880_v20, %v880_v20  ;;  %v911_v19 = vld [vmem:[%s2205_s3] sm:$0x3] }
 0x15d   :  { %v885_v27 = vsub.f32 %v881_v21, %v883_v22 }
 0x15e   :  { %v886_v31 = vsub.f32 %v882_v25, %v884_v26 }
 0x15f   :  { %v888_v32 = vadd.f32 1e-05, %v885_v27 }
 0x160   :  { %v889_v34 = vadd.f32 1e-05, %v886_v31 }
 0x161   :  { %1484 = vrsqrt.f32 %v888_v32 }
 0x162   :  { %1486 = vrsqrt.f32 %v889_v34 }
 0x16b   :  { %v1485_v49 = vpop.eup %1484 }
 0x16c   :  { %v1487_v52 = vpop.eup %1486 }
 0x16d   :  { %v894_v53 = vcombine.low %v1485_v49, %v1487_v52 }
 0x16f   :  { %v901_v54 = vrot.slane %v894_v53, %v900_v50 }
 0x171   :  { %v908_v57 = vrot.slane %v901_v54, %v900_v50 }
 0x173   :  { %v910_v62 = vmul.f32 %v908_v57, %v887_v56 }
 0x175   :  { %v916_v63 = vrot.slane %v910_v62, %v915_v58  ;;  %v920_v0 = vrot.slane %v910_v62, %v919_v60 }
 0x177   :  { %v923_v2 = vmul.f32 %v916_v63, %v879_v17  ;;  %v924_v4 = vmul.f32 %v920_v0, %v880_v20  ;;  %v944_v8 = vmul.f32 %v916_v63, %v1790_v30  ;;  %v945_v13 = vmul.f32 %v920_v0, %v1792_v33 }
 0x178   :  { %v946_v14 = vmul.f32 %v916_v63, %v1794_v36  ;;  %v947_v16 = vmul.f32 %v920_v0, %v1796_v39  ;;  %v948_v21 = vmul.f32 %v916_v63, %v1798_v42  ;;  %v949_v22 = vmul.f32 %v920_v0, %v1800_v45 }
 0x179   :  { %v927_v5 = vcombine.low %v923_v2, %v924_v4  ;;  %v962_v17 = vmul.f32 %v916_v63, %v1875_v9  ;;  %v963_v20 = vmul.f32 %v920_v0, %v1880_v15  ;;  %v964_v25 = vmul.f32 %v916_v63, %v1889_v28 }
 0x17a   :  { %v965_v33 = vmul.f32 %v920_v0, %v1892_v35  ;;  %v966_v36 = vmul.f32 %v916_v63, %v1897_v47  ;;  %v967_v39 = vmul.f32 %v920_v0, %v1902_v55  ;;  %v968_v26 = vmul.f32 %v916_v63, %v1910_v7 }
 0x17b   :  { %v934_v10 = vrot.slane %v927_v5, %v900_v50  ;;  %v969_v27 = vmul.f32 %v920_v0, %v1912_v12  ;;  %v970_v42 = vmul.f32 %v916_v63, %v1917_v18  ;;  %v950_v9 = vmul.f32 %v916_v63, %v1802_v48 }
 0x17c   :  { %v951_v15 = vmul.f32 %v920_v0, %v1804_v51  ;;  %v971_v31 = vmul.f32 %v920_v0, %v1922_v23  ;;  %v952_v28 = vmul.f32 %v916_v63, %v1816_v59  ;;  %v953_v35 = vmul.f32 %v920_v0, %v1824_v1 }
 0x17d   :  { %v941_v30 = vrot.slane %v934_v10, %v900_v50  ;;  %v954_v47 = vmul.f32 %v916_v63, %v1827_v6  ;;  %v955_v55 = vmul.f32 %v920_v0, %v1830_v11  ;;  %v956_v7 = vmul.f32 %v916_v63, %v1843_v24 }
 0x17e   :  { %v957_v12 = vmul.f32 %v920_v0, %v1846_v29  ;;  %v958_v48 = vmul.f32 %v916_v63, %v1850_v37  ;;  %v959_v51 = vmul.f32 %v920_v0, %v1854_v44  ;;  %v960_v23 = vmul.f32 %v916_v63, %v1866_v61 }
 0x17f   :  { %v943_v45 = vsub.f32 %v911_v19, %v941_v30  ;;  %v961_v59 = vmul.f32 %v920_v0, %v1870_v3 }
 0x181   :  { %v976_v18 = vrot.slane %v943_v45, %v915_v58  ;;  %v980_v32 = vrot.slane %v943_v45, %v919_v60 }
 0x183   :  { %v1964_v34 = vadd.f32 %v976_v18, %v944_v8  ;;  %v1966_v1 = vadd.f32 %v980_v32, %v945_v13  ;;  %v1968_v6 = vadd.f32 %v976_v18, %v946_v14  ;;  %v1970_v11 = vadd.f32 %v980_v32, %v947_v16 }
 0x184   :  { %v1972_v24 = vadd.f32 %v976_v18, %v948_v21  ;;  %v1974_v29 = vadd.f32 %v980_v32, %v949_v22  ;;  %v1976_v38 = vadd.f32 %v976_v18, %v950_v9  ;;  %v1978_v37 = vadd.f32 %v980_v32, %v951_v15 }
 0x185   :  { %v1980_v44 = vadd.f32 %v976_v18, %v952_v28  ;;  %v1982_v61 = vadd.f32 %v980_v32, %v953_v35  ;;  %v1984_v3 = vadd.f32 %v976_v18, %v954_v47  ;;  %v1986_v40 = vadd.f32 %v980_v32, %v955_v55 }
 0x186   :  { %v1988_v41 = vadd.f32 %v976_v18, %v956_v7  ;;  %v1990_v43 = vadd.f32 %v980_v32, %v957_v12  ;;  %v1992_v46 = vadd.f32 %v976_v18, %v958_v48  ;;  %v1994_v49 = vadd.f32 %v980_v32, %v959_v51 }
 0x187   :  { %v1996_v50 = vadd.f32 %v976_v18, %v960_v23  ;;  %v1998_v52 = vadd.f32 %v980_v32, %v961_v59  ;;  %v2000_v53 = vadd.f32 %v976_v18, %v962_v17  ;;  %v2002_v54 = vadd.f32 %v980_v32, %v963_v20 }
 0x188   :  { %v2004_v56 = vadd.f32 %v976_v18, %v964_v25  ;;  %v2006_v57 = vadd.f32 %v980_v32, %v965_v33  ;;  %v2008_v58 = vadd.f32 %v976_v18, %v966_v36  ;;  %v2010_v60 = vadd.f32 %v980_v32, %v967_v39 }
 0x189   :  { %v2012_v62 = vadd.f32 %v976_v18, %v968_v26  ;;  %v2014_v63 = vadd.f32 %v980_v32, %v969_v27  ;;  %v2016_v0 = vadd.f32 %v976_v18, %v970_v42  ;;  %v2018_v2 = vadd.f32 %v980_v32, %v971_v31 }
 0x18a   :  { %vm1011_vm0 = vcmp.ge.f32.partialorder %v1964_v34, 0.0  ;;  %vm1012_vm1 = vcmp.ge.f32.partialorder %v1966_v1, 0.0  ;;  %vm1013_vm2 = vcmp.ge.f32.partialorder %v1968_v6, 0.0  ;;  %vm1014_vm3 = vcmp.ge.f32.partialorder %v1970_v11, 0.0 }
 0x18b   :  { %vm1015_vm4 = vcmp.ge.f32.partialorder %v1972_v24, 0.0  ;;  %vm1016_vm5 = vcmp.ge.f32.partialorder %v1974_v29, 0.0  ;;  %vm1019_vm8 = vcmp.ge.f32.partialorder %v1980_v44, 0.0  ;;  %vm1020_vm9 = vcmp.ge.f32.partialorder %v1982_v61, 0.0 }
 0x18c   :  { %vm1021_vm10 = vcmp.ge.f32.partialorder %v1984_v3, 0.0  ;;  %v1039_v4 = vmul.f32 0.2, %v1964_v34  ;;  %v1040_v5 = vmul.f32 0.2, %v1966_v1  ;;  %vm1030_vm12 = vcmp.ge.f32.partialorder %v2002_v54, 0.0 }
 0x18d   :  { %v1041_v8 = vmul.f32 0.2, %v1968_v6  ;;  %vm1031_vm13 = vcmp.ge.f32.partialorder %v2004_v56, 0.0  ;;  %v1042_v10 = vmul.f32 0.2, %v1970_v11  ;;  %vm1034_vm6 = vcmp.ge.f32.partialorder %v2010_v60, 0.0 }
 0x18e   :  { %v1043_v13 = vmul.f32 0.2, %v1972_v24  ;;  %v1044_v14 = vmul.f32 0.2, %v1974_v29  ;;  %vm1035_vm15 = vcmp.ge.f32.partialorder %v2012_v62, 0.0  ;;  %vm1036_vm11 = vcmp.ge.f32.partialorder %v2014_v63, 0.0 }
 0x18f   :  { %v1045_v16 = vmul.f32 0.2, %v1976_v38  ;;  %v1046_v19 = vmul.f32 0.2, %v1978_v37  ;;  %v1047_v21 = vmul.f32 0.2, %v1980_v44  ;;  %v1067_v22 = vsel %vm1011_vm0, %v1964_v34, %v1039_v4 }
 0x190   :  { %vm1037_vm14 = vcmp.ge.f32.partialorder %v2016_v0, 0.0  ;;  %vm1038_vm7 = vcmp.ge.f32.partialorder %v2018_v2, 0.0  ;;  %v1048_v17 = vmul.f32 0.2, %v1982_v61  ;;  %v1049_v20 = vmul.f32 0.2, %v1984_v3 }
 0x191   :  { %v1050_v30 = vmul.f32 0.2, %v1986_v40  ;;  %v1068_v25 = vsel %vm1012_vm1, %v1966_v1, %v1040_v5  ;;  %v1051_v33 = vmul.f32 0.2, %v1988_v41  ;;  %v1052_v36 = vmul.f32 0.2, %v1990_v43 }
 0x192   :  { %v1053_v39 = vmul.f32 0.2, %v1992_v46  ;;  %v1069_v26 = vsel %vm1013_vm2, %v1968_v6, %v1041_v8  ;;  %v1054_v27 = vmul.f32 0.2, %v1994_v49  ;;  %v1055_v42 = vmul.f32 0.2, %v1996_v50 }
 0x193   :  { %v1056_v45 = vmul.f32 0.2, %v1998_v52  ;;  %v1070_v9 = vsel %vm1014_vm3, %v1970_v11, %v1042_v10  ;;  %v1057_v15 = vmul.f32 0.2, %v2000_v53  ;;  %v1058_v31 = vmul.f32 0.2, %v2002_v54 }
 0x194   :  { %v1059_v28 = vmul.f32 0.2, %v2004_v56  ;;  %v1071_v35 = vsel %vm1015_vm4, %v1972_v24, %v1043_v13  ;;  %v1060_v47 = vmul.f32 0.2, %v2006_v57  ;;  %v1061_v55 = vmul.f32 0.2, %v2008_v58 }
 0x195   :  { %v1062_v7 = vmul.f32 0.2, %v2010_v60  ;;  %v1072_v12 = vsel %vm1016_vm5, %v1974_v29, %v1044_v14  ;;  %v1063_v18 = vmul.f32 0.2, %v2012_v62  ;;  %v1064_v32 = vmul.f32 0.2, %v2014_v63 }
 0x196   :  { %v1065_v48 = vmul.f32 0.2, %v2016_v0  ;;  %vm2207_vm0 = vcmp.ge.f32.partialorder %v1976_v38, 0.0  ;;  %v1066_v23 = vmul.f32 0.2, %v2018_v2  ;;  %vm2208_vm1 = vcmp.ge.f32.partialorder %v1978_v37, 0.0 }
 0x197   :  { %v1073_v51 = vsel %vm2207_vm0, %v1976_v38, %v1045_v16  ;;  %v1074_v59 = vsel %vm2208_vm1, %v1978_v37, %v1046_v19  ;;  %v1075_v34 = vsel %vm1019_vm8, %v1980_v44, %v1047_v21  ;;  %v1076_v1 = vsel %vm1020_vm9, %v1982_v61, %v1048_v17 }
 0x198   :  { %v1077_v6 = vsel %vm1021_vm10, %v1984_v3, %v1049_v20  ;;  %vm2209_vm2 = vcmp.ge.f32.partialorder %v1986_v40, 0.0  ;;  %vm2210_vm3 = vcmp.ge.f32.partialorder %v1988_v41, 0.0  ;;  %vm2211_vm4 = vcmp.ge.f32.partialorder %v1990_v43, 0.0 }
 0x199   :  { %v1078_v11 = vsel %vm2209_vm2, %v1986_v40, %v1050_v30  ;;  %v1079_v24 = vsel %vm2210_vm3, %v1988_v41, %v1051_v33  ;;  %v1080_v29 = vsel %vm2211_vm4, %v1990_v43, %v1052_v36  ;;  %vm2212_vm5 = vcmp.ge.f32.partialorder %v1992_v46, 0.0 }
 0x19a   :  { %v1081_v38 = vsel %vm2212_vm5, %v1992_v46, %v1053_v39  ;;  %vm2213_vm8 = vcmp.ge.f32.partialorder %v1994_v49, 0.0  ;;  %vm2214_vm9 = vcmp.ge.f32.partialorder %v1996_v50, 0.0  ;;  %vm2215_vm10 = vcmp.ge.f32.partialorder %v1998_v52, 0.0 }
 0x19b   :  { %v1082_v37 = vsel %vm2213_vm8, %v1994_v49, %v1054_v27  ;;  %v1083_v44 = vsel %vm2214_vm9, %v1996_v50, %v1055_v42  ;;  %v1084_v61 = vsel %vm2215_vm10, %v1998_v52, %v1056_v45  ;;  %vm2216_vm0 = vcmp.ge.f32.partialorder %v2000_v53, 0.0 }
 0x19c   :  { %v1085_v3 = vsel %vm2216_vm0, %v2000_v53, %v1057_v15  ;;  %v1086_v40 = vsel %vm1030_vm12, %v2002_v54, %v1058_v31  ;;  %v1087_v41 = vsel %vm1031_vm13, %v2004_v56, %v1059_v28  ;;  %vm2217_vm1 = vcmp.ge.f32.partialorder %v2006_v57, 0.0 }
 0x19d   :  { %v1088_v43 = vsel %vm2217_vm1, %v2006_v57, %v1060_v47  ;;  %vm2218_vm2 = vcmp.ge.f32.partialorder %v2008_v58, 0.0  ;;  %v1090_v49 = vsel %vm1034_vm6, %v2010_v60, %v1062_v7  ;;  %v1091_v50 = vsel %vm1035_vm15, %v2012_v62, %v1063_v18 }
 0x19e   :  { %v1089_v46 = vsel %vm2218_vm2, %v2008_v58, %v1061_v55  ;;  %v1092_v52 = vsel %vm1036_vm11, %v2014_v63, %v1064_v32  ;;  %v1093_v53 = vsel %vm1037_vm14, %v2016_v0, %v1065_v48  ;;  %v1094_v54 = vsel %vm1038_vm7, %v2018_v2, %v1066_v23 }
 0x19f   :  { %v1303_v56 = vpack.c.bf16 %v1068_v25, %v1067_v22  ;;  %v1304_v57 = vpack.c.bf16 %v1070_v9, %v1069_v26  ;;  %v1305_v58 = vpack.c.bf16 %v1072_v12, %v1071_v35  ;;  %v1306_v60 = vpack.c.bf16 %v1074_v59, %v1073_v51 }
 0x1a0   :  { %v1307_v4 = vpack.c.bf16 %v1076_v1, %v1075_v34  ;;  %v1308_v5 = vpack.c.bf16 %v1078_v11, %v1077_v6  ;;  %v1309_v8 = vpack.c.bf16 %v1080_v29, %v1079_v24  ;;  %v1310_v62 = vpack.c.bf16 %v1082_v37, %v1081_v38 }
 0x1a1   :  { %v1311_v10 = vpack.c.bf16 %v1084_v61, %v1083_v44  ;;  %v1312_v13 = vpack.c.bf16 %v1086_v40, %v1085_v3  ;;  %1179 = vst [vmem:[%s2206_s4] sm:$0xff] %v1303_v56  ;;  %1180 = vst [vmem:[%s2206_s4 + $0x8] sm:$0xff] %v1304_v57  ;;  %v1313_v63 = vpack.c.bf16 %v1088_v43, %v1087_v41 }
 0x1a2   :  { %v1314_v0 = vpack.c.bf16 %v1090_v49, %v1089_v46  ;;  %v1315_v2 = vpack.c.bf16 %v1092_v52, %v1091_v50  ;;  %v1316_v14 = vpack.c.bf16 %v1094_v54, %v1093_v53  ;;  %1181 = vst [vmem:[%s2206_s4 + $0x10] sm:$0xff] %v1305_v58  ;;  %1182 = vst [vmem:[%s2206_s4 + $0x18] sm:$0xff] %v1306_v60 }
 0x1a3   :  { %1183 = vst [vmem:[%s2206_s4 + $0x20] sm:$0xff] %v1307_v4  ;;  %1184 = vst [vmem:[%s2206_s4 + $0x28] sm:$0xff] %v1308_v5 }
 0x1a4   :  { %1185 = vst [vmem:[%s2206_s4 + $0x30] sm:$0xff] %v1309_v8  ;;  %1186 = vst [vmem:[%s2206_s4 + $0x38] sm:$0xff] %v1310_v62 }
 0x1a5   :  { %1187 = vst [vmem:[%s2206_s4 + $0x40] sm:$0xff] %v1311_v10  ;;  %1188 = vst [vmem:[%s2206_s4 + $0x48] sm:$0xff] %v1312_v13 }
 0x1a6   :  { %1189 = vst [vmem:[%s2206_s4 + $0x50] sm:$0xff] %v1313_v63  ;;  %1190 = vst [vmem:[%s2206_s4 + $0x58] sm:$0xff] %v1314_v0 }
 0x1a7   :  { %1191 = vst [vmem:[%s2206_s4 + $0x60] sm:$0xff] %v1315_v2  ;;  %1192 = vst [vmem:[%s2206_s4 + $0x68] sm:$0xff] %v1316_v14 }

// kernel: discriminator_forward.8
= control target key start
LH: loop header
LB: loop body
LE: loop exit
PB: predicated region body
PF: predicated region fallthrough
CT: control target
= control target key end

     0   :  { %s2633_s15 = smov 0   ;;  %s2635_s16 = smov 0   ;;  %s3236_s0 = inlined_call_operand.vmem [shape: bf16[32,1024], index: 0, kind: input, shape index: {}]   ;;  %s3237_s1 = inlined_call_operand.vmem [shape: bf16[1024,512], index: 1, kind: input, shape index: {}]   ;;  %s3238_s2 = inlined_call_operand.vmem [shape: f32[1,512], index: 2, kind: input, shape index: {}]   ;;  %s3239_s3 = inlined_call_operand.vmem [shape: f32[1,512], index: 3, kind: input, shape index: {}]   ;;  %s3240_s4 = inlined_call_operand.vmem [shape: bf16[32,512], index: 4, kind: output, shape index: {}]  }
   0x1   :  { %s2637_s17 = smov 0  }
   0x2 LB: > { %s2649_s18 = sadd.s32 4294967295, %s2605_s17   ;;  %s2652_s19 = sadd.s32 1, %s2605_s17   ;;  %s2605_s17 = sphi %s2637_s17, %s3244_s17   ;;  %s2601_s16 = sphi %s2635_s16, %s3243_s16   ;;  %s2597_s15 = sphi %s2633_s15, %s3242_s15  }
   0x3   : > { %s39_s20 = ssub.s32 %s2605_s17, %s2652_s19  ;;  %s42_s21 = sadd.s32 1, %s2601_s16 }
   0x4   : > { %p40_p0 = scmp.eq.s32.totalorder %s39_s20, 0  ;;  %p49_p1 = scmp.ne.s32.totalorder %s2601_s16, %s2597_s15 }
   0x5   : > { %p50_p2 = scmp.eq.s32.totalorder %s2605_s17, 0  ;;  %p131_p3 = scmp.eq.s32.totalorder %s2649_s18, 1 }
   0x6   : > { %s2662_s22 = scalar_select %p40_p0, %s2601_s16, %s42_s21  }
   0x7   : > { %p51_p4 = por %p50_p2, %p49_p1  ;;  %p2664_p5 = por %p131_p3, %p49_p1 }
   0x8   : > { %p2170_p6 = scmp.ge.s32.totalorder %s2605_s17, 2 }
   0xa   : > { %156 = sbr.rel (%p2170_p6) target bundleno = 85 (0x55), region = 20 }
  0x11   : > { %159 = sbr.rel (!%p51_p4) target bundleno = 85 (0x55), region = 24  ;;  %s161_s24 = sand.u32 (%p51_p4), 1, %s2601_s16  }
  0x12   : > { %s2332_s25 = sshll.u32 (%p51_p4), %s2605_s17, 3  ;;  %s2171_s26 = sshll.u32 (%p51_p4), %s161_s24, 10 }
  0x13   : > { %s2674_s29 = scalar_lea.vmem (%p51_p4), %s3237_s1, %s2332_s25  ;;  %s2679_s30 = scalar_lea.vmem (%p51_p4), [#allocation2], %s2171_s26 }
  0x14   : > { %v448_v0 = vld [vmem:[%s2674_s29] sm:$0xff] (%p51_p4)  ;;  %v450_v1 = vld [vmem:[%s2674_s29 + $0x10] sm:$0xff] (%p51_p4) }
  0x15   : > { %v452_v2 = vld [vmem:[%s2674_s29 + $0x20] sm:$0xff] (%p51_p4)  ;;  %449 = vst [vmem:[%s2679_s30] sm:$0xff] (%p51_p4), %v448_v0  ;;  %451 = vst [vmem:[%s2679_s30 + $0x8] sm:$0xff] (%p51_p4), %v450_v1  ;;  %v454_v3 = vld [vmem:[%s2674_s29 + $0x30] sm:$0xff] (%p51_p4) }
  0x16   : > { %453 = vst [vmem:[%s2679_s30 + $0x10] sm:$0xff] (%p51_p4), %v452_v2  ;;  %v456_v4 = vld [vmem:[%s2674_s29 + $0x40] sm:$0xff] (%p51_p4)  ;;  %v458_v5 = vld [vmem:[%s2674_s29 + $0x50] sm:$0xff] (%p51_p4)  ;;  %455 = vst [vmem:[%s2679_s30 + $0x18] sm:$0xff] (%p51_p4), %v454_v3 }
  0x17   : > { %457 = vst [vmem:[%s2679_s30 + $0x20] sm:$0xff] (%p51_p4), %v456_v4  ;;  %459 = vst [vmem:[%s2679_s30 + $0x28] sm:$0xff] (%p51_p4), %v458_v5  ;;  %v460_v6 = vld [vmem:[%s2674_s29 + $0x60] sm:$0xff] (%p51_p4)  ;;  %v462_v7 = vld [vmem:[%s2674_s29 + $0x70] sm:$0xff] (%p51_p4) }
  0x18   : > { %v464_v8 = vld [vmem:[%s2674_s29 + $0x80] sm:$0xff]  ;;  %461 = vst [vmem:[%s2679_s30 + $0x30] sm:$0xff] %v460_v6  ;;  %463 = vst [vmem:[%s2679_s30 + $0x38] sm:$0xff] %v462_v7  ;;  %v466_v9 = vld [vmem:[%s2674_s29 + $0x90] sm:$0xff] }
  0x19   : > { %465 = vst [vmem:[%s2679_s30 + $0x40] sm:$0xff] %v464_v8  ;;  %v468_v10 = vld [vmem:[%s2674_s29 + $0xa0] sm:$0xff]  ;;  %v470_v11 = vld [vmem:[%s2674_s29 + $0xb0] sm:$0xff]  ;;  %467 = vst [vmem:[%s2679_s30 + $0x48] sm:$0xff] %v466_v9 }
  0x1a   : > { %469 = vst [vmem:[%s2679_s30 + $0x50] sm:$0xff] %v468_v10  ;;  %471 = vst [vmem:[%s2679_s30 + $0x58] sm:$0xff] %v470_v11  ;;  %v472_v12 = vld [vmem:[%s2674_s29 + $0xc0] sm:$0xff]  ;;  %v474_v13 = vld [vmem:[%s2674_s29 + $0xd0] sm:$0xff] }
  0x1b   : > { %v476_v14 = vld [vmem:[%s2674_s29 + $0xe0] sm:$0xff]  ;;  %473 = vst [vmem:[%s2679_s30 + $0x60] sm:$0xff] %v472_v12  ;;  %475 = vst [vmem:[%s2679_s30 + $0x68] sm:$0xff] %v474_v13  ;;  %v478_v15 = vld [vmem:[%s2674_s29 + $0xf0] sm:$0xff] }
  0x1c   : > { %477 = vst [vmem:[%s2679_s30 + $0x70] sm:$0xff] %v476_v14  ;;  %v480_v16 = vld [vmem:[%s2674_s29 + $0x100] sm:$0xff]  ;;  %v482_v17 = vld [vmem:[%s2674_s29 + $0x110] sm:$0xff]  ;;  %479 = vst [vmem:[%s2679_s30 + $0x78] sm:$0xff] %v478_v15 }
  0x1d   : > { %481 = vst [vmem:[%s2679_s30 + $0x80] sm:$0xff] %v480_v16  ;;  %483 = vst [vmem:[%s2679_s30 + $0x88] sm:$0xff] %v482_v17  ;;  %v484_v18 = vld [vmem:[%s2674_s29 + $0x120] sm:$0xff]  ;;  %v486_v19 = vld [vmem:[%s2674_s29 + $0x130] sm:$0xff] }
  0x1e   : > { %v488_v20 = vld [vmem:[%s2674_s29 + $0x140] sm:$0xff]  ;;  %485 = vst [vmem:[%s2679_s30 + $0x90] sm:$0xff] %v484_v18  ;;  %487 = vst [vmem:[%s2679_s30 + $0x98] sm:$0xff] %v486_v19  ;;  %v490_v21 = vld [vmem:[%s2674_s29 + $0x150] sm:$0xff] }
  0x1f   : > { %489 = vst [vmem:[%s2679_s30 + $0xa0] sm:$0xff] %v488_v20  ;;  %v492_v22 = vld [vmem:[%s2674_s29 + $0x160] sm:$0xff]  ;;  %v494_v23 = vld [vmem:[%s2674_s29 + $0x170] sm:$0xff]  ;;  %491 = vst [vmem:[%s2679_s30 + $0xa8] sm:$0xff] %v490_v21 }
  0x20   : > { %493 = vst [vmem:[%s2679_s30 + $0xb0] sm:$0xff] %v492_v22  ;;  %495 = vst [vmem:[%s2679_s30 + $0xb8] sm:$0xff] %v494_v23  ;;  %v496_v24 = vld [vmem:[%s2674_s29 + $0x180] sm:$0xff]  ;;  %v498_v25 = vld [vmem:[%s2674_s29 + $0x190] sm:$0xff] }
  0x21   : > { %v500_v26 = vld [vmem:[%s2674_s29 + $0x1a0] sm:$0xff]  ;;  %497 = vst [vmem:[%s2679_s30 + $0xc0] sm:$0xff] %v496_v24  ;;  %499 = vst [vmem:[%s2679_s30 + $0xc8] sm:$0xff] %v498_v25  ;;  %v502_v27 = vld [vmem:[%s2674_s29 + $0x1b0] sm:$0xff] }
  0x22   : > { %501 = vst [vmem:[%s2679_s30 + $0xd0] sm:$0xff] %v500_v26  ;;  %v504_v28 = vld [vmem:[%s2674_s29 + $0x1c0] sm:$0xff]  ;;  %v506_v29 = vld [vmem:[%s2674_s29 + $0x1d0] sm:$0xff]  ;;  %503 = vst [vmem:[%s2679_s30 + $0xd8] sm:$0xff] %v502_v27 }
  0x23   : > { %505 = vst [vmem:[%s2679_s30 + $0xe0] sm:$0xff] %v504_v28  ;;  %507 = vst [vmem:[%s2679_s30 + $0xe8] sm:$0xff] %v506_v29  ;;  %v508_v30 = vld [vmem:[%s2674_s29 + $0x1e0] sm:$0xff]  ;;  %v510_v31 = vld [vmem:[%s2674_s29 + $0x1f0] sm:$0xff] }
  0x24   : > { %v512_v32 = vld [vmem:[%s2674_s29 + $0x200] sm:$0xff]  ;;  %509 = vst [vmem:[%s2679_s30 + $0xf0] sm:$0xff] %v508_v30  ;;  %511 = vst [vmem:[%s2679_s30 + $0xf8] sm:$0xff] %v510_v31  ;;  %v514_v33 = vld [vmem:[%s2674_s29 + $0x210] sm:$0xff] }
  0x25   : > { %513 = vst [vmem:[%s2679_s30 + $0x100] sm:$0xff] %v512_v32  ;;  %v516_v34 = vld [vmem:[%s2674_s29 + $0x220] sm:$0xff]  ;;  %v518_v35 = vld [vmem:[%s2674_s29 + $0x230] sm:$0xff]  ;;  %515 = vst [vmem:[%s2679_s30 + $0x108] sm:$0xff] %v514_v33 }
  0x26   : > { %517 = vst [vmem:[%s2679_s30 + $0x110] sm:$0xff] %v516_v34  ;;  %519 = vst [vmem:[%s2679_s30 + $0x118] sm:$0xff] %v518_v35  ;;  %v520_v36 = vld [vmem:[%s2674_s29 + $0x240] sm:$0xff]  ;;  %v522_v37 = vld [vmem:[%s2674_s29 + $0x250] sm:$0xff] }
  0x27   : > { %v524_v38 = vld [vmem:[%s2674_s29 + $0x260] sm:$0xff]  ;;  %521 = vst [vmem:[%s2679_s30 + $0x120] sm:$0xff] %v520_v36  ;;  %523 = vst [vmem:[%s2679_s30 + $0x128] sm:$0xff] %v522_v37  ;;  %v526_v39 = vld [vmem:[%s2674_s29 + $0x270] sm:$0xff] }
  0x28   : > { %525 = vst [vmem:[%s2679_s30 + $0x130] sm:$0xff] %v524_v38  ;;  %v528_v40 = vld [vmem:[%s2674_s29 + $0x280] sm:$0xff]  ;;  %v530_v41 = vld [vmem:[%s2674_s29 + $0x290] sm:$0xff]  ;;  %527 = vst [vmem:[%s2679_s30 + $0x138] sm:$0xff] %v526_v39 }
  0x29   : > { %529 = vst [vmem:[%s2679_s30 + $0x140] sm:$0xff] %v528_v40  ;;  %531 = vst [vmem:[%s2679_s30 + $0x148] sm:$0xff] %v530_v41  ;;  %v532_v42 = vld [vmem:[%s2674_s29 + $0x2a0] sm:$0xff]  ;;  %v534_v43 = vld [vmem:[%s2674_s29 + $0x2b0] sm:$0xff] }
  0x2a   : > { %v536_v44 = vld [vmem:[%s2674_s29 + $0x2c0] sm:$0xff]  ;;  %533 = vst [vmem:[%s2679_s30 + $0x150] sm:$0xff] %v532_v42  ;;  %535 = vst [vmem:[%s2679_s30 + $0x158] sm:$0xff] %v534_v43  ;;  %v538_v45 = vld [vmem:[%s2674_s29 + $0x2d0] sm:$0xff] }
  0x2b   : > { %537 = vst [vmem:[%s2679_s30 + $0x160] sm:$0xff] %v536_v44  ;;  %v540_v46 = vld [vmem:[%s2674_s29 + $0x2e0] sm:$0xff]  ;;  %v542_v47 = vld [vmem:[%s2674_s29 + $0x2f0] sm:$0xff]  ;;  %539 = vst [vmem:[%s2679_s30 + $0x168] sm:$0xff] %v538_v45 }
  0x2c   : > { %541 = vst [vmem:[%s2679_s30 + $0x170] sm:$0xff] %v540_v46  ;;  %543 = vst [vmem:[%s2679_s30 + $0x178] sm:$0xff] %v542_v47  ;;  %v544_v48 = vld [vmem:[%s2674_s29 + $0x300] sm:$0xff]  ;;  %v546_v49 = vld [vmem:[%s2674_s29 + $0x310] sm:$0xff] }
  0x2d   : > { %v548_v50 = vld [vmem:[%s2674_s29 + $0x320] sm:$0xff]  ;;  %545 = vst [vmem:[%s2679_s30 + $0x180] sm:$0xff] %v544_v48  ;;  %547 = vst [vmem:[%s2679_s30 + $0x188] sm:$0xff] %v546_v49  ;;  %v550_v51 = vld [vmem:[%s2674_s29 + $0x330] sm:$0xff] }
  0x2e   : > { %549 = vst [vmem:[%s2679_s30 + $0x190] sm:$0xff] %v548_v50  ;;  %v552_v52 = vld [vmem:[%s2674_s29 + $0x340] sm:$0xff]  ;;  %v554_v53 = vld [vmem:[%s2674_s29 + $0x350] sm:$0xff]  ;;  %551 = vst [vmem:[%s2679_s30 + $0x198] sm:$0xff] %v550_v51 }
  0x2f   : > { %553 = vst [vmem:[%s2679_s30 + $0x1a0] sm:$0xff] %v552_v52  ;;  %555 = vst [vmem:[%s2679_s30 + $0x1a8] sm:$0xff] %v554_v53  ;;  %v556_v54 = vld [vmem:[%s2674_s29 + $0x360] sm:$0xff]  ;;  %v558_v55 = vld [vmem:[%s2674_s29 + $0x370] sm:$0xff] }
  0x30   : > { %v560_v56 = vld [vmem:[%s2674_s29 + $0x380] sm:$0xff]  ;;  %557 = vst [vmem:[%s2679_s30 + $0x1b0] sm:$0xff] %v556_v54  ;;  %559 = vst [vmem:[%s2679_s30 + $0x1b8] sm:$0xff] %v558_v55  ;;  %v562_v57 = vld [vmem:[%s2674_s29 + $0x390] sm:$0xff] }
  0x31   : > { %561 = vst [vmem:[%s2679_s30 + $0x1c0] sm:$0xff] %v560_v56  ;;  %v564_v58 = vld [vmem:[%s2674_s29 + $0x3a0] sm:$0xff]  ;;  %v566_v59 = vld [vmem:[%s2674_s29 + $0x3b0] sm:$0xff]  ;;  %563 = vst [vmem:[%s2679_s30 + $0x1c8] sm:$0xff] %v562_v57 }
  0x32   : > { %565 = vst [vmem:[%s2679_s30 + $0x1d0] sm:$0xff] %v564_v58  ;;  %567 = vst [vmem:[%s2679_s30 + $0x1d8] sm:$0xff] %v566_v59  ;;  %v568_v60 = vld [vmem:[%s2674_s29 + $0x3c0] sm:$0xff]  ;;  %v570_v61 = vld [vmem:[%s2674_s29 + $0x3d0] sm:$0xff] }
  0x33   : > { %v572_v62 = vld [vmem:[%s2674_s29 + $0x3e0] sm:$0xff]  ;;  %569 = vst [vmem:[%s2679_s30 + $0x1e0] sm:$0xff] %v568_v60  ;;  %571 = vst [vmem:[%s2679_s30 + $0x1e8] sm:$0xff] %v570_v61  ;;  %v574_v63 = vld [vmem:[%s2674_s29 + $0x3f0] sm:$0xff] }
  0x34   : > { %573 = vst [vmem:[%s2679_s30 + $0x1f0] sm:$0xff] %v572_v62  ;;  %v576_v0 = vld [vmem:[%s2674_s29 + $0x400] sm:$0xff]  ;;  %v578_v1 = vld [vmem:[%s2674_s29 + $0x410] sm:$0xff]  ;;  %575 = vst [vmem:[%s2679_s30 + $0x1f8] sm:$0xff] %v574_v63 }
  0x35   : > { %577 = vst [vmem:[%s2679_s30 + $0x200] sm:$0xff] %v576_v0  ;;  %579 = vst [vmem:[%s2679_s30 + $0x208] sm:$0xff] %v578_v1  ;;  %v580_v2 = vld [vmem:[%s2674_s29 + $0x420] sm:$0xff]  ;;  %v582_v3 = vld [vmem:[%s2674_s29 + $0x430] sm:$0xff] }
  0x36   : > { %v584_v4 = vld [vmem:[%s2674_s29 + $0x440] sm:$0xff]  ;;  %581 = vst [vmem:[%s2679_s30 + $0x210] sm:$0xff] %v580_v2  ;;  %583 = vst [vmem:[%s2679_s30 + $0x218] sm:$0xff] %v582_v3  ;;  %v586_v5 = vld [vmem:[%s2674_s29 + $0x450] sm:$0xff] }
  0x37   : > { %585 = vst [vmem:[%s2679_s30 + $0x220] sm:$0xff] %v584_v4  ;;  %v588_v6 = vld [vmem:[%s2674_s29 + $0x460] sm:$0xff]  ;;  %v590_v7 = vld [vmem:[%s2674_s29 + $0x470] sm:$0xff]  ;;  %587 = vst [vmem:[%s2679_s30 + $0x228] sm:$0xff] %v586_v5 }
  0x38   : > { %589 = vst [vmem:[%s2679_s30 + $0x230] sm:$0xff] %v588_v6  ;;  %591 = vst [vmem:[%s2679_s30 + $0x238] sm:$0xff] %v590_v7  ;;  %v592_v8 = vld [vmem:[%s2674_s29 + $0x480] sm:$0xff]  ;;  %v594_v9 = vld [vmem:[%s2674_s29 + $0x490] sm:$0xff] }
  0x39   : > { %v596_v10 = vld [vmem:[%s2674_s29 + $0x4a0] sm:$0xff]  ;;  %593 = vst [vmem:[%s2679_s30 + $0x240] sm:$0xff] %v592_v8  ;;  %595 = vst [vmem:[%s2679_s30 + $0x248] sm:$0xff] %v594_v9  ;;  %v598_v11 = vld [vmem:[%s2674_s29 + $0x4b0] sm:$0xff] }
  0x3a   : > { %597 = vst [vmem:[%s2679_s30 + $0x250] sm:$0xff] %v596_v10  ;;  %v600_v12 = vld [vmem:[%s2674_s29 + $0x4c0] sm:$0xff]  ;;  %v602_v13 = vld [vmem:[%s2674_s29 + $0x4d0] sm:$0xff]  ;;  %599 = vst [vmem:[%s2679_s30 + $0x258] sm:$0xff] %v598_v11 }
  0x3b   : > { %601 = vst [vmem:[%s2679_s30 + $0x260] sm:$0xff] %v600_v12  ;;  %603 = vst [vmem:[%s2679_s30 + $0x268] sm:$0xff] %v602_v13  ;;  %v604_v14 = vld [vmem:[%s2674_s29 + $0x4e0] sm:$0xff]  ;;  %v606_v15 = vld [vmem:[%s2674_s29 + $0x4f0] sm:$0xff] }
  0x3c   : > { %v608_v16 = vld [vmem:[%s2674_s29 + $0x500] sm:$0xff]  ;;  %605 = vst [vmem:[%s2679_s30 + $0x270] sm:$0xff] %v604_v14  ;;  %607 = vst [vmem:[%s2679_s30 + $0x278] sm:$0xff] %v606_v15  ;;  %v610_v17 = vld [vmem:[%s2674_s29 + $0x510] sm:$0xff] }
  0x3d   : > { %609 = vst [vmem:[%s2679_s30 + $0x280] sm:$0xff] %v608_v16  ;;  %v612_v18 = vld [vmem:[%s2674_s29 + $0x520] sm:$0xff]  ;;  %v614_v19 = vld [vmem:[%s2674_s29 + $0x530] sm:$0xff]  ;;  %611 = vst [vmem:[%s2679_s30 + $0x288] sm:$0xff] %v610_v17 }
  0x3e   : > { %613 = vst [vmem:[%s2679_s30 + $0x290] sm:$0xff] %v612_v18  ;;  %615 = vst [vmem:[%s2679_s30 + $0x298] sm:$0xff] %v614_v19  ;;  %v616_v20 = vld [vmem:[%s2674_s29 + $0x540] sm:$0xff]  ;;  %v618_v21 = vld [vmem:[%s2674_s29 + $0x550] sm:$0xff] }
  0x3f   : > { %v620_v22 = vld [vmem:[%s2674_s29 + $0x560] sm:$0xff]  ;;  %617 = vst [vmem:[%s2679_s30 + $0x2a0] sm:$0xff] %v616_v20  ;;  %619 = vst [vmem:[%s2679_s30 + $0x2a8] sm:$0xff] %v618_v21  ;;  %v622_v23 = vld [vmem:[%s2674_s29 + $0x570] sm:$0xff] }
  0x40   : > { %621 = vst [vmem:[%s2679_s30 + $0x2b0] sm:$0xff] %v620_v22  ;;  %v624_v24 = vld [vmem:[%s2674_s29 + $0x580] sm:$0xff]  ;;  %v626_v25 = vld [vmem:[%s2674_s29 + $0x590] sm:$0xff]  ;;  %623 = vst [vmem:[%s2679_s30 + $0x2b8] sm:$0xff] %v622_v23 }
  0x41   : > { %625 = vst [vmem:[%s2679_s30 + $0x2c0] sm:$0xff] %v624_v24  ;;  %627 = vst [vmem:[%s2679_s30 + $0x2c8] sm:$0xff] %v626_v25  ;;  %v628_v26 = vld [vmem:[%s2674_s29 + $0x5a0] sm:$0xff]  ;;  %v630_v27 = vld [vmem:[%s2674_s29 + $0x5b0] sm:$0xff] }
  0x42   : > { %v632_v28 = vld [vmem:[%s2674_s29 + $0x5c0] sm:$0xff]  ;;  %629 = vst [vmem:[%s2679_s30 + $0x2d0] sm:$0xff] %v628_v26  ;;  %631 = vst [vmem:[%s2679_s30 + $0x2d8] sm:$0xff] %v630_v27  ;;  %v634_v29 = vld [vmem:[%s2674_s29 + $0x5d0] sm:$0xff] }
  0x43   : > { %633 = vst [vmem:[%s2679_s30 + $0x2e0] sm:$0xff] %v632_v28  ;;  %v636_v30 = vld [vmem:[%s2674_s29 + $0x5e0] sm:$0xff]  ;;  %v638_v31 = vld [vmem:[%s2674_s29 + $0x5f0] sm:$0xff]  ;;  %635 = vst [vmem:[%s2679_s30 + $0x2e8] sm:$0xff] %v634_v29 }
  0x44   : > { %637 = vst [vmem:[%s2679_s30 + $0x2f0] sm:$0xff] %v636_v30  ;;  %639 = vst [vmem:[%s2679_s30 + $0x2f8] sm:$0xff] %v638_v31  ;;  %v640_v32 = vld [vmem:[%s2674_s29 + $0x600] sm:$0xff]  ;;  %v642_v33 = vld [vmem:[%s2674_s29 + $0x610] sm:$0xff] }
  0x45   : > { %v644_v34 = vld [vmem:[%s2674_s29 + $0x620] sm:$0xff]  ;;  %641 = vst [vmem:[%s2679_s30 + $0x300] sm:$0xff] %v640_v32  ;;  %643 = vst [vmem:[%s2679_s30 + $0x308] sm:$0xff] %v642_v33  ;;  %v646_v35 = vld [vmem:[%s2674_s29 + $0x630] sm:$0xff] }
  0x46   : > { %645 = vst [vmem:[%s2679_s30 + $0x310] sm:$0xff] %v644_v34  ;;  %v648_v36 = vld [vmem:[%s2674_s29 + $0x640] sm:$0xff]  ;;  %v650_v37 = vld [vmem:[%s2674_s29 + $0x650] sm:$0xff]  ;;  %647 = vst [vmem:[%s2679_s30 + $0x318] sm:$0xff] %v646_v35 }
  0x47   : > { %649 = vst [vmem:[%s2679_s30 + $0x320] sm:$0xff] %v648_v36  ;;  %651 = vst [vmem:[%s2679_s30 + $0x328] sm:$0xff] %v650_v37  ;;  %v652_v38 = vld [vmem:[%s2674_s29 + $0x660] sm:$0xff]  ;;  %v654_v39 = vld [vmem:[%s2674_s29 + $0x670] sm:$0xff] }
  0x48   : > { %v656_v40 = vld [vmem:[%s2674_s29 + $0x680] sm:$0xff]  ;;  %653 = vst [vmem:[%s2679_s30 + $0x330] sm:$0xff] %v652_v38  ;;  %655 = vst [vmem:[%s2679_s30 + $0x338] sm:$0xff] %v654_v39  ;;  %v658_v41 = vld [vmem:[%s2674_s29 + $0x690] sm:$0xff] }
  0x49   : > { %657 = vst [vmem:[%s2679_s30 + $0x340] sm:$0xff] %v656_v40  ;;  %v660_v42 = vld [vmem:[%s2674_s29 + $0x6a0] sm:$0xff]  ;;  %v662_v43 = vld [vmem:[%s2674_s29 + $0x6b0] sm:$0xff]  ;;  %659 = vst [vmem:[%s2679_s30 + $0x348] sm:$0xff] %v658_v41 }
  0x4a   : > { %661 = vst [vmem:[%s2679_s30 + $0x350] sm:$0xff] %v660_v42  ;;  %663 = vst [vmem:[%s2679_s30 + $0x358] sm:$0xff] %v662_v43  ;;  %v664_v44 = vld [vmem:[%s2674_s29 + $0x6c0] sm:$0xff]  ;;  %v666_v45 = vld [vmem:[%s2674_s29 + $0x6d0] sm:$0xff] }
  0x4b   : > { %v668_v46 = vld [vmem:[%s2674_s29 + $0x6e0] sm:$0xff]  ;;  %665 = vst [vmem:[%s2679_s30 + $0x360] sm:$0xff] %v664_v44  ;;  %667 = vst [vmem:[%s2679_s30 + $0x368] sm:$0xff] %v666_v45  ;;  %v670_v47 = vld [vmem:[%s2674_s29 + $0x6f0] sm:$0xff] }
  0x4c   : > { %669 = vst [vmem:[%s2679_s30 + $0x370] sm:$0xff] %v668_v46  ;;  %v672_v48 = vld [vmem:[%s2674_s29 + $0x700] sm:$0xff]  ;;  %v674_v49 = vld [vmem:[%s2674_s29 + $0x710] sm:$0xff]  ;;  %671 = vst [vmem:[%s2679_s30 + $0x378] sm:$0xff] %v670_v47 }
  0x4d   : > { %673 = vst [vmem:[%s2679_s30 + $0x380] sm:$0xff] %v672_v48  ;;  %675 = vst [vmem:[%s2679_s30 + $0x388] sm:$0xff] %v674_v49  ;;  %v676_v50 = vld [vmem:[%s2674_s29 + $0x720] sm:$0xff]  ;;  %v678_v51 = vld [vmem:[%s2674_s29 + $0x730] sm:$0xff] }
  0x4e   : > { %v680_v52 = vld [vmem:[%s2674_s29 + $0x740] sm:$0xff]  ;;  %677 = vst [vmem:[%s2679_s30 + $0x390] sm:$0xff] %v676_v50  ;;  %679 = vst [vmem:[%s2679_s30 + $0x398] sm:$0xff] %v678_v51  ;;  %v682_v53 = vld [vmem:[%s2674_s29 + $0x750] sm:$0xff] }
  0x4f   : > { %681 = vst [vmem:[%s2679_s30 + $0x3a0] sm:$0xff] %v680_v52  ;;  %v684_v54 = vld [vmem:[%s2674_s29 + $0x760] sm:$0xff]  ;;  %v686_v55 = vld [vmem:[%s2674_s29 + $0x770] sm:$0xff]  ;;  %683 = vst [vmem:[%s2679_s30 + $0x3a8] sm:$0xff] %v682_v53 }
  0x50   : > { %685 = vst [vmem:[%s2679_s30 + $0x3b0] sm:$0xff] %v684_v54  ;;  %687 = vst [vmem:[%s2679_s30 + $0x3b8] sm:$0xff] %v686_v55  ;;  %v688_v56 = vld [vmem:[%s2674_s29 + $0x780] sm:$0xff]  ;;  %v690_v57 = vld [vmem:[%s2674_s29 + $0x790] sm:$0xff] }
  0x51   : > { %v692_v58 = vld [vmem:[%s2674_s29 + $0x7a0] sm:$0xff]  ;;  %689 = vst [vmem:[%s2679_s30 + $0x3c0] sm:$0xff] %v688_v56  ;;  %691 = vst [vmem:[%s2679_s30 + $0x3c8] sm:$0xff] %v690_v57  ;;  %v694_v59 = vld [vmem:[%s2674_s29 + $0x7b0] sm:$0xff] }
  0x52   : > { %693 = vst [vmem:[%s2679_s30 + $0x3d0] sm:$0xff] %v692_v58  ;;  %v696_v60 = vld [vmem:[%s2674_s29 + $0x7c0] sm:$0xff]  ;;  %v698_v61 = vld [vmem:[%s2674_s29 + $0x7d0] sm:$0xff]  ;;  %695 = vst [vmem:[%s2679_s30 + $0x3d8] sm:$0xff] %v694_v59 }
  0x53   : > { %697 = vst [vmem:[%s2679_s30 + $0x3e0] sm:$0xff] %v696_v60  ;;  %699 = vst [vmem:[%s2679_s30 + $0x3e8] sm:$0xff] %v698_v61  ;;  %v700_v62 = vld [vmem:[%s2674_s29 + $0x7e0] sm:$0xff]  ;;  %v702_v63 = vld [vmem:[%s2674_s29 + $0x7f0] sm:$0xff] }
  0x54   : > { %701 = vst [vmem:[%s2679_s30 + $0x3f0] sm:$0xff] %v700_v62  ;;  %703 = vst [vmem:[%s2679_s30 + $0x3f8] sm:$0xff] %v702_v63 }
  0x55 PF: > { %p2174_p7 = scmp.ge.s32.totalorder %s2605_s17, 1  ;;  %p724_p8 = scmp.lt.s32.totalorder %s2605_s17, 3 }
  0x57   : > { %p725_p9 = pnand %p2174_p7, %p724_p8 }
  0x58   : > { %s731_s5 = sand.u32 (!%p725_p9), 1, %s2597_s15   ;;  %v2940_v0 = vld [vmem:[%s3236_s0] sm:$0xff] (!%p725_p9)  ;;  %v2950_v2 = vld [vmem:[%s3236_s0 + $0x10] sm:$0xff] (!%p725_p9) }
  0x59   : > { %728 = sbr.rel (%p725_p9) target bundleno = 521 (0x209), region = 70  ;;  %v2945_v1 = vld [vmem:[%s3236_s0 + $0x20] sm:$0xff] (!%p725_p9)  ;;  %s2175_s12 = sshll.u32 (!%p725_p9), %s731_s5, 10  ;;  %v2961_v5 = vld [vmem:[%s3236_s0 + $0x30] sm:$0xff] (!%p725_p9) }
  0x5a   : > { %v2179_v3 = vcombine.low (!%p725_p9), %v2940_v0, %v2945_v1  ;;  %v2180_v4 = vcombine.high (!%p725_p9), %v2940_v0, %v2945_v1  ;;  %v2183_v6 = vcombine.low (!%p725_p9), %v2950_v2, %v2961_v5  ;;  %v2184_v7 = vcombine.high (!%p725_p9), %v2950_v2, %v2961_v5  ;;  %s2967_s17 = scalar_lea.vmem (!%p725_p9), [#allocation2], %s2175_s12  ;;  %s2176_s9 = sshll.u32 (!%p725_p9), %s731_s5, 5 }
  0x5b   : > { %v2387_v8 = vld [vmem:[%s2967_s17 + $0x4] ss:$8 sps:$4 sm:$0xff] (!%p725_p9)   ;;  %v2391_v10 = vld [vmem:[%s2967_s17] ss:$8 sps:$4 sm:$0xff] (!%p725_p9)   ;;  %v2393_v12 = vld [vmem:[%s2967_s17 + $0x14] ss:$8 sps:$4 sm:$0xff] (!%p725_p9)  }
  0x5c   : > { %1671 = vmatprep.mubr.bf16.mxu1 (!%p725_p9), %v2180_v4  ;;  %v2389_v9 = vld [vmem:[%s2967_s17 + $0x204] ss:$8 sps:$4 sm:$0xff] (!%p725_p9)   ;;  %1777 = vmatprep.mubr.bf16.mxu0 (!%p725_p9), %v2184_v7  ;;  %v2392_v11 = vld [vmem:[%s2967_s17 + $0x200] ss:$8 sps:$4 sm:$0xff] (!%p725_p9)   ;;  %v2395_v13 = vld [vmem:[%s2967_s17 + $0x214] ss:$8 sps:$4 sm:$0xff] (!%p725_p9)  }
  0x5d   : > { %1639 = vmatprep.subr.bf16.mxu1 (!%p725_p9), %v2387_v8  ;;  %1745 = vmatprep.subr.bf16.mxu0 (!%p725_p9), %v2389_v9  ;;  %v2397_v14 = vld [vmem:[%s2967_s17 + $0x10] ss:$8 sps:$4 sm:$0xff] (!%p725_p9)   ;;  %v2399_v16 = vld [vmem:[%s2967_s17 + $0x24] ss:$8 sps:$4 sm:$0xff] (!%p725_p9)   ;;  %v2403_v18 = vld [vmem:[%s2967_s17 + $0x20] ss:$8 sps:$4 sm:$0xff] (!%p725_p9)  }
  0x5e   : > { %1640 = vmatpush1.bf16.msra.mxu1 (!%p725_p9), %v2391_v10  ;;  %1746 = vmatpush1.bf16.msra.mxu0 (!%p725_p9), %v2392_v11  ;;  %v2398_v15 = vld [vmem:[%s2967_s17 + $0x210] ss:$8 sps:$4 sm:$0xff] (!%p725_p9)   ;;  %v2401_v17 = vld [vmem:[%s2967_s17 + $0x224] ss:$8 sps:$4 sm:$0xff] (!%p725_p9)   ;;  %v2404_v19 = vld [vmem:[%s2967_s17 + $0x220] ss:$8 sps:$4 sm:$0xff] (!%p725_p9)  }
  0x5f   : > { %1641 = vmatprep.subr.bf16.mxu1 (!%p725_p9), %v2393_v12  ;;  %1747 = vmatprep.subr.bf16.mxu0 (!%p725_p9), %v2395_v13  ;;  %v2405_v20 = vld [vmem:[%s2967_s17 + $0x34] ss:$8 sps:$4 sm:$0xff] (!%p725_p9)   ;;  %v2409_v22 = vld [vmem:[%s2967_s17 + $0x30] ss:$8 sps:$4 sm:$0xff] (!%p725_p9)   ;;  %v2411_v24 = vld [vmem:[%s2967_s17 + $0x44] ss:$8 sps:$4 sm:$0xff] (!%p725_p9)  }
  0x60   : > { %v2407_v21 = vld [vmem:[%s2967_s17 + $0x234] ss:$8 sps:$4 sm:$0xff]   ;;  %v2410_v23 = vld [vmem:[%s2967_s17 + $0x230] ss:$8 sps:$4 sm:$0xff]   ;;  %v2413_v25 = vld [vmem:[%s2967_s17 + $0x244] ss:$8 sps:$4 sm:$0xff]  }
  0x61   : > { %v2415_v26 = vld [vmem:[%s2967_s17 + $0x40] ss:$8 sps:$4 sm:$0xff]   ;;  %v2417_v28 = vld [vmem:[%s2967_s17 + $0x54] ss:$8 sps:$4 sm:$0xff]   ;;  %v2421_v30 = vld [vmem:[%s2967_s17 + $0x50] ss:$8 sps:$4 sm:$0xff]  }
  0x62   : > { %1642 = vmatpush1.bf16.msra.mxu1 %v2397_v14  ;;  %1748 = vmatpush1.bf16.msra.mxu0 %v2398_v15  ;;  %v2416_v27 = vld [vmem:[%s2967_s17 + $0x240] ss:$8 sps:$4 sm:$0xff]   ;;  %v2419_v29 = vld [vmem:[%s2967_s17 + $0x254] ss:$8 sps:$4 sm:$0xff]   ;;  %v2422_v31 = vld [vmem:[%s2967_s17 + $0x250] ss:$8 sps:$4 sm:$0xff]  }
  0x63   : > { %1643 = vmatprep.subr.bf16.mxu1 %v2399_v16  ;;  %1749 = vmatprep.subr.bf16.mxu0 %v2401_v17  ;;  %v2423_v32 = vld [vmem:[%s2967_s17 + $0x64] ss:$8 sps:$4 sm:$0xff]   ;;  %v2427_v34 = vld [vmem:[%s2967_s17 + $0x60] ss:$8 sps:$4 sm:$0xff]   ;;  %v2429_v36 = vld [vmem:[%s2967_s17 + $0x74] ss:$8 sps:$4 sm:$0xff]  }
  0x64   : > { %v2425_v33 = vld [vmem:[%s2967_s17 + $0x264] ss:$8 sps:$4 sm:$0xff]   ;;  %v2428_v35 = vld [vmem:[%s2967_s17 + $0x260] ss:$8 sps:$4 sm:$0xff]   ;;  %v2431_v37 = vld [vmem:[%s2967_s17 + $0x274] ss:$8 sps:$4 sm:$0xff]  }
  0x65   : > { %v2433_v38 = vld [vmem:[%s2967_s17 + $0x70] ss:$8 sps:$4 sm:$0xff]   ;;  %v2435_v40 = vld [vmem:[%s2967_s17 + $0x84] ss:$8 sps:$4 sm:$0xff]   ;;  %v2439_v42 = vld [vmem:[%s2967_s17 + $0x80] ss:$8 sps:$4 sm:$0xff]  }
  0x66   : > { %1644 = vmatpush1.bf16.msra.mxu1 %v2403_v18  ;;  %1750 = vmatpush1.bf16.msra.mxu0 %v2404_v19  ;;  %v2434_v39 = vld [vmem:[%s2967_s17 + $0x270] ss:$8 sps:$4 sm:$0xff]   ;;  %v2437_v41 = vld [vmem:[%s2967_s17 + $0x284] ss:$8 sps:$4 sm:$0xff]   ;;  %v2440_v43 = vld [vmem:[%s2967_s17 + $0x280] ss:$8 sps:$4 sm:$0xff]  }
  0x67   : > { %1645 = vmatprep.subr.bf16.mxu1 %v2405_v20  ;;  %1751 = vmatprep.subr.bf16.mxu0 %v2407_v21  ;;  %v2441_v44 = vld [vmem:[%s2967_s17 + $0x94] ss:$8 sps:$4 sm:$0xff]   ;;  %v2445_v46 = vld [vmem:[%s2967_s17 + $0x90] ss:$8 sps:$4 sm:$0xff]   ;;  %v2447_v48 = vld [vmem:[%s2967_s17 + $0xa4] ss:$8 sps:$4 sm:$0xff]  }
  0x68   : > { %v2443_v45 = vld [vmem:[%s2967_s17 + $0x294] ss:$8 sps:$4 sm:$0xff]   ;;  %v2446_v47 = vld [vmem:[%s2967_s17 + $0x290] ss:$8 sps:$4 sm:$0xff]   ;;  %v2449_v49 = vld [vmem:[%s2967_s17 + $0x2a4] ss:$8 sps:$4 sm:$0xff]  }
  0x69   : > { %v2451_v50 = vld [vmem:[%s2967_s17 + $0xa0] ss:$8 sps:$4 sm:$0xff]   ;;  %v2453_v52 = vld [vmem:[%s2967_s17 + $0xb4] ss:$8 sps:$4 sm:$0xff]   ;;  %v2457_v54 = vld [vmem:[%s2967_s17 + $0xb0] ss:$8 sps:$4 sm:$0xff]  }
  0x6a   : > { %1646 = vmatpush1.bf16.msra.mxu1 %v2409_v22  ;;  %1752 = vmatpush1.bf16.msra.mxu0 %v2410_v23  ;;  %v2452_v51 = vld [vmem:[%s2967_s17 + $0x2a0] ss:$8 sps:$4 sm:$0xff]   ;;  %v2455_v53 = vld [vmem:[%s2967_s17 + $0x2b4] ss:$8 sps:$4 sm:$0xff]   ;;  %v2458_v55 = vld [vmem:[%s2967_s17 + $0x2b0] ss:$8 sps:$4 sm:$0xff]  }
  0x6b   : > { %1647 = vmatprep.subr.bf16.mxu1 %v2411_v24  ;;  %1753 = vmatprep.subr.bf16.mxu0 %v2413_v25  ;;  %v2459_v56 = vld [vmem:[%s2967_s17 + $0xc4] ss:$8 sps:$4 sm:$0xff]   ;;  %v2463_v58 = vld [vmem:[%s2967_s17 + $0xc0] ss:$8 sps:$4 sm:$0xff]   ;;  %v2465_v60 = vld [vmem:[%s2967_s17 + $0xd4] ss:$8 sps:$4 sm:$0xff]  }
  0x6c   : > { %v2461_v57 = vld [vmem:[%s2967_s17 + $0x2c4] ss:$8 sps:$4 sm:$0xff]   ;;  %v2464_v59 = vld [vmem:[%s2967_s17 + $0x2c0] ss:$8 sps:$4 sm:$0xff]   ;;  %v2467_v61 = vld [vmem:[%s2967_s17 + $0x2d4] ss:$8 sps:$4 sm:$0xff]  }
  0x6d   : > { %v2469_v62 = vld [vmem:[%s2967_s17 + $0xd0] ss:$8 sps:$4 sm:$0xff]   ;;  %v2471_v4 = vld [vmem:[%s2967_s17 + $0xe4] ss:$8 sps:$4 sm:$0xff]   ;;  %v2475_v8 = vld [vmem:[%s2967_s17 + $0xe0] ss:$8 sps:$4 sm:$0xff]  }
  0x6e   : > { %1648 = vmatpush1.bf16.msra.mxu1 %v2415_v26  ;;  %1754 = vmatpush1.bf16.msra.mxu0 %v2416_v27  ;;  %v2470_v63 = vld [vmem:[%s2967_s17 + $0x2d0] ss:$8 sps:$4 sm:$0xff]   ;;  %v2473_v7 = vld [vmem:[%s2967_s17 + $0x2e4] ss:$8 sps:$4 sm:$0xff]   ;;  %v2476_v9 = vld [vmem:[%s2967_s17 + $0x2e0] ss:$8 sps:$4 sm:$0xff]  }
  0x6f   : > { %1649 = vmatprep.subr.bf16.mxu1 %v2417_v28  ;;  %1755 = vmatprep.subr.bf16.mxu0 %v2419_v29  ;;  %v2477_v10 = vld [vmem:[%s2967_s17 + $0xf4] ss:$8 sps:$4 sm:$0xff]   ;;  %v2481_v12 = vld [vmem:[%s2967_s17 + $0xf0] ss:$8 sps:$4 sm:$0xff]   ;;  %v2485_v14 = vld [vmem:[%s2967_s17 + $0x104] ss:$8 sps:$4 sm:$0xff]  }
  0x70   : > { %v2479_v11 = vld [vmem:[%s2967_s17 + $0x2f4] ss:$8 sps:$4 sm:$0xff]   ;;  %v2482_v13 = vld [vmem:[%s2967_s17 + $0x2f0] ss:$8 sps:$4 sm:$0xff]   ;;  %v2488_v15 = vld [vmem:[%s2967_s17 + $0x304] ss:$8 sps:$4 sm:$0xff]  }
  0x71   : > { %v783_v16 = vld [vmem:[%s3236_s0 + $0x40] sm:$0xff]  ;;  %v785_v18 = vld [vmem:[%s3236_s0 + $0x50] sm:$0xff]  ;;  %s762_s15 = scalar_lea.vmem [#allocation3], %s2176_s9  ;;  %s2337_s5 = sshll.u32 (%p2664_p5), %s2649_s18, 3 }
  0x72   : > { %1650 = vmatpush1.bf16.msra.mxu1 %v2421_v30  ;;  %1756 = vmatpush1.bf16.msra.mxu0 %v2422_v31  ;;  %v787_v17 = vld [vmem:[%s3236_s0 + $0x60] sm:$0xff]  ;;  %v789_v19 = vld [vmem:[%s3236_s0 + $0x70] sm:$0xff]  ;;  %s2048_s12 = scalar_lea.vmem (%p2664_p5), %s3240_s4, %s2337_s5 }
  0x73   : > { %1651 = vmatprep.subr.bf16.mxu1 %v2423_v32  ;;  %1757 = vmatprep.subr.bf16.mxu0 %v2425_v33  ;;  %v2483_v20 = vld [vmem:[%s2967_s17 + $0x100] ss:$8 sps:$4 sm:$0xff]   ;;  %v2491_v22 = vld [vmem:[%s2967_s17 + $0x114] ss:$8 sps:$4 sm:$0xff]   ;;  %v2188_v24 = vcombine.high %v783_v16, %v787_v17  ;;  %v2192_v25 = vcombine.high %v785_v18, %v789_v19  ;;  %v2489_v26 = vld [vmem:[%s2967_s17 + $0x110] ss:$8 sps:$4 sm:$0xff]   ;;  %v2191_v2 = vcombine.low %v785_v18, %v789_v19 }
  0x74   : > { %v2486_v21 = vld [vmem:[%s2967_s17 + $0x300] ss:$8 sps:$4 sm:$0xff]   ;;  %v2494_v23 = vld [vmem:[%s2967_s17 + $0x314] ss:$8 sps:$4 sm:$0xff]   ;;  %v2492_v27 = vld [vmem:[%s2967_s17 + $0x310] ss:$8 sps:$4 sm:$0xff]  }
  0x75   : > { %v2497_v28 = vld [vmem:[%s2967_s17 + $0x124] ss:$8 sps:$4 sm:$0xff]   ;;  %v2495_v0 = vld [vmem:[%s2967_s17 + $0x120] ss:$8 sps:$4 sm:$0xff]   ;;  %v2503_v5 = vld [vmem:[%s2967_s17 + $0x134] ss:$8 sps:$4 sm:$0xff]  }
  0x76   : > { %1652 = vmatpush1.bf16.msra.mxu1 %v2427_v34  ;;  %1758 = vmatpush1.bf16.msra.mxu0 %v2428_v35  ;;  %v2500_v29 = vld [vmem:[%s2967_s17 + $0x324] ss:$8 sps:$4 sm:$0xff]   ;;  %v2498_v1 = vld [vmem:[%s2967_s17 + $0x320] ss:$8 sps:$4 sm:$0xff]   ;;  %v2501_v30 = vld [vmem:[%s2967_s17 + $0x130] ss:$8 sps:$4 sm:$0xff]  }
  0x77   : > { %1653 = vmatprep.subr.bf16.mxu1 %v2429_v36  ;;  %1759 = vmatprep.subr.bf16.mxu0 %v2431_v37  ;;  %v2504_v31 = vld [vmem:[%s2967_s17 + $0x330] ss:$8 sps:$4 sm:$0xff]   ;;  %v2509_v32 = vld [vmem:[%s2967_s17 + $0x144] ss:$8 sps:$4 sm:$0xff]   ;;  %v2507_v34 = vld [vmem:[%s2967_s17 + $0x140] ss:$8 sps:$4 sm:$0xff]  }
  0x78   : > { %v2512_v33 = vld [vmem:[%s2967_s17 + $0x344] ss:$8 sps:$4 sm:$0xff]   ;;  %v2510_v35 = vld [vmem:[%s2967_s17 + $0x340] ss:$8 sps:$4 sm:$0xff]   ;;  %v2515_v36 = vld [vmem:[%s2967_s17 + $0x154] ss:$8 sps:$4 sm:$0xff]  }
  0x79   : > { %v2518_v37 = vld [vmem:[%s2967_s17 + $0x354] ss:$8 sps:$4 sm:$0xff]   ;;  %v2561_v18 = vld [vmem:[%s2967_s17 + $0x1d0] ss:$8 sps:$4 sm:$0xff]  }
  0x7a   : > { %1654 = vmatpush1.bf16.msra.mxu1 %v2433_v38  ;;  %1760 = vmatpush1.bf16.msra.mxu0 %v2434_v39  ;;  %v3076_v38 = vld [vmem:[%s3236_s0 + $0x8] sm:$0xff]  ;;  %v2513_v39 = vld [vmem:[%s2967_s17 + $0x150] ss:$8 sps:$4 sm:$0xff]  }
  0x7b   : > { %1655 = vmatprep.subr.bf16.mxu1 %v2435_v40  ;;  %1761 = vmatprep.subr.bf16.mxu0 %v2437_v41  ;;  %v2516_v40 = vld [vmem:[%s2967_s17 + $0x350] ss:$8 sps:$4 sm:$0xff]   ;;  %v2521_v41 = vld [vmem:[%s2967_s17 + $0x164] ss:$8 sps:$4 sm:$0xff]  }
  0x7c   : > { %v2564_v19 = vld [vmem:[%s2967_s17 + $0x3d0] ss:$8 sps:$4 sm:$0xff]  }
  0x7e   : > { %1656 = vmatpush1.bf16.msra.mxu1 %v2439_v42  ;;  %1762 = vmatpush1.bf16.msra.mxu0 %v2440_v43  ;;  %v2524_v42 = vld [vmem:[%s2967_s17 + $0x364] ss:$8 sps:$4 sm:$0xff]  }
  0x7f   : > { %1657 = vmatprep.subr.bf16.mxu1 %v2441_v44  ;;  %1763 = vmatprep.subr.bf16.mxu0 %v2443_v45  ;;  %v3085_v43 = vld [vmem:[%s3236_s0 + $0x28] sm:$0xff]  ;;  %v3090_v44 = vld [vmem:[%s3236_s0 + $0x18] sm:$0xff] }
  0x80   : > { %v2182_v45 = vcombine.high %v3076_v38, %v3085_v43 }
  0x82   : > { %1658 = vmatpush1.bf16.msra.mxu1 %v2445_v46  ;;  %1764 = vmatpush1.bf16.msra.mxu0 %v2446_v47  ;;  %v3097_v46 = vld [vmem:[%s3236_s0 + $0x38] sm:$0xff] }
  0x83   : > { %1659 = vmatprep.subr.bf16.mxu1 %v2447_v48  ;;  %1765 = vmatprep.subr.bf16.mxu0 %v2449_v49  ;;  %v2186_v47 = vcombine.high %v3090_v44, %v3097_v46  ;;  %v2519_v48 = vld [vmem:[%s2967_s17 + $0x160] ss:$8 sps:$4 sm:$0xff]  }
  0x84   : > { %v2522_v49 = vld [vmem:[%s2967_s17 + $0x360] ss:$8 sps:$4 sm:$0xff]  }
  0x86   : > { %1660 = vmatpush1.bf16.msra.mxu1 %v2451_v50  ;;  %1766 = vmatpush1.bf16.msra.mxu0 %v2452_v51  ;;  %v2527_v50 = vld [vmem:[%s2967_s17 + $0x174] ss:$8 sps:$4 sm:$0xff]  }
  0x87   : > { %1661 = vmatprep.subr.bf16.mxu1 %v2453_v52  ;;  %1767 = vmatprep.subr.bf16.mxu0 %v2455_v53  ;;  %v2530_v51 = vld [vmem:[%s2967_s17 + $0x374] ss:$8 sps:$4 sm:$0xff]   ;;  %v2525_v52 = vld [vmem:[%s2967_s17 + $0x170] ss:$8 sps:$4 sm:$0xff]  }
  0x88   : > { %v2528_v53 = vld [vmem:[%s2967_s17 + $0x370] ss:$8 sps:$4 sm:$0xff]  }
  0x8a   : > { %1662 = vmatpush1.bf16.msra.mxu1 %v2457_v54  ;;  %1768 = vmatpush1.bf16.msra.mxu0 %v2458_v55  ;;  %v2533_v54 = vld [vmem:[%s2967_s17 + $0x184] ss:$8 sps:$4 sm:$0xff]  }
  0x8b   : > { %1663 = vmatprep.subr.bf16.mxu1 %v2459_v56  ;;  %1769 = vmatprep.subr.bf16.mxu0 %v2461_v57  ;;  %v2536_v55 = vld [vmem:[%s2967_s17 + $0x384] ss:$8 sps:$4 sm:$0xff]   ;;  %v2531_v56 = vld [vmem:[%s2967_s17 + $0x180] ss:$8 sps:$4 sm:$0xff]  }
  0x8c   : > { %v2534_v57 = vld [vmem:[%s2967_s17 + $0x380] ss:$8 sps:$4 sm:$0xff]  }
  0x8e   : > { %1664 = vmatpush1.bf16.msra.mxu1 %v2463_v58  ;;  %1770 = vmatpush1.bf16.msra.mxu0 %v2464_v59  ;;  %v2539_v58 = vld [vmem:[%s2967_s17 + $0x194] ss:$8 sps:$4 sm:$0xff]  }
  0x8f   : > { %1665 = vmatprep.subr.bf16.mxu1 %v2465_v60  ;;  %1771 = vmatprep.subr.bf16.mxu0 %v2467_v61  ;;  %v2542_v59 = vld [vmem:[%s2967_s17 + $0x394] ss:$8 sps:$4 sm:$0xff]   ;;  %v2537_v60 = vld [vmem:[%s2967_s17 + $0x190] ss:$8 sps:$4 sm:$0xff]  }
  0x90   : > { %v2540_v61 = vld [vmem:[%s2967_s17 + $0x390] ss:$8 sps:$4 sm:$0xff]  }
  0x92   : > { %1666 = vmatpush1.bf16.msra.mxu1 %v2469_v62  ;;  %1772 = vmatpush1.bf16.msra.mxu0 %v2470_v63  ;;  %v2545_v62 = vld [vmem:[%s2967_s17 + $0x1a4] ss:$8 sps:$4 sm:$0xff]  }
  0x93   : > { %1667 = vmatprep.subr.bf16.mxu1 %v2471_v4  ;;  %1773 = vmatprep.subr.bf16.mxu0 %v2473_v7  ;;  %v2548_v63 = vld [vmem:[%s2967_s17 + $0x3a4] ss:$8 sps:$4 sm:$0xff]   ;;  %v2543_v4 = vld [vmem:[%s2967_s17 + $0x1a0] ss:$8 sps:$4 sm:$0xff]  }
  0x94   : > { %v2546_v7 = vld [vmem:[%s2967_s17 + $0x3a0] ss:$8 sps:$4 sm:$0xff]  }
  0x96   : > { %1668 = vmatpush1.bf16.msra.mxu1 %v2475_v8  ;;  %1774 = vmatpush1.bf16.msra.mxu0 %v2476_v9  ;;  %v2551_v8 = vld [vmem:[%s2967_s17 + $0x1b4] ss:$8 sps:$4 sm:$0xff]  }
  0x97   : > { %1669 = vmatprep.subr.bf16.mxu1 %v2477_v10  ;;  %1775 = vmatprep.subr.bf16.mxu0 %v2479_v11  ;;  %v2554_v9 = vld [vmem:[%s2967_s17 + $0x3b4] ss:$8 sps:$4 sm:$0xff]   ;;  %v2549_v10 = vld [vmem:[%s2967_s17 + $0x1b0] ss:$8 sps:$4 sm:$0xff]  }
  0x98   : > { %v2552_v11 = vld [vmem:[%s2967_s17 + $0x3b0] ss:$8 sps:$4 sm:$0xff]  }
  0x9a   : > { %1670 = vmatpush1.bf16.msra.mxu1 %v2481_v12  ;;  %1776 = vmatpush1.bf16.msra.mxu0 %v2482_v13  ;;  %v2557_v12 = vld [vmem:[%s2967_s17 + $0x1c4] ss:$8 sps:$4 sm:$0xff]  }
  0x9b   : > { %1692 = vmatprep.subr.bf16.mxu1 %v2485_v14  ;;  %1798 = vmatprep.subr.bf16.mxu0 %v2488_v15  ;;  %v2560_v13 = vld [vmem:[%s2967_s17 + $0x3c4] ss:$8 sps:$4 sm:$0xff]   ;;  %v2555_v14 = vld [vmem:[%s2967_s17 + $0x1c0] ss:$8 sps:$4 sm:$0xff]  }
  0x9c   : > { %v2558_v15 = vld [vmem:[%s2967_s17 + $0x3c0] ss:$8 sps:$4 sm:$0xff]  }
  0x9d   : > { %1672 = vmatmul.mubr.bf16.vlgmr.msra.gmra.mrb[0].mxu1 %v2179_v3  ;;  %1778 = vmatmul.mubr.bf16.vlgmr.msra.gmra.mrb[0].mxu0 %v2183_v6  ;;  %v2187_v3 = vcombine.low %v783_v16, %v787_v17  ;;  %v2506_v6 = vld [vmem:[%s2967_s17 + $0x334] ss:$8 sps:$4 sm:$0xff]  }
  0x9e   : > { %1693 = vmatpush1.bf16.msra.mxu1 %v2483_v20  ;;  %1799 = vmatpush1.bf16.msra.mxu0 %v2486_v21  ;;  %v2563_v16 = vld [vmem:[%s2967_s17 + $0x1d4] ss:$8 sps:$4 sm:$0xff]   ;;  %v2569_v20 = vld [vmem:[%s2967_s17 + $0x1e4] ss:$8 sps:$4 sm:$0xff]  }
  0x9f   : > { %1694 = vmatprep.subr.bf16.mxu1 %v2491_v22  ;;  %1800 = vmatprep.subr.bf16.mxu0 %v2494_v23  ;;  %v2566_v17 = vld [vmem:[%s2967_s17 + $0x3d4] ss:$8 sps:$4 sm:$0xff]   ;;  %v2572_v21 = vld [vmem:[%s2967_s17 + $0x3e4] ss:$8 sps:$4 sm:$0xff]   ;;  %v2567_v22 = vld [vmem:[%s2967_s17 + $0x1e0] ss:$8 sps:$4 sm:$0xff]  }
  0xa0   : > { %1681 = vmatprep.mubr.bf16.mxu1 %v2188_v24  ;;  %1787 = vmatprep.mubr.bf16.mxu0 %v2192_v25  ;;  %v2570_v23 = vld [vmem:[%s2967_s17 + $0x3e0] ss:$8 sps:$4 sm:$0xff]   ;;  %v2575_v24 = vld [vmem:[%s2967_s17 + $0x1f4] ss:$8 sps:$4 sm:$0xff]  }
  0xa1   : > { %v2578_v25 = vld [vmem:[%s2967_s17 + $0x3f4] ss:$8 sps:$4 sm:$0xff]  }
  0xa2   : > { %1695 = vmatpush1.bf16.msra.mxu1 %v2489_v26  ;;  %1801 = vmatpush1.bf16.msra.mxu0 %v2492_v27  ;;  %v2573_v26 = vld [vmem:[%s2967_s17 + $0x1f0] ss:$8 sps:$4 sm:$0xff]  }
  0xa3   : > { %1696 = vmatprep.subr.bf16.mxu1 %v2497_v28  ;;  %1802 = vmatprep.subr.bf16.mxu0 %v2500_v29  ;;  %v2576_v27 = vld [vmem:[%s2967_s17 + $0x3f0] ss:$8 sps:$4 sm:$0xff]   ;;  %v784_v28 = vld [vmem:[%s3236_s0 + $0x48] sm:$0xff]  ;;  %s2177_s17 = sshll.u32 %s2649_s18, 1 }
  0xa4   : > { %v788_v29 = vld [vmem:[%s3236_s0 + $0x68] sm:$0xff]  ;;  %p765_p10 = scmp.lt.s32.totalorder %s2177_s17, 3 }
  0xa5   : > { %1682 = vmatmul.mubr.bf16.gmra.mrb[4].mxu1 %v2187_v3  ;;  %1788 = vmatmul.mubr.bf16.gmra.mrb[4].mxu0 %v2191_v2  ;;  %v2181_v3 = vcombine.low %v3076_v38, %v3085_v43  ;;  %v2185_v2 = vcombine.low %v3090_v44, %v3097_v46 }
  0xa6   : > { %1697 = vmatpush1.bf16.msra.mxu1 %v2495_v0  ;;  %1803 = vmatpush1.bf16.msra.mxu0 %v2498_v1  ;;  %v786_v0 = vld [vmem:[%s3236_s0 + $0x58] sm:$0xff]  ;;  %s3246_s17 = smov (!%p765_p10, %s2177_s17), 3 }
  0xa7   : > { %1698 = vmatprep.subr.bf16.mxu1 %v2503_v5  ;;  %1804 = vmatprep.subr.bf16.mxu0 %v2506_v6  ;;  %v790_v1 = vld [vmem:[%s3236_s0 + $0x78] sm:$0xff]  ;;  %v2190_v5 = vcombine.high %v784_v28, %v788_v29  ;;  %s767_s30 = scalar_lea.vmem %s3238_s2, %s3246_s17  ;;  %s772_s8 = scalar_lea.vmem %s3239_s3, %s3246_s17 }
  0xa8   : > { %1724 = vmatprep.mubr.bf16.mxu1 %v2182_v45  ;;  %1830 = vmatprep.mubr.bf16.mxu0 %v2186_v47  ;;  %v2194_v6 = vcombine.high %v786_v0, %v790_v1 }
  0xaa   : > { %1699 = vmatpush1.bf16.msra.mxu1 %v2501_v30  ;;  %1805 = vmatpush1.bf16.msra.mxu0 %v2504_v31  ;;  %v2189_v30 = vcombine.low %v784_v28, %v788_v29  ;;  %v2193_v31 = vcombine.low %v786_v0, %v790_v1 }
  0xab   : > { %1700 = vmatprep.subr.bf16.mxu1 %v2509_v32  ;;  %1806 = vmatprep.subr.bf16.mxu0 %v2512_v33 }
  0xae   : > { %1701 = vmatpush1.bf16.msra.mxu1 %v2507_v34  ;;  %1807 = vmatpush1.bf16.msra.mxu0 %v2510_v35 }
  0xaf   : > { %1702 = vmatprep.subr.bf16.mxu1 %v2515_v36  ;;  %1808 = vmatprep.subr.bf16.mxu0 %v2518_v37 }
  0xb2   : > { %1703 = vmatpush1.bf16.msra.mxu1 %v2513_v39  ;;  %1809 = vmatpush1.bf16.msra.mxu0 %v2516_v40 }
  0xb3   : > { %1704 = vmatprep.subr.bf16.mxu1 %v2521_v41  ;;  %1810 = vmatprep.subr.bf16.mxu0 %v2524_v42 }
  0xb6   : > { %1705 = vmatpush1.bf16.msra.mxu1 %v2519_v48  ;;  %1811 = vmatpush1.bf16.msra.mxu0 %v2522_v49 }
  0xb7   : > { %1706 = vmatprep.subr.bf16.mxu1 %v2527_v50  ;;  %1812 = vmatprep.subr.bf16.mxu0 %v2530_v51 }
  0xba   : > { %1707 = vmatpush1.bf16.msra.mxu1 %v2525_v52  ;;  %1813 = vmatpush1.bf16.msra.mxu0 %v2528_v53 }
  0xbb   : > { %1708 = vmatprep.subr.bf16.mxu1 %v2533_v54  ;;  %1814 = vmatprep.subr.bf16.mxu0 %v2536_v55 }
  0xbe   : > { %1709 = vmatpush1.bf16.msra.mxu1 %v2531_v56  ;;  %1815 = vmatpush1.bf16.msra.mxu0 %v2534_v57 }
  0xbf   : > { %1710 = vmatprep.subr.bf16.mxu1 %v2539_v58  ;;  %1816 = vmatprep.subr.bf16.mxu0 %v2542_v59 }
  0xc2   : > { %1711 = vmatpush1.bf16.msra.mxu1 %v2537_v60  ;;  %1817 = vmatpush1.bf16.msra.mxu0 %v2540_v61 }
  0xc3   : > { %1712 = vmatprep.subr.bf16.mxu1 %v2545_v62  ;;  %1818 = vmatprep.subr.bf16.mxu0 %v2548_v63 }
  0xc6   : > { %1713 = vmatpush1.bf16.msra.mxu1 %v2543_v4  ;;  %1819 = vmatpush1.bf16.msra.mxu0 %v2546_v7 }
  0xc7   : > { %1714 = vmatprep.subr.bf16.mxu1 %v2551_v8  ;;  %1820 = vmatprep.subr.bf16.mxu0 %v2554_v9 }
  0xca   : > { %1715 = vmatpush1.bf16.msra.mxu1 %v2549_v10  ;;  %1821 = vmatpush1.bf16.msra.mxu0 %v2552_v11 }
  0xcb   : > { %1716 = vmatprep.subr.bf16.mxu1 %v2557_v12  ;;  %1822 = vmatprep.subr.bf16.mxu0 %v2560_v13 }
  0xce   : > { %1717 = vmatpush1.bf16.msra.mxu1 %v2555_v14  ;;  %1823 = vmatpush1.bf16.msra.mxu0 %v2558_v15 }
  0xcf   : > { %1718 = vmatprep.subr.bf16.mxu1 %v2563_v16  ;;  %1824 = vmatprep.subr.bf16.mxu0 %v2566_v17 }
  0xd2   : > { %1719 = vmatpush1.bf16.msra.mxu1 %v2561_v18  ;;  %1825 = vmatpush1.bf16.msra.mxu0 %v2564_v19 }
  0xd3   : > { %1720 = vmatprep.subr.bf16.mxu1 %v2569_v20  ;;  %1826 = vmatprep.subr.bf16.mxu0 %v2572_v21 }
  0xd6   : > { %1721 = vmatpush1.bf16.msra.mxu1 %v2567_v22  ;;  %1827 = vmatpush1.bf16.msra.mxu0 %v2570_v23 }
  0xd7   : > { %1722 = vmatprep.subr.bf16.mxu1 %v2575_v24  ;;  %1828 = vmatprep.subr.bf16.mxu0 %v2578_v25 }
  0xda   : > { %1723 = vmatpush1.bf16.msra.mxu1 %v2573_v26  ;;  %1829 = vmatpush1.bf16.msra.mxu0 %v2576_v27 }
  0xdd   : > { %1725 = vmatmul.mubr.bf16.vlgmr.msra.gmra.mrb[0].mxu1 %v2181_v3  ;;  %1831 = vmatmul.mubr.bf16.vlgmr.msra.gmra.mrb[0].mxu0 %v2185_v2 }
  0xde   : > { %1734 = vmatprep.mubr.bf16.mxu1 %v2190_v5  ;;  %1840 = vmatprep.mubr.bf16.mxu0 %v2194_v6 }
  0xe5   : > { %1735 = vmatmul.mubr.bf16.gmra.mrb[4].mxu1 %v2189_v30  ;;  %1841 = vmatmul.mubr.bf16.gmra.mrb[4].mxu0 %v2193_v31 }
 0x1b0   : > { %v1726_v32 = vpop.f32.mrb[0].mxu1  ;;  %v1832_v33 = vpop.f32.mrb[0].mxu0 }
 0x1b1   : > { %v3155_v34 = vadd.f32 %v1832_v33, %v1726_v32  ;;  %v1728_v35 = vpop.f32.mrb[1].mxu1  ;;  %v1834_v36 = vpop.f32.mrb[1].mxu0 }
 0x1b2   : > { %v3157_v37 = vadd.f32 %v1834_v36, %v1728_v35  ;;  %v1730_v38 = vpop.f32.mrb[2].mxu1  ;;  %v1836_v39 = vpop.f32.mrb[2].mxu0 }
 0x1b3   : > { %v3159_v40 = vadd.f32 %v1836_v39, %v1730_v38  ;;  %v1732_v41 = vpop.f32.mrb[3].mxu1  ;;  %v1838_v42 = vpop.f32.mrb[3].mxu0  ;;  %v1869_v44 = vmul.f32 %v3155_v34, %v3155_v34 }
 0x1b4   : > { %v3161_v43 = vadd.f32 %v1838_v42, %v1732_v41  ;;  %v1870_v47 = vmul.f32 %v3157_v37, %v3157_v37 }
 0x1b5   : > { %v1851_v45 = vadd.f32 %v3159_v40, %v3155_v34  ;;  %v1871_v46 = vmul.f32 %v3159_v40, %v3159_v40 }
 0x1b6   : > { %v1860_v48 = vadd.f32 %v3161_v43, %v3157_v37  ;;  %v1872_v49 = vmul.f32 %v3161_v43, %v3161_v43 }
 0x1b7   : > { %v1877_v50 = vadd.f32 %v1871_v46, %v1869_v44 }
 0x1b8   : > { %v1886_v51 = vadd.f32 %v1872_v49, %v1870_v47  ;;  %v1736_v52 = vpop.f32.mrb[4].mxu1  ;;  %v1842_v53 = vpop.f32.mrb[4].mxu0 }
 0x1b9   : > { %v3175_v54 = vadd.f32 %v1842_v53, %v1736_v52  ;;  %v1738_v55 = vpop.f32.mrb[5].mxu1  ;;  %v1844_v56 = vpop.f32.mrb[5].mxu0  ;;  %v1914_v52 = vlaneseq }
 0x1ba   : > { %v3177_v57 = vadd.f32 %v1844_v56, %v1738_v55  ;;  %v1740_v58 = vpop.f32.mrb[6].mxu1  ;;  %v1846_v59 = vpop.f32.mrb[6].mxu0 }
 0x1bb   : > { %v1852_v60 = vadd.f32 %v3175_v54, %v1851_v45  ;;  %v1873_v61 = vmul.f32 %v3175_v54, %v3175_v54  ;;  %v3182_v62 = vadd.f32 %v1846_v59, %v1740_v58  ;;  %v1742_v63 = vpop.f32.mrb[7].mxu1  ;;  %v1848_v4 = vpop.f32.mrb[7].mxu0  ;;  %v1915_v55 = vshrl.u32 %v1914_v52, 7 }
 0x1bc   : > { %v1861_v7 = vadd.f32 %v3177_v57, %v1860_v48  ;;  %v1874_v8 = vmul.f32 %v3177_v57, %v3177_v57  ;;  %v3187_v9 = vadd.f32 %v1848_v4, %v1742_v63  ;;  %v1903_v63 = vld [vmem:[%s767_s30] sm:$0x3] }
 0x1bd   : > { %v1878_v10 = vadd.f32 %v1877_v50, %v1873_v61  ;;  %v1853_v11 = vadd.f32 %v3182_v62, %v1852_v60  ;;  %v1875_v12 = vmul.f32 %v3182_v62, %v3182_v62  ;;  %v2607_v50 = vmov 1966171168  }
 0x1be   : > { %v1887_v13 = vadd.f32 %v1886_v51, %v1874_v8  ;;  %v1862_v14 = vadd.f32 %v3187_v9, %v1861_v7  ;;  %v1876_v15 = vmul.f32 %v3187_v9, %v3187_v9  ;;  %v1912_v51 = vunpack.c.l.s4 %v2607_v50 }
 0x1bf   : > { %v1854_v16 = vrot.slane %v1853_v11, 4  ;;  %v1879_v17 = vadd.f32 %v1878_v10, %v1875_v12  ;;  %v1931_v7 = vsub.s32 0, %v1915_v55  ;;  %v1935_v8 = vsub.s32 1, %v1915_v55 }
 0x1c0   : > { %v1863_v18 = vrot.slane %v1862_v14, 4  ;;  %v1888_v19 = vadd.f32 %v1887_v13, %v1876_v15  ;;  %v1913_v53 = vunpack.c.0.s8 %v1912_v51 }
 0x1c1   : > { %v1855_v20 = vadd.f32 %v1854_v16, %v1853_v11  ;;  %v1880_v21 = vrot.slane %v1879_v17, 4 }
 0x1c2   : > { %v1864_v22 = vadd.f32 %v1863_v18, %v1862_v14  ;;  %v1889_v23 = vrot.slane %v1888_v19, 4  ;;  %v1916_v58 = vsub.s32 %v1913_v53, %v1915_v55 }
 0x1c3   : > { %v1856_v24 = vrot.slane %v1855_v20, 2  ;;  %v1881_v25 = vadd.f32 %v1880_v21, %v1879_v17 }
 0x1c4   : > { %v1865_v26 = vrot.slane %v1864_v22, 2  ;;  %v1890_v27 = vadd.f32 %v1889_v23, %v1888_v19 }
 0x1c5   : > { %v1857_v28 = vadd.f32 %v1856_v24, %v1855_v20  ;;  %v1882_v29 = vrot.slane %v1881_v25, 2  ;;  %v1927_v24 = vld [vmem:[%s772_s8] sm:$0x3] }
 0x1c6   : > { %v1866_v0 = vadd.f32 %v1865_v26, %v1864_v22  ;;  %v1891_v1 = vrot.slane %v1890_v27, 2 }
 0x1c7   : > { %v1858_v3 = vrot.slane %v1857_v28, 1  ;;  %v1883_v2 = vadd.f32 %v1882_v29, %v1881_v25 }
 0x1c8   : > { %v1867_v5 = vrot.slane %v1866_v0, 1  ;;  %v1892_v6 = vadd.f32 %v1891_v1, %v1890_v27 }
 0x1c9   : > { %v1859_v30 = vadd.f32 %v1858_v3, %v1857_v28  ;;  %v1884_v31 = vrot.slane %v1883_v2, 1 }
 0x1ca   : > { %v1868_v32 = vadd.f32 %v1867_v5, %v1866_v0  ;;  %v1893_v33 = vrot.slane %v1892_v6, 1 }
 0x1cb   : > { %v1885_v35 = vadd.f32 %v1884_v31, %v1883_v2  ;;  %v1895_v36 = vmul.f32 0.03125, %v1859_v30 }
 0x1cc   : > { %v1894_v38 = vadd.f32 %v1893_v33, %v1892_v6  ;;  %v1896_v39 = vmul.f32 0.03125, %v1868_v32 }
 0x1cd   : > { %v1897_v41 = vmul.f32 0.03125, %v1885_v35  ;;  %v1899_v42 = vmul.f32 %v1895_v36, %v1895_v36 }
 0x1ce   : > { %v1898_v44 = vmul.f32 0.03125, %v1894_v38  ;;  %v1900_v45 = vmul.f32 %v1896_v39, %v1896_v39 }
 0x1cf   : > { %v1901_v46 = vsub.f32 %v1897_v41, %v1899_v42 }
 0x1d0   : > { %v1902_v47 = vsub.f32 %v1898_v44, %v1900_v45 }
 0x1d1   : > { %v1904_v48 = vadd.f32 1e-05, %v1901_v46 }
 0x1d2   : > { %v1905_v49 = vadd.f32 1e-05, %v1902_v47 }
 0x1d3   : > { %2579 = vrsqrt.f32 %v1904_v48 }
 0x1d4   : > { %2581 = vrsqrt.f32 %v1905_v49 }
 0x1dd   : > { %v2580_v56 = vpop.eup %2579 }
 0x1de   : > { %v2582_v59 = vpop.eup %2581 }
 0x1df   : > { %v1910_v60 = vcombine.low %v2580_v56, %v2582_v59 }
 0x1e1   : > { %v1917_v61 = vrot.slane %v1910_v60, %v1916_v58 }
 0x1e3   : > { %v1924_v4 = vrot.slane %v1917_v61, %v1916_v58 }
 0x1e5   : > { %v1926_v10 = vmul.f32 %v1924_v4, %v1903_v63 }
 0x1e7   : > { %v1932_v11 = vrot.slane %v1926_v10, %v1931_v7  ;;  %v1936_v12 = vrot.slane %v1926_v10, %v1935_v8 }
 0x1e9   : > { %v1939_v13 = vmul.f32 %v1932_v11, %v1895_v36  ;;  %v1940_v14 = vmul.f32 %v1936_v12, %v1896_v39  ;;  %v1960_v15 = vmul.f32 %v3155_v34, %v1932_v11  ;;  %v1961_v16 = vmul.f32 %v3157_v37, %v1936_v12 }
 0x1ea   : > { %v1962_v17 = vmul.f32 %v3159_v40, %v1932_v11  ;;  %v1963_v18 = vmul.f32 %v3161_v43, %v1936_v12  ;;  %v1964_v19 = vmul.f32 %v3175_v54, %v1932_v11  ;;  %v1965_v20 = vmul.f32 %v3177_v57, %v1936_v12 }
 0x1eb   : > { %v1943_v21 = vcombine.low %v1939_v13, %v1940_v14  ;;  %v1966_v22 = vmul.f32 %v3182_v62, %v1932_v11  ;;  %v1967_v23 = vmul.f32 %v3187_v9, %v1936_v12 }
 0x1ed   : > { %v1950_v34 = vrot.slane %v1943_v21, %v1916_v58 }
 0x1ef   : > { %v1957_v37 = vrot.slane %v1950_v34, %v1916_v58 }
 0x1f1   : > { %v1959_v40 = vsub.f32 %v1927_v24, %v1957_v37 }
 0x1f3   : > { %v1972_v25 = vrot.slane %v1959_v40, %v1931_v7  ;;  %v1976_v43 = vrot.slane %v1959_v40, %v1935_v8 }
 0x1f5   : > { %v1979_v26 = vadd.f32 %v1972_v25, %v1960_v15  ;;  %v1980_v54 = vadd.f32 %v1976_v43, %v1961_v16  ;;  %v1981_v27 = vadd.f32 %v1972_v25, %v1962_v17  ;;  %v1982_v57 = vadd.f32 %v1976_v43, %v1963_v18 }
 0x1f6   : > { %v1983_v28 = vadd.f32 %v1972_v25, %v1964_v19  ;;  %v1984_v29 = vadd.f32 %v1976_v43, %v1965_v20  ;;  %v1985_v0 = vadd.f32 %v1972_v25, %v1966_v22  ;;  %v1986_v1 = vadd.f32 %v1976_v43, %v1967_v23 }
 0x1f7   : > { %vm1987_vm0 = vcmp.ge.f32.partialorder %v1979_v26, 0.0  ;;  %vm1988_vm1 = vcmp.ge.f32.partialorder %v1980_v54, 0.0  ;;  %vm1989_vm2 = vcmp.ge.f32.partialorder %v1981_v27, 0.0  ;;  %vm1990_vm3 = vcmp.ge.f32.partialorder %v1982_v57, 0.0 }
 0x1f8   : > { %vm1991_vm4 = vcmp.ge.f32.partialorder %v1983_v28, 0.0  ;;  %vm1992_vm5 = vcmp.ge.f32.partialorder %v1984_v29, 0.0  ;;  %vm1993_vm6 = vcmp.ge.f32.partialorder %v1985_v0, 0.0  ;;  %vm1994_vm7 = vcmp.ge.f32.partialorder %v1986_v1, 0.0 }
 0x1f9   : > { %v1995_v62 = vmul.f32 0.2, %v1979_v26  ;;  %v1996_v9 = vmul.f32 0.2, %v1980_v54  ;;  %v1997_v3 = vmul.f32 0.2, %v1981_v27 }
 0x1fa   : > { %v1998_v2 = vmul.f32 0.2, %v1982_v57  ;;  %v1999_v5 = vmul.f32 0.2, %v1983_v28  ;;  %v2000_v6 = vmul.f32 0.2, %v1984_v29 }
 0x1fb   : > { %v2001_v30 = vmul.f32 0.2, %v1985_v0  ;;  %v2002_v31 = vmul.f32 0.2, %v1986_v1  ;;  %v2003_v32 = vsel %vm1987_vm0, %v1979_v26, %v1995_v62  ;;  %v2004_v33 = vsel %vm1988_vm1, %v1980_v54, %v1996_v9  ;;  %2045 = sbr.rel (!%p2664_p5) target bundleno = 521 (0x209), region = 78 }
 0x1fc   : > { %v2005_v35 = vsel %vm1989_vm2, %v1981_v27, %v1997_v3  ;;  %v2006_v36 = vsel %vm1990_vm3, %v1982_v57, %v1998_v2  ;;  %v2007_v38 = vsel %vm1991_vm4, %v1983_v28, %v1999_v5  ;;  %v2008_v39 = vsel %vm1992_vm5, %v1984_v29, %v2000_v6 }
 0x1fd   : > { %v2009_v41 = vsel %vm1993_vm6, %v1985_v0, %v2001_v30  ;;  %v2010_v42 = vsel %vm1994_vm7, %v1986_v1, %v2002_v31  ;;  %v2333_v44 = vpack.c.bf16 %v2004_v33, %v2003_v32  ;;  %v2334_v45 = vpack.c.bf16 %v2006_v36, %v2005_v35 }
 0x1fe   : > { %v2335_v46 = vpack.c.bf16 %v2008_v39, %v2007_v38  ;;  %v2336_v47 = vpack.c.bf16 %v2010_v42, %v2009_v41 }
 0x1ff   : > { %2035 = vst [vmem:[%s762_s15] sm:$0xff] %v2333_v44  ;;  %2036 = vst [vmem:[%s762_s15 + $0x8] sm:$0xff] %v2334_v45 }
 0x200   : > { %2037 = vst [vmem:[%s762_s15 + $0x10] sm:$0xff] %v2335_v46  ;;  %2038 = vst [vmem:[%s762_s15 + $0x18] sm:$0xff] %v2336_v47 }
 0x206   : > { %v2082_v48 = vld [vmem:[%s762_s15] sm:$0xff]  ;;  %v2084_v49 = vld [vmem:[%s762_s15 + $0x8] sm:$0xff] }
 0x207   : > { %v2086_v50 = vld [vmem:[%s762_s15 + $0x10] sm:$0xff]  ;;  %v2088_v51 = vld [vmem:[%s762_s15 + $0x18] sm:$0xff]  ;;  %2083 = vst [vmem:[%s2048_s12] sm:$0xff] %v2082_v48  ;;  %2085 = vst [vmem:[%s2048_s12 + $0x10] sm:$0xff] %v2084_v49 }
 0x208   : > { %2087 = vst [vmem:[%s2048_s12 + $0x20] sm:$0xff] %v2086_v50  ;;  %2089 = vst [vmem:[%s2048_s12 + $0x30] sm:$0xff] %v2088_v51 }
 0x209 PF: > { %p11_p11 = scmp.ge.s32.totalorder %s2652_s19, 4   ;;  %s3242_s15 = smov %s2601_s16 }
 0x20a   : > { %s3243_s16 = smov %s2662_s22  ;;  %s3244_s17 = smov %s2652_s19 }
 0x20b   :  { %13 = sbr.rel (!%p11_p11) target bundleno = 2 (0x2), region = 153 }

// kernel: discriminator_forward.9
= control target key start
LH: loop header
LB: loop body
LE: loop exit
PB: predicated region body
PF: predicated region fallthrough
CT: control target
= control target key end

     0   :  { %v75_v0 = vlaneseq  ;;  %v1508_v10 = vmov 1983009808   ;;  %vm1371_vm0 = vcmask 1041408   ;;  %vm1501_vm1 = vcmask 1024   ;;  %s2489_s1 = inlined_call_operand.vmem [shape: bf16[1,8192], index: 1, kind: input, shape index: {}]   ;;  %s2490_s0 = inlined_call_operand.vmem [shape: bf16[2,8192], index: 0, kind: input, shape index: {}]   ;;  %s2491_s2 = inlined_call_operand.vmem [shape: f32[2,1], index: 2, kind: output, shape index: {}]  }
   0x1   :  { %v39_v1 = vld [vmem:[%s2489_s1 + $0x20] sm:$0xff]  ;;  %v40_v2 = vld [vmem:[%s2489_s1 + $0x28] sm:$0xff]  ;;  %v41_v4 = vld [vmem:[%s2489_s1 + $0x30] sm:$0xff]  ;;  %v1546_v11 = vunpack.c.l.s4 %v1508_v10 }
   0x2   :  { %v1530_v3 = vshrl.u32 %v75_v0, 7  ;;  %v42_v5 = vld [vmem:[%s2489_s1 + $0x38] sm:$0xff]  ;;  %v1538_v6 = vunpack.c.l.bf16 %v39_v1  ;;  %v1540_v7 = vunpack.c.h.bf16 %v39_v1  ;;  %v1542_v8 = vunpack.c.l.bf16 %v40_v2  ;;  %v1627_v48 = vld [vmem:[%s2490_s0] sm:$0xff]  ;;  %v1632_v49 = vld [vmem:[%s2490_s0 + $0x8] sm:$0xff] }
   0x3   :  { %v1544_v9 = vunpack.c.h.bf16 %v40_v2  ;;  %v1560_v16 = vunpack.c.l.bf16 %v41_v4  ;;  %v1562_v17 = vunpack.c.h.bf16 %v41_v4  ;;  %v1564_v18 = vunpack.c.l.bf16 %v42_v5  ;;  %2512 = vst [vmem:[#allocation4_spill] sm:$0xff] %v1627_v48  ;;  %2513 = vst [vmem:[#allocation5_spill] sm:$0xff] %v1632_v49  ;;  %v1645_v54 = vld [vmem:[%s2490_s0 + $0x20] sm:$0xff]  ;;  %v1653_v56 = vld [vmem:[%s2490_s0 + $0x28] sm:$0xff] }
   0x4   :  { %v1549_v12 = vsub.s32 0, %v1530_v3  ;;  %v1552_v13 = vsub.s32 2, %v1530_v3  ;;  %v1555_v14 = vsub.s32 4, %v1530_v3  ;;  %v1558_v15 = vsub.s32 6, %v1530_v3  ;;  %v35_v55 = vld [vmem:[%s2489_s1] sm:$0xff]  ;;  %v1658_v57 = vld [vmem:[%s2490_s0 + $0x30] sm:$0xff] }
   0x5   :  { %v1566_v19 = vunpack.c.h.bf16 %v42_v5  ;;  %2514 = vst [vmem:[#allocation6_spill] sm:$0xff] %v1658_v57  ;;  %v1663_v58 = vld [vmem:[%s2490_s0 + $0x38] sm:$0xff]  ;;  %v36_v0 = vld [vmem:[%s2489_s1 + $0x8] sm:$0xff]  ;;  %v37_v1 = vld [vmem:[%s2489_s1 + $0x10] sm:$0xff]  ;;  %v1676_v2 = vunpack.c.l.bf16 %v35_v55  ;;  %v719_v4 = vunpack.c.0.s8 %v1546_v11  ;;  %v1691_v11 = vunpack.c.h.bf16 %v35_v55 }
   0x6   :  { %2510 = vst [vmem:[#allocation2_spill] sm:$0xff] %v1552_v13  ;;  %2511 = vst [vmem:[#allocation3_spill] sm:$0xff] %v1555_v14  ;;  %v206_v20 = vrot.slane %v1538_v6, %v1549_v12  ;;  %v210_v21 = vrot.slane %v1538_v6, %v1552_v13  ;;  %v214_v22 = vrot.slane %v1538_v6, %v1555_v14  ;;  %v1686_v60 = vld [vmem:[%s2489_s1 + $0x18] sm:$0xff]  ;;  %v1693_v5 = vunpack.c.l.bf16 %v36_v0 }
   0x7   :  { %v218_v23 = vrot.slane %v1538_v6, %v1558_v15  ;;  %v222_v24 = vrot.slane %v1540_v7, %v1549_v12  ;;  %v226_v25 = vrot.slane %v1540_v7, %v1552_v13  ;;  %v230_v26 = vrot.slane %v1540_v7, %v1555_v14  ;;  %2515 = vst [vmem:[#allocation7_spill] sm:$0xff] %v1663_v58 }
   0x8   :  { %v234_v27 = vrot.slane %v1540_v7, %v1558_v15  ;;  %v238_v28 = vrot.slane %v1542_v8, %v1549_v12  ;;  %v242_v29 = vrot.slane %v1542_v8, %v1552_v13  ;;  %v246_v30 = vrot.slane %v1542_v8, %v1555_v14  ;;  %2516 = vst [vmem:[#allocation8_spill] sm:$0xff] %v1686_v60 }
   0x9   :  { %v250_v31 = vrot.slane %v1542_v8, %v1558_v15  ;;  %v254_v32 = vrot.slane %v1544_v9, %v1549_v12  ;;  %v258_v33 = vrot.slane %v1544_v9, %v1552_v13  ;;  %v262_v34 = vrot.slane %v1544_v9, %v1555_v14 }
   0xa   :  { %v266_v35 = vrot.slane %v1544_v9, %v1558_v15  ;;  %v270_v36 = vrot.slane %v1560_v16, %v1549_v12  ;;  %v274_v37 = vrot.slane %v1560_v16, %v1552_v13  ;;  %v278_v38 = vrot.slane %v1560_v16, %v1555_v14 }
   0xb   :  { %v282_v39 = vrot.slane %v1560_v16, %v1558_v15  ;;  %v286_v40 = vrot.slane %v1562_v17, %v1549_v12  ;;  %v290_v41 = vrot.slane %v1562_v17, %v1552_v13  ;;  %v294_v42 = vrot.slane %v1562_v17, %v1555_v14 }
   0xc   :  { %v298_v43 = vrot.slane %v1562_v17, %v1558_v15  ;;  %v302_v44 = vrot.slane %v1564_v18, %v1549_v12  ;;  %v306_v45 = vrot.slane %v1564_v18, %v1552_v13  ;;  %v310_v46 = vrot.slane %v1564_v18, %v1555_v14 }
   0xd   :  { %v314_v47 = vrot.slane %v1564_v18, %v1558_v15  ;;  %v318_v50 = vrot.slane %v1566_v19, %v1549_v12  ;;  %v322_v51 = vrot.slane %v1566_v19, %v1552_v13  ;;  %v1695_v10 = vunpack.c.h.bf16 %v36_v0 }
   0xe   :  { %v1697_v62 = vunpack.c.l.bf16 %v37_v1  ;;  %v1699_v61 = vunpack.c.h.bf16 %v37_v1  ;;  %v1702_v52 = vunpack.c.l.bf16 %v1686_v60  ;;  %v78_v59 = vrot.slane %v1676_v2, %v1549_v12 }
   0xf   :  { %v82_v63 = vrot.slane %v1676_v2, %v1552_v13  ;;  %v1709_v55 = vsub.s32 %v719_v4, %v1530_v3  ;;  %v1715_v0 = vrot.slane %v206_v20, %v1549_v12  ;;  %v1721_v1 = vrot.slane %v210_v21, %v1549_v12 }
  0x10   :  { %2517 = vst [vmem:[#allocation9_spill] sm:$0xff] %v1699_v61  ;;  %2518 = vst [vmem:[#allocation10_spill] sm:$0xff] %v1702_v52  ;;  %v1727_v53 = vrot.slane %v214_v22, %v1549_v12  ;;  %v1733_v3 = vrot.slane %v218_v23, %v1549_v12  ;;  %v1739_v20 = vrot.slane %v222_v24, %v1549_v12 }
  0x11   :  { %2519 = vst [vmem:[#allocation11_spill] sm:$0xff] %v1709_v55  ;;  %v1745_v21 = vrot.slane %v226_v25, %v1549_v12  ;;  %v1751_v22 = vrot.slane %v230_v26, %v1549_v12  ;;  %v1757_v6 = vrot.slane %v234_v27, %v1549_v12  ;;  %v1763_v23 = vrot.slane %v238_v28, %v1549_v12 }
  0x12   :  { %v1769_v24 = vrot.slane %v242_v29, %v1549_v12  ;;  %v1775_v25 = vrot.slane %v246_v30, %v1549_v12  ;;  %v1781_v7 = vrot.slane %v250_v31, %v1549_v12  ;;  %v1787_v26 = vrot.slane %v254_v32, %v1549_v12 }
  0x13   :  { %v1793_v27 = vrot.slane %v258_v33, %v1549_v12  ;;  %v1799_v28 = vrot.slane %v262_v34, %v1549_v12  ;;  %v1805_v8 = vrot.slane %v266_v35, %v1549_v12  ;;  %v1811_v29 = vrot.slane %v270_v36, %v1549_v12 }
  0x14   :  { %v1817_v30 = vrot.slane %v274_v37, %v1549_v12  ;;  %v1823_v31 = vrot.slane %v278_v38, %v1549_v12  ;;  %v1829_v9 = vrot.slane %v282_v39, %v1549_v12  ;;  %v1835_v32 = vrot.slane %v286_v40, %v1549_v12 }
  0x15   :  { %v1841_v33 = vrot.slane %v290_v41, %v1549_v12  ;;  %v1847_v34 = vrot.slane %v294_v42, %v1549_v12  ;;  %v1853_v16 = vrot.slane %v298_v43, %v1549_v12  ;;  %v1859_v35 = vrot.slane %v302_v44, %v1549_v12 }
  0x16   :  { %v1865_v36 = vrot.slane %v306_v45, %v1549_v12  ;;  %v1871_v37 = vrot.slane %v310_v46, %v1549_v12  ;;  %v1877_v17 = vrot.slane %v314_v47, %v1549_v12  ;;  %v1883_v38 = vrot.slane %v318_v50, %v1549_v12 }
  0x17   :  { %v1889_v39 = vrot.slane %v322_v51, %v1549_v12  ;;  %v2520_v40 = vrot.slane %v1566_v19, %v1555_v14  ;;  %v2521_v18 = vrot.slane %v1566_v19, %v1558_v15  ;;  %v86_v43 = vrot.slane %v1676_v2, %v1555_v14 }
  0x18   :  { %v90_v44 = vrot.slane %v1676_v2, %v1558_v15  ;;  %v94_v45 = vrot.slane %v1691_v11, %v1549_v12  ;;  %v98_v46 = vrot.slane %v1691_v11, %v1552_v13  ;;  %v102_v47 = vrot.slane %v1691_v11, %v1555_v14 }
  0x19   :  { %v1895_v41 = vrot.slane %v2520_v40, %v1549_v12  ;;  %v1901_v42 = vrot.slane %v2521_v18, %v1549_v12  ;;  %v106_v19 = vrot.slane %v1691_v11, %v1558_v15  ;;  %v110_v50 = vrot.slane %v1693_v5, %v1549_v12 }
  0x1a   :  { %v114_v51 = vrot.slane %v1693_v5, %v1552_v13  ;;  %v118_v2 = vrot.slane %v1693_v5, %v1555_v14  ;;  %v122_v4 = vrot.slane %v1693_v5, %v1558_v15  ;;  %v126_v40 = vrot.slane %v1695_v10, %v1549_v12 }
  0x1b   :  { %v130_v18 = vrot.slane %v1695_v10, %v1552_v13  ;;  %v134_v11 = vrot.slane %v1695_v10, %v1555_v14  ;;  %v138_v49 = vrot.slane %v1695_v10, %v1558_v15  ;;  %v142_v48 = vrot.slane %v1697_v62, %v1549_v12 }
  0x1c   :  { %v146_v60 = vrot.slane %v1697_v62, %v1552_v13  ;;  %v150_v5 = vrot.slane %v1697_v62, %v1555_v14  ;;  %v154_v52 = vrot.slane %v1697_v62, %v1558_v15  ;;  %v1940_v61 = vrot.slane %v78_v59, %v1549_v12 }
  0x1d   :  { %v1943_v58 = vrot.slane %v82_v63, %v1549_v12  ;;  %v1946_v10 = vrot.slane %v86_v43, %v1549_v12  ;;  %v1949_v57 = vrot.slane %v90_v44, %v1549_v12  ;;  %v1952_v13 = vrot.slane %v94_v45, %v1549_v12 }
  0x1e   :  { %v1955_v14 = vrot.slane %v98_v46, %v1549_v12  ;;  %v1958_v62 = vrot.slane %v102_v47, %v1549_v12  ;;  %v1961_v59 = vrot.slane %v106_v19, %v1549_v12  ;;  %v1964_v63 = vrot.slane %v110_v50, %v1549_v12 }
  0x1f   :  { %v1967_v43 = vrot.slane %v114_v51, %v1549_v12  ;;  %v1970_v44 = vrot.slane %v118_v2, %v1549_v12  ;;  %v1973_v45 = vrot.slane %v122_v4, %v1549_v12  ;;  %v1976_v46 = vrot.slane %v126_v40, %v1549_v12 }
  0x20   :  { %v1979_v47 = vrot.slane %v130_v18, %v1549_v12  ;;  %v1982_v19 = vrot.slane %v134_v11, %v1549_v12  ;;  %v1985_v50 = vrot.slane %v138_v49, %v1549_v12  ;;  %v1988_v51 = vrot.slane %v142_v48, %v1549_v12 }
  0x21   :  { %v851_v2 = vcombine.low %v1715_v0, %v1721_v1  ;;  %v1993_v4 = vrot.slane %v146_v60, %v1549_v12  ;;  %v1996_v40 = vrot.slane %v150_v5, %v1549_v12  ;;  %v1999_v18 = vrot.slane %v154_v52, %v1549_v12 }
  0x22   :  { %v852_v11 = vcombine.low %v1727_v53, %v1733_v3  ;;  %v715_v49 = vcombine.low %v1940_v61, %v1943_v58  ;;  %v868_v0 = vcombine.low %v1739_v20, %v1745_v21  ;;  %v869_v60 = vcombine.low %v1751_v22, %v1757_v6 }
  0x23   :  { %v859_v48 = vrot.slane %v851_v2, %v1709_v55  ;;  %v716_v1 = vcombine.low %v1946_v10, %v1949_v57  ;;  %v885_v5 = vcombine.low %v1763_v23, %v1769_v24  ;;  %v886_v53 = vcombine.low %v1775_v25, %v1781_v7 }
  0x24   :  { %v866_v52 = vrot.slane %v852_v11, %v1709_v55  ;;  %v876_v58 = vrot.slane %v868_v0, %v1709_v55  ;;  %v883_v61 = vrot.slane %v869_v60, %v1709_v55  ;;  %v902_v3 = vcombine.low %v1787_v26, %v1793_v27 }
  0x25   :  { %v903_v20 = vcombine.low %v1799_v28, %v1805_v8  ;;  %v893_v57 = vrot.slane %v885_v5, %v1709_v55  ;;  %v900_v22 = vrot.slane %v886_v53, %v1709_v55  ;;  %v919_v6 = vcombine.low %v1811_v29, %v1817_v30  ;;  %v2529_v5 = vld [vmem:[#allocation7_spill] sm:$0xff] }
  0x26   :  { %v867_v21 = vcombine.low %v859_v48, %v866_v52  ;;  %v884_v23 = vcombine.low %v876_v58, %v883_v61  ;;  %v910_v24 = vrot.slane %v902_v3, %v1709_v55  ;;  %v920_v7 = vcombine.low %v1823_v31, %v1829_v9 }
  0x27   :  { %v917_v25 = vrot.slane %v903_v20, %v1709_v55  ;;  %v901_v26 = vcombine.low %v893_v57, %v900_v22  ;;  %v927_v27 = vrot.slane %v919_v6, %v1709_v55  ;;  %v936_v28 = vcombine.low %v1835_v32, %v1841_v33  ;;  %v2533_v20 = vld [vmem:[#allocation2_spill] sm:$0xff]  ;;  %v2534_v6 = vld [vmem:[#allocation3_spill] sm:$0xff] }
  0x28   :  { %v937_v8 = vcombine.low %v1847_v34, %v1853_v16  ;;  %v934_v29 = vrot.slane %v920_v7, %v1709_v55  ;;  %v953_v30 = vcombine.low %v1859_v35, %v1865_v36  ;;  %v954_v2 = vcombine.low %v1871_v37, %v1877_v17 }
  0x29   :  { %v918_v10 = vcombine.low %v910_v24, %v917_v25  ;;  %v944_v31 = vrot.slane %v936_v28, %v1709_v55  ;;  %v970_v11 = vcombine.low %v1883_v38, %v1889_v39  ;;  %v971_v32 = vcombine.low %v1895_v41, %v1901_v42 }
  0x2a   :  { %v951_v9 = vrot.slane %v937_v8, %v1709_v55  ;;  %v732_v33 = vcombine.low %v1952_v13, %v1955_v14  ;;  %v935_v34 = vcombine.low %v927_v27, %v934_v29  ;;  %v961_v16 = vrot.slane %v953_v30, %v1709_v55  ;;  %v2114_v29 = vld [vmem:[%s2490_s0 + $0x10] sm:$0xff] }
  0x2b   :  { %v968_v35 = vrot.slane %v954_v2, %v1709_v55  ;;  %v733_v36 = vcombine.low %v1958_v62, %v1961_v59  ;;  %v978_v17 = vrot.slane %v970_v11, %v1709_v55  ;;  %v985_v48 = vrot.slane %v971_v32, %v1709_v55 }
  0x2c   :  { %v952_v37 = vcombine.low %v944_v31, %v951_v9  ;;  %v749_v38 = vcombine.low %v1964_v63, %v1967_v43  ;;  %v750_v39 = vcombine.low %v1970_v44, %v1973_v45  ;;  %v766_v13 = vcombine.low %v1976_v46, %v1979_v47 }
  0x2d   :  { %v969_v14 = vcombine.low %v961_v16, %v968_v35  ;;  %v723_v41 = vrot.slane %v715_v49, %v1709_v55  ;;  %v730_v42 = vrot.slane %v716_v1, %v1709_v55  ;;  %v767_v62 = vcombine.low %v1982_v19, %v1985_v50  ;;  %v2526_v49 = vld [vmem:[#allocation6_spill] sm:$0xff]  ;;  %v2536_v35 = vld [vmem:[#allocation8_spill] sm:$0xff] }
  0x2e   :  { %v986_v59 = vcombine.low %v978_v17, %v985_v48  ;;  %v2522_v0 = vunpack.c.l.bf16 %v1645_v54  ;;  %v2523_v63 = vunpack.c.h.bf16 %v1645_v54  ;;  %v2524_v44 = vunpack.c.l.bf16 %v1653_v56 }
  0x2f   :  { %v2525_v46 = vunpack.c.h.bf16 %v1653_v56  ;;  %v2527_v52 = vunpack.c.l.bf16 %v2526_v49  ;;  %v2528_v19 = vunpack.c.h.bf16 %v2526_v49  ;;  %v2530_v53 = vunpack.c.l.bf16 %v2529_v5  ;;  %v2532_v56 = vld [vmem:[#allocation9_spill] sm:$0xff] }
  0x30   :  { %v1011_v60 = vmul.f32 %v867_v21, %v2522_v0  ;;  %v1012_v43 = vmul.f32 %v884_v23, %v2523_v63  ;;  %v1013_v45 = vmul.f32 %v901_v26, %v2524_v44  ;;  %v2531_v54 = vunpack.c.h.bf16 %v2529_v5  ;;  %v2535_v26 = vld [vmem:[#allocation10_spill] sm:$0xff] }
  0x31   :  { %v2073_v47 = vmul.f32 %v918_v10, %v2525_v46  ;;  %v2077_v1 = vmul.f32 %v935_v34, %v2527_v52  ;;  %v2081_v50 = vmul.f32 %v952_v37, %v2528_v19  ;;  %v2085_v58 = vmul.f32 %v969_v14, %v2530_v53  ;;  %v2541_v19 = vld [vmem:[#allocation5_spill] sm:$0xff] }
  0x32   :  { %v2089_v61 = vmul.f32 %v986_v59, %v2531_v54  ;;  %v158_v3 = vrot.slane %v2532_v56, %v1549_v12  ;;  %v162_v21 = vrot.slane %v2532_v56, %v2533_v20  ;;  %v740_v57 = vrot.slane %v732_v33, %v1709_v55 }
  0x33   :  { %v747_v22 = vrot.slane %v733_v36, %v1709_v55  ;;  %v166_v23 = vrot.slane %v2532_v56, %v2534_v6  ;;  %v170_v24 = vrot.slane %v2532_v56, %v1558_v15  ;;  %v783_v25 = vcombine.low %v1988_v51, %v1993_v4 }
  0x34   :  { %v784_v7 = vcombine.low %v1996_v40, %v1999_v18  ;;  %v174_v27 = vrot.slane %v2535_v26, %v1549_v12  ;;  %v178_v28 = vrot.slane %v2535_v26, %v2533_v20  ;;  %v757_v8 = vrot.slane %v749_v38, %v1709_v55 }
  0x35   :  { %v764_v10 = vrot.slane %v750_v39, %v1709_v55  ;;  %v182_v51 = vrot.slane %v2535_v26, %v2534_v6  ;;  %v731_v4 = vcombine.low %v723_v41, %v730_v42  ;;  %v774_v40 = vrot.slane %v766_v13, %v1709_v55  ;;  %v2537_v13 = vld [vmem:[#allocation4_spill] sm:$0xff] }
  0x36   :  { %v781_v18 = vrot.slane %v767_v62, %v1709_v55  ;;  %v186_v30 = vrot.slane %v2535_v26, %v1558_v15  ;;  %v478_v2 = vrot.slane %v158_v3, %v1549_v12  ;;  %v482_v31 = vrot.slane %v162_v21, %v1549_v12 }
  0x37   :  { %v748_v9 = vcombine.low %v740_v57, %v747_v22  ;;  %v486_v11 = vrot.slane %v166_v23, %v1549_v12  ;;  %v490_v32 = vrot.slane %v170_v24, %v1549_v12  ;;  %v791_v33 = vrot.slane %v783_v25, %v1709_v55 }
  0x38   :  { %v798_v34 = vrot.slane %v784_v7, %v1709_v55  ;;  %v23_v16 = vunpack.c.l.bf16 %v2114_v29  ;;  %v2130_v36 = vunpack.c.h.bf16 %v2536_v35  ;;  %v2133_v37 = vrot.slane %v174_v27, %v1549_v12 }
  0x39   :  { %v765_v17 = vcombine.low %v757_v8, %v764_v10  ;;  %v2136_v48 = vrot.slane %v178_v28, %v1549_v12  ;;  %v2139_v38 = vrot.slane %v182_v51, %v1549_v12  ;;  %v782_v39 = vcombine.low %v774_v40, %v781_v18 }
  0x3a   :  { %v2538_v14 = vunpack.c.l.bf16 %v2537_v13  ;;  %v2144_v42 = vrot.slane %v186_v30, %v1549_v12  ;;  %v800_v62 = vcombine.low %v478_v2, %v482_v31  ;;  %v2539_v59 = vunpack.c.h.bf16 %v2537_v13 }
  0x3b   :  { %v1171_v63 = vcombine.high %v1011_v60, %v1011_v60  ;;  %v799_v44 = vcombine.low %v791_v33, %v798_v34  ;;  %v801_v46 = vcombine.low %v486_v11, %v490_v32  ;;  %v2149_v52 = vrot.slane %v1011_v60, %v1709_v55 }
  0x3c   :  { %v1003_v41 = vmul.f32 %v731_v4, %v2538_v14  ;;  %v1004_v0 = vmul.f32 %v748_v9, %v2539_v59  ;;  %v2542_v5 = vunpack.c.l.bf16 %v2541_v19  ;;  %v1188_v56 = vcombine.high %v1012_v43, %v1012_v43 }
  0x3d   :  { %2540 = vst [vmem:[#allocation6_spill] sm:$0xff] %v2149_v52  ;;  %v2154_v54 = vrot.slane %v1171_v63, %v1709_v55  ;;  %v2157_v3 = vrot.slane %v1012_v43, %v1709_v55  ;;  %v2543_v21 = vunpack.c.h.bf16 %v2541_v19  ;;  %v1205_v23 = vcombine.high %v1013_v45, %v1013_v45 }
  0x3e   :  { %v1035_v49 = vcombine.high %v1003_v41, %v1003_v41  ;;  %v1005_v53 = vmul.f32 %v765_v17, %v2542_v5  ;;  %v1042_v22 = vrot.slane %v1003_v41, %v1709_v55  ;;  %v2163_v24 = vrot.slane %v1013_v45, %v1709_v55 }
  0x3f   :  { %v1006_v57 = vmul.f32 %v782_v39, %v2543_v21  ;;  %v1052_v60 = vcombine.high %v1004_v0, %v1004_v0  ;;  %v1059_v25 = vrot.slane %v1004_v0, %v1709_v55  ;;  %v2167_v7 = vrot.slane %v1188_v56, %v1709_v55 }
  0x40   :  { %v1222_v26 = vcombine.high %v2073_v47, %v2073_v47  ;;  %v1049_v43 = vrot.slane %v1035_v49, %v1709_v55  ;;  %v2173_v27 = vrot.slane %v1205_v23, %v1709_v55  ;;  %v2177_v28 = vrot.slane %v2073_v47, %v1709_v55 }
  0x41   :  { %v1239_v45 = vcombine.high %v2077_v1, %v2077_v1  ;;  %v1069_v8 = vcombine.high %v1005_v53, %v1005_v53  ;;  %v2186_v51 = vrot.slane %v2077_v1, %v1709_v55  ;;  %v1256_v4 = vcombine.high %v2081_v50, %v2081_v50 }
  0x42   :  { %v2182_v10 = vrot.slane %v1222_v26, %v1709_v55  ;;  %v1050_v40 = vcombine.high %v1042_v22, %v1042_v22  ;;  %v1076_v18 = vrot.slane %v1005_v53, %v1709_v55  ;;  %v2196_v30 = vrot.slane %v2081_v50, %v1709_v55 }
  0x43   :  { %v2192_v47 = vrot.slane %v1239_v45, %v1709_v55  ;;  %v1086_v2 = vcombine.high %v1006_v57, %v1006_v57  ;;  %v2199_v31 = vrot.slane %v1006_v57, %v1709_v55  ;;  %v2202_v1 = vrot.slane %v1256_v4, %v1709_v55 }
  0x44   :  { %v1273_v9 = vcombine.high %v2085_v58, %v2085_v58  ;;  %v1051_v11 = vcombine.high %v1049_v43, %v1049_v43  ;;  %v1066_v32 = vrot.slane %v1052_v60, %v1709_v55  ;;  %v2209_v33 = vrot.slane %v2085_v58, %v1709_v55 }
  0x45   :  { %v1290_v50 = vcombine.high %v2089_v61, %v2089_v61  ;;  %v1083_v34 = vrot.slane %v1069_v8, %v1709_v55  ;;  %v2219_v17 = vrot.slane %v2089_v61, %v1709_v55  ;;  %v1372_v39 = vsel %vm1371_vm0, %v1042_v22, 0.0 }
  0x46   :  { %v2215_v35 = vrot.slane %v1273_v9, %v1709_v55  ;;  %v2223_v13 = vrot.slane %v800_v62, %v1709_v55  ;;  %v1373_v14 = vsel %vm1371_vm0, %v1050_v40, 0.0  ;;  %v1375_v41 = vsel %vm1371_vm0, %v1049_v43, 0.0 }
  0x47   :  { %v2226_v58 = vrot.slane %v1290_v50, %v1709_v55  ;;  %v2231_v59 = vrot.slane %v801_v46, %v1709_v55  ;;  %v2233_v0 = vmul.f32 %v799_v44, %v23_v16  ;;  %v1067_v63 = vcombine.high %v1059_v25, %v1059_v25 }
  0x48   :  { %v1374_v61 = vadd.f32 %v1373_v14, %v1372_v39  ;;  %v1084_v49 = vcombine.high %v1076_v18, %v1076_v18  ;;  %v2236_v19 = vrot.slane %v1086_v2, %v1709_v55  ;;  %v1377_v5 = vsel %vm1371_vm0, %v1051_v11, 0.0 }
  0x49   :  { %v1068_v53 = vcombine.high %v1066_v32, %v1066_v32  ;;  %v1085_v56 = vcombine.high %v1083_v34, %v1083_v34  ;;  %v1186_v21 = vcombine.high %v2149_v52, %v2149_v52  ;;  %v1187_v16 = vcombine.high %v2154_v54, %v2154_v54 }
  0x4a   :  { %v1376_v46 = vadd.f32 %v1375_v41, %v1374_v61  ;;  %v1203_v44 = vcombine.high %v2157_v3, %v2157_v3  ;;  %v1220_v57 = vcombine.high %v2163_v24, %v2163_v24  ;;  %v1379_v22 = vsel %vm1371_vm0, %v1059_v25, 0.0 }
  0x4b   :  { %v1204_v23 = vcombine.high %v2167_v7, %v2167_v7  ;;  %v1221_v60 = vcombine.high %v2173_v27, %v2173_v27  ;;  %v1237_v26 = vcombine.high %v2177_v28, %v2177_v28  ;;  %v1238_v45 = vcombine.high %v2182_v10, %v2182_v10 }
  0x4c   :  { %v1378_v43 = vadd.f32 %v1377_v5, %v1376_v46  ;;  %v1254_v8 = vcombine.high %v2186_v51, %v2186_v51  ;;  %v1255_v4 = vcombine.high %v2192_v47, %v2192_v47  ;;  %v1381_v25 = vsel %vm1371_vm0, %v1067_v63, 0.0 }
  0x4d   :  { %v1271_v40 = vcombine.high %v2196_v30, %v2196_v30  ;;  %v1272_v2 = vcombine.high %v2202_v1, %v2202_v1  ;;  %v1288_v9 = vcombine.high %v2209_v33, %v2209_v33  ;;  %v1289_v50 = vcombine.high %v2215_v35, %v2215_v35 }
  0x4e   :  { %v1380_v11 = vadd.f32 %v1379_v22, %v1378_v43  ;;  %v1305_v39 = vcombine.high %v2219_v17, %v2219_v17  ;;  %v1306_v14 = vcombine.high %v2226_v58, %v2226_v58  ;;  %v1383_v41 = vsel %vm1371_vm0, %v1066_v32, 0.0 }
  0x4f   :  { %v1385_v61 = vsel %vm1371_vm0, %v1068_v53, 0.0  ;;  %v1387_v5 = vsel %vm1371_vm0, %v1076_v18, 0.0  ;;  %v1389_v46 = vsel %vm1371_vm0, %v1084_v49, 0.0  ;;  %v1391_v22 = vsel %vm1371_vm0, %v1083_v34, 0.0 }
  0x50   :  { %v1382_v63 = vadd.f32 %v1381_v25, %v1380_v11  ;;  %v1393_v43 = vsel %vm1371_vm0, %v1085_v56, 0.0  ;;  %v2282_v62 = vsel %vm1371_vm0, %v1186_v21, 0.0  ;;  %v2286_v52 = vsel %vm1371_vm0, %v2154_v54, 0.0 }
  0x51   :  { %v2289_v32 = vsel %vm1371_vm0, %v1187_v16, 0.0  ;;  %v2293_v18 = vsel %vm1371_vm0, %v2157_v3, 0.0  ;;  %v2296_v49 = vsel %vm1371_vm0, %v1203_v44, 0.0  ;;  %v2300_v34 = vsel %vm1371_vm0, %v2167_v7, 0.0 }
  0x52   :  { %v1384_v55 = vadd.f32 %v1383_v41, %v1382_v63  ;;  %v2303_v53 = vsel %vm1371_vm0, %v1204_v23, 0.0  ;;  %v2307_v54 = vsel %vm1371_vm0, %v2163_v24, 0.0  ;;  %v2310_v56 = vsel %vm1371_vm0, %v1220_v57, 0.0 }
  0x53   :  { %v2314_v3 = vsel %vm1371_vm0, %v2173_v27, 0.0  ;;  %v2317_v16 = vsel %vm1371_vm0, %v1221_v60, 0.0  ;;  %v2321_v7 = vsel %vm1371_vm0, %v2177_v28, 0.0  ;;  %v2324_v44 = vsel %vm1371_vm0, %v1237_v26, 0.0 }
  0x54   :  { %v1386_v21 = vadd.f32 %v1385_v61, %v1384_v55  ;;  %v2328_v24 = vsel %vm1371_vm0, %v2182_v10, 0.0  ;;  %v2331_v55 = vsel %vm1371_vm0, %v1238_v45, 0.0  ;;  %v2335_v27 = vsel %vm1371_vm0, %v2186_v51, 0.0 }
  0x55   :  { %v2338_v23 = vsel %vm1371_vm0, %v1254_v8, 0.0  ;;  %v2342_v28 = vsel %vm1371_vm0, %v2192_v47, 0.0  ;;  %v2345_v60 = vsel %vm1371_vm0, %v1255_v4, 0.0  ;;  %v2349_v10 = vsel %vm1371_vm0, %v2196_v30, 0.0 }
  0x56   :  { %v1388_v57 = vadd.f32 %v1387_v5, %v1386_v21  ;;  %v2352_v26 = vsel %vm1371_vm0, %v1271_v40, 0.0  ;;  %v2356_v51 = vsel %vm1371_vm0, %v2202_v1, 0.0  ;;  %v2359_v45 = vsel %vm1371_vm0, %v1272_v2, 0.0  ;;  %v14_v5 = vld [vmem:[%s2490_s0 + $0x18] sm:$0xff] }
  0x57   :  { %v2363_v47 = vsel %vm1371_vm0, %v2209_v33, 0.0  ;;  %v2366_v4 = vsel %vm1371_vm0, %v1288_v9, 0.0  ;;  %v2370_v30 = vsel %vm1371_vm0, %v2215_v35, 0.0  ;;  %v2373_v25 = vsel %vm1371_vm0, %v1289_v50, 0.0 }
  0x58   :  { %v1390_v8 = vadd.f32 %v1389_v46, %v1388_v57  ;;  %v2377_v1 = vsel %vm1371_vm0, %v2219_v17, 0.0  ;;  %v2380_v40 = vsel %vm1371_vm0, %v1305_v39, 0.0  ;;  %v2384_v33 = vsel %vm1371_vm0, %v2226_v58, 0.0 }
  0x59   :  { %v24_v2 = vunpack.c.h.bf16 %v2114_v29  ;;  %v190_v35 = vrot.slane %v2130_v36, %v1549_v12  ;;  %v2390_v11 = vsel %vm1371_vm0, %v1306_v14, 0.0  ;;  %v194_v17 = vrot.slane %v2130_v36, %v2533_v20 }
  0x5a   :  { %v1392_v9 = vadd.f32 %v1391_v22, %v1390_v8  ;;  %v198_v50 = vrot.slane %v2130_v36, %v2534_v6  ;;  %v202_v39 = vrot.slane %v2130_v36, %v1558_v15  ;;  %v1395_v58 = vsel %vm1371_vm0, %v2199_v31, 0.0  ;;  %v2544_v15 = vld [vmem:[#allocation11_spill] sm:$0xff] }
  0x5b   :  { %v816_v29 = vcombine.low %v2223_v13, %v2231_v59  ;;  %v817_v41 = vcombine.low %v2133_v37, %v2136_v48  ;;  %v818_v14 = vcombine.low %v2139_v38, %v2144_v42  ;;  %v1102_v20 = vcombine.high %v2236_v19, %v2236_v19 }
  0x5c   :  { %v1394_v63 = vadd.f32 %v1393_v43, %v1392_v9  ;;  %v1103_v6 = vcombine.high %v2233_v0, %v2233_v0  ;;  %v1110_v36 = vrot.slane %v2233_v0, %v2544_v15  ;;  %v2545_v61 = vcombine.high %v2199_v31, %v2199_v31 }
  0x5d   :  { %v510_v37 = vrot.slane %v190_v35, %v1549_v12  ;;  %v514_v48 = vrot.slane %v194_v17, %v1549_v12  ;;  %v518_v38 = vrot.slane %v198_v50, %v1549_v12  ;;  %v1399_v42 = vsel %vm1371_vm0, %v2236_v19, 0.0 }
  0x5e   :  { %v1397_v13 = vsel %vm1371_vm0, %v2545_v61, 0.0  ;;  %v1396_v59 = vadd.f32 %v1395_v58, %v1394_v63  ;;  %v522_v0 = vrot.slane %v202_v39, %v1549_v12  ;;  %v825_v31 = vrot.slane %v817_v41, %v2544_v15 }
  0x5f   :  { %v832_v46 = vrot.slane %v818_v14, %v2544_v15  ;;  %v1008_v43 = vmul.f32 %v816_v29, %v24_v2  ;;  %v1117_v21 = vrot.slane %v1103_v6, %v2544_v15  ;;  %v1118_v57 = vcombine.high %v1110_v36, %v1110_v36 }
  0x60   :  { %v1398_v22 = vadd.f32 %v1397_v13, %v1396_v59  ;;  %v1401_v8 = vsel %vm1371_vm0, %v1102_v20, 0.0  ;;  %v25_v9 = vunpack.c.l.bf16 %v14_v5  ;;  %v1403_v19 = vsel %vm1371_vm0, %v1110_v36, 0.0 }
  0x61   :  { %v833_v17 = vcombine.low %v825_v31, %v832_v46  ;;  %v834_v50 = vcombine.low %v510_v37, %v514_v48  ;;  %v835_v58 = vcombine.low %v518_v38, %v522_v0  ;;  %v1119_v12 = vcombine.high %v1117_v21, %v1117_v21 }
  0x62   :  { %v1400_v35 = vadd.f32 %v1399_v42, %v1398_v22  ;;  %v1120_v39 = vcombine.high %v1008_v43, %v1008_v43  ;;  %v1127_v41 = vrot.slane %v1008_v43, %v2544_v15  ;;  %v1405_v14 = vsel %vm1371_vm0, %v1118_v57, 0.0 }
  0x63   :  { %v1407_v29 = vsel %vm1371_vm0, %v1117_v21, 0.0  ;;  %v842_v6 = vrot.slane %v834_v50, %v2544_v15  ;;  %v849_v20 = vrot.slane %v835_v58, %v2544_v15  ;;  %v1009_v13 = vmul.f32 %v833_v17, %v25_v9 }
  0x64   :  { %v1402_v63 = vadd.f32 %v1401_v8, %v1400_v35  ;;  %v1134_v36 = vrot.slane %v1120_v39, %v2544_v15  ;;  %v1135_v59 = vcombine.high %v1127_v41, %v1127_v41  ;;  %v1409_v37 = vsel %vm1371_vm0, %v1119_v12, 0.0 }
  0x65   :  { %v1411_v38 = vsel %vm1371_vm0, %v1127_v41, 0.0  ;;  %v26_v42 = vunpack.c.h.bf16 %v14_v5  ;;  %v850_v0 = vcombine.low %v842_v6, %v849_v20  ;;  %v1137_v22 = vcombine.high %v1009_v13, %v1009_v13 }
  0x66   :  { %v1404_v2 = vadd.f32 %v1403_v19, %v1402_v63  ;;  %v1136_v46 = vcombine.high %v1134_v36, %v1134_v36  ;;  %v1144_v43 = vrot.slane %v1009_v13, %v2544_v15  ;;  %v1413_v21 = vsel %vm1371_vm0, %v1135_v59, 0.0 }
  0x67   :  { %v1415_v8 = vsel %vm1371_vm0, %v1134_v36, 0.0  ;;  %v1010_v9 = vmul.f32 %v850_v0, %v26_v42  ;;  %v1151_v19 = vrot.slane %v1137_v22, %v2544_v15 }
  0x68   :  { %v1406_v61 = vadd.f32 %v1405_v14, %v1404_v2  ;;  %v1152_v17 = vcombine.high %v1144_v43, %v1144_v43  ;;  %v1417_v50 = vsel %vm1371_vm0, %v1136_v46, 0.0  ;;  %v1419_v5 = vsel %vm1371_vm0, %v1144_v43, 0.0  ;;  %v2546_v43 = vld [vmem:[#allocation6_spill] sm:$0xff] }
  0x69   :  { %v1153_v12 = vcombine.high %v1151_v19, %v1151_v19  ;;  %v1154_v39 = vcombine.high %v1010_v9, %v1010_v9  ;;  %v1161_v41 = vrot.slane %v1010_v9, %v2544_v15 }
  0x6a   :  { %v1408_v48 = vadd.f32 %v1407_v29, %v1406_v61  ;;  %v1421_v14 = vsel %vm1371_vm0, %v1152_v17, 0.0  ;;  %v1423_v29 = vsel %vm1371_vm0, %v1151_v19, 0.0 }
  0x6b   :  { %v1168_v20 = vrot.slane %v1154_v39, %v2544_v15  ;;  %v1169_v61 = vcombine.high %v1161_v41, %v1161_v41  ;;  %v1425_v13 = vsel %vm1371_vm0, %v1153_v12, 0.0  ;;  %v1427_v59 = vsel %vm1371_vm0, %v1161_v41, 0.0 }
  0x6c   :  { %v1410_v31 = vadd.f32 %v1409_v37, %v1408_v48  ;;  %v1435_v15 = vsel %vm1371_vm0, %v2546_v43, 0.0 }
  0x6d   :  { %v1170_v48 = vcombine.high %v1168_v20, %v1168_v20  ;;  %v1431_v0 = vsel %vm1371_vm0, %v1168_v20, 0.0 }
  0x6e   :  { %v1412_v57 = vadd.f32 %v1411_v38, %v1410_v31  ;;  %v1429_v38 = vsel %vm1371_vm0, %v1169_v61, 0.0 }
  0x6f   :  { %v1433_v46 = vsel %vm1371_vm0, %v1170_v48, 0.0 }
  0x70   :  { %v1414_v35 = vadd.f32 %v1413_v21, %v1412_v57 }
  0x72   :  { %v1416_v58 = vadd.f32 %v1415_v8, %v1414_v35 }
  0x74   :  { %v1418_v63 = vadd.f32 %v1417_v50, %v1416_v58 }
  0x76   :  { %v1420_v2 = vadd.f32 %v1419_v5, %v1418_v63 }
  0x78   :  { %v1422_v6 = vadd.f32 %v1421_v14, %v1420_v2 }
  0x7a   :  { %v1424_v36 = vadd.f32 %v1423_v29, %v1422_v6 }
  0x7c   :  { %v1426_v37 = vadd.f32 %v1425_v13, %v1424_v36 }
  0x7e   :  { %v1428_v42 = vadd.f32 %v1427_v59, %v1426_v37 }
  0x80   :  { %v1430_v31 = vadd.f32 %v1429_v38, %v1428_v42 }
  0x82   :  { %v1432_v22 = vadd.f32 %v1431_v0, %v1430_v31 }
  0x84   :  { %v1434_v21 = vadd.f32 %v1433_v46, %v1432_v22 }
  0x86   :  { %v1436_v57 = vadd.f32 %v1435_v15, %v1434_v21 }
  0x88   :  { %v1438_v8 = vadd.f32 %v2282_v62, %v1436_v57 }
  0x8a   :  { %v1440_v35 = vadd.f32 %v2286_v52, %v1438_v8 }
  0x8c   :  { %v1442_v9 = vadd.f32 %v2289_v32, %v1440_v35 }
  0x8e   :  { %v1444_v19 = vadd.f32 %v2293_v18, %v1442_v9 }
  0x90   :  { %v1446_v17 = vadd.f32 %v2296_v49, %v1444_v19 }
  0x92   :  { %v1448_v50 = vadd.f32 %v2300_v34, %v1446_v17 }
  0x94   :  { %v1450_v58 = vadd.f32 %v2303_v53, %v1448_v50 }
  0x96   :  { %v1452_v5 = vadd.f32 %v2307_v54, %v1450_v58 }
  0x98   :  { %v1454_v63 = vadd.f32 %v2310_v56, %v1452_v5 }
  0x9a   :  { %v1456_v12 = vadd.f32 %v2314_v3, %v1454_v63 }
  0x9c   :  { %v1458_v62 = vadd.f32 %v2317_v16, %v1456_v12 }
  0x9e   :  { %v1460_v52 = vadd.f32 %v2321_v7, %v1458_v62 }
  0xa0   :  { %v1462_v32 = vadd.f32 %v2324_v44, %v1460_v52 }
  0xa2   :  { %v1464_v18 = vadd.f32 %v2328_v24, %v1462_v32 }
  0xa4   :  { %v1466_v49 = vadd.f32 %v2331_v55, %v1464_v18 }
  0xa6   :  { %v1468_v34 = vadd.f32 %v2335_v27, %v1466_v49 }
  0xa8   :  { %v1470_v53 = vadd.f32 %v2338_v23, %v1468_v34 }
  0xaa   :  { %v1472_v54 = vadd.f32 %v2342_v28, %v1470_v53 }
  0xac   :  { %v1474_v56 = vadd.f32 %v2345_v60, %v1472_v54 }
  0xae   :  { %v1476_v3 = vadd.f32 %v2349_v10, %v1474_v56 }
  0xb0   :  { %v1478_v16 = vadd.f32 %v2352_v26, %v1476_v3 }
  0xb2   :  { %v1480_v7 = vadd.f32 %v2356_v51, %v1478_v16 }
  0xb4   :  { %v1482_v44 = vadd.f32 %v2359_v45, %v1480_v7 }
  0xb6   :  { %v1484_v24 = vadd.f32 %v2363_v47, %v1482_v44 }
  0xb8   :  { %v1486_v55 = vadd.f32 %v2366_v4, %v1484_v24 }
  0xba   :  { %v1488_v27 = vadd.f32 %v2370_v30, %v1486_v55 }
  0xbc   :  { %v1490_v23 = vadd.f32 %v2373_v25, %v1488_v27 }
  0xbe   :  { %v1492_v28 = vadd.f32 %v2377_v1, %v1490_v23 }
  0xc0   :  { %v1494_v60 = vadd.f32 %v2380_v40, %v1492_v28 }
  0xc2   :  { %v1496_v10 = vadd.f32 %v2384_v33, %v1494_v60 }
  0xc4   :  { %v1498_v26 = vadd.f32 %v2390_v11, %v1496_v10 }
  0xc6   :  { %1499 = vadd.xlane.f32.xlu0 %v1498_v26 }
 0x153   :  { %v1500_v51 = vpop.xlane.xlu0 %1499 }
 0x154   :  { %1502 = vst.msk [vmem:[%s2491_s2] sm:$0x3] %vm1501_vm1, %v1500_v51 }

</bundles_post_ra>
